<compile_context>
chip_gen: v7x
topology: tpu7x:2x2x1
jax: 0.10.0
libtpu: 0.0.40
codegen_flags: <defaults>
</compile_context>

<pallas_src>
import functools

import jax
import jax.numpy as jnp
from jax.experimental import pallas as pl
from jax.experimental.pallas import tpu as pltpu


_NEG = float(jnp.finfo(jnp.float32).min)   # pad value: never wins a max


def _round_up(x, m):
    return (x + m - 1) // m * m


# ----------------------------------------------------------------------------
# Fused SPP kernel
# ----------------------------------------------------------------------------
def _spp_kernel(x_ref, o_ref, pad_ref, *, pool_sizes, H, W, C, pmax):
    # x_ref:   (1, H, W, C)
    # o_ref:   (1, H, W, (len(pool_sizes) + 1) * C)
    # pad_ref: VMEM scratch (>= H + 2*pmax, >= W + 2*pmax, C), f32
    x = x_ref[0]                                              # (H, W, C)

    # Build the -FLT_MAX-padded tile once in VMEM (matches PyTorch MaxPool2d's
    # implicit -inf padding: padded cells never win the max).
    pad_ref[...] = jnp.full(pad_ref.shape, _NEG, dtype=pad_ref.dtype)
    pad_ref[pmax:pmax + H, pmax:pmax + W, :] = x.astype(pad_ref.dtype)

    n_pool = len(pool_sizes)
    # torch: features = [maxpool(x) for maxpool in self.maxpools[::-1]]
    for idx, k in enumerate(reversed(pool_sizes)):
        p = k // 2
        off = pmax - p                 # this pool's window origin in pad_ref
        wp = W + 2 * p
        # Row (H-axis) running max over k shifted slices of the padded tile.
        rmax = pad_ref[off:off + H, off:off + wp, :]
        for dh in range(1, k):
            rmax = jnp.maximum(
                rmax, pad_ref[off + dh:off + dh + H, off:off + wp, :])
        # Column (W-axis) running max.
        out = rmax[:, 0:W, :]
        for dw in range(1, k):
            out = jnp.maximum(out, rmax[:, dw:dw + W, :])
        # Fused concat: write this branch straight into its channel slice
        # (offsets are multiples of C -> lane-aligned stores).
        o_ref[0, :, :, idx * C:(idx + 1) * C] = out.astype(o_ref.dtype)

    # Identity branch goes last: torch.cat(features + [x], dim=1).
    o_ref[0, :, :, n_pool * C:(n_pool + 1) * C] = x


def spp_nhwc(x, pool_sizes=(5, 9, 13)):
    """x: [N, H, W, C] -> [N, H, W, (len(pool_sizes)+1)*C] (NHWC)."""
    N, H, W, C = x.shape
    pmax = max(pool_sizes) // 2
    cout = (len(pool_sizes) + 1) * C
    # Scratch dims rounded up to the sublane multiple for a clean layout.
    hp = _round_up(H + 2 * pmax, 8)
    wp = _round_up(W + 2 * pmax, 8)
    kernel = functools.partial(
        _spp_kernel, pool_sizes=tuple(pool_sizes), H=H, W=W, C=C, pmax=pmax)
    return pl.pallas_call(
        kernel,
        out_shape=jax.ShapeDtypeStruct((N, H, W, cout), x.dtype),
        grid=(N,),
        in_specs=[pl.BlockSpec((1, H, W, C), lambda n: (n, 0, 0, 0))],
        out_specs=pl.BlockSpec((1, H, W, cout), lambda n: (n, 0, 0, 0)),
        scratch_shapes=[pltpu.VMEM((hp, wp, C), jnp.float32)],
        compiler_params=pltpu.CompilerParams(
            dimension_semantics=("parallel",)),
    )(x)


def spatial_pyramid_pooling(x_nchw, pool_sizes=(5, 9, 13)):
    """Matches SpatialPyramidPooling.forward on NCHW input.

    Output channel order: [pool13, pool9, pool5, x]  (== maxpools[::-1] + [x]).
    """
    x = jnp.transpose(x_nchw, (0, 2, 3, 1))          # NCHW -> NHWC
    y = spp_nhwc(x, pool_sizes)
    return jnp.transpose(y, (0, 3, 1, 2))            # NHWC -> NCHW


# ----------------------------------------------------------------------------
# Pure-JAX reference (for correctness check only)
# ----------------------------------------------------------------------------
def _maxpool_ref_nchw(x, k):
    p = k // 2
    return jax.lax.reduce_window(
        x, -jnp.inf, jax.lax.max,
        window_dimensions=(1, 1, k, k),
        window_strides=(1, 1, 1, 1),
        padding=((0, 0), (0, 0), (p, p), (p, p)))


def spp_reference(x_nchw, pool_sizes=(5, 9, 13)):
    feats = [_maxpool_ref_nchw(x_nchw, k) for k in reversed(pool_sizes)]
    return jnp.concatenate(feats + [x_nchw], axis=1)


# ----------------------------------------------------------------------------
if __name__ == "__main__":
    key = jax.random.PRNGKey(0)
    N, C, H, W = 2, 128, 16, 16                       # NCHW, like PyTorch
    x = jax.random.normal(key, (N, C, H, W), jnp.float32)

    out = jax.jit(spatial_pyramid_pooling)(x)
    out = jax.block_until_ready(out)

    assert out.shape == (N, (len((5, 9, 13)) + 1) * C, H, W), out.shape
    assert bool(jnp.all(jnp.isfinite(out)))

    ref = spp_reference(x)
    assert bool(jnp.allclose(out, ref, atol=0.0, rtol=0.0)), (
        float(jnp.max(jnp.abs(out - ref))))

    print("KERNEL_OK")
</pallas_src>

<mosaic_0001>
module attributes {stable_mosaic.version = 11 : i64} {
  func.func @_spp_kernel(%arg0: i32, %arg1: memref<1x16x16x128xf32, #tpu.memory_space<vmem>>, %arg2: memref<1x16x16x512xf32, #tpu.memory_space<vmem>>, %arg3: memref<32x32x128xf32, #tpu.memory_space<vmem>>) attributes {dimension_semantics = [#tpu.dimension_semantics<parallel>], iteration_bounds = array<i64: 2>, scalar_prefetch = 0 : i64, scratch_operands = 1 : i64, tpu.core_type = #tpu.core_type<tc>, window_params = [{transform_indices = @transform_0, window_bounds = array<i64: 1, 16, 16, 128>}, {transform_indices = @transform_1, window_bounds = array<i64: 1, 16, 16, 512>}]} {
    %c0 = arith.constant 0 : index
    %c0_0 = arith.constant 0 : index
    %c0_1 = arith.constant 0 : index
    %c0_2 = arith.constant 0 : index
    %0 = vector.load %arg1[%c0, %c0_0, %c0_1, %c0_2] : memref<1x16x16x128xf32, #tpu.memory_space<vmem>>, vector<1x16x16x128xf32>
    %1 = vector.shape_cast %0 : vector<1x16x16x128xf32> to vector<16x16x128xf32>
    %cst = arith.constant -3.40282347E+38 : f32
    %2 = vector.broadcast %cst : f32 to vector<32x32x128xf32>
    %c0_3 = arith.constant 0 : index
    %c0_4 = arith.constant 0 : index
    %c0_5 = arith.constant 0 : index
    %3 = vector.load %arg3[%c0_3, %c0_4, %c0_5] : memref<32x32x128xf32, #tpu.memory_space<vmem>>, vector<32x32x128xf32>
    tpu.vector_store %arg3[%c0_3, %c0_4, %c0_5], %2 {strides = array<i32>} : memref<32x32x128xf32, #tpu.memory_space<vmem>>, vector<32x32x128xf32>,
    %c6 = arith.constant 6 : index
    %c6_6 = arith.constant 6 : index
    %c0_7 = arith.constant 0 : index
    %4 = vector.load %arg3[%c6, %c6_6, %c0_7] : memref<32x32x128xf32, #tpu.memory_space<vmem>>, vector<16x16x128xf32>
    tpu.vector_store %arg3[%c6, %c6_6, %c0_7], %1 {strides = array<i32>} : memref<32x32x128xf32, #tpu.memory_space<vmem>>, vector<16x16x128xf32>,
    %c0_8 = arith.constant 0 : index
    %c0_9 = arith.constant 0 : index
    %c0_10 = arith.constant 0 : index
    %5 = vector.load %arg3[%c0_8, %c0_9, %c0_10] : memref<32x32x128xf32, #tpu.memory_space<vmem>>, vector<16x28x128xf32>
    %c1 = arith.constant 1 : index
    %c0_11 = arith.constant 0 : index
    %c0_12 = arith.constant 0 : index
    %6 = vector.load %arg3[%c1, %c0_11, %c0_12] : memref<32x32x128xf32, #tpu.memory_space<vmem>>, vector<16x28x128xf32>
    %7 = arith.maximumf %5, %6 : vector<16x28x128xf32>
    %c2 = arith.constant 2 : index
    %c0_13 = arith.constant 0 : index
    %c0_14 = arith.constant 0 : index
    %8 = vector.load %arg3[%c2, %c0_13, %c0_14] : memref<32x32x128xf32, #tpu.memory_space<vmem>>, vector<16x28x128xf32>
    %9 = arith.maximumf %7, %8 : vector<16x28x128xf32>
    %c3 = arith.constant 3 : index
    %c0_15 = arith.constant 0 : index
    %c0_16 = arith.constant 0 : index
    %10 = vector.load %arg3[%c3, %c0_15, %c0_16] : memref<32x32x128xf32, #tpu.memory_space<vmem>>, vector<16x28x128xf32>
    %11 = arith.maximumf %9, %10 : vector<16x28x128xf32>
    %c4 = arith.constant 4 : index
    %c0_17 = arith.constant 0 : index
    %c0_18 = arith.constant 0 : index
    %12 = vector.load %arg3[%c4, %c0_17, %c0_18] : memref<32x32x128xf32, #tpu.memory_space<vmem>>, vector<16x28x128xf32>
    %13 = arith.maximumf %11, %12 : vector<16x28x128xf32>
    %c5 = arith.constant 5 : index
    %c0_19 = arith.constant 0 : index
    %c0_20 = arith.constant 0 : index
    %14 = vector.load %arg3[%c5, %c0_19, %c0_20] : memref<32x32x128xf32, #tpu.memory_space<vmem>>, vector<16x28x128xf32>
    %15 = arith.maximumf %13, %14 : vector<16x28x128xf32>
    %c6_21 = arith.constant 6 : index
    %c0_22 = arith.constant 0 : index
    %c0_23 = arith.constant 0 : index
    %16 = vector.load %arg3[%c6_21, %c0_22, %c0_23] : memref<32x32x128xf32, #tpu.memory_space<vmem>>, vector<16x28x128xf32>
    %17 = arith.maximumf %15, %16 : vector<16x28x128xf32>
    %c7 = arith.constant 7 : index
    %c0_24 = arith.constant 0 : index
    %c0_25 = arith.constant 0 : index
    %18 = vector.load %arg3[%c7, %c0_24, %c0_25] : memref<32x32x128xf32, #tpu.memory_space<vmem>>, vector<16x28x128xf32>
    %19 = arith.maximumf %17, %18 : vector<16x28x128xf32>
    %c8 = arith.constant 8 : index
    %c0_26 = arith.constant 0 : index
    %c0_27 = arith.constant 0 : index
    %20 = vector.load %arg3[%c8, %c0_26, %c0_27] : memref<32x32x128xf32, #tpu.memory_space<vmem>>, vector<16x28x128xf32>
    %21 = arith.maximumf %19, %20 : vector<16x28x128xf32>
    %c9 = arith.constant 9 : index
    %c0_28 = arith.constant 0 : index
    %c0_29 = arith.constant 0 : index
    %22 = vector.load %arg3[%c9, %c0_28, %c0_29] : memref<32x32x128xf32, #tpu.memory_space<vmem>>, vector<16x28x128xf32>
    %23 = arith.maximumf %21, %22 : vector<16x28x128xf32>
    %c10 = arith.constant 10 : index
    %c0_30 = arith.constant 0 : index
    %c0_31 = arith.constant 0 : index
    %24 = vector.load %arg3[%c10, %c0_30, %c0_31] : memref<32x32x128xf32, #tpu.memory_space<vmem>>, vector<16x28x128xf32>
    %25 = arith.maximumf %23, %24 : vector<16x28x128xf32>
    %c11 = arith.constant 11 : index
    %c0_32 = arith.constant 0 : index
    %c0_33 = arith.constant 0 : index
    %26 = vector.load %arg3[%c11, %c0_32, %c0_33] : memref<32x32x128xf32, #tpu.memory_space<vmem>>, vector<16x28x128xf32>
    %27 = arith.maximumf %25, %26 : vector<16x28x128xf32>
    %c12 = arith.constant 12 : index
    %c0_34 = arith.constant 0 : index
    %c0_35 = arith.constant 0 : index
    %28 = vector.load %arg3[%c12, %c0_34, %c0_35] : memref<32x32x128xf32, #tpu.memory_space<vmem>>, vector<16x28x128xf32>
    %29 = arith.maximumf %27, %28 : vector<16x28x128xf32>
    %30 = vector.extract_strided_slice %29 {offsets = [0, 0, 0], sizes = [16, 16, 128], strides = [1, 1, 1]} : vector<16x28x128xf32> to vector<16x16x128xf32>
    %31 = vector.extract_strided_slice %29 {offsets = [0, 1, 0], sizes = [16, 16, 128], strides = [1, 1, 1]} : vector<16x28x128xf32> to vector<16x16x128xf32>
    %32 = arith.maximumf %30, %31 : vector<16x16x128xf32>
    %33 = vector.extract_strided_slice %29 {offsets = [0, 2, 0], sizes = [16, 16, 128], strides = [1, 1, 1]} : vector<16x28x128xf32> to vector<16x16x128xf32>
    %34 = arith.maximumf %32, %33 : vector<16x16x128xf32>
    %35 = vector.extract_strided_slice %29 {offsets = [0, 3, 0], sizes = [16, 16, 128], strides = [1, 1, 1]} : vector<16x28x128xf32> to vector<16x16x128xf32>
    %36 = arith.maximumf %34, %35 : vector<16x16x128xf32>
    %37 = vector.extract_strided_slice %29 {offsets = [0, 4, 0], sizes = [16, 16, 128], strides = [1, 1, 1]} : vector<16x28x128xf32> to vector<16x16x128xf32>
    %38 = arith.maximumf %36, %37 : vector<16x16x128xf32>
    %39 = vector.extract_strided_slice %29 {offsets = [0, 5, 0], sizes = [16, 16, 128], strides = [1, 1, 1]} : vector<16x28x128xf32> to vector<16x16x128xf32>
    %40 = arith.maximumf %38, %39 : vector<16x16x128xf32>
    %41 = vector.extract_strided_slice %29 {offsets = [0, 6, 0], sizes = [16, 16, 128], strides = [1, 1, 1]} : vector<16x28x128xf32> to vector<16x16x128xf32>
    %42 = arith.maximumf %40, %41 : vector<16x16x128xf32>
    %43 = vector.extract_strided_slice %29 {offsets = [0, 7, 0], sizes = [16, 16, 128], strides = [1, 1, 1]} : vector<16x28x128xf32> to vector<16x16x128xf32>
    %44 = arith.maximumf %42, %43 : vector<16x16x128xf32>
    %45 = vector.extract_strided_slice %29 {offsets = [0, 8, 0], sizes = [16, 16, 128], strides = [1, 1, 1]} : vector<16x28x128xf32> to vector<16x16x128xf32>
    %46 = arith.maximumf %44, %45 : vector<16x16x128xf32>
    %47 = vector.extract_strided_slice %29 {offsets = [0, 9, 0], sizes = [16, 16, 128], strides = [1, 1, 1]} : vector<16x28x128xf32> to vector<16x16x128xf32>
    %48 = arith.maximumf %46, %47 : vector<16x16x128xf32>
    %49 = vector.extract_strided_slice %29 {offsets = [0, 10, 0], sizes = [16, 16, 128], strides = [1, 1, 1]} : vector<16x28x128xf32> to vector<16x16x128xf32>
    %50 = arith.maximumf %48, %49 : vector<16x16x128xf32>
    %51 = vector.extract_strided_slice %29 {offsets = [0, 11, 0], sizes = [16, 16, 128], strides = [1, 1, 1]} : vector<16x28x128xf32> to vector<16x16x128xf32>
    %52 = arith.maximumf %50, %51 : vector<16x16x128xf32>
    %53 = vector.extract_strided_slice %29 {offsets = [0, 12, 0], sizes = [16, 16, 128], strides = [1, 1, 1]} : vector<16x28x128xf32> to vector<16x16x128xf32>
    %54 = arith.maximumf %52, %53 : vector<16x16x128xf32>
    %c0_36 = arith.constant 0 : index
    %c0_37 = arith.constant 0 : index
    %c0_38 = arith.constant 0 : index
    %c0_39 = arith.constant 0 : index
    %55 = vector.load %arg2[%c0_36, %c0_37, %c0_38, %c0_39] : memref<1x16x16x512xf32, #tpu.memory_space<vmem>>, vector<1x16x16x128xf32>
    %56 = vector.shape_cast %55 : vector<1x16x16x128xf32> to vector<16x16x128xf32>
    %57 = vector.shape_cast %54 : vector<16x16x128xf32> to vector<1x16x16x128xf32>
    tpu.vector_store %arg2[%c0_36, %c0_37, %c0_38, %c0_39], %57 {strides = array<i32>} : memref<1x16x16x512xf32, #tpu.memory_space<vmem>>, vector<1x16x16x128xf32>,
    %c2_40 = arith.constant 2 : index
    %c2_41 = arith.constant 2 : index
    %c0_42 = arith.constant 0 : index
    %58 = vector.load %arg3[%c2_40, %c2_41, %c0_42] : memref<32x32x128xf32, #tpu.memory_space<vmem>>, vector<16x24x128xf32>
    %c3_43 = arith.constant 3 : index
    %c2_44 = arith.constant 2 : index
    %c0_45 = arith.constant 0 : index
    %59 = vector.load %arg3[%c3_43, %c2_44, %c0_45] : memref<32x32x128xf32, #tpu.memory_space<vmem>>, vector<16x24x128xf32>
    %60 = arith.maximumf %58, %59 : vector<16x24x128xf32>
    %c4_46 = arith.constant 4 : index
    %c2_47 = arith.constant 2 : index
    %c0_48 = arith.constant 0 : index
    %61 = vector.load %arg3[%c4_46, %c2_47, %c0_48] : memref<32x32x128xf32, #tpu.memory_space<vmem>>, vector<16x24x128xf32>
    %62 = arith.maximumf %60, %61 : vector<16x24x128xf32>
    %c5_49 = arith.constant 5 : index
    %c2_50 = arith.constant 2 : index
    %c0_51 = arith.constant 0 : index
    %63 = vector.load %arg3[%c5_49, %c2_50, %c0_51] : memref<32x32x128xf32, #tpu.memory_space<vmem>>, vector<16x24x128xf32>
    %64 = arith.maximumf %62, %63 : vector<16x24x128xf32>
    %c6_52 = arith.constant 6 : index
    %c2_53 = arith.constant 2 : index
    %c0_54 = arith.constant 0 : index
    %65 = vector.load %arg3[%c6_52, %c2_53, %c0_54] : memref<32x32x128xf32, #tpu.memory_space<vmem>>, vector<16x24x128xf32>
    %66 = arith.maximumf %64, %65 : vector<16x24x128xf32>
    %c7_55 = arith.constant 7 : index
    %c2_56 = arith.constant 2 : index
    %c0_57 = arith.constant 0 : index
    %67 = vector.load %arg3[%c7_55, %c2_56, %c0_57] : memref<32x32x128xf32, #tpu.memory_space<vmem>>, vector<16x24x128xf32>
    %68 = arith.maximumf %66, %67 : vector<16x24x128xf32>
    %c8_58 = arith.constant 8 : index
    %c2_59 = arith.constant 2 : index
    %c0_60 = arith.constant 0 : index
    %69 = vector.load %arg3[%c8_58, %c2_59, %c0_60] : memref<32x32x128xf32, #tpu.memory_space<vmem>>, vector<16x24x128xf32>
    %70 = arith.maximumf %68, %69 : vector<16x24x128xf32>
    %c9_61 = arith.constant 9 : index
    %c2_62 = arith.constant 2 : index
    %c0_63 = arith.constant 0 : index
    %71 = vector.load %arg3[%c9_61, %c2_62, %c0_63] : memref<32x32x128xf32, #tpu.memory_space<vmem>>, vector<16x24x128xf32>
    %72 = arith.maximumf %70, %71 : vector<16x24x128xf32>
    %c10_64 = arith.constant 10 : index
    %c2_65 = arith.constant 2 : index
    %c0_66 = arith.constant 0 : index
    %73 = vector.load %arg3[%c10_64, %c2_65, %c0_66] : memref<32x32x128xf32, #tpu.memory_space<vmem>>, vector<16x24x128xf32>
    %74 = arith.maximumf %72, %73 : vector<16x24x128xf32>
    %75 = vector.extract_strided_slice %74 {offsets = [0, 0, 0], sizes = [16, 16, 128], strides = [1, 1, 1]} : vector<16x24x128xf32> to vector<16x16x128xf32>
    %76 = vector.extract_strided_slice %74 {offsets = [0, 1, 0], sizes = [16, 16, 128], strides = [1, 1, 1]} : vector<16x24x128xf32> to vector<16x16x128xf32>
    %77 = arith.maximumf %75, %76 : vector<16x16x128xf32>
    %78 = vector.extract_strided_slice %74 {offsets = [0, 2, 0], sizes = [16, 16, 128], strides = [1, 1, 1]} : vector<16x24x128xf32> to vector<16x16x128xf32>
    %79 = arith.maximumf %77, %78 : vector<16x16x128xf32>
    %80 = vector.extract_strided_slice %74 {offsets = [0, 3, 0], sizes = [16, 16, 128], strides = [1, 1, 1]} : vector<16x24x128xf32> to vector<16x16x128xf32>
    %81 = arith.maximumf %79, %80 : vector<16x16x128xf32>
    %82 = vector.extract_strided_slice %74 {offsets = [0, 4, 0], sizes = [16, 16, 128], strides = [1, 1, 1]} : vector<16x24x128xf32> to vector<16x16x128xf32>
    %83 = arith.maximumf %81, %82 : vector<16x16x128xf32>
    %84 = vector.extract_strided_slice %74 {offsets = [0, 5, 0], sizes = [16, 16, 128], strides = [1, 1, 1]} : vector<16x24x128xf32> to vector<16x16x128xf32>
    %85 = arith.maximumf %83, %84 : vector<16x16x128xf32>
    %86 = vector.extract_strided_slice %74 {offsets = [0, 6, 0], sizes = [16, 16, 128], strides = [1, 1, 1]} : vector<16x24x128xf32> to vector<16x16x128xf32>
    %87 = arith.maximumf %85, %86 : vector<16x16x128xf32>
    %88 = vector.extract_strided_slice %74 {offsets = [0, 7, 0], sizes = [16, 16, 128], strides = [1, 1, 1]} : vector<16x24x128xf32> to vector<16x16x128xf32>
    %89 = arith.maximumf %87, %88 : vector<16x16x128xf32>
    %90 = vector.extract_strided_slice %74 {offsets = [0, 8, 0], sizes = [16, 16, 128], strides = [1, 1, 1]} : vector<16x24x128xf32> to vector<16x16x128xf32>
    %91 = arith.maximumf %89, %90 : vector<16x16x128xf32>
    %c0_67 = arith.constant 0 : index
    %c0_68 = arith.constant 0 : index
    %c0_69 = arith.constant 0 : index
    %c128 = arith.constant 128 : index
    %92 = vector.load %arg2[%c0_67, %c0_68, %c0_69, %c128] : memref<1x16x16x512xf32, #tpu.memory_space<vmem>>, vector<1x16x16x128xf32>
    %93 = vector.shape_cast %92 : vector<1x16x16x128xf32> to vector<16x16x128xf32>
    %94 = vector.shape_cast %91 : vector<16x16x128xf32> to vector<1x16x16x128xf32>
    tpu.vector_store %arg2[%c0_67, %c0_68, %c0_69, %c128], %94 {strides = array<i32>} : memref<1x16x16x512xf32, #tpu.memory_space<vmem>>, vector<1x16x16x128xf32>,
    %c4_70 = arith.constant 4 : index
    %c4_71 = arith.constant 4 : index
    %c0_72 = arith.constant 0 : index
    %95 = vector.load %arg3[%c4_70, %c4_71, %c0_72] : memref<32x32x128xf32, #tpu.memory_space<vmem>>, vector<16x20x128xf32>
    %c5_73 = arith.constant 5 : index
    %c4_74 = arith.constant 4 : index
    %c0_75 = arith.constant 0 : index
    %96 = vector.load %arg3[%c5_73, %c4_74, %c0_75] : memref<32x32x128xf32, #tpu.memory_space<vmem>>, vector<16x20x128xf32>
    %97 = arith.maximumf %95, %96 : vector<16x20x128xf32>
    %c6_76 = arith.constant 6 : index
    %c4_77 = arith.constant 4 : index
    %c0_78 = arith.constant 0 : index
    %98 = vector.load %arg3[%c6_76, %c4_77, %c0_78] : memref<32x32x128xf32, #tpu.memory_space<vmem>>, vector<16x20x128xf32>
    %99 = arith.maximumf %97, %98 : vector<16x20x128xf32>
    %c7_79 = arith.constant 7 : index
    %c4_80 = arith.constant 4 : index
    %c0_81 = arith.constant 0 : index
    %100 = vector.load %arg3[%c7_79, %c4_80, %c0_81] : memref<32x32x128xf32, #tpu.memory_space<vmem>>, vector<16x20x128xf32>
    %101 = arith.maximumf %99, %100 : vector<16x20x128xf32>
    %c8_82 = arith.constant 8 : index
    %c4_83 = arith.constant 4 : index
    %c0_84 = arith.constant 0 : index
    %102 = vector.load %arg3[%c8_82, %c4_83, %c0_84] : memref<32x32x128xf32, #tpu.memory_space<vmem>>, vector<16x20x128xf32>
    %103 = arith.maximumf %101, %102 : vector<16x20x128xf32>
    %104 = vector.extract_strided_slice %103 {offsets = [0, 0, 0], sizes = [16, 16, 128], strides = [1, 1, 1]} : vector<16x20x128xf32> to vector<16x16x128xf32>
    %105 = vector.extract_strided_slice %103 {offsets = [0, 1, 0], sizes = [16, 16, 128], strides = [1, 1, 1]} : vector<16x20x128xf32> to vector<16x16x128xf32>
    %106 = arith.maximumf %104, %105 : vector<16x16x128xf32>
    %107 = vector.extract_strided_slice %103 {offsets = [0, 2, 0], sizes = [16, 16, 128], strides = [1, 1, 1]} : vector<16x20x128xf32> to vector<16x16x128xf32>
    %108 = arith.maximumf %106, %107 : vector<16x16x128xf32>
    %109 = vector.extract_strided_slice %103 {offsets = [0, 3, 0], sizes = [16, 16, 128], strides = [1, 1, 1]} : vector<16x20x128xf32> to vector<16x16x128xf32>
    %110 = arith.maximumf %108, %109 : vector<16x16x128xf32>
    %111 = vector.extract_strided_slice %103 {offsets = [0, 4, 0], sizes = [16, 16, 128], strides = [1, 1, 1]} : vector<16x20x128xf32> to vector<16x16x128xf32>
    %112 = arith.maximumf %110, %111 : vector<16x16x128xf32>
    %c0_85 = arith.constant 0 : index
    %c0_86 = arith.constant 0 : index
    %c0_87 = arith.constant 0 : index
    %c256 = arith.constant 256 : index
    %113 = vector.load %arg2[%c0_85, %c0_86, %c0_87, %c256] : memref<1x16x16x512xf32, #tpu.memory_space<vmem>>, vector<1x16x16x128xf32>
    %114 = vector.shape_cast %113 : vector<1x16x16x128xf32> to vector<16x16x128xf32>
    %115 = vector.shape_cast %112 : vector<16x16x128xf32> to vector<1x16x16x128xf32>
    tpu.vector_store %arg2[%c0_85, %c0_86, %c0_87, %c256], %115 {strides = array<i32>} : memref<1x16x16x512xf32, #tpu.memory_space<vmem>>, vector<1x16x16x128xf32>,
    %c0_88 = arith.constant 0 : index
    %c0_89 = arith.constant 0 : index
    %c0_90 = arith.constant 0 : index
    %c384 = arith.constant 384 : index
    %116 = vector.load %arg2[%c0_88, %c0_89, %c0_90, %c384] : memref<1x16x16x512xf32, #tpu.memory_space<vmem>>, vector<1x16x16x128xf32>
    %117 = vector.shape_cast %116 : vector<1x16x16x128xf32> to vector<16x16x128xf32>
    %118 = vector.shape_cast %1 : vector<16x16x128xf32> to vector<1x16x16x128xf32>
    tpu.vector_store %arg2[%c0_88, %c0_89, %c0_90, %c384], %118 {strides = array<i32>} : memref<1x16x16x512xf32, #tpu.memory_space<vmem>>, vector<1x16x16x128xf32>,
    return
  }
  func.func @transform_0(%arg0: i32) -> (i32, i32, i32, i32) {
    %c0_i32 = arith.constant 0 : i32
    %c0_i32_0 = arith.constant 0 : i32
    %c0_i32_1 = arith.constant 0 : i32
    %c0_i32_2 = arith.constant 0 : i32
    return %arg0, %c0_i32, %c0_i32_0, %c0_i32_1 : i32, i32, i32, i32
  }
  func.func @transform_1(%arg0: i32) -> (i32, i32, i32, i32) {
    %c0_i32 = arith.constant 0 : i32
    %c0_i32_0 = arith.constant 0 : i32
    %c0_i32_1 = arith.constant 0 : i32
    %c0_i32_2 = arith.constant 0 : i32
    return %arg0, %c0_i32, %c0_i32_0, %c0_i32_1 : i32, i32, i32, i32
  }
}

</mosaic_0001>

<bundles_post_ra>
// kernel: spatial_pyramid_pooling.1
= control target key start
LH: loop header
LB: loop body
LE: loop exit
PB: predicated region body
PF: predicated region fallthrough
CT: control target
= control target key end

     0   :  { %6 = vsyncpa [#allocation4], 0  ;;  %s12091_s0 = inlined_call_operand.hbm [shape: f32[2,16,16,128], index: 0, kind: input, shape index: {}]   ;;  %s12092_s1 = inlined_call_operand.hbm [shape: f32[2,16,16,512], index: 1, kind: output, shape index: {}]  }
   0x1   :  { %8 = vsyncpa [#allocation4 + $0x1], 0 }
   0x2   :  { %9 = vsyncpa [#allocation5], 0 }
   0x3   :  { %11 = vsyncpa [#allocation5 + $0x1], 0  ;;  %s6731_s6 = smov 0   ;;  %s6733_s7 = smov 0  }
   0x4   :  { %s6735_s8 = smov 0   ;;  %s6737_s9 = smov 0  }
   0x5 LB: > { %s6752_s10 = sadd.s32 4294967295, %s6712_s9   ;;  %s6545_s11 = sadd.s32 4294967294, %s6712_s9   ;;  %s6712_s9 = sphi %s6737_s9, %s12624_s9   ;;  %s6708_s8 = sphi %s6735_s8, %s12623_s8   ;;  %s6704_s7 = sphi %s6733_s7, %s12622_s7   ;;  %s6700_s6 = sphi %s6731_s6, %s12621_s6  }
   0x6   : > { %s6756_s12 = sadd.s32 1, %s6712_s9   ;;  %s24_s13 = sadd.s32 1, %s6708_s8 }
   0x7   : > { %s21_s14 = ssub.s32 %s6712_s9, %s6756_s12  ;;  %p31_p0 = scmp.ne.s32.totalorder %s6708_s8, %s6704_s7 }
   0x8   : > { %p22_p1 = scmp.eq.s32.totalorder %s21_s14, 0  ;;  %p32_p2 = scmp.eq.s32.totalorder %s6712_s9, 0 }
   0x9   : > { %p37_p3 = scmp.ne.s32.totalorder %s6704_s7, %s6700_s6  ;;  %p38_p4 = scmp.eq.s32.totalorder %s6752_s10, 0 }
   0xa   : > { %s6768_s15 = scalar_select %p22_p1, %s6708_s8, %s24_s13  }
   0xb   : > { %p6770_p5 = por %p32_p2, %p31_p0  ;;  %p6774_p6 = por %p38_p4, %p37_p3 }
   0xc   : > { %p61_p7 = scmp.eq.s32.totalorder %s6752_s10, 1  ;;  %p67_p8 = scmp.eq.s32.totalorder %s6545_s11, 1 }
   0xd   : > { %p6573_p10 = scmp.lt.s32.totalorder %s6712_s9, 2  ;;  %s87_s20 = sand.u32 1, %s6708_s8  }
   0xe   : > { %p6781_p11 = por %p61_p7, %p31_p0  ;;  %p6785_p12 = por %p67_p8, %p37_p3 }
   0xf   : > { %s6559_s21 = sshll.u32 %s6712_s9, 12  ;;  %s6548_s22 = sshll.u32 %s87_s20, 8 }
  0x10   : > { %s12230_s18 = scalar_select %p6781_p11, 1, 0 }
  0x11   : > { %s12231_s19 = scalar_select %p6785_p12, 1, 0 }
  0x12   : > { %s6794_s25 = scalar_lea.hbm %s12091_s0, %s6559_s21  ;;  %s91_s26 = scalar_lea.vmem [#allocation3], %s6548_s22 }
  0x13   : > { %s98_s27 = sshll.u32 %s91_s26, 4  ;;  %p6798_p13 = pnand %p6573_p10, %p6770_p5  ;;  %s6802_s27 = int_to_ptr.vmem [resolvable:$true] %s98_s27 }
  0x14   : > { %s6804_s29 = scalar_lea.sflag [#allocation4], %s87_s20  ;;  %s6616_s30 = scalar_lea.hbm %s6794_s25, 4096 }
  0x15   : > { %p6617_p0 = scmp.ne.s32.totalorder %s6794_s25, %s6616_s30  ;;  %p6618_p1 = pneg %p6798_p13 }
  0x16   : > { %s6621_s4 = scalar_lea.hbm %s12091_s0, 8192  ;;  %p6622_p4 = scmp.lt.u32.totalorder %s6794_s25, %s12091_s0 }
  0x17   : > { %p6619_p2 = pnand %p6618_p1, %p6617_p0  ;;  %p6623_p5 = scmp.lt.u32.totalorder %s6621_s4, %s6616_s30 }
  0x18   : > { %p6625_p8 = scmp.lt.u32.totalorder %s6616_s30, %s6794_s25 }
  0x19   : > { %p6620_p3 = pneg %p6619_p2  ;;  %p6624_p7 = por %p6623_p5, %p6622_p4 }
  0x1b   : > { %p6626_p10 = por %p6625_p8, %p6624_p7 }
  0x1d   : > { %p6627_p9 = pnand %p6626_p10, %p6620_p3 }
  0x1f   : > { %6630 = shalt.err (!%p6627_p9)
}
  0x20   : > { %s6631_s13 = scalar_lea.vmem %s6802_s27, 4096  ;;  %s6714_s14 = smov [#allocation3]  }
  0x21   : > { %p6632_p0 = scmp.ne.s32.totalorder %s6802_s27, %s6631_s13  ;;  %s6636_s16 = sshll.u32 %s6714_s14, 4  ;;  %s6637_s16 = int_to_ptr.vmem [resolvable:$false] %s6636_s16 }
  0x22   : > { %s6638_s20 = scalar_lea.vmem %s6637_s16, 8192  ;;  %p6639_p11 = scmp.lt.s32.totalorder %s6802_s27, %s6637_s16 }
  0x23   : > { %p6634_p2 = pnand %p6632_p0, %p6618_p1  ;;  %p6640_p4 = scmp.lt.s32.totalorder %s6638_s20, %s6631_s13 }
  0x25   : > { %p6635_p12 = pneg %p6634_p2  ;;  %p6641_p5 = por %p6640_p4, %p6639_p11 }
  0x27   : > { %p6642_p7 = pnand %p6641_p5, %p6635_p12 }
  0x29   : > { %6645 = shalt.err (!%p6642_p7)
}
  0x2a   : > { %s6715_s21 = smov 128   ;;  %s6716_s22 = smov 8  }
  0x2b   : > { %6568 = dma.hbm_to_vmem [thread:$0]  (!%p6798_p13), %s6794_s25, 4096, %s6802_s27, %s6804_s29, %s6715_s21, %s6715_s21, %s6716_s22  }
  0x2c   : > { %p6551_p9 = scmp.ge.s32.totalorder %s6712_s9, 1  ;;  %p106_p1 = scmp.lt.s32.totalorder %s6712_s9, 3 }
  0x2e   : > { %p107_p3 = pnand %p6551_p9, %p106_p1 }
  0x30   : > { %110 = sbr.rel (%p107_p3) target bundleno = 1058 (0x422), region = 24 }
  0x37   : > { %s6835_s23 = sand.u32 1, %s6704_s7  }
  0x38   : > { %s6552_s24 = sshll.u32 %s6835_s23, 8  ;;  %s113_s26 = scalar_lea.sflag [#allocation4], %s6835_s23 }
  0x39   : > { %s6839_s30 = scalar_lea.vmem [#allocation3], %s6552_s24 }
  0x3a   : > { %6691 = dma.done.wait (%p6774_p6), %s113_s26, 4096  }
  0x3b   : > { %6693 = vsyncadd (%p6774_p6), %s113_s26, 4294963200  ;;  %v6717_v0 = vmov -3.4028235e+38   ;;  %v135_v1 = vld [vmem:[%s6839_s30] sm:$0xff]  ;;  %v136_v2 = vld [vmem:[%s6839_s30 + $0x8] sm:$0xff]  ;;  %s6553_s17 = sshll.u32 %s6835_s23, 10 }
  0x3c   : > { %167 = vst [vmem:[#allocation2] sm:$0xff] %v6717_v0  ;;  %170 = vst [vmem:[#allocation2 + $0x18] sm:$0xff] %v6717_v0  ;;  %v137_v3 = vld [vmem:[%s6839_s30 + $0x10] sm:$0xff]  ;;  %s8117_s25 = scalar_lea.vmem [#allocation6], %s6553_s17  ;;  %vm1987_vm0 = vcmask 1046528   ;;  %vm2132_vm1 = vcmask 1045504  }
  0x3d   : > { %174 = vst [vmem:[#allocation2 + $0x38] sm:$0xff] %v6717_v0  ;;  %175 = vst [vmem:[#allocation2 + $0x40] sm:$0xff] %v6717_v0  ;;  %vm2277_vm2 = vcmask 1044480   ;;  %vm2422_vm3 = vcmask 1043456   ;;  %vm2567_vm4 = vcmask 1042432   ;;  %vm2712_vm5 = vcmask 1041408  }
  0x3e   : > { %176 = vst [vmem:[#allocation2 + $0x48] sm:$0xff] %v6717_v0  ;;  %177 = vst [vmem:[#allocation2 + $0x50] sm:$0xff] %v6717_v0  ;;  %vm2857_vm6 = vcmask 1040384   ;;  %s6560_s27 = sshll.u32 %s6752_s10, 14  ;;  %s6472_s28 = sshll.u32 %s8117_s25, 4  ;;  %s12046_s28 = int_to_ptr.vmem [resolvable:$true] %s6472_s28 }
  0x3f   : > { %178 = vst [vmem:[#allocation2 + $0x58] sm:$0xff] %v6717_v0  ;;  %179 = vst [vmem:[#allocation2 + $0x60] sm:$0xff] %v6717_v0  ;;  %s12044_s3 = scalar_lea.hbm %s12092_s1, %s6560_s27  ;;  %s6459_s10 = scalar_lea.sflag [#allocation5], %s6835_s23 }
  0x40   : > { %180 = vst [vmem:[#allocation2 + $0x68] sm:$0xff] %v6717_v0  ;;  %181 = vst [vmem:[#allocation2 + $0x70] sm:$0xff] %v6717_v0  ;;  %s6646_s4 = scalar_lea.vmem %s12046_s28, 16384  ;;  %p12618_p11 = scmp.ne.s32.totalorder %s12230_s18, 0 }
  0x41   : > { %182 = vst [vmem:[#allocation2 + $0x78] sm:$0xff] %v6717_v0  ;;  %183 = vst [vmem:[#allocation2 + $0x80] sm:$0xff] %v6717_v0  ;;  %p6647_p6 = scmp.ne.s32.totalorder %s12046_s28, %s6646_s4  ;;  %s6718_s5 = smov [#allocation6]  }
  0x42   : > { %184 = vst [vmem:[#allocation2 + $0x88] sm:$0xff] %v6717_v0  ;;  %185 = vst [vmem:[#allocation2 + $0x90] sm:$0xff] %v6717_v0  ;;  %s6650_s11 = sshll.u32 %s6718_s5, 4  ;;  %s6651_s11 = int_to_ptr.vmem [resolvable:$false] %s6650_s11 }
  0x43   : > { %186 = vst [vmem:[#allocation2 + $0x98] sm:$0xff] %v6717_v0  ;;  %187 = vst [vmem:[#allocation2 + $0xa0] sm:$0xff] %v6717_v0  ;;  %v6949_v4 = vld [vmem:[#allocation2 + $0x18] sm:$0xf]  ;;  %p6648_p12 = pnand %p6647_p6, %p12618_p11  ;;  %s6652_s13 = scalar_lea.vmem %s6651_s11, 32768 }
  0x44   : > { %188 = vst [vmem:[#allocation2 + $0xa8] sm:$0xff] %v6717_v0  ;;  %189 = vst [vmem:[#allocation2 + $0xb0] sm:$0xff] %v6717_v0  ;;  %v6951_v5 = vld [vmem:[#allocation2 + $0x38] sm:$0xf]  ;;  %p6653_p8 = scmp.lt.s32.totalorder %s12046_s28, %s6651_s11  ;;  %p6654_p10 = scmp.lt.s32.totalorder %s6652_s13, %s6646_s4 }
  0x45   : > { %190 = vst [vmem:[#allocation2 + $0xb8] sm:$0xff] %v6717_v0  ;;  %191 = vst [vmem:[#allocation2 + $0xc0] sm:$0xff] %v6717_v0  ;;  %v6953_v6 = vld [vmem:[#allocation2 + $0x38] sm:$0xf]  ;;  %p6649_p13 = pneg %p6648_p12 }
  0x46   : > { %192 = vst [vmem:[#allocation2 + $0xc8] sm:$0xff] %v6717_v0  ;;  %193 = vst [vmem:[#allocation2 + $0xd0] sm:$0xff] %v6717_v0  ;;  %v6955_v7 = vld [vmem:[#allocation2 + $0x58] sm:$0xf]  ;;  %v460_v38 = vmax.f32 %v6949_v4, %v6953_v6  ;;  %p6655_p0 = por %p6654_p10, %p6653_p8 }
  0x47   : > { %194 = vst [vmem:[#allocation2 + $0xd8] sm:$0xff] %v6717_v0  ;;  %195 = vst [vmem:[#allocation2 + $0xe0] sm:$0xff] %v6717_v0  ;;  %v6957_v8 = vld [vmem:[#allocation2 + $0x58] sm:$0xf]  ;;  %v464_v39 = vmax.f32 %v6951_v5, %v6955_v7 }
  0x48   : > { %196 = vst [vmem:[#allocation2 + $0xe8] sm:$0xff] %v6717_v0  ;;  %197 = vst [vmem:[#allocation2 + $0xf0] sm:$0xff] %v6717_v0  ;;  %v6959_v9 = vld [vmem:[#allocation2 + $0x78] sm:$0xf]  ;;  %p6656_p2 = pnand %p6655_p0, %p6649_p13 }
  0x49   : > { %198 = vst [vmem:[#allocation2 + $0xf8] sm:$0xff] %v6717_v0  ;;  %199 = vst [vmem:[#allocation2 + $0x100] sm:$0xff] %v6717_v0  ;;  %v6965_v12 = vld [vmem:[#allocation2 + $0x78] sm:$0xf] }
  0x4a   : > { %200 = vst [vmem:[#allocation2 + $0x108] sm:$0xff] %v6717_v0  ;;  %201 = vst [vmem:[#allocation2 + $0x110] sm:$0xff] %v6717_v0  ;;  %v6961_v10 = vld [vmem:[#allocation2 + $0x98] sm:$0xf]  ;;  %v468_v44 = vmax.f32 %v6957_v8, %v6965_v12 }
  0x4b   : > { %202 = vst [vmem:[#allocation2 + $0x118] sm:$0xff] %v6717_v0  ;;  %203 = vst [vmem:[#allocation2 + $0x120] sm:$0xff] %v6717_v0  ;;  %v6967_v13 = vld [vmem:[#allocation2 + $0x98] sm:$0xf] }
  0x4c   : > { %204 = vst [vmem:[#allocation2 + $0x128] sm:$0xff] %v6717_v0  ;;  %205 = vst [vmem:[#allocation2 + $0x130] sm:$0xff] %v6717_v0  ;;  %v6963_v11 = vld [vmem:[#allocation2 + $0xb8] sm:$0xf]  ;;  %v472_v45 = vmax.f32 %v6959_v9, %v6967_v13 }
  0x4d   : > { %206 = vst [vmem:[#allocation2 + $0x138] sm:$0xff] %v6717_v0  ;;  %207 = vst [vmem:[#allocation2 + $0x140] sm:$0xff] %v6717_v0  ;;  %v6969_v14 = vld [vmem:[#allocation2 + $0xb8] sm:$0xf] }
  0x4e   : > { %208 = vst [vmem:[#allocation2 + $0x148] sm:$0xff] %v6717_v0  ;;  %209 = vst [vmem:[#allocation2 + $0x150] sm:$0xff] %v6717_v0  ;;  %v6971_v15 = vld [vmem:[#allocation2 + $0xd8] sm:$0xf]  ;;  %v476_v46 = vmax.f32 %v6961_v10, %v6969_v14 }
  0x4f   : > { %210 = vst [vmem:[#allocation2 + $0x158] sm:$0xff] %v6717_v0  ;;  %211 = vst [vmem:[#allocation2 + $0x160] sm:$0xff] %v6717_v0  ;;  %v6973_v16 = vld [vmem:[#allocation2 + $0xd8] sm:$0xf]  ;;  %v480_v47 = vmax.f32 %v6963_v11, %v6971_v15 }
  0x50   : > { %212 = vst [vmem:[#allocation2 + $0x168] sm:$0xff] %v6717_v0  ;;  %213 = vst [vmem:[#allocation2 + $0x170] sm:$0xff] %v6717_v0  ;;  %v6975_v17 = vld [vmem:[#allocation2 + $0xf8] sm:$0xf] }
  0x51   : > { %214 = vst [vmem:[#allocation2 + $0x178] sm:$0xff] %v6717_v0  ;;  %215 = vst [vmem:[#allocation2 + $0x180] sm:$0xff] %v6717_v0  ;;  %v6981_v20 = vld [vmem:[#allocation2 + $0xf8] sm:$0xf] }
  0x52   : > { %216 = vst [vmem:[#allocation2 + $0x188] sm:$0xff] %v6717_v0  ;;  %217 = vst [vmem:[#allocation2 + $0x190] sm:$0xff] %v6717_v0  ;;  %v6977_v18 = vld [vmem:[#allocation2 + $0x118] sm:$0xf]  ;;  %v484_v52 = vmax.f32 %v6973_v16, %v6981_v20 }
  0x53   : > { %218 = vst [vmem:[#allocation2 + $0x198] sm:$0xff] %v6717_v0  ;;  %219 = vst [vmem:[#allocation2 + $0x1a0] sm:$0xff] %v6717_v0  ;;  %v6983_v21 = vld [vmem:[#allocation2 + $0x118] sm:$0xf] }
  0x54   : > { %220 = vst [vmem:[#allocation2 + $0x1a8] sm:$0xff] %v6717_v0  ;;  %221 = vst [vmem:[#allocation2 + $0x1b0] sm:$0xff] %v6717_v0  ;;  %v6979_v19 = vld [vmem:[#allocation2 + $0x138] sm:$0xf]  ;;  %v488_v53 = vmax.f32 %v6975_v17, %v6983_v21 }
  0x55   : > { %222 = vst [vmem:[#allocation2 + $0x1b8] sm:$0xff] %v6717_v0  ;;  %223 = vst [vmem:[#allocation2 + $0x1c0] sm:$0xff] %v6717_v0  ;;  %v6985_v22 = vld [vmem:[#allocation2 + $0x138] sm:$0xf] }
  0x56   : > { %224 = vst [vmem:[#allocation2 + $0x1c8] sm:$0xff] %v6717_v0  ;;  %225 = vst [vmem:[#allocation2 + $0x1d0] sm:$0xff] %v6717_v0  ;;  %v6987_v23 = vld [vmem:[#allocation2 + $0x158] sm:$0xf]  ;;  %v492_v54 = vmax.f32 %v6977_v18, %v6985_v22 }
  0x57   : > { %226 = vst [vmem:[#allocation2 + $0x1d8] sm:$0xff] %v6717_v0  ;;  %227 = vst [vmem:[#allocation2 + $0x1e0] sm:$0xff] %v6717_v0  ;;  %v6989_v24 = vld [vmem:[#allocation2 + $0x158] sm:$0xf]  ;;  %v496_v55 = vmax.f32 %v6979_v19, %v6987_v23 }
  0x58   : > { %228 = vst [vmem:[#allocation2 + $0x1e8] sm:$0xff] %v6717_v0  ;;  %229 = vst [vmem:[#allocation2 + $0x1f0] sm:$0xff] %v6717_v0  ;;  %v6991_v25 = vld [vmem:[#allocation2 + $0x178] sm:$0xf] }
  0x59   : > { %230 = vst [vmem:[#allocation2 + $0x1f8] sm:$0xff] %v6717_v0  ;;  %231 = vst [vmem:[#allocation2 + $0x200] sm:$0xff] %v6717_v0  ;;  %v6997_v28 = vld [vmem:[#allocation2 + $0x178] sm:$0xf] }
  0x5a   : > { %232 = vst [vmem:[#allocation2 + $0x208] sm:$0xff] %v6717_v0  ;;  %233 = vst [vmem:[#allocation2 + $0x210] sm:$0xff] %v6717_v0  ;;  %v6993_v26 = vld [vmem:[#allocation2 + $0x198] sm:$0xf]  ;;  %v500_v60 = vmax.f32 %v6989_v24, %v6997_v28 }
  0x5b   : > { %234 = vst [vmem:[#allocation2 + $0x218] sm:$0xff] %v6717_v0  ;;  %235 = vst [vmem:[#allocation2 + $0x220] sm:$0xff] %v6717_v0  ;;  %v6999_v29 = vld [vmem:[#allocation2 + $0x198] sm:$0xf] }
  0x5c   : > { %236 = vst [vmem:[#allocation2 + $0x228] sm:$0xff] %v6717_v0  ;;  %237 = vst [vmem:[#allocation2 + $0x230] sm:$0xff] %v6717_v0  ;;  %v6995_v27 = vld [vmem:[#allocation2 + $0x1b8] sm:$0xf]  ;;  %v504_v61 = vmax.f32 %v6991_v25, %v6999_v29 }
  0x5d   : > { %238 = vst [vmem:[#allocation2 + $0x238] sm:$0xff] %v6717_v0  ;;  %239 = vst [vmem:[#allocation2 + $0x240] sm:$0xff] %v6717_v0  ;;  %v7001_v30 = vld [vmem:[#allocation2 + $0x1b8] sm:$0xf] }
  0x5e   : > { %240 = vst [vmem:[#allocation2 + $0x248] sm:$0xff] %v6717_v0  ;;  %241 = vst [vmem:[#allocation2 + $0x250] sm:$0xff] %v6717_v0  ;;  %v7003_v31 = vld [vmem:[#allocation2 + $0x1d8] sm:$0xf]  ;;  %v508_v62 = vmax.f32 %v6993_v26, %v7001_v30 }
  0x5f   : > { %242 = vst [vmem:[#allocation2 + $0x258] sm:$0xff] %v6717_v0  ;;  %243 = vst [vmem:[#allocation2 + $0x260] sm:$0xff] %v6717_v0  ;;  %v7005_v32 = vld [vmem:[#allocation2 + $0x1d8] sm:$0xf]  ;;  %v512_v63 = vmax.f32 %v6995_v27, %v7003_v31 }
  0x60   : > { %244 = vst [vmem:[#allocation2 + $0x268] sm:$0xff] %v6717_v0  ;;  %245 = vst [vmem:[#allocation2 + $0x270] sm:$0xff] %v6717_v0  ;;  %v7007_v33 = vld [vmem:[#allocation2 + $0x1f8] sm:$0xf] }
  0x61   : > { %246 = vst [vmem:[#allocation2 + $0x278] sm:$0xff] %v6717_v0  ;;  %247 = vst [vmem:[#allocation2 + $0x280] sm:$0xff] %v6717_v0  ;;  %v7009_v34 = vld [vmem:[#allocation2 + $0x1f8] sm:$0xf] }
  0x62   : > { %248 = vst [vmem:[#allocation2 + $0x288] sm:$0xff] %v6717_v0  ;;  %249 = vst [vmem:[#allocation2 + $0x290] sm:$0xff] %v6717_v0  ;;  %v7011_v35 = vld [vmem:[#allocation2 + $0x218] sm:$0xf]  ;;  %v516_v4 = vmax.f32 %v7005_v32, %v7009_v34 }
  0x63   : > { %250 = vst [vmem:[#allocation2 + $0x298] sm:$0xff] %v6717_v0  ;;  %251 = vst [vmem:[#allocation2 + $0x2a0] sm:$0xff] %v6717_v0  ;;  %v525_v36 = vld [vmem:[#allocation2 + $0x58] sm:$0xf]  ;;  %v520_v5 = vmax.f32 %v7007_v33, %v7011_v35 }
  0x64   : > { %252 = vst [vmem:[#allocation2 + $0x2a8] sm:$0xff] %v6717_v0  ;;  %253 = vst [vmem:[#allocation2 + $0x2b0] sm:$0xff] %v6717_v0  ;;  %v529_v37 = vld [vmem:[#allocation2 + $0x78] sm:$0xf]  ;;  %v589_v6 = vmax.f32 %v460_v38, %v525_v36 }
  0x65   : > { %254 = vst [vmem:[#allocation2 + $0x2b8] sm:$0xff] %v6717_v0  ;;  %255 = vst [vmem:[#allocation2 + $0x2c0] sm:$0xff] %v6717_v0  ;;  %v533_v40 = vld [vmem:[#allocation2 + $0x98] sm:$0xf]  ;;  %v593_v7 = vmax.f32 %v464_v39, %v529_v37 }
  0x66   : > { %256 = vst [vmem:[#allocation2 + $0x2c8] sm:$0xff] %v6717_v0  ;;  %257 = vst [vmem:[#allocation2 + $0x2d0] sm:$0xff] %v6717_v0  ;;  %v537_v41 = vld [vmem:[#allocation2 + $0xb8] sm:$0xf]  ;;  %v597_v12 = vmax.f32 %v468_v44, %v533_v40 }
  0x67   : > { %258 = vst [vmem:[#allocation2 + $0x2d8] sm:$0xff] %v6717_v0  ;;  %259 = vst [vmem:[#allocation2 + $0x2e0] sm:$0xff] %v6717_v0  ;;  %v541_v42 = vld [vmem:[#allocation2 + $0xd8] sm:$0xf]  ;;  %v7057_v13 = vmax.f32 %v472_v45, %v537_v41 }
  0x68   : > { %260 = vst [vmem:[#allocation2 + $0x2e8] sm:$0xff] %v6717_v0  ;;  %261 = vst [vmem:[#allocation2 + $0x2f0] sm:$0xff] %v6717_v0  ;;  %v545_v43 = vld [vmem:[#allocation2 + $0xf8] sm:$0xf]  ;;  %v7059_v14 = vmax.f32 %v476_v46, %v541_v42 }
  0x69   : > { %262 = vst [vmem:[#allocation2 + $0x2f8] sm:$0xff] %v6717_v0  ;;  %263 = vst [vmem:[#allocation2 + $0x300] sm:$0xff] %v6717_v0  ;;  %v549_v48 = vld [vmem:[#allocation2 + $0x118] sm:$0xf]  ;;  %v7061_v15 = vmax.f32 %v480_v47, %v545_v43 }
  0x6a   : > { %264 = vst [vmem:[#allocation2 + $0x308] sm:$0xff] %v6717_v0  ;;  %265 = vst [vmem:[#allocation2 + $0x310] sm:$0xff] %v6717_v0  ;;  %v553_v49 = vld [vmem:[#allocation2 + $0x138] sm:$0xf]  ;;  %v7071_v20 = vmax.f32 %v484_v52, %v549_v48 }
  0x6b   : > { %266 = vst [vmem:[#allocation2 + $0x318] sm:$0xff] %v6717_v0  ;;  %267 = vst [vmem:[#allocation2 + $0x320] sm:$0xff] %v6717_v0  ;;  %v557_v50 = vld [vmem:[#allocation2 + $0x158] sm:$0xf]  ;;  %v7073_v21 = vmax.f32 %v488_v53, %v553_v49 }
  0x6c   : > { %268 = vst [vmem:[#allocation2 + $0x328] sm:$0xff] %v6717_v0  ;;  %269 = vst [vmem:[#allocation2 + $0x330] sm:$0xff] %v6717_v0  ;;  %v561_v51 = vld [vmem:[#allocation2 + $0x178] sm:$0xf]  ;;  %v7075_v22 = vmax.f32 %v492_v54, %v557_v50 }
  0x6d   : > { %270 = vst [vmem:[#allocation2 + $0x338] sm:$0xff] %v6717_v0  ;;  %274 = vst [vmem:[#allocation2 + $0x358] sm:$0xff] %v6717_v0  ;;  %v565_v56 = vld [vmem:[#allocation2 + $0x198] sm:$0xf]  ;;  %v7077_v23 = vmax.f32 %v496_v55, %v561_v51 }
  0x6e   : > { %278 = vst [vmem:[#allocation2 + $0x378] sm:$0xff] %v6717_v0  ;;  %296 = vst [vmem:[#allocation2 + $0xc6] sm:$0xff] %v135_v1  ;;  %v569_v57 = vld [vmem:[#allocation2 + $0x1b8] sm:$0xf]  ;;  %v7085_v27 = vmax.f32 %v500_v60, %v565_v56  ;;  %v3402_v60 = vld [vmem:[#allocation2 + $0x42] sm:$0xff] }
  0x6f   : > { %297 = vst [vmem:[#allocation2 + $0xce] sm:$0xff] %v136_v2  ;;  %298 = vst [vmem:[#allocation2 + $0xe6] sm:$0xff] %v137_v3  ;;  %v573_v58 = vld [vmem:[#allocation2 + $0x1d8] sm:$0xf]  ;;  %v7087_v28 = vmax.f32 %v504_v61, %v569_v57  ;;  %v3403_v61 = vld [vmem:[#allocation2 + $0x4a] sm:$0xff] }
  0x70   : > { %v577_v59 = vld [vmem:[#allocation2 + $0x1f8] sm:$0xf]  ;;  %v7089_v29 = vmax.f32 %v508_v62, %v573_v58 }
  0x71   : > { %v581_v0 = vld [vmem:[#allocation2 + $0x218] sm:$0xf]  ;;  %v7091_v30 = vmax.f32 %v512_v63, %v577_v59 }
  0x72   : > { %v585_v1 = vld [vmem:[#allocation2 + $0x238] sm:$0xf]  ;;  %v7099_v34 = vmax.f32 %v516_v4, %v581_v0  ;;  %v3405_v4 = vld [vmem:[#allocation2 + $0x62] sm:$0xff] }
  0x73   : > { %v7041_v2 = vld [vmem:[#allocation2 + $0x78] sm:$0xf]  ;;  %v7101_v35 = vmax.f32 %v520_v5, %v585_v1  ;;  %v3406_v5 = vld [vmem:[#allocation2 + $0x6a] sm:$0xff] }
  0x74   : > { %v7043_v3 = vld [vmem:[#allocation2 + $0x98] sm:$0xf]  ;;  %v718_v36 = vmax.f32 %v589_v6, %v7041_v2 }
  0x75   : > { %v7049_v8 = vld [vmem:[#allocation2 + $0xb8] sm:$0xf]  ;;  %v722_v37 = vmax.f32 %v593_v7, %v7043_v3 }
  0x76   : > { %v7051_v9 = vld [vmem:[#allocation2 + $0xd8] sm:$0xf]  ;;  %v726_v41 = vmax.f32 %v597_v12, %v7049_v8  ;;  %v3408_v8 = vld [vmem:[#allocation2 + $0x82] sm:$0xff]  ;;  %v3499_v12 = vmax.f32 %v3403_v61, %v3406_v5 }
  0x77   : > { %v7053_v10 = vld [vmem:[#allocation2 + $0xf8] sm:$0xf]  ;;  %v730_v42 = vmax.f32 %v7057_v13, %v7051_v9  ;;  %v7138_v9 = vld [vmem:[#allocation2 + $0x8a] sm:$0xff]  ;;  %v7226_v61 = vld [vmem:[%s6839_s30 + $0x20] sm:$0xff] }
  0x78   : > { %v7055_v11 = vld [vmem:[#allocation2 + $0x118] sm:$0xf]  ;;  %v734_v43 = vmax.f32 %v7059_v14, %v7053_v10  ;;  %300 = vst [vmem:[#allocation2 + $0x106] sm:$0xff] %v7226_v61  ;;  %6430 = vst [vmem:[%s8117_s25 + $0x98] sm:$0xff] %v7226_v61 }
  0x79   : > { %v7063_v16 = vld [vmem:[#allocation2 + $0x138] sm:$0xf]  ;;  %v738_v44 = vmax.f32 %v7061_v15, %v7055_v11  ;;  %v3498_v11 = vmax.f32 %v3402_v60, %v3405_v4  ;;  %v7222_v60 = vld [vmem:[#allocation2 + $0xe0] sm:$0xff] }
  0x7a   : > { %v7065_v17 = vld [vmem:[#allocation2 + $0x158] sm:$0xf]  ;;  %v742_v48 = vmax.f32 %v7071_v20, %v7063_v16 }
  0x7b   : > { %v7067_v18 = vld [vmem:[#allocation2 + $0x178] sm:$0xf]  ;;  %v746_v49 = vmax.f32 %v7073_v21, %v7065_v17 }
  0x7c   : > { %v7069_v19 = vld [vmem:[#allocation2 + $0x198] sm:$0xf]  ;;  %v750_v50 = vmax.f32 %v7075_v22, %v7067_v18 }
  0x7d   : > { %v7079_v24 = vld [vmem:[#allocation2 + $0x1b8] sm:$0xf]  ;;  %v754_v51 = vmax.f32 %v7077_v23, %v7069_v19 }
  0x7e   : > { %v7081_v25 = vld [vmem:[#allocation2 + $0x1d8] sm:$0xf]  ;;  %v758_v55 = vmax.f32 %v7085_v27, %v7079_v24  ;;  %v3594_v27 = vmax.f32 %v3498_v11, %v3408_v8 }
  0x7f   : > { %v7083_v26 = vld [vmem:[#allocation2 + $0x1f8] sm:$0xf]  ;;  %v762_v56 = vmax.f32 %v7087_v28, %v7081_v25  ;;  %v7154_v25 = vld [vmem:[#allocation2 + $0xa2] sm:$0xff] }
  0x80   : > { %v7093_v31 = vld [vmem:[#allocation2 + $0x218] sm:$0xf]  ;;  %v766_v57 = vmax.f32 %v7089_v29, %v7083_v26  ;;  %v3501_v26 = vmax.f32 %v3405_v4, %v3408_v8  ;;  %v7158_v29 = vld [vmem:[#allocation2 + $0xaa] sm:$0xff] }
  0x81   : > { %v7095_v32 = vld [vmem:[#allocation2 + $0x238] sm:$0xf]  ;;  %v770_v58 = vmax.f32 %v7091_v30, %v7093_v31  ;;  %v3502_v31 = vmax.f32 %v3406_v5, %v7138_v9 }
  0x82   : > { %v7097_v33 = vld [vmem:[#allocation2 + $0x258] sm:$0xf]  ;;  %v774_v63 = vmax.f32 %v7099_v34, %v7095_v32 }
  0x83   : > { %v783_v38 = vld [vmem:[#allocation2 + $0x98] sm:$0xf]  ;;  %v778_v0 = vmax.f32 %v7101_v35, %v7097_v33  ;;  %v7165_v33 = vmax.f32 %v3499_v12, %v7138_v9  ;;  %v7263_v12 = vld [vmem:[%s6839_s30 + $0x60] sm:$0xff] }
  0x84   : > { %v787_v39 = vld [vmem:[#allocation2 + $0xb8] sm:$0xf]  ;;  %v7132_v2 = vmax.f32 %v718_v36, %v783_v38  ;;  %12255 = vst [vmem:[#allocation31_spill] sm:$0xff] %v7263_v12  ;;  %308 = vst [vmem:[#allocation2 + $0x186] sm:$0xff] %v7263_v12 }
  0x85   : > { %v791_v40 = vld [vmem:[#allocation2 + $0xd8] sm:$0xf]  ;;  %v7134_v3 = vmax.f32 %v722_v37, %v787_v39 }
  0x86   : > { %v795_v45 = vld [vmem:[#allocation2 + $0xf8] sm:$0xf]  ;;  %12233 = vst [vmem:[#allocation9_spill] sm:$0xff] %v7132_v2  ;;  %v7136_v7 = vmax.f32 %v726_v41, %v791_v40  ;;  %v3504_v41 = vmax.f32 %v3408_v8, %v7154_v25  ;;  %v7248_v8 = vld [vmem:[%s6839_s30 + $0x40] sm:$0xff] }
  0x87   : > { %v799_v46 = vld [vmem:[#allocation2 + $0x118] sm:$0xf]  ;;  %12234 = vst [vmem:[#allocation10_spill] sm:$0xff] %v7134_v3  ;;  %v7142_v17 = vmax.f32 %v730_v42, %v795_v45  ;;  %v3505_v42 = vmax.f32 %v7138_v9, %v7158_v29  ;;  %v3690_v45 = vmax.f32 %v3594_v27, %v7154_v25  ;;  %12251 = vst [vmem:[#allocation27_spill] sm:$0xff] %v7248_v8  ;;  %v7251_v9 = vld [vmem:[%s6839_s30 + $0x48] sm:$0xff] }
  0x88   : > { %v803_v47 = vld [vmem:[#allocation2 + $0x138] sm:$0xf]  ;;  %12235 = vst [vmem:[#allocation11_spill] sm:$0xff] %v7136_v7  ;;  %v7144_v18 = vmax.f32 %v734_v43, %v799_v46  ;;  %v7191_v46 = vld [vmem:[#allocation2 + $0xc0] sm:$0xff]  ;;  %12252 = vst [vmem:[#allocation28_spill] sm:$0xff] %v7251_v9 }
  0x89   : > { %v807_v52 = vld [vmem:[#allocation2 + $0x158] sm:$0xf]  ;;  %12236 = vst [vmem:[#allocation12_spill] sm:$0xff] %v7142_v17  ;;  %v7146_v19 = vmax.f32 %v738_v44, %v803_v47  ;;  %v7188_v44 = vmax.f32 %v3501_v26, %v7154_v25  ;;  %v7193_v47 = vld [vmem:[#allocation2 + $0xc2] sm:$0xff]  ;;  %304 = vst [vmem:[#allocation2 + $0x146] sm:$0xff] %v7248_v8 }
  0x8a   : > { %v811_v53 = vld [vmem:[#allocation2 + $0x178] sm:$0xf]  ;;  %12237 = vst [vmem:[#allocation13_spill] sm:$0xff] %v7144_v18  ;;  %v7148_v20 = vmax.f32 %v742_v48, %v807_v52  ;;  %v7196_v48 = vmax.f32 %v3502_v31, %v7158_v29  ;;  %v7204_v52 = vld [vmem:[#allocation2 + $0xc8] sm:$0xff]  ;;  %305 = vst [vmem:[#allocation2 + $0x14e] sm:$0xff] %v7251_v9 }
  0x8b   : > { %v815_v54 = vld [vmem:[#allocation2 + $0x198] sm:$0xf]  ;;  %12238 = vst [vmem:[#allocation14_spill] sm:$0xff] %v7146_v19  ;;  %v7150_v23 = vmax.f32 %v746_v49, %v811_v53  ;;  %v7206_v53 = vld [vmem:[#allocation2 + $0xd0] sm:$0xff]  ;;  %v603_v4 = vmax.f32 %v7204_v52, -3.4028235e+38 }
  0x8c   : > { %v819_v59 = vld [vmem:[#allocation2 + $0x1b8] sm:$0xf]  ;;  %12239 = vst [vmem:[#allocation15_spill] sm:$0xff] %v7148_v20  ;;  %v7152_v24 = vmax.f32 %v750_v50, %v815_v54  ;;  %v3691_v50 = vmax.f32 %v7165_v33, %v7158_v29  ;;  %v604_v5 = vmax.f32 %v7206_v53, -3.4028235e+38  ;;  %v7287_v26 = vld [vmem:[%s6839_s30 + $0x80] sm:$0xff] }
  0x8d   : > { %v3404_v62 = vld [vmem:[#allocation2 + $0x52] sm:$0xff]  ;;  %12240 = vst [vmem:[#allocation16_spill] sm:$0xff] %v7150_v23  ;;  %v7156_v28 = vmax.f32 %v754_v51, %v819_v59  ;;  %v602_v51 = vmax.f32 %v7191_v46, -3.4028235e+38  ;;  %v7220_v59 = vmax.f32 %v3504_v41, %v7193_v47  ;;  %12259 = vst [vmem:[#allocation35_spill] sm:$0xff] %v7287_v26  ;;  %v7290_v27 = vld [vmem:[%s6839_s30 + $0x88] sm:$0xff] }
  0x8e   : > { %v823_v1 = vld [vmem:[#allocation2 + $0x1d8] sm:$0xf]  ;;  %12241 = vst [vmem:[#allocation17_spill] sm:$0xff] %v7152_v24  ;;  %12260 = vst [vmem:[#allocation36_spill] sm:$0xff] %v7290_v27  ;;  %v7293_v31 = vld [vmem:[%s6839_s30 + $0x90] sm:$0xff] }
  0x8f   : > { %v3407_v6 = vld [vmem:[#allocation2 + $0x72] sm:$0xff]  ;;  %12242 = vst [vmem:[#allocation18_spill] sm:$0xff] %v7156_v28  ;;  %v7167_v34 = vmax.f32 %v758_v55, %v823_v1  ;;  %v7210_v55 = vld [vmem:[#allocation2 + $0xca] sm:$0xff]  ;;  %v7237_v1 = vmax.f32 %v3690_v45, %v7193_v47  ;;  %12261 = vst [vmem:[#allocation37_spill] sm:$0xff] %v7293_v31  ;;  %v7304_v33 = vmax.f32 %v602_v51, %v7222_v60 }
  0x90   : > { %v7140_v10 = vld [vmem:[#allocation2 + $0x92] sm:$0xff]  ;;  %v3500_v13 = vmax.f32 %v3404_v62, %v3407_v6  ;;  %v7229_v62 = vld [vmem:[%s6839_s30 + $0x28] sm:$0xff]  ;;  %312 = vst [vmem:[#allocation2 + $0x1c6] sm:$0xff] %v7287_v26  ;;  %313 = vst [vmem:[#allocation2 + $0x1ce] sm:$0xff] %v7290_v27  ;;  %v7323_v45 = vmax.f32 %v3691_v50, %v7210_v55 }
  0x91   : > { %v827_v14 = vld [vmem:[#allocation2 + $0x1f8] sm:$0xf]  ;;  %v3503_v32 = vmax.f32 %v3407_v6, %v7140_v10  ;;  %12243 = vst [vmem:[#allocation19_spill] sm:$0xff] %v7167_v34  ;;  %301 = vst [vmem:[#allocation2 + $0x10e] sm:$0xff] %v7229_v62  ;;  %v7313_v41 = vld [vmem:[%s6839_s30 + $0xa0] sm:$0xff] }
  0x92   : > { %v831_v15 = vld [vmem:[#allocation2 + $0x218] sm:$0xf]  ;;  %v7169_v35 = vmax.f32 %v762_v56, %v827_v14  ;;  %v7174_v37 = vmax.f32 %v3500_v13, %v7140_v10  ;;  %v7265_v13 = vld [vmem:[#allocation2 + $0xe2] sm:$0xff]  ;;  %314 = vst [vmem:[#allocation2 + $0x1e6] sm:$0xff] %v7293_v31  ;;  %12263 = vst [vmem:[#allocation39_spill] sm:$0xff] %v7313_v41 }
  0x93   : > { %v835_v16 = vld [vmem:[#allocation2 + $0x238] sm:$0xf]  ;;  %v7171_v36 = vmax.f32 %v766_v57, %v831_v15  ;;  %v7271_v14 = vld [vmem:[%s6839_s30 + $0x68] sm:$0xff]  ;;  %v7274_v15 = vld [vmem:[%s6839_s30 + $0x70] sm:$0xff]  ;;  %316 = vst [vmem:[#allocation2 + $0x206] sm:$0xff] %v7313_v41  ;;  %v3696_v34 = vmax.f32 %v7220_v59, %v7265_v13 }
  0x94   : > { %v839_v21 = vld [vmem:[#allocation2 + $0x258] sm:$0xf]  ;;  %12244 = vst [vmem:[#allocation20_spill] sm:$0xff] %v7169_v35  ;;  %v7176_v38 = vmax.f32 %v770_v58, %v835_v16  ;;  %12256 = vst [vmem:[#allocation32_spill] sm:$0xff] %v7271_v14  ;;  %v7393_v23 = vld [vmem:[#allocation2 + $0x102] sm:$0xff] }
  0x95   : > { %v843_v22 = vld [vmem:[#allocation2 + $0x278] sm:$0xf]  ;;  %12245 = vst [vmem:[#allocation21_spill] sm:$0xff] %v7171_v36  ;;  %v7178_v39 = vmax.f32 %v774_v63, %v839_v21  ;;  %v7232_v63 = vld [vmem:[%s6839_s30 + $0x30] sm:$0xff]  ;;  %12257 = vst [vmem:[#allocation33_spill] sm:$0xff] %v7274_v15  ;;  %v3508_v21 = vmax.f32 %v7158_v29, %v7210_v55  ;;  %v12267_v36 = vmax.f32 %v7154_v25, %v7193_v47 }
  0x96   : > { %v7160_v30 = vld [vmem:[#allocation2 + $0xb2] sm:$0xff]  ;;  %12246 = vst [vmem:[#allocation22_spill] sm:$0xff] %v7176_v38  ;;  %v7180_v40 = vmax.f32 %v778_v0, %v843_v22  ;;  %12249 = vst [vmem:[#allocation25_spill] sm:$0xff] %v7232_v63  ;;  %v3693_v0 = vmax.f32 %v7188_v44, %v7193_v47  ;;  %v7553_v41 = vld [vmem:[#allocation2 + $0x140] sm:$0xff] }
  0x97   : > { %12247 = vst [vmem:[#allocation23_spill] sm:$0xff] %v7178_v39  ;;  %v3506_v43 = vmax.f32 %v7140_v10, %v7160_v30  ;;  %v7199_v49 = vmax.f32 %v3503_v32, %v7160_v30  ;;  %v3692_v54 = vmax.f32 %v7174_v37, %v7160_v30  ;;  %v7212_v56 = vld [vmem:[#allocation2 + $0xd2] sm:$0xff]  ;;  %302 = vst [vmem:[#allocation2 + $0x126] sm:$0xff] %v7232_v63  ;;  %v7595_v31 = vld [vmem:[#allocation2 + $0x148] sm:$0xff] }
  0x98   : > { %12248 = vst [vmem:[#allocation24_spill] sm:$0xff] %v7180_v40  ;;  %v7215_v57 = vld [vmem:[%s6839_s30 + $0x18] sm:$0xff]  ;;  %v7257_v10 = vld [vmem:[%s6839_s30 + $0x50] sm:$0xff]  ;;  %v3509_v22 = vmax.f32 %v7160_v30, %v7212_v56  ;;  %309 = vst [vmem:[#allocation2 + $0x18e] sm:$0xff] %v7271_v14  ;;  %v7296_v32 = vmax.f32 %v3505_v42, %v7210_v55  ;;  %v481_v30 = vmax.f32 %v7191_v46, %v7222_v60 }
  0x99   : > { %299 = vst [vmem:[#allocation2 + $0xee] sm:$0xff] %v7215_v57  ;;  %v7245_v6 = vld [vmem:[%s6839_s30 + $0x38] sm:$0xff]  ;;  %12253 = vst [vmem:[#allocation29_spill] sm:$0xff] %v7257_v10  ;;  %v7299_v29 = vmax.f32 %v3506_v43, %v7212_v56  ;;  %v7316_v42 = vld [vmem:[%s6839_s30 + $0xa8] sm:$0xff]  ;;  %v3694_v43 = vmax.f32 %v7196_v48, %v7210_v55  ;;  %v3695_v44 = vmax.f32 %v7199_v49, %v7212_v56 }
  0x9a   : > { %12250 = vst [vmem:[#allocation26_spill] sm:$0xff] %v7245_v6  ;;  %303 = vst [vmem:[#allocation2 + $0x12e] sm:$0xff] %v7245_v6  ;;  %v7260_v11 = vld [vmem:[%s6839_s30 + $0x58] sm:$0xff]  ;;  %v7329_v46 = vld [vmem:[%s6839_s30 + $0xb0] sm:$0xff]  ;;  %v7335_v58 = vmax.f32 %v3692_v54, %v7212_v56  ;;  %v3510_v49 = vmax.f32 %v7193_v47, %v7265_v13  ;;  %v7359_v35 = vmax.f32 %v12267_v36, %v7265_v13 }
  0x9b   : > { %12254 = vst [vmem:[#allocation30_spill] sm:$0xff] %v7260_v11  ;;  %306 = vst [vmem:[#allocation2 + $0x166] sm:$0xff] %v7257_v10  ;;  %v7277_v16 = vld [vmem:[%s6839_s30 + $0x78] sm:$0xff]  ;;  %v12304_v61 = vld [vmem:[#allocation31_spill] sm:$0xff] }
  0x9c   : > { %307 = vst [vmem:[#allocation2 + $0x16e] sm:$0xff] %v7260_v11  ;;  %12258 = vst [vmem:[#allocation34_spill] sm:$0xff] %v7277_v16  ;;  %v7310_v37 = vld [vmem:[%s6839_s30 + $0x98] sm:$0xff]  ;;  %v7414_v20 = vmax.f32 %v3510_v49, %v7393_v23  ;;  %v3699_v49 = vmax.f32 %v7359_v35, %v7393_v23 }
  0x9d   : > { %310 = vst [vmem:[#allocation2 + $0x1a6] sm:$0xff] %v7274_v15  ;;  %311 = vst [vmem:[#allocation2 + $0x1ae] sm:$0xff] %v7277_v16  ;;  %v7332_v51 = vld [vmem:[%s6839_s30 + $0xb8] sm:$0xff] }
  0x9e   : > { %12262 = vst [vmem:[#allocation38_spill] sm:$0xff] %v7310_v37  ;;  %12264 = vst [vmem:[#allocation40_spill] sm:$0xff] %v7316_v42  ;;  %v7442_v18 = vld [vmem:[#allocation2 + $0x112] sm:$0xff] }
  0x9f   : > { %315 = vst [vmem:[#allocation2 + $0x1ee] sm:$0xff] %v7310_v37  ;;  %317 = vst [vmem:[#allocation2 + $0x20e] sm:$0xff] %v7316_v42  ;;  %v7711_v14 = vld [vmem:[%s6839_s30 + $0xf8] sm:$0xff] }
  0xa0   : > { %12265 = vst [vmem:[#allocation41_spill] sm:$0xff] %v7329_v46  ;;  %12266 = vst [vmem:[#allocation42_spill] sm:$0xff] %v7332_v51  ;;  %v7337_v48 = vld [vmem:[#allocation2 + $0xe8] sm:$0xff]  ;;  %v7339_v40 = vld [vmem:[#allocation2 + $0xf0] sm:$0xff] }
  0xa1   : > { %318 = vst [vmem:[#allocation2 + $0x226] sm:$0xff] %v7329_v46  ;;  %319 = vst [vmem:[#allocation2 + $0x22e] sm:$0xff] %v7332_v51  ;;  %v482_v50 = vmax.f32 %v7204_v52, %v7337_v48  ;;  %v483_v39 = vmax.f32 %v7206_v53, %v7339_v40  ;;  %v7350_v54 = vmax.f32 %v603_v4, %v7337_v48  ;;  %v7368_v4 = vld [vmem:[#allocation2 + $0xea] sm:$0xff]  ;;  %v7370_v28 = vld [vmem:[#allocation2 + $0xf2] sm:$0xff] }
  0xa2   : > { %v7353_v38 = vmax.f32 %v604_v5, %v7339_v40  ;;  %v7364_v52 = vmax.f32 %v3693_v0, %v7265_v13  ;;  %v3882_v53 = vmax.f32 %v7237_v1, %v7265_v13  ;;  %v7372_v5 = vld [vmem:[#allocation2 + $0x100] sm:$0xff]  ;;  %v3511_v25 = vmax.f32 %v7210_v55, %v7368_v4  ;;  %v7532_v42 = vld [vmem:[#allocation2 + $0x132] sm:$0xff]  ;;  %12276 = vst [vmem:[#allocation51_spill] sm:$0xff] %v7711_v14 }
  0xa3   : > { %v3512_v36 = vmax.f32 %v7212_v56, %v7370_v28  ;;  %v7379_v47 = vmax.f32 %v3508_v21, %v7368_v4  ;;  %v7382_v59 = vmax.f32 %v3509_v22, %v7370_v28  ;;  %v3697_v0 = vmax.f32 %v7296_v32, %v7368_v4  ;;  %v7403_v32 = vld [vmem:[#allocation2 + $0x108] sm:$0xff]  ;;  %327 = vst [vmem:[#allocation2 + $0x2ae] sm:$0xff] %v7711_v14 }
  0xa4   : > { %v3698_v1 = vmax.f32 %v7299_v29, %v7370_v28  ;;  %v485_v24 = vmax.f32 %v7222_v60, %v7372_v5  ;;  %v7391_v55 = vmax.f32 %v481_v30, %v7372_v5  ;;  %v7396_v56 = vmax.f32 %v3694_v43, %v7368_v4  ;;  %v7405_v29 = vld [vmem:[#allocation2 + $0x110] sm:$0xff]  ;;  %v7699_v15 = vld [vmem:[#allocation2 + $0x162] sm:$0xff]  ;;  %6429 = vst [vmem:[%s8117_s25 + $0x78] sm:$0xff] %v7215_v57 }
  0xa5   : > { %v7399_v21 = vmax.f32 %v3695_v44, %v7370_v28  ;;  %v735_v22 = vmax.f32 %v7304_v33, %v7372_v5  ;;  %v3883_v60 = vmax.f32 %v7323_v45, %v7368_v4  ;;  %v3884_v30 = vmax.f32 %v7335_v58, %v7370_v28  ;;  %v7973_v6 = vld [vmem:[#allocation2 + $0x1b0] sm:$0xff]  ;;  %6431 = vst [vmem:[%s8117_s25 + $0xb8] sm:$0xff] %v7229_v62  ;;  %v12303_v57 = vld [vmem:[#allocation30_spill] sm:$0xff]  ;;  %v12305_v62 = vld [vmem:[#allocation32_spill] sm:$0xff] }
  0xa6   : > { %v3513_v43 = vmax.f32 %v7265_v13, %v7393_v23  ;;  %v486_v44 = vmax.f32 %v7337_v48, %v7403_v32  ;;  %v487_v33 = vmax.f32 %v7339_v40, %v7405_v29  ;;  %v7421_v19 = vmax.f32 %v482_v50, %v7403_v32  ;;  %6437 = vst [vmem:[%s8117_s25 + $0x178] sm:$0xff] %v12303_v57  ;;  %v12311_v57 = vld [vmem:[#allocation38_spill] sm:$0xff] }
  0xa7   : > { %v7424_v45 = vmax.f32 %v483_v39, %v7405_v29  ;;  %v736_v58 = vmax.f32 %v7350_v54, %v7403_v32  ;;  %v737_v13 = vmax.f32 %v7353_v38, %v7405_v29  ;;  %v7433_v48 = vmax.f32 %v3696_v34, %v7393_v23  ;;  %v7440_v39 = vld [vmem:[#allocation2 + $0x10a] sm:$0xff]  ;;  %v7444_v54 = vld [vmem:[#allocation2 + $0x120] sm:$0xff]  ;;  %6438 = vst [vmem:[%s8117_s25 + $0x198] sm:$0xff] %v12304_v61  ;;  %v12313_v61 = vld [vmem:[#allocation40_spill] sm:$0xff] }
  0xa8   : > { %v3885_v40 = vmax.f32 %v7364_v52, %v7393_v23  ;;  %v7438_v50 = vmax.f32 %v3882_v53, %v7393_v23  ;;  %v3514_v38 = vmax.f32 %v7368_v4, %v7440_v39  ;;  %v3515_v35 = vmax.f32 %v7370_v28, %v7442_v18  ;;  %v7466_v28 = vld [vmem:[#allocation2 + $0x122] sm:$0xff]  ;;  %6439 = vst [vmem:[%s8117_s25 + $0x1b8] sm:$0xff] %v12305_v62 }
  0xa9   : > { %v7451_v34 = vmax.f32 %v3511_v25, %v7440_v39  ;;  %v7454_v52 = vmax.f32 %v3512_v36, %v7442_v18  ;;  %v3700_v53 = vmax.f32 %v7379_v47, %v7440_v39  ;;  %v3701_v17 = vmax.f32 %v7382_v59, %v7442_v18  ;;  %6445 = vst [vmem:[%s8117_s25 + $0x278] sm:$0xff] %v12311_v57  ;;  %v12314_v62 = vld [vmem:[#allocation41_spill] sm:$0xff] }
  0xaa   : > { %v7461_v7 = vmax.f32 %v3697_v0, %v7440_v39  ;;  %v7464_v4 = vmax.f32 %v3698_v1, %v7442_v18  ;;  %v489_v25 = vmax.f32 %v7372_v5, %v7444_v54  ;;  %v7471_v36 = vmax.f32 %v485_v24, %v7444_v54  ;;  %v7485_v5 = vld [vmem:[#allocation2 + $0x128] sm:$0xff]  ;;  %v7487_v24 = vld [vmem:[#allocation2 + $0x130] sm:$0xff]  ;;  %6447 = vst [vmem:[%s8117_s25 + $0x2b8] sm:$0xff] %v12313_v61 }
  0xab   : > { %v739_v47 = vmax.f32 %v7391_v55, %v7444_v54  ;;  %v7476_v59 = vmax.f32 %v735_v22, %v7444_v54  ;;  %v3886_v0 = vmax.f32 %v7396_v56, %v7440_v39  ;;  %v3887_v1 = vmax.f32 %v7399_v21, %v7442_v18  ;;  %v7500_v21 = vld [vmem:[%s6839_s30 + $0xc0] sm:$0xff]  ;;  %6448 = vst [vmem:[%s8117_s25 + $0x2d8] sm:$0xff] %v12314_v62 }
  0xac   : > { %v7483_v3 = vmax.f32 %v3883_v60, %v7440_v39  ;;  %v7490_v2 = vmax.f32 %v3884_v30, %v7442_v18  ;;  %v3516_v55 = vmax.f32 %v7393_v23, %v7466_v28  ;;  %v7495_v22 = vmax.f32 %v3513_v43, %v7466_v28  ;;  %12268 = vst [vmem:[#allocation43_spill] sm:$0xff] %v7500_v21  ;;  %v7503_v60 = vld [vmem:[%s6839_s30 + $0xc8] sm:$0xff] }
  0xad   : > { %v3702_v56 = vmax.f32 %v7414_v20, %v7466_v28  ;;  %12269 = vst [vmem:[#allocation44_spill] sm:$0xff] %v7503_v60  ;;  %v490_v51 = vmax.f32 %v7403_v32, %v7485_v5  ;;  %v491_v30 = vmax.f32 %v7405_v29, %v7487_v24  ;;  %v7510_v46 = vmax.f32 %v486_v44, %v7485_v5  ;;  %v7518_v20 = vld [vmem:[%s6839_s30 + $0xd0] sm:$0xff] }
  0xae   : > { %v7513_v23 = vmax.f32 %v487_v33, %v7487_v24  ;;  %320 = vst [vmem:[#allocation2 + $0x246] sm:$0xff] %v7500_v21  ;;  %321 = vst [vmem:[#allocation2 + $0x24e] sm:$0xff] %v7503_v60  ;;  %v740_v43 = vmax.f32 %v7421_v19, %v7485_v5  ;;  %v741_v32 = vmax.f32 %v7424_v45, %v7487_v24  ;;  %v7530_v33 = vld [vmem:[#allocation2 + $0x12a] sm:$0xff]  ;;  %v7536_v60 = vld [vmem:[%s6839_s30 + $0xd8] sm:$0xff] }
  0xaf   : > { %12270 = vst [vmem:[#allocation45_spill] sm:$0xff] %v7518_v20  ;;  %v7525_v29 = vmax.f32 %v736_v58, %v7485_v5  ;;  %v7528_v44 = vmax.f32 %v737_v13, %v7487_v24  ;;  %322 = vst [vmem:[#allocation2 + $0x266] sm:$0xff] %v7518_v20  ;;  %v7539_v21 = vmax.f32 %v3699_v49, %v7466_v28 }
  0xb0   : > { %12271 = vst [vmem:[#allocation46_spill] sm:$0xff] %v7536_v60  ;;  %v3888_v19 = vmax.f32 %v7433_v48, %v7466_v28  ;;  %323 = vst [vmem:[#allocation2 + $0x26e] sm:$0xff] %v7536_v60  ;;  %v7545_v45 = vmax.f32 %v3885_v40, %v7466_v28  ;;  %v4074_v58 = vmax.f32 %v7438_v50, %v7466_v28  ;;  %v7575_v60 = vld [vmem:[#allocation2 + $0x142] sm:$0xff] }
  0xb1   : > { %v3517_v13 = vmax.f32 %v7440_v39, %v7530_v33  ;;  %v3518_v20 = vmax.f32 %v7442_v18, %v7532_v42  ;;  %v7556_v49 = vmax.f32 %v3514_v38, %v7530_v33  ;;  %v7559_v48 = vmax.f32 %v3515_v35, %v7532_v42 }
  0xb2   : > { %v3703_v40 = vmax.f32 %v7451_v34, %v7530_v33  ;;  %v3704_v50 = vmax.f32 %v7454_v52, %v7532_v42  ;;  %v7566_v39 = vmax.f32 %v3700_v53, %v7530_v33  ;;  %v7569_v18 = vmax.f32 %v3701_v17, %v7532_v42 }
  0xb3   : > { %v3889_v38 = vmax.f32 %v7461_v7, %v7530_v33  ;;  %v3890_v35 = vmax.f32 %v7464_v4, %v7532_v42  ;;  %v493_v34 = vmax.f32 %v7444_v54, %v7553_v41  ;;  %v7580_v37 = vmax.f32 %v489_v25, %v7553_v41  ;;  %v7597_v54 = vld [vmem:[#allocation2 + $0x150] sm:$0xff]  ;;  %v7600_v25 = vld [vmem:[%s6839_s30 + $0xe0] sm:$0xff] }
  0xb4   : > { %v743_v52 = vmax.f32 %v7471_v36, %v7553_v41  ;;  %v7585_v17 = vmax.f32 %v739_v47, %v7553_v41  ;;  %v7588_v53 = vmax.f32 %v3886_v0, %v7530_v33  ;;  %v7591_v7 = vmax.f32 %v3887_v1, %v7532_v42  ;;  %12272 = vst [vmem:[#allocation47_spill] sm:$0xff] %v7600_v25 }
  0xb5   : > { %v993_v4 = vmax.f32 %v7476_v59, %v7553_v41  ;;  %v4075_v36 = vmax.f32 %v7483_v3, %v7530_v33  ;;  %v4076_v47 = vmax.f32 %v7490_v2, %v7532_v42  ;;  %v3519_v0 = vmax.f32 %v7466_v28, %v7575_v60  ;;  %324 = vst [vmem:[#allocation2 + $0x286] sm:$0xff] %v7600_v25 }
  0xb6   : > { %v7609_v1 = vmax.f32 %v3516_v55, %v7575_v60  ;;  %v3705_v59 = vmax.f32 %v7495_v22, %v7575_v60  ;;  %v7615_v27 = vmax.f32 %v3702_v56, %v7575_v60  ;;  %v494_v3 = vmax.f32 %v7485_v5, %v7595_v31  ;;  %v7632_v56 = vld [vmem:[%s6839_s30 + $0xe8] sm:$0xff] }
  0xb7   : > { %v495_v2 = vmax.f32 %v7487_v24, %v7597_v54  ;;  %v7622_v26 = vmax.f32 %v490_v51, %v7595_v31  ;;  %v7625_v28 = vmax.f32 %v491_v30, %v7597_v54  ;;  %v744_v55 = vmax.f32 %v7510_v46, %v7595_v31  ;;  %12273 = vst [vmem:[#allocation48_spill] sm:$0xff] %v7632_v56  ;;  %v7644_v30 = vld [vmem:[#allocation2 + $0x14a] sm:$0xff]  ;;  %v7646_v46 = vld [vmem:[#allocation2 + $0x152] sm:$0xff] }
  0xb8   : > { %v745_v22 = vmax.f32 %v7513_v23, %v7597_v54  ;;  %v7635_v25 = vmax.f32 %v740_v43, %v7595_v31  ;;  %v7638_v5 = vmax.f32 %v741_v32, %v7597_v54  ;;  %v994_v51 = vmax.f32 %v7525_v29, %v7595_v31  ;;  %325 = vst [vmem:[#allocation2 + $0x28e] sm:$0xff] %v7632_v56 }
  0xb9   : > { %v995_v24 = vmax.f32 %v7528_v44, %v7597_v54  ;;  %v3891_v23 = vmax.f32 %v7539_v21, %v7575_v60  ;;  %v7652_v43 = vmax.f32 %v3888_v19, %v7575_v60  ;;  %v4077_v32 = vmax.f32 %v7545_v45, %v7575_v60  ;;  %v7669_v19 = vld [vmem:[#allocation2 + $0x160] sm:$0xff] }
  0xba   : > { %v7657_v29 = vmax.f32 %v4074_v58, %v7575_v60  ;;  %v3520_v44 = vmax.f32 %v7530_v33, %v7644_v30  ;;  %v3521_v16 = vmax.f32 %v7532_v42, %v7646_v46  ;;  %v7664_v56 = vmax.f32 %v3517_v13, %v7644_v30 }
  0xbb   : > { %v7667_v21 = vmax.f32 %v3518_v20, %v7646_v46  ;;  %v3706_v45 = vmax.f32 %v7556_v49, %v7644_v30  ;;  %v3707_v58 = vmax.f32 %v7559_v48, %v7646_v46  ;;  %v7676_v33 = vmax.f32 %v3703_v40, %v7644_v30 }
  0xbc   : > { %12274 = vst [vmem:[#allocation49_spill] sm:$0xff] %v7657_v29  ;;  %v7679_v42 = vmax.f32 %v3704_v50, %v7646_v46  ;;  %v3892_v13 = vmax.f32 %v7566_v39, %v7644_v30  ;;  %v3893_v20 = vmax.f32 %v7569_v18, %v7646_v46  ;;  %v7686_v29 = vld [vmem:[%s6839_s30 + $0xf0] sm:$0xff]  ;;  %v7689_v49 = vmax.f32 %v3889_v38, %v7644_v30 }
  0xbd   : > { %12275 = vst [vmem:[#allocation50_spill] sm:$0xff] %v7686_v29  ;;  %v7692_v48 = vmax.f32 %v3890_v35, %v7646_v46  ;;  %v497_v40 = vmax.f32 %v7553_v41, %v7669_v19  ;;  %v7697_v50 = vmax.f32 %v493_v34, %v7669_v19  ;;  %326 = vst [vmem:[#allocation2 + $0x2a6] sm:$0xff] %v7686_v29 }
  0xbe   : > { %v747_v39 = vmax.f32 %v7580_v37, %v7669_v19  ;;  %v7705_v18 = vmax.f32 %v743_v52, %v7669_v19  ;;  %v997_v38 = vmax.f32 %v7585_v17, %v7669_v19  ;;  %v1121_v35 = vmax.f32 %v993_v4, %v7669_v19  ;;  %v7720_v37 = vld [vmem:[#allocation2 + $0x168] sm:$0xff]  ;;  %v7722_v52 = vld [vmem:[#allocation2 + $0x170] sm:$0xff] }
  0xbf   : > { %v4078_v41 = vmax.f32 %v7588_v53, %v7644_v30  ;;  %v4079_v34 = vmax.f32 %v7591_v7, %v7646_v46  ;;  %v7718_v29 = vmax.f32 %v4075_v36, %v7644_v30  ;;  %v7726_v17 = vmax.f32 %v4076_v47, %v7646_v46 }
  0xc0   : > { %v3522_v4 = vmax.f32 %v7575_v60, %v7699_v15  ;;  %v7731_v53 = vmax.f32 %v3519_v0, %v7699_v15  ;;  %v3708_v7 = vmax.f32 %v7609_v1, %v7699_v15  ;;  %v7736_v36 = vmax.f32 %v3705_v59, %v7699_v15 }
  0xc1   : > { %12277 = vst [vmem:[#allocation52_spill] sm:$0xff] %v7718_v29  ;;  %12278 = vst [vmem:[#allocation53_spill] sm:$0xff] %v7726_v17  ;;  %v498_v29 = vmax.f32 %v7595_v31, %v7720_v37  ;;  %v499_v14 = vmax.f32 %v7597_v54, %v7722_v52  ;;  %v7743_v47 = vmax.f32 %v494_v3, %v7720_v37  ;;  %v7763_v17 = vld [vmem:[#allocation2 + $0x16a] sm:$0xff] }
  0xc2   : > { %v7746_v60 = vmax.f32 %v495_v2, %v7722_v52  ;;  %v748_v0 = vmax.f32 %v7622_v26, %v7720_v37  ;;  %v749_v1 = vmax.f32 %v7625_v28, %v7722_v52  ;;  %v7753_v59 = vmax.f32 %v744_v55, %v7720_v37  ;;  %v7768_v55 = vld [vmem:[#allocation2 + $0x172] sm:$0xff] }
  0xc3   : > { %v7756_v31 = vmax.f32 %v745_v22, %v7722_v52  ;;  %v998_v54 = vmax.f32 %v7635_v25, %v7720_v37  ;;  %v999_v3 = vmax.f32 %v7638_v5, %v7722_v52  ;;  %v1122_v2 = vmax.f32 %v994_v51, %v7720_v37 }
  0xc4   : > { %v3894_v26 = vmax.f32 %v7615_v27, %v7699_v15  ;;  %v1123_v28 = vmax.f32 %v995_v24, %v7722_v52  ;;  %v7771_v22 = vmax.f32 %v3891_v23, %v7699_v15  ;;  %v4080_v25 = vmax.f32 %v7652_v43, %v7699_v15  ;;  %v7788_v23 = vld [vmem:[#allocation2 + $0x180] sm:$0xff]  ;;  %v12322_v57 = vld [vmem:[#allocation50_spill] sm:$0xff] }
  0xc5   : > { %v7776_v12 = vmax.f32 %v4077_v32, %v7699_v15  ;;  %v3523_v5 = vmax.f32 %v7644_v30, %v7763_v17  ;;  %v3524_v51 = vmax.f32 %v7646_v46, %v7768_v55  ;;  %v7783_v27 = vmax.f32 %v3520_v44, %v7763_v17  ;;  %6456 = vst [vmem:[%s8117_s25 + $0x3d8] sm:$0xff] %v12322_v57 }
  0xc6   : > { %v7786_v24 = vmax.f32 %v3521_v16, %v7768_v55  ;;  %v3709_v43 = vmax.f32 %v7664_v56, %v7763_v17  ;;  %v3710_v32 = vmax.f32 %v7667_v21, %v7768_v55  ;;  %v7798_v30 = vmax.f32 %v3707_v58, %v7768_v55 }
  0xc7   : > { %12279 = vst [vmem:[#allocation54_spill] sm:$0xff] %v7776_v12  ;;  %v7795_v12 = vmax.f32 %v3706_v45, %v7763_v17  ;;  %v3895_v46 = vmax.f32 %v7676_v33, %v7763_v17  ;;  %v3896_v16 = vmax.f32 %v7679_v42, %v7768_v55  ;;  %v7805_v44 = vmax.f32 %v3892_v13, %v7763_v17  ;;  %v7812_v45 = vld [vmem:[#allocation2 + $0x182] sm:$0xff] }
  0xc8   : > { %v7808_v56 = vmax.f32 %v3893_v20, %v7768_v55  ;;  %v501_v21 = vmax.f32 %v7669_v19, %v7788_v23  ;;  %v7815_v58 = vmax.f32 %v497_v40, %v7788_v23  ;;  %v751_v33 = vmax.f32 %v7697_v50, %v7788_v23  ;;  %v7832_v40 = vld [vmem:[#allocation2 + $0x188] sm:$0xff] }
  0xc9   : > { %v7820_v11 = vmax.f32 %v747_v39, %v7788_v23  ;;  %v1001_v42 = vmax.f32 %v7705_v18, %v7788_v23  ;;  %v4081_v13 = vmax.f32 %v7689_v49, %v7763_v17  ;;  %v7827_v20 = vmax.f32 %v997_v38, %v7788_v23  ;;  %v7844_v18 = vld [vmem:[#allocation2 + $0x190] sm:$0xff] }
  0xca   : > { %v7830_v19 = vmax.f32 %v1121_v35, %v7788_v23  ;;  %v4082_v50 = vmax.f32 %v7692_v48, %v7768_v55  ;;  %v7837_v39 = vmax.f32 %v4078_v41, %v7763_v17  ;;  %v7840_v10 = vmax.f32 %v4079_v34, %v7768_v55 }
  0xcb   : > { %v3525_v49 = vmax.f32 %v7699_v15, %v7812_v45  ;;  %v7847_v38 = vmax.f32 %v3522_v4, %v7812_v45  ;;  %v3711_v35 = vmax.f32 %v7731_v53, %v7812_v45  ;;  %v7852_v9 = vmax.f32 %v3708_v7, %v7812_v45 }
  0xcc   : > { %12280 = vst [vmem:[#allocation55_spill] sm:$0xff] %v7830_v19  ;;  %12281 = vst [vmem:[#allocation56_spill] sm:$0xff] %v7837_v39  ;;  %v502_v48 = vmax.f32 %v7720_v37, %v7832_v40  ;;  %v503_v41 = vmax.f32 %v7722_v52, %v7844_v18  ;;  %v7859_v34 = vmax.f32 %v498_v29, %v7832_v40 }
  0xcd   : > { %12282 = vst [vmem:[#allocation57_spill] sm:$0xff] %v7840_v10  ;;  %v7862_v15 = vmax.f32 %v499_v14, %v7844_v18  ;;  %v752_v4 = vmax.f32 %v7743_v47, %v7832_v40  ;;  %v753_v53 = vmax.f32 %v7746_v60, %v7844_v18  ;;  %v7869_v7 = vmax.f32 %v748_v0, %v7832_v40  ;;  %v7887_v0 = vld [vmem:[#allocation2 + $0x18a] sm:$0xff] }
  0xce   : > { %v7872_v37 = vmax.f32 %v749_v1, %v7844_v18  ;;  %v1002_v52 = vmax.f32 %v7753_v59, %v7832_v40  ;;  %v1003_v29 = vmax.f32 %v7756_v31, %v7844_v18  ;;  %v7879_v14 = vmax.f32 %v998_v54, %v7832_v40  ;;  %v7894_v59 = vld [vmem:[#allocation2 + $0x192] sm:$0xff] }
  0xcf   : > { %v7882_v47 = vmax.f32 %v999_v3, %v7844_v18  ;;  %v7885_v60 = vmax.f32 %v1122_v2, %v7832_v40  ;;  %v3897_v1 = vmax.f32 %v7736_v36, %v7812_v45  ;;  %v7892_v10 = vmax.f32 %v1123_v28, %v7844_v18 }
  0xd0   : > { %v7897_v31 = vmax.f32 %v3894_v26, %v7812_v45  ;;  %v4083_v54 = vmax.f32 %v7771_v22, %v7812_v45  ;;  %v7902_v3 = vmax.f32 %v4080_v25, %v7812_v45  ;;  %v3526_v2 = vmax.f32 %v7763_v17, %v7887_v0  ;;  %v7914_v26 = vld [vmem:[#allocation2 + $0x1a0] sm:$0xff] }
  0xd1   : > { %12283 = vst [vmem:[#allocation58_spill] sm:$0xff] %v7885_v60  ;;  %12284 = vst [vmem:[#allocation59_spill] sm:$0xff] %v7892_v10  ;;  %v3527_v36 = vmax.f32 %v7768_v55, %v7894_v59  ;;  %v7909_v28 = vmax.f32 %v3523_v5, %v7887_v0  ;;  %v7912_v39 = vmax.f32 %v3524_v51, %v7894_v59 }
  0xd2   : > { %12285 = vst [vmem:[#allocation60_spill] sm:$0xff] %v7902_v3  ;;  %v3712_v22 = vmax.f32 %v7783_v27, %v7887_v0  ;;  %v3713_v25 = vmax.f32 %v7786_v24, %v7894_v59  ;;  %v7921_v3 = vmax.f32 %v3709_v43, %v7887_v0  ;;  %v7924_v17 = vmax.f32 %v3710_v32, %v7894_v59  ;;  %v7938_v43 = vld [vmem:[#allocation2 + $0x1a2] sm:$0xff] }
  0xd3   : > { %v3898_v55 = vmax.f32 %v7795_v12, %v7887_v0  ;;  %v3899_v5 = vmax.f32 %v7798_v30, %v7894_v59  ;;  %v7931_v51 = vmax.f32 %v3895_v46, %v7887_v0  ;;  %v7934_v27 = vmax.f32 %v3896_v16, %v7894_v59 }
  0xd4   : > { %12286 = vst [vmem:[#allocation61_spill] sm:$0xff] %v7921_v3  ;;  %v505_v24 = vmax.f32 %v7788_v23, %v7914_v26  ;;  %v7941_v32 = vmax.f32 %v501_v21, %v7914_v26  ;;  %v755_v12 = vmax.f32 %v7815_v58, %v7914_v26  ;;  %v7946_v8 = vmax.f32 %v751_v33, %v7914_v26  ;;  %v7961_v58 = vld [vmem:[#allocation2 + $0x1a8] sm:$0xff] }
  0xd5   : > { %v1005_v30 = vmax.f32 %v7820_v11, %v7914_v26  ;;  %v4084_v46 = vmax.f32 %v7805_v44, %v7887_v0  ;;  %v7953_v16 = vmax.f32 %v1001_v42, %v7914_v26  ;;  %v1254_v23 = vmax.f32 %v7827_v20, %v7914_v26 }
  0xd6   : > { %v7959_v21 = vmax.f32 %v7830_v19, %v7914_v26  ;;  %v4085_v33 = vmax.f32 %v7808_v56, %v7894_v59  ;;  %v7966_v11 = vmax.f32 %v4081_v13, %v7887_v0  ;;  %v7969_v44 = vmax.f32 %v4082_v50, %v7894_v59 }
  0xd7   : > { %v3528_v42 = vmax.f32 %v7812_v45, %v7938_v43  ;;  %v7976_v20 = vmax.f32 %v3525_v49, %v7938_v43  ;;  %v7981_v63 = vmax.f32 %v3711_v35, %v7938_v43  ;;  %v7988_v50 = vmax.f32 %v502_v48, %v7961_v58 }
  0xd8   : > { %12287 = vst [vmem:[#allocation62_spill] sm:$0xff] %v7959_v21  ;;  %12288 = vst [vmem:[#allocation63_spill] sm:$0xff] %v7966_v11  ;;  %v7991_v45 = vmax.f32 %v503_v41, %v7973_v6  ;;  %v7998_v35 = vmax.f32 %v752_v4, %v7961_v58  ;;  %v8001_v56 = vmax.f32 %v753_v53, %v7973_v6  ;;  %v8015_v4 = vld [vmem:[#allocation2 + $0x1aa] sm:$0xff] }
  0xd9   : > { %12289 = vst [vmem:[#allocation64_spill] sm:$0xff] %v7969_v44  ;;  %v8008_v41 = vmax.f32 %v1002_v52, %v7961_v58  ;;  %v8011_v49 = vmax.f32 %v1003_v29, %v7973_v6  ;;  %v8023_v48 = vmax.f32 %v7885_v60, %v7961_v58  ;;  %v8027_v52 = vmax.f32 %v7892_v10, %v7973_v6  ;;  %v8029_v29 = vld [vmem:[#allocation2 + $0x1b2] sm:$0xff] }
  0xda   : > { %v8032_v19 = vmax.f32 %v3897_v1, %v7938_v43  ;;  %v8037_v53 = vmax.f32 %v4083_v54, %v7938_v43  ;;  %v8044_v10 = vmax.f32 %v3526_v2, %v8015_v4  ;;  %v8047_v11 = vmax.f32 %v3527_v36, %v8029_v29  ;;  %v8049_v1 = vld [vmem:[#allocation2 + $0x1c0] sm:$0xff]  ;;  %v8108_v2 = vld [vmem:[#allocation2 + $0x1d0] sm:$0xff] }
  0xdb   : > { %12290 = vst [vmem:[#allocation65_spill] sm:$0xff] %v8023_v48  ;;  %12291 = vst [vmem:[#allocation66_spill] sm:$0xff] %v8027_v52  ;;  %v8059_v13 = vmax.f32 %v3713_v25, %v8029_v29  ;;  %v8066_v60 = vmax.f32 %v3898_v55, %v8015_v4  ;;  %v8069_v44 = vmax.f32 %v3899_v5, %v8029_v29  ;;  %v8073_v54 = vld [vmem:[#allocation2 + $0x1c2] sm:$0xff] }
  0xdc   : > { %12292 = vst [vmem:[#allocation67_spill] sm:$0xff] %v8037_v53  ;;  %v8056_v53 = vmax.f32 %v3712_v22, %v8015_v4  ;;  %v8076_v25 = vmax.f32 %v505_v24, %v8049_v1  ;;  %v8081_v3 = vmax.f32 %v755_v12, %v8049_v1  ;;  %v8088_v36 = vmax.f32 %v1005_v30, %v8049_v1  ;;  %v12298_v30 = vld [vmem:[#allocation25_spill] sm:$0xff]  ;;  %v12301_v12 = vld [vmem:[#allocation28_spill] sm:$0xff] }
  0xdd   : > { %12293 = vst [vmem:[#allocation68_spill] sm:$0xff] %v8066_v60  ;;  %12294 = vst [vmem:[#allocation69_spill] sm:$0xff] %v8069_v44  ;;  %v8093_v24 = vmax.f32 %v1254_v23, %v8049_v1  ;;  %v8095_v44 = vld [vmem:[#allocation2 + $0x1c8] sm:$0xff]  ;;  %v8101_v55 = vmax.f32 %v4084_v46, %v8015_v4  ;;  %v8104_v5 = vmax.f32 %v4085_v33, %v8029_v29 }
  0xde   : > { %v8112_v23 = vmax.f32 %v7959_v21, %v8049_v1  ;;  %v8115_v22 = vmax.f32 %v3528_v42, %v8073_v54  ;;  %v6612_v46 = vld [vmem:[#allocation2 + $0xc6] sm:$0xff]  ;;  %v6613_v33 = vld [vmem:[#allocation2 + $0xce] sm:$0xff]  ;;  %6432 = vst [vmem:[%s8117_s25 + $0xd8] sm:$0xff] %v12298_v30  ;;  %6435 = vst [vmem:[%s8117_s25 + $0x138] sm:$0xff] %v12301_v12  ;;  %v3717_v61 = vmax.f32 %v7976_v20, %v8073_v54 }
  0xdf   : > { %12295 = vst [vmem:[#allocation70_spill] sm:$0xff] %v8101_v55  ;;  %12296 = vst [vmem:[#allocation71_spill] sm:$0xff] %v8104_v5  ;;  %v6614_v42 = vld [vmem:[#allocation2 + $0xe6] sm:$0xff]  ;;  %v12309_v12 = vld [vmem:[#allocation36_spill] sm:$0xff]  ;;  %v12326_v20 = vmax.f32 %v7844_v18, %v7973_v6  ;;  %v12327_v57 = vmax.f32 %v7859_v34, %v7961_v58  ;;  %v1010_v18 = vmax.f32 %v7998_v35, %v8095_v44 }
  0xe0   : > { %12297 = vst [vmem:[#allocation72_spill] sm:$0xff] %v8112_v23  ;;  %6426 = vst [vmem:[%s8117_s25 + $0x18] sm:$0xff] %v6612_v46  ;;  %v12299_v46 = vld [vmem:[#allocation26_spill] sm:$0xff]  ;;  %v12306_v30 = vld [vmem:[#allocation33_spill] sm:$0xff]  ;;  %v12330_v34 = vmax.f32 %v7872_v37, %v7973_v6  ;;  %v1260_v35 = vmax.f32 %v8011_v49, %v8108_v2  ;;  %v12332_v37 = vmax.f32 %v7882_v47, %v7973_v6 }
  0xe1   : > { %6427 = vst [vmem:[%s8117_s25 + $0x38] sm:$0xff] %v6613_v33  ;;  %6428 = vst [vmem:[%s8117_s25 + $0x58] sm:$0xff] %v6614_v42  ;;  %v12300_v33 = vld [vmem:[#allocation27_spill] sm:$0xff]  ;;  %v12302_v42 = vld [vmem:[#allocation29_spill] sm:$0xff]  ;;  %v4089_v49 = vmax.f32 %v8032_v19, %v8073_v54  ;;  %v8278_v47 = vmax.f32 %v8027_v52, %v8108_v2 }
  0xe2   : > { %6433 = vst [vmem:[%s8117_s25 + $0xf8] sm:$0xff] %v12299_v46  ;;  %6434 = vst [vmem:[%s8117_s25 + $0x118] sm:$0xff] %v12300_v33  ;;  %v12307_v46 = vld [vmem:[#allocation34_spill] sm:$0xff]  ;;  %v12308_v33 = vld [vmem:[#allocation35_spill] sm:$0xff] }
  0xe3   : > { %6436 = vst [vmem:[%s8117_s25 + $0x158] sm:$0xff] %v12302_v42  ;;  %6440 = vst [vmem:[%s8117_s25 + $0x1d8] sm:$0xff] %v12306_v30  ;;  %v12310_v42 = vld [vmem:[#allocation37_spill] sm:$0xff]  ;;  %v12312_v21 = vld [vmem:[#allocation39_spill] sm:$0xff] }
  0xe4   : > { %6441 = vst [vmem:[%s8117_s25 + $0x1f8] sm:$0xff] %v12307_v46  ;;  %6442 = vst [vmem:[%s8117_s25 + $0x218] sm:$0xff] %v12308_v33  ;;  %v12315_v5 = vld [vmem:[#allocation42_spill] sm:$0xff]  ;;  %v12316_v30 = vld [vmem:[#allocation43_spill] sm:$0xff] }
  0xe5   : > { %6443 = vst [vmem:[%s8117_s25 + $0x238] sm:$0xff] %v12309_v12  ;;  %6444 = vst [vmem:[%s8117_s25 + $0x258] sm:$0xff] %v12310_v42  ;;  %v12317_v46 = vld [vmem:[#allocation44_spill] sm:$0xff]  ;;  %v12318_v55 = vld [vmem:[#allocation45_spill] sm:$0xff] }
  0xe6   : > { %6446 = vst [vmem:[%s8117_s25 + $0x298] sm:$0xff] %v12312_v21  ;;  %6449 = vst [vmem:[%s8117_s25 + $0x2f8] sm:$0xff] %v12315_v5  ;;  %v12319_v33 = vld [vmem:[#allocation46_spill] sm:$0xff]  ;;  %v12320_v12 = vld [vmem:[#allocation47_spill] sm:$0xff]  ;;  %v12324_v5 = vmax.f32 %v7847_v38, %v7938_v43  ;;  %v760_v38 = vmax.f32 %v7988_v50, %v8095_v44  ;;  %v1011_v50 = vmax.f32 %v8001_v56, %v8108_v2 }
  0xe7   : > { %6450 = vst [vmem:[%s8117_s25 + $0x318] sm:$0xff] %v12316_v30  ;;  %6451 = vst [vmem:[%s8117_s25 + $0x338] sm:$0xff] %v12317_v46  ;;  %v12321_v42 = vld [vmem:[#allocation48_spill] sm:$0xff]  ;;  %v12323_v21 = vld [vmem:[#allocation51_spill] sm:$0xff]  ;;  %v511_v30 = vmax.f32 %v7973_v6, %v8108_v2  ;;  %v12325_v46 = vmax.f32 %v7832_v40, %v7961_v58  ;;  %v12328_v40 = vmax.f32 %v7862_v15, %v7973_v6 }
  0xe8   : > { %6452 = vst [vmem:[%s8117_s25 + $0x358] sm:$0xff] %v12318_v55  ;;  %6453 = vst [vmem:[%s8117_s25 + $0x378] sm:$0xff] %v12319_v33  ;;  %v8186_v62 = vmax.f32 %v12324_v5, %v8073_v54  ;;  %v510_v55 = vmax.f32 %v7961_v58, %v8095_v44  ;;  %v1259_v15 = vmax.f32 %v8008_v41, %v8095_v44  ;;  %v8256_v41 = vld [vmem:[#allocation2 + $0x1d2] sm:$0xff] }
  0xe9   : > { %6454 = vst [vmem:[%s8117_s25 + $0x398] sm:$0xff] %v12320_v12  ;;  %6455 = vst [vmem:[%s8117_s25 + $0x3b8] sm:$0xff] %v12321_v42  ;;  %v8196_v33 = vmax.f32 %v12325_v46, %v8095_v44  ;;  %v8202_v12 = vmax.f32 %v12326_v20, %v8108_v2  ;;  %v761_v42 = vmax.f32 %v7991_v45, %v8108_v2 }
  0xea   : > { %6457 = vst [vmem:[%s8117_s25 + $0x3f8] sm:$0xff] %v12323_v21  ;;  %v8212_v21 = vmax.f32 %v12327_v57, %v8095_v44  ;;  %v8218_v5 = vmax.f32 %v12328_v40, %v8108_v2  ;;  %v12329_v45 = vmax.f32 %v7869_v7, %v7961_v58  ;;  %v8234_v20 = vmax.f32 %v12330_v34, %v8108_v2  ;;  %v8238_v57 = vld [vmem:[#allocation2 + $0x1ca] sm:$0xff] }
  0xeb   : > { %v12331_v7 = vmax.f32 %v7879_v14, %v7961_v58  ;;  %v12333_v34 = vmax.f32 %v7852_v9, %v7938_v43  ;;  %v12334_v14 = vmax.f32 %v7897_v31, %v7938_v43  ;;  %v8274_v6 = vmax.f32 %v8023_v48, %v8095_v44  ;;  %12337 = vst [vmem:[#allocation27_spill] sm:$0xff] %v8278_v47 }
  0xec   : > { %v8228_v46 = vmax.f32 %v12329_v45, %v8095_v44  ;;  %v8254_v45 = vmax.f32 %v12332_v37, %v8108_v2  ;;  %v3532_v9 = vmax.f32 %v8015_v4, %v8238_v57  ;;  %v3533_v19 = vmax.f32 %v8029_v29, %v8256_v41 }
  0xed   : > { %v8248_v40 = vmax.f32 %v12331_v7, %v8095_v44  ;;  %v8262_v56 = vmax.f32 %v12333_v34, %v8073_v54  ;;  %v8270_v58 = vmax.f32 %v12334_v14, %v8073_v54  ;;  %12336 = vst [vmem:[#allocation26_spill] sm:$0xff] %v8274_v6  ;;  %v12338_v31 = vmax.f32 %v7887_v0, %v8015_v4  ;;  %v8296_v14 = vld [vmem:[#allocation2 + $0x1e0] sm:$0xff] }
  0xee   : > { %v12340_v37 = vmax.f32 %v7894_v59, %v8029_v29  ;;  %v3718_v52 = vmax.f32 %v8044_v10, %v8238_v57  ;;  %v3719_v48 = vmax.f32 %v8047_v11, %v8256_v41  ;;  %v12342_v0 = vmax.f32 %v7909_v28, %v8015_v4  ;;  %v12345_v11 = vld [vmem:[#allocation61_spill] sm:$0xff] }
  0xef   : > { %12335 = vst [vmem:[#allocation25_spill] sm:$0xff] %v8270_v58  ;;  %v8288_v7 = vmax.f32 %v12338_v31, %v8238_v57  ;;  %v12344_v59 = vmax.f32 %v7912_v39, %v8029_v29  ;;  %v3904_v58 = vmax.f32 %v8056_v53, %v8238_v57  ;;  %v3905_v10 = vmax.f32 %v8059_v13, %v8256_v41 }
  0xf0   : > { %v8294_v34 = vmax.f32 %v12340_v37, %v8256_v41  ;;  %v8306_v31 = vmax.f32 %v12342_v0, %v8238_v57  ;;  %v12348_v28 = vmax.f32 %v7924_v17, %v8029_v29  ;;  %v513_v39 = vmax.f32 %v8049_v1, %v8296_v14 }
  0xf1   : > { %12339 = vst [vmem:[#allocation28_spill] sm:$0xff] %v8288_v7  ;;  %v8312_v37 = vmax.f32 %v12344_v59, %v8256_v41  ;;  %v8332_v59 = vld [vmem:[#allocation2 + $0x1e2] sm:$0xff]  ;;  %v12350_v13 = vmax.f32 %v7914_v26, %v8049_v1  ;;  %v12351_v17 = vmax.f32 %v7941_v32, %v8049_v1  ;;  %v12353_v26 = vmax.f32 %v7946_v8, %v8049_v1 }
  0xf2   : > { %12341 = vst [vmem:[#allocation29_spill] sm:$0xff] %v8294_v34  ;;  %12343 = vst [vmem:[#allocation30_spill] sm:$0xff] %v8306_v31  ;;  %v12346_v34 = vmax.f32 %v12345_v11, %v8015_v4  ;;  %v8328_v0 = vmax.f32 %v12348_v28, %v8256_v41  ;;  %v1013_v28 = vmax.f32 %v8081_v3, %v8296_v14  ;;  %v12355_v3 = vld [vmem:[#allocation69_spill] sm:$0xff] }
  0xf3   : > { %v8338_v53 = vmax.f32 %v12350_v13, %v8296_v14  ;;  %v8346_v11 = vmax.f32 %v12351_v17, %v8296_v14  ;;  %v8356_v13 = vmax.f32 %v12353_v26, %v8296_v14  ;;  %v12354_v32 = vmax.f32 %v7953_v16, %v8049_v1  ;;  %v8384_v1 = vld [vmem:[#allocation2 + $0x1f0] sm:$0xff] }
  0xf4   : > { %v8322_v7 = vmax.f32 %v12346_v34, %v8238_v57  ;;  %12349 = vst [vmem:[#allocation32_spill] sm:$0xff] %v8328_v0  ;;  %v763_v34 = vmax.f32 %v8076_v25, %v8296_v14  ;;  %v1262_v25 = vmax.f32 %v8088_v36, %v8296_v14  ;;  %v4091_v0 = vmax.f32 %v12355_v3, %v8256_v41 }
  0xf5   : > { %12352 = vst [vmem:[#allocation33_spill] sm:$0xff] %v8346_v11  ;;  %v8364_v17 = vmax.f32 %v12354_v32, %v8296_v14  ;;  %v12356_v8 = vmax.f32 %v7931_v51, %v8015_v4  ;;  %v12358_v36 = vmax.f32 %v7934_v27, %v8029_v29  ;;  %v1512_v32 = vmax.f32 %v8093_v24, %v8296_v14 }
  0xf6   : > { %12347 = vst [vmem:[#allocation31_spill] sm:$0xff] %v8322_v7  ;;  %v8366_v7 = vld [vmem:[#allocation2 + $0x1e8] sm:$0xff]  ;;  %v8390_v3 = vmax.f32 %v8112_v23, %v8296_v14  ;;  %v12361_v51 = vmax.f32 %v7938_v43, %v8073_v54  ;;  %v3720_v27 = vmax.f32 %v8115_v22, %v8332_v59  ;;  %v8401_v29 = vmax.f32 %v3717_v61, %v8332_v59 }
  0xf7   : > { %v8374_v26 = vmax.f32 %v12356_v8, %v8238_v57  ;;  %v8380_v60 = vmax.f32 %v12358_v36, %v8256_v41  ;;  %v8408_v36 = vmax.f32 %v510_v55, %v8366_v7  ;;  %v8411_v16 = vmax.f32 %v511_v30, %v8384_v1  ;;  %v8447_v55 = vld [vmem:[#allocation2 + $0x1f2] sm:$0xff] }
  0xf8   : > { %12360 = vst [vmem:[#allocation36_spill] sm:$0xff] %v8390_v3  ;;  %v8396_v4 = vmax.f32 %v12361_v51, %v8332_v59  ;;  %v8418_v61 = vmax.f32 %v760_v38, %v8366_v7  ;;  %v8421_v51 = vmax.f32 %v761_v42, %v8384_v1  ;;  %v8428_v30 = vmax.f32 %v1010_v18, %v8366_v7  ;;  %v8435_v38 = vld [vmem:[#allocation2 + $0x1ea] sm:$0xff] }
  0xf9   : > { %12357 = vst [vmem:[#allocation34_spill] sm:$0xff] %v8374_v26  ;;  %12359 = vst [vmem:[#allocation35_spill] sm:$0xff] %v8380_v60  ;;  %v8431_v43 = vmax.f32 %v1011_v50, %v8384_v1  ;;  %v8442_v8 = vmax.f32 %v1259_v15, %v8366_v7  ;;  %v8445_v18 = vmax.f32 %v1260_v35, %v8384_v1  ;;  %v8482_v35 = vld [vmem:[#allocation2 + $0x200] sm:$0xff]  ;;  %v8543_v60 = vld [vmem:[#allocation2 + $0x210] sm:$0xff] }
  0xfa   : > { %v12362_v50 = vmax.f32 %v7981_v63, %v8073_v54  ;;  %v4092_v42 = vmax.f32 %v8262_v56, %v8332_v59  ;;  %v8458_v23 = vmax.f32 %v4089_v49, %v8332_v59  ;;  %v8466_v24 = vmax.f32 %v8274_v6, %v8366_v7  ;;  %v12368_v6 = vld [vmem:[#allocation28_spill] sm:$0xff] }
  0xfb   : > { %v8470_v63 = vmax.f32 %v8278_v47, %v8384_v1  ;;  %v8480_v15 = vmax.f32 %v3533_v19, %v8447_v55  ;;  %v12369_v47 = vld [vmem:[#allocation29_spill] sm:$0xff]  ;;  %v8489_v26 = vmax.f32 %v3718_v52, %v8435_v38  ;;  %v8492_v56 = vmax.f32 %v3719_v48, %v8447_v55 }
  0xfc   : > { %v8453_v22 = vmax.f32 %v12362_v50, %v8332_v59  ;;  %12363 = vst [vmem:[#allocation37_spill] sm:$0xff] %v8458_v23  ;;  %12364 = vst [vmem:[#allocation38_spill] sm:$0xff] %v8466_v24  ;;  %v8477_v50 = vmax.f32 %v3532_v9, %v8435_v38  ;;  %v8499_v49 = vmax.f32 %v3904_v58, %v8435_v38  ;;  %v8506_v52 = vld [vmem:[#allocation2 + $0x202] sm:$0xff] }
  0xfd   : > { %12365 = vst [vmem:[#allocation39_spill] sm:$0xff] %v8470_v63  ;;  %12367 = vst [vmem:[#allocation41_spill] sm:$0xff] %v8480_v15  ;;  %v8502_v23 = vmax.f32 %v3905_v10, %v8447_v55  ;;  %v8509_v48 = vmax.f32 %v513_v39, %v8482_v35  ;;  %v8514_v31 = vmax.f32 %v763_v34, %v8482_v35  ;;  %v12374_v10 = vld [vmem:[#allocation31_spill] sm:$0xff]  ;;  %v12376_v34 = vld [vmem:[#allocation32_spill] sm:$0xff] }
  0xfe   : > { %12366 = vst [vmem:[#allocation40_spill] sm:$0xff] %v8477_v50  ;;  %12370 = vst [vmem:[#allocation42_spill] sm:$0xff] %v8499_v49  ;;  %v8526_v39 = vmax.f32 %v1262_v25, %v8482_v35  ;;  %v8528_v49 = vld [vmem:[#allocation2 + $0x208] sm:$0xff]  ;;  %v8552_v9 = vmax.f32 %v8390_v3, %v8482_v35  ;;  %v8563_v19 = vmax.f32 %v3720_v27, %v8506_v52 }
  0xff   : > { %12371 = vst [vmem:[#allocation43_spill] sm:$0xff] %v8502_v23  ;;  %12372 = vst [vmem:[#allocation44_spill] sm:$0xff] %v8509_v48  ;;  %v8521_v23 = vmax.f32 %v1013_v28, %v8482_v35  ;;  %v8539_v28 = vmax.f32 %v4091_v0, %v8447_v55  ;;  %v12383_v3 = vmax.f32 %v8095_v44, %v8366_v7 }
 0x100   : > { %12373 = vst [vmem:[#allocation45_spill] sm:$0xff] %v8514_v31  ;;  %12375 = vst [vmem:[#allocation46_spill] sm:$0xff] %v8526_v39  ;;  %v12377_v31 = vld [vmem:[#allocation68_spill] sm:$0xff]  ;;  %v8548_v39 = vmax.f32 %v1512_v32, %v8482_v35  ;;  %v12385_v25 = vmax.f32 %v8196_v33, %v8366_v7  ;;  %v12386_v44 = vmax.f32 %v8202_v12, %v8384_v1 }
 0x101   : > { %v12378_v58 = vmax.f32 %v12377_v31, %v8238_v57  ;;  %12380 = vst [vmem:[#allocation48_spill] sm:$0xff] %v8539_v28  ;;  %12381 = vst [vmem:[#allocation50_spill] sm:$0xff] %v8552_v9  ;;  %v12382_v31 = vmax.f32 %v8073_v54, %v8332_v59  ;;  %v8573_v28 = vmax.f32 %v12383_v3, %v8528_v49  ;;  %v8633_v12 = vld [vmem:[#allocation2 + $0x212] sm:$0xff] }
 0x102   : > { %v12384_v54 = vmax.f32 %v8108_v2, %v8384_v1  ;;  %v8595_v3 = vmax.f32 %v12386_v44, %v8543_v60  ;;  %v12387_v32 = vmax.f32 %v8212_v21, %v8366_v7  ;;  %v12388_v33 = vmax.f32 %v8218_v5, %v8384_v1  ;;  %v8615_v44 = vld [vmem:[#allocation2 + $0x20a] sm:$0xff] }
 0x103   : > { %v8536_v11 = vmax.f32 %v12378_v58, %v8435_v38  ;;  %v8558_v0 = vmax.f32 %v12382_v31, %v8506_v52  ;;  %v8589_v58 = vmax.f32 %v12385_v25, %v8528_v49  ;;  %v1268_v2 = vmax.f32 %v8431_v43, %v8543_v60 }
 0x104   : > { %v8579_v31 = vmax.f32 %v12384_v54, %v8543_v60  ;;  %v8605_v27 = vmax.f32 %v12387_v32, %v8528_v49  ;;  %v8611_v25 = vmax.f32 %v12388_v33, %v8543_v60  ;;  %v12389_v21 = vmax.f32 %v8228_v46, %v8366_v7 }
 0x105   : > { %12379 = vst [vmem:[#allocation47_spill] sm:$0xff] %v8536_v11  ;;  %v12390_v5 = vmax.f32 %v8234_v20, %v8384_v1  ;;  %v12392_v54 = vmax.f32 %v8186_v62, %v8332_v59  ;;  %v4095_v43 = vmax.f32 %v8453_v22, %v8506_v52  ;;  %v8644_v46 = vmax.f32 %v4092_v42, %v8506_v52  ;;  %v8682_v42 = vld [vmem:[#allocation2 + $0x220] sm:$0xff] }
 0x106   : > { %v8625_v32 = vmax.f32 %v12389_v21, %v8528_v49  ;;  %v12395_v62 = vmax.f32 %v8254_v45, %v8384_v1  ;;  %v3539_v20 = vmax.f32 %v8447_v55, %v8633_v12  ;;  %v12398_v45 = vmax.f32 %v8256_v41, %v8447_v55 }
 0x107   : > { %v8631_v33 = vmax.f32 %v12390_v5, %v8543_v60  ;;  %v8639_v11 = vmax.f32 %v12392_v54, %v8506_v52  ;;  %12393 = vst [vmem:[#allocation61_spill] sm:$0xff] %v8644_v46  ;;  %v12394_v5 = vmax.f32 %v8248_v40, %v8366_v7  ;;  %v8666_v54 = vmax.f32 %v8466_v24, %v8528_v49  ;;  %v12422_v24 = vld [vmem:[#allocation46_spill] sm:$0xff] }
 0x108   : > { %v8660_v22 = vmax.f32 %v12395_v62, %v8543_v60  ;;  %v12397_v40 = vmax.f32 %v8238_v57, %v8435_v38  ;;  %v8680_v62 = vmax.f32 %v12398_v45, %v8633_v12  ;;  %v8686_v21 = vmax.f32 %v8470_v63, %v8543_v60  ;;  %v12402_v57 = vld [vmem:[#allocation30_spill] sm:$0xff] }
 0x109   : > { %12391 = vst [vmem:[#allocation51_spill] sm:$0xff] %v8631_v33  ;;  %v8654_v33 = vmax.f32 %v12394_v5, %v8528_v49  ;;  %12396 = vst [vmem:[#allocation69_spill] sm:$0xff] %v8666_v54  ;;  %v12401_v41 = vmax.f32 %v12369_v47, %v8447_v55  ;;  %v12403_v15 = vmax.f32 %v12402_v57, %v8435_v38  ;;  %v8726_v63 = vld [vmem:[#allocation2 + $0x222] sm:$0xff] }
 0x10a   : > { %v8674_v5 = vmax.f32 %v12397_v40, %v8615_v44  ;;  %12399 = vst [vmem:[#allocation28_spill] sm:$0xff] %v8686_v21  ;;  %v12400_v40 = vmax.f32 %v12368_v6, %v8435_v38  ;;  %v12405_v6 = vmax.f32 %v8312_v37, %v8447_v55  ;;  %v12407_v47 = vmax.f32 %v8296_v14, %v8482_v35  ;;  %v8756_v37 = vld [vmem:[#allocation2 + $0x228] sm:$0xff] }
 0x10b   : > { %v8702_v45 = vmax.f32 %v12401_v41, %v8633_v12  ;;  %v8712_v50 = vmax.f32 %v12403_v15, %v8615_v44  ;;  %v12409_v15 = vmax.f32 %v8338_v53, %v8482_v35  ;;  %v12419_v48 = vmax.f32 %v12376_v34, %v8447_v55 }
 0x10c   : > { %v8696_v46 = vmax.f32 %v12400_v40, %v8615_v44  ;;  %v8718_v40 = vmax.f32 %v12405_v6, %v8633_v12  ;;  %v8724_v41 = vmax.f32 %v12407_v47, %v8682_v42  ;;  %v12425_v34 = vmax.f32 %v8396_v4, %v8506_v52 }
 0x10d   : > { %12404 = vst [vmem:[#allocation29_spill] sm:$0xff] %v8712_v50  ;;  %v8734_v57 = vmax.f32 %v12409_v15, %v8682_v42  ;;  %v12413_v50 = vld [vmem:[#allocation42_spill] sm:$0xff]  ;;  %v12415_v15 = vmax.f32 %v8356_v13, %v8482_v35  ;;  %v8770_v53 = vmax.f32 %v12419_v48, %v8633_v12  ;;  %v8792_v48 = vmax.f32 %v8552_v9, %v8682_v42 }
 0x10e   : > { %12406 = vst [vmem:[#allocation31_spill] sm:$0xff] %v8718_v40  ;;  %12408 = vst [vmem:[#allocation32_spill] sm:$0xff] %v8724_v41  ;;  %v12411_v40 = vld [vmem:[#allocation33_spill] sm:$0xff] }
 0x10f   : > { %v12412_v14 = vmax.f32 %v12411_v40, %v8482_v35  ;;  %v8754_v6 = vmax.f32 %v12415_v15, %v8682_v42  ;;  %v8758_v40 = vld [vmem:[#allocation2 + $0x230] sm:$0xff]  ;;  %12420 = vst [vmem:[#allocation33_spill] sm:$0xff] %v8770_v53  ;;  %v12421_v15 = vmax.f32 %v8332_v59, %v8506_v52  ;;  %12424 = vst [vmem:[#allocation42_spill] sm:$0xff] %v8792_v48 }
 0x110   : > { %v772_v59 = vmax.f32 %v8573_v28, %v8756_v37  ;;  %v773_v4 = vmax.f32 %v8579_v31, %v8758_v40  ;;  %v1023_v28 = vmax.f32 %v8595_v3, %v8758_v40  ;;  %v12430_v31 = vmax.f32 %v8418_v61, %v8528_v49  ;;  %v12435_v13 = vld [vmem:[#allocation51_spill] sm:$0xff] }
 0x111   : > { %v8742_v47 = vmax.f32 %v12412_v14, %v8682_v42  ;;  %12416 = vst [vmem:[#allocation68_spill] sm:$0xff] %v8754_v6  ;;  %v12417_v14 = vmax.f32 %v12374_v10, %v8435_v38  ;;  %v8778_v6 = vmax.f32 %v12421_v15, %v8726_v63  ;;  %v8800_v15 = vmax.f32 %v12425_v34, %v8726_v63 }
 0x112   : > { %v12428_v34 = vmax.f32 %v8408_v36, %v8528_v49  ;;  %v12431_v36 = vmax.f32 %v8421_v51, %v8543_v60  ;;  %v12432_v3 = vmax.f32 %v8428_v30, %v8528_v49  ;;  %v8857_v61 = vmax.f32 %v1268_v2, %v8758_v40  ;;  %v8861_v51 = vld [vmem:[#allocation2 + $0x232] sm:$0xff] }
 0x113   : > { %v8764_v41 = vmax.f32 %v12417_v14, %v8615_v44  ;;  %v12423_v14 = vmax.f32 %v8364_v17, %v8482_v35  ;;  %v12426_v17 = vmax.f32 %v8366_v7, %v8528_v49  ;;  %v12429_v7 = vmax.f32 %v8411_v16, %v8543_v60 }
 0x114   : > { %v8822_v10 = vmax.f32 %v12428_v34, %v8756_v37  ;;  %v8844_v34 = vmax.f32 %v12431_v36, %v8758_v40  ;;  %v3912_v36 = vmax.f32 %v8563_v19, %v8726_v63  ;;  %v4098_v30 = vmax.f32 %v8639_v11, %v8726_v63 }
 0x115   : > { %12418 = vst [vmem:[#allocation30_spill] sm:$0xff] %v8764_v41  ;;  %v8786_v41 = vmax.f32 %v12423_v14, %v8682_v42  ;;  %v8806_v35 = vmax.f32 %v12426_v17, %v8756_v37  ;;  %v12427_v14 = vmax.f32 %v8384_v1, %v8543_v60  ;;  %v8828_v17 = vmax.f32 %v12429_v7, %v8758_v40 }
 0x116   : > { %v1022_v1 = vmax.f32 %v8589_v58, %v8756_v37  ;;  %v8854_v7 = vmax.f32 %v12432_v3, %v8756_v37  ;;  %v12433_v58 = vmax.f32 %v8401_v29, %v8506_v52  ;;  %v8874_v3 = vmax.f32 %v4095_v43, %v8726_v63 }
 0x117   : > { %v8812_v55 = vmax.f32 %v12427_v14, %v8758_v40  ;;  %v8838_v14 = vmax.f32 %v12430_v31, %v8756_v37  ;;  %v8859_v31 = vld [vmem:[#allocation2 + $0x22a] sm:$0xff]  ;;  %v1521_v2 = vmax.f32 %v8625_v32, %v8756_v37  ;;  %v1522_v48 = vmax.f32 %v12435_v13, %v8758_v40  ;;  %v12443_v32 = vld [vmem:[#allocation41_spill] sm:$0xff] }
 0x118   : > { %v8869_v16 = vmax.f32 %v12433_v58, %v8726_v63  ;;  %12434 = vst [vmem:[#allocation46_spill] sm:$0xff] %v8874_v3  ;;  %v12436_v19 = vmax.f32 %v8442_v8, %v8528_v49  ;;  %v12437_v29 = vmax.f32 %v8445_v18, %v8543_v60  ;;  %v12438_v13 = vmax.f32 %v8435_v38, %v8615_v44  ;;  %v8917_v38 = vld [vmem:[#allocation2 + $0x240] sm:$0xff]  ;;  %v12465_v53 = vld [vmem:[#allocation68_spill] sm:$0xff] }
 0x119   : > { %v8903_v8 = vmax.f32 %v3539_v20, %v8861_v51  ;;  %v8911_v49 = vmax.f32 %v8666_v54, %v8756_v37  ;;  %v3727_v20 = vmax.f32 %v8674_v5, %v8859_v31  ;;  %v12444_v43 = vmax.f32 %v12443_v32, %v8633_v12  ;;  %v12449_v32 = vld [vmem:[#allocation32_spill] sm:$0xff] }
 0x11a   : > { %v8884_v9 = vmax.f32 %v12436_v19, %v8756_v37  ;;  %v8890_v11 = vmax.f32 %v12437_v29, %v8758_v40  ;;  %v8900_v58 = vmax.f32 %v12438_v13, %v8859_v31  ;;  %v8915_v19 = vmax.f32 %v8686_v21, %v8758_v40  ;;  %v12441_v13 = vld [vmem:[#allocation40_spill] sm:$0xff] }
 0x11b   : > { %12439 = vst [vmem:[#allocation51_spill] sm:$0xff] %v8911_v49  ;;  %v3728_v29 = vmax.f32 %v8680_v62, %v8861_v51  ;;  %v12442_v18 = vmax.f32 %v12441_v13, %v8615_v44  ;;  %v8933_v49 = vmax.f32 %v12444_v43, %v8861_v51  ;;  %v12445_v62 = vmax.f32 %v8489_v26, %v8615_v44  ;;  %v8951_v43 = vld [vmem:[#allocation2 + $0x242] sm:$0xff]  ;;  %v12450_v54 = vld [vmem:[#allocation44_spill] sm:$0xff] }
 0x11c   : > { %12440 = vst [vmem:[#allocation73_spill] sm:$0xff] %v8915_v19  ;;  %v775_v19 = vmax.f32 %v12449_v32, %v8917_v38  ;;  %v12451_v5 = vmax.f32 %v12450_v54, %v8682_v42  ;;  %v1025_v26 = vmax.f32 %v8734_v57, %v8917_v38  ;;  %v1274_v54 = vmax.f32 %v8742_v47, %v8917_v38 }
 0x11d   : > { %v8927_v60 = vmax.f32 %v12442_v18, %v8859_v31  ;;  %v8943_v21 = vmax.f32 %v12445_v62, %v8859_v31  ;;  %v12447_v18 = vmax.f32 %v8492_v56, %v8633_v12  ;;  %v12453_v62 = vld [vmem:[#allocation45_spill] sm:$0xff] }
 0x11e   : > { %v8959_v3 = vmax.f32 %v12451_v5, %v8917_v38  ;;  %v12454_v56 = vmax.f32 %v12453_v62, %v8682_v42  ;;  %v12457_v5 = vmax.f32 %v8521_v23, %v8682_v42  ;;  %v8983_v62 = vld [vmem:[#allocation2 + $0x250] sm:$0xff]  ;;  %v3543_v23 = vmax.f32 %v8726_v63, %v8951_v43 }
 0x11f   : > { %12446 = vst [vmem:[#allocation40_spill] sm:$0xff] %v8943_v21  ;;  %v8949_v13 = vmax.f32 %v12447_v18, %v8861_v51  ;;  %v12461_v21 = vld [vmem:[#allocation43_spill] sm:$0xff] }
 0x120   : > { %12452 = vst [vmem:[#allocation32_spill] sm:$0xff] %v8959_v3  ;;  %v8967_v18 = vmax.f32 %v12454_v56, %v8917_v38  ;;  %v8979_v57 = vmax.f32 %v12457_v5, %v8917_v38  ;;  %v8981_v3 = vld [vmem:[#allocation2 + $0x248] sm:$0xff]  ;;  %v12459_v56 = vmax.f32 %v12413_v50, %v8615_v44  ;;  %v12462_v47 = vmax.f32 %v12461_v21, %v8633_v12 }
 0x121   : > { %12448 = vst [vmem:[#allocation41_spill] sm:$0xff] %v8949_v13  ;;  %v12464_v5 = vmax.f32 %v8506_v52, %v8726_v63  ;;  %v1524_v50 = vmax.f32 %v12465_v53, %v8917_v38  ;;  %v1774_v21 = vmax.f32 %v8786_v41, %v8917_v38  ;;  %v3729_v52 = vmax.f32 %v8778_v6, %v8951_v43 }
 0x122   : > { %12458 = vst [vmem:[#allocation44_spill] sm:$0xff] %v8979_v57  ;;  %v8989_v13 = vmax.f32 %v12459_v56, %v8859_v31  ;;  %v8995_v32 = vmax.f32 %v12462_v47, %v8861_v51  ;;  %v12466_v56 = vmax.f32 %v12422_v24, %v8682_v42  ;;  %v12467_v47 = vmax.f32 %v8548_v39, %v8682_v42 }
 0x123   : > { %v9003_v57 = vmax.f32 %v12464_v5, %v8951_v43  ;;  %v12469_v53 = vmax.f32 %v8558_v0, %v8726_v63  ;;  %v776_v24 = vmax.f32 %v8806_v35, %v8981_v3  ;;  %v777_v41 = vmax.f32 %v8812_v55, %v8983_v62  ;;  %v9053_v35 = vld [vmem:[#allocation2 + $0x24a] sm:$0xff] }
 0x124   : > { %12460 = vst [vmem:[#allocation45_spill] sm:$0xff] %v8989_v13  ;;  %12463 = vst [vmem:[#allocation43_spill] sm:$0xff] %v8995_v32  ;;  %v9011_v13 = vmax.f32 %v12466_v56, %v8917_v38  ;;  %v9019_v32 = vmax.f32 %v12467_v47, %v8917_v38  ;;  %v9034_v56 = vmax.f32 %v772_v59, %v8981_v3 }
 0x125   : > { %v9027_v5 = vmax.f32 %v12469_v53, %v8951_v43  ;;  %v9037_v39 = vmax.f32 %v773_v4, %v8983_v62  ;;  %v1026_v42 = vmax.f32 %v8822_v10, %v8981_v3  ;;  %v1027_v63 = vmax.f32 %v8828_v17, %v8983_v62  ;;  %v9055_v4 = vld [vmem:[#allocation2 + $0x252] sm:$0xff] }
 0x126   : > { %12468 = vst [vmem:[#allocation68_spill] sm:$0xff] %v9019_v32  ;;  %v9044_v0 = vmax.f32 %v1022_v1, %v8981_v3  ;;  %v9047_v6 = vmax.f32 %v1023_v28, %v8983_v62  ;;  %v1275_v55 = vmax.f32 %v8838_v14, %v8981_v3  ;;  %v1276_v59 = vmax.f32 %v8844_v34, %v8983_v62 }
 0x127   : > { %v3915_v10 = vmax.f32 %v8800_v15, %v8951_v43  ;;  %v9060_v17 = vmax.f32 %v3912_v36, %v8951_v43  ;;  %v12470_v1 = vmax.f32 %v8605_v27, %v8756_v37  ;;  %v12471_v14 = vmax.f32 %v8611_v25, %v8758_v40 }
 0x128   : > { %v4101_v38 = vmax.f32 %v8869_v16, %v8951_v43  ;;  %v9077_v15 = vmax.f32 %v4098_v30, %v8951_v43  ;;  %v1525_v36 = vmax.f32 %v8854_v7, %v8981_v3  ;;  %v1526_v27 = vmax.f32 %v8857_v61, %v8983_v62 }
 0x129   : > { %v9066_v28 = vmax.f32 %v12470_v1, %v8981_v3  ;;  %v9072_v34 = vmax.f32 %v12471_v14, %v8983_v62  ;;  %v9084_v47 = vmax.f32 %v1521_v2, %v8981_v3  ;;  %v9087_v53 = vmax.f32 %v1522_v48, %v8983_v62  ;;  %v9109_v1 = vld [vmem:[#allocation2 + $0x260] sm:$0xff]  ;;  %v12488_v32 = vld [vmem:[#allocation44_spill] sm:$0xff] }
 0x12a   : > { %12472 = vst [vmem:[#allocation74_spill] sm:$0xff] %v9077_v15  ;;  %v3544_v25 = vmax.f32 %v8859_v31, %v9053_v35  ;;  %v1775_v30 = vmax.f32 %v8884_v9, %v8981_v3  ;;  %v1776_v7 = vmax.f32 %v8890_v11, %v8983_v62  ;;  %v12473_v61 = vmax.f32 %v8615_v44, %v8859_v31 }
 0x12b   : > { %v12474_v48 = vmax.f32 %v8633_v12, %v8861_v51  ;;  %v12475_v9 = vmax.f32 %v8654_v33, %v8756_v37  ;;  %v12477_v44 = vmax.f32 %v8660_v22, %v8758_v40  ;;  %v9131_v16 = vmax.f32 %v3728_v29, %v9055_v4  ;;  %v9137_v37 = vld [vmem:[#allocation2 + $0x262] sm:$0xff] }
 0x12c   : > { %v9101_v2 = vmax.f32 %v12473_v61, %v9053_v35  ;;  %v3730_v61 = vmax.f32 %v8900_v58, %v9053_v35  ;;  %v3916_v33 = vmax.f32 %v8927_v60, %v9053_v35  ;;  %v12479_v40 = vmax.f32 %v8696_v46, %v8859_v31  ;;  %v12481_v60 = vld [vmem:[#allocation32_spill] sm:$0xff] }
 0x12d   : > { %v9107_v43 = vmax.f32 %v12474_v48, %v9055_v4  ;;  %v9115_v14 = vmax.f32 %v12475_v9, %v8981_v3  ;;  %v9121_v11 = vmax.f32 %v12477_v44, %v8983_v62  ;;  %v9128_v48 = vmax.f32 %v3727_v20, %v9053_v35  ;;  %v12482_v9 = vld [vmem:[#allocation40_spill] sm:$0xff] }
 0x12e   : > { %v9143_v3 = vmax.f32 %v12479_v40, %v9053_v35  ;;  %v12480_v58 = vmax.f32 %v8702_v45, %v8861_v51  ;;  %v9152_v29 = vmax.f32 %v775_v19, %v9109_v1  ;;  %v1029_v62 = vmax.f32 %v12481_v60, %v9109_v1  ;;  %v9166_v45 = vld [vmem:[#allocation2 + $0x268] sm:$0xff]  ;;  %v12483_v19 = vld [vmem:[#allocation41_spill] sm:$0xff] }
 0x12f   : > { %12476 = vst [vmem:[#allocation75_spill] sm:$0xff] %v9115_v14  ;;  %12478 = vst [vmem:[#allocation76_spill] sm:$0xff] %v9121_v11  ;;  %v4102_v44 = vmax.f32 %v12482_v9, %v9053_v35  ;;  %v9159_v22 = vmax.f32 %v1025_v26, %v9109_v1  ;;  %v1278_v46 = vmax.f32 %v8967_v18, %v9109_v1  ;;  %v12484_v60 = vld [vmem:[#allocation29_spill] sm:$0xff]  ;;  %v12486_v26 = vld [vmem:[#allocation31_spill] sm:$0xff] }
 0x130   : > { %v9149_v20 = vmax.f32 %v12480_v58, %v9055_v4  ;;  %v9164_v40 = vmax.f32 %v1274_v54, %v9109_v1  ;;  %v9168_v58 = vld [vmem:[#allocation2 + $0x270] sm:$0xff]  ;;  %v12485_v9 = vmax.f32 %v12484_v60, %v8859_v31  ;;  %v12487_v18 = vmax.f32 %v12486_v26, %v8861_v51 }
 0x131   : > { %v9185_v54 = vmax.f32 %v3543_v23, %v9137_v37  ;;  %v1528_v15 = vmax.f32 %v12488_v32, %v9109_v1  ;;  %v9190_v12 = vmax.f32 %v1524_v50, %v9109_v1  ;;  %v1778_v31 = vmax.f32 %v9011_v13, %v9109_v1 }
 0x132   : > { %v9176_v11 = vmax.f32 %v12485_v9, %v9053_v35  ;;  %v9182_v14 = vmax.f32 %v12487_v18, %v9055_v4  ;;  %v9195_v35 = vmax.f32 %v1774_v21, %v9109_v1  ;;  %v3732_v60 = vmax.f32 %v9003_v57, %v9137_v37  ;;  %v9228_v1 = vld [vmem:[#allocation2 + $0x26a] sm:$0xff] }
 0x133   : > { %v9200_v9 = vmax.f32 %v3729_v52, %v9137_v37  ;;  %v9203_v23 = vmax.f32 %v776_v24, %v9166_v45  ;;  %v9206_v32 = vmax.f32 %v777_v41, %v9168_v58  ;;  %v1030_v50 = vmax.f32 %v9034_v56, %v9166_v45 }
 0x134   : > { %12489 = vst [vmem:[#allocation32_spill] sm:$0xff] %v9195_v35  ;;  %v1031_v13 = vmax.f32 %v9037_v39, %v9168_v58  ;;  %v9213_v21 = vmax.f32 %v1026_v42, %v9166_v45  ;;  %v9216_v57 = vmax.f32 %v1027_v63, %v9168_v58  ;;  %v1279_v52 = vmax.f32 %v9044_v0, %v9166_v45 }
 0x135   : > { %v1280_v24 = vmax.f32 %v9047_v6, %v9168_v58  ;;  %v9223_v41 = vmax.f32 %v1275_v55, %v9166_v45  ;;  %v9226_v56 = vmax.f32 %v1276_v59, %v9168_v58  ;;  %v3918_v39 = vmax.f32 %v9027_v5, %v9137_v37  ;;  %v9240_v6 = vld [vmem:[#allocation2 + $0x280] sm:$0xff] }
 0x136   : > { %v9233_v42 = vmax.f32 %v3915_v10, %v9137_v37  ;;  %v4104_v63 = vmax.f32 %v9060_v17, %v9137_v37  ;;  %v9238_v0 = vmax.f32 %v4101_v38, %v9137_v37  ;;  %v1529_v55 = vmax.f32 %v9066_v28, %v9166_v45  ;;  %v9272_v37 = vld [vmem:[#allocation2 + $0x282] sm:$0xff] }
 0x137   : > { %v1530_v59 = vmax.f32 %v9072_v34, %v9168_v58  ;;  %v9247_v26 = vmax.f32 %v1525_v36, %v9166_v45  ;;  %v9250_v5 = vmax.f32 %v1526_v27, %v9168_v58  ;;  %v1779_v10 = vmax.f32 %v9084_v47, %v9166_v45 }
 0x138   : > { %v1780_v17 = vmax.f32 %v9087_v53, %v9168_v58  ;;  %v9257_v38 = vmax.f32 %v1775_v30, %v9166_v45  ;;  %v9260_v28 = vmax.f32 %v3544_v25, %v9228_v1  ;;  %v9263_v34 = vmax.f32 %v1776_v7, %v9168_v58  ;;  %v9276_v30 = vld [vmem:[#allocation2 + $0x272] sm:$0xff]  ;;  %v9306_v58 = vld [vmem:[#allocation2 + $0x288] sm:$0xff] }
 0x139   : > { %v3733_v36 = vmax.f32 %v9101_v2, %v9228_v1  ;;  %v9268_v27 = vmax.f32 %v3730_v61, %v9228_v1  ;;  %v1033_v47 = vmax.f32 %v9152_v29, %v9240_v6  ;;  %v3919_v53 = vmax.f32 %v9128_v48, %v9228_v1 }
 0x13a   : > { %12490 = vst [vmem:[#allocation40_spill] sm:$0xff] %v9257_v38  ;;  %12491 = vst [vmem:[#allocation41_spill] sm:$0xff] %v9263_v34  ;;  %v9279_v25 = vmax.f32 %v1029_v62, %v9240_v6  ;;  %v1282_v7 = vmax.f32 %v9159_v22, %v9240_v6  ;;  %v9284_v2 = vmax.f32 %v1278_v46, %v9240_v6 }
 0x13b   : > { %v9287_v61 = vmax.f32 %v3916_v33, %v9228_v1  ;;  %v4105_v29 = vmax.f32 %v9143_v3, %v9228_v1  ;;  %v9292_v45 = vmax.f32 %v4102_v44, %v9228_v1  ;;  %v1532_v48 = vmax.f32 %v9164_v40, %v9240_v6  ;;  %v9308_v3 = vld [vmem:[#allocation2 + $0x290] sm:$0xff] }
 0x13c   : > { %v9297_v62 = vmax.f32 %v1528_v15, %v9240_v6  ;;  %v1782_v22 = vmax.f32 %v9190_v12, %v9240_v6  ;;  %v9302_v46 = vmax.f32 %v1778_v31, %v9240_v6  ;;  %v3735_v33 = vmax.f32 %v9185_v54, %v9272_v37 }
 0x13d   : > { %v9311_v44 = vmax.f32 %v3732_v60, %v9272_v37  ;;  %v3921_v15 = vmax.f32 %v9200_v9, %v9272_v37  ;;  %v9316_v40 = vmax.f32 %v3918_v39, %v9272_v37  ;;  %v12493_v12 = vmax.f32 %v8861_v51, %v9055_v4 }
 0x13e   : > { %12492 = vst [vmem:[#allocation29_spill] sm:$0xff] %v9302_v46  ;;  %v4107_v54 = vmax.f32 %v9233_v42, %v9272_v37  ;;  %v9327_v31 = vmax.f32 %v4104_v63, %v9272_v37  ;;  %v3734_v60 = vmax.f32 %v9107_v43, %v9276_v30  ;;  %v12494_v9 = vmax.f32 %v8903_v8, %v9055_v4 }
 0x13f   : > { %v9322_v18 = vmax.f32 %v12493_v12, %v9276_v30  ;;  %v1034_v51 = vmax.f32 %v9203_v23, %v9306_v58  ;;  %v1035_v39 = vmax.f32 %v9206_v32, %v9308_v3  ;;  %v9342_v42 = vmax.f32 %v1030_v50, %v9306_v58 }
 0x140   : > { %v9335_v1 = vmax.f32 %v12494_v9, %v9276_v30  ;;  %v9345_v63 = vmax.f32 %v1031_v13, %v9308_v3  ;;  %v1283_v43 = vmax.f32 %v9213_v21, %v9306_v58  ;;  %v1284_v8 = vmax.f32 %v9216_v57, %v9308_v3 }
 0x141   : > { %v9352_v6 = vmax.f32 %v1279_v52, %v9306_v58  ;;  %v9355_v23 = vmax.f32 %v1280_v24, %v9308_v3  ;;  %v3920_v32 = vmax.f32 %v9131_v16, %v9276_v30  ;;  %v12495_v50 = vmax.f32 %v8933_v49, %v9055_v4  ;;  %v9373_v24 = vld [vmem:[#allocation2 + $0x28a] sm:$0xff] }
 0x142   : > { %v4106_v21 = vmax.f32 %v9149_v20, %v9276_v30  ;;  %v12496_v57 = vmax.f32 %v12483_v19, %v9055_v4  ;;  %v1533_v16 = vmax.f32 %v9223_v41, %v9306_v58  ;;  %v1534_v37 = vmax.f32 %v9226_v56, %v9308_v3  ;;  %v9385_v20 = vld [vmem:[#allocation2 + $0x292] sm:$0xff]  ;;  %v1097_v56 = vld [vmem:[#allocation2 + $0x2a0] sm:$0xff] }
 0x143   : > { %v9363_v13 = vmax.f32 %v12495_v50, %v9276_v30  ;;  %v9380_v49 = vmax.f32 %v1529_v55, %v9306_v58  ;;  %v9383_v12 = vmax.f32 %v1530_v59, %v9308_v3  ;;  %v1783_v4 = vmax.f32 %v9247_v26, %v9306_v58 }
 0x144   : > { %v9371_v52 = vmax.f32 %v12496_v57, %v9276_v30  ;;  %v1784_v19 = vmax.f32 %v9250_v5, %v9308_v3  ;;  %v9392_v30 = vmax.f32 %v1779_v10, %v9306_v58  ;;  %v9395_v41 = vmax.f32 %v1780_v17, %v9308_v3 }
 0x145   : > { %v3736_v55 = vmax.f32 %v9260_v28, %v9373_v24  ;;  %v9400_v59 = vmax.f32 %v3733_v36, %v9373_v24  ;;  %v3922_v9 = vmax.f32 %v9268_v27, %v9373_v24  ;;  %v9405_v26 = vmax.f32 %v3919_v53, %v9373_v24  ;;  %v3783_v36 = vld [vmem:[#allocation2 + $0x2a2] sm:$0xff] }
 0x146   : > { %12497 = vst [vmem:[#allocation31_spill] sm:$0xff] %v9392_v30  ;;  %12498 = vst [vmem:[#allocation44_spill] sm:$0xff] %v9395_v41  ;;  %v4108_v5 = vmax.f32 %v9287_v61, %v9373_v24  ;;  %v9410_v10 = vmax.f32 %v4105_v29, %v9373_v24  ;;  %v9415_v28 = vmax.f32 %v3734_v60, %v9385_v20  ;;  %v1099_v24 = vld [vmem:[#allocation2 + $0x2b0] sm:$0xff]  ;;  %v9442_v41 = vld [vmem:[#allocation2] sm:$0xff] }
 0x147   : > { %v1161_v58 = vmax.f32 %v1033_v47, %v1097_v56  ;;  %v1286_v3 = vmax.f32 %v9279_v25, %v1097_v56  ;;  %v1411_v27 = vmax.f32 %v1282_v7, %v1097_v56  ;;  %v1536_v53 = vmax.f32 %v9284_v2, %v1097_v56  ;;  %v1098_v2 = vld [vmem:[#allocation2 + $0x2a8] sm:$0xff] }
 0x148   : > { %v9422_v61 = vmax.f32 %v3920_v32, %v9385_v20  ;;  %v9424_v29 = vmax.f32 %v1532_v48, %v1097_v56  ;;  %v1786_v57 = vmax.f32 %v9297_v62, %v1097_v56  ;;  %v9430_v47 = vmax.f32 %v4106_v21, %v9385_v20  ;;  %v9440_v62 = vld [vmem:[#allocation2 + $0x2c2] sm:$0xff] }
 0x149   : > { %v9432_v25 = vmax.f32 %v1782_v22, %v1097_v56  ;;  %v3831_v7 = vmax.f32 %v3735_v33, %v3783_v36  ;;  %v3924_v50 = vmax.f32 %v9311_v44, %v3783_v36  ;;  %v9435_v17 = vmax.f32 %v3921_v15, %v3783_v36 }
 0x14a   : > { %v4110_v48 = vmax.f32 %v9316_v40, %v3783_v36  ;;  %v9438_v32 = vmax.f32 %v4107_v54, %v3783_v36  ;;  %v1290_v21 = vmax.f32 %v1161_v58, %v9442_v41  ;;  %v1415_v22 = vmax.f32 %v1286_v3, %v9442_v41 }
 0x14b   : > { %12499 = vst [vmem:[#allocation77_spill] sm:$0xff] %v9432_v25  ;;  %v1540_v33 = vmax.f32 %v1411_v27, %v9442_v41  ;;  %v9448_v56 = vmax.f32 %v1536_v53, %v9442_v41  ;;  %v1790_v44 = vmax.f32 %v9424_v29, %v9442_v41  ;;  %v9453_v15 = vmax.f32 %v1786_v57, %v9442_v41  ;;  %v3784_v57 = vld [vmem:[#allocation2 + $0x2aa] sm:$0xff] }
 0x14c   : > { %v1162_v40 = vmax.f32 %v1034_v51, %v1098_v2  ;;  %v1163_v54 = vmax.f32 %v1035_v39, %v1099_v24  ;;  %v1287_v36 = vmax.f32 %v9342_v42, %v1098_v2  ;;  %v1288_v60 = vmax.f32 %v9345_v63, %v1099_v24 }
 0x14d   : > { %12500 = vst [vmem:[#allocation78_spill] sm:$0xff] %v9453_v15  ;;  %v1412_v58 = vmax.f32 %v1283_v43, %v1098_v2  ;;  %v1413_v25 = vmax.f32 %v1284_v8, %v1099_v24  ;;  %v3927_v3 = vmax.f32 %v3831_v7, %v9440_v62  ;;  %v9459_v27 = vmax.f32 %v3924_v50, %v9440_v62 }
 0x14e   : > { %v4113_v53 = vmax.f32 %v9435_v17, %v9440_v62  ;;  %v9464_v29 = vmax.f32 %v4110_v48, %v9440_v62  ;;  %v1537_v51 = vmax.f32 %v9352_v6, %v1098_v2  ;;  %v1538_v39 = vmax.f32 %v9355_v23, %v1099_v24 }
 0x14f   : > { %v9468_v42 = vmax.f32 %v1533_v16, %v1098_v2  ;;  %v9470_v63 = vmax.f32 %v1534_v37, %v1099_v24  ;;  %v1787_v43 = vmax.f32 %v9380_v49, %v1098_v2  ;;  %v1788_v8 = vmax.f32 %v9383_v12, %v1099_v24  ;;  %v9489_v12 = vld [vmem:[#allocation2 + $0x2ca] sm:$0xff] }
 0x150   : > { %v9474_v50 = vmax.f32 %v1783_v4, %v1098_v2  ;;  %v9476_v7 = vmax.f32 %v1784_v19, %v1099_v24  ;;  %v9478_v17 = vmax.f32 %v3736_v55, %v3784_v57  ;;  %v3925_v48 = vmax.f32 %v9400_v59, %v3784_v57 }
 0x151   : > { %v9481_v62 = vmax.f32 %v3922_v9, %v3784_v57  ;;  %v4111_v6 = vmax.f32 %v9405_v26, %v3784_v57  ;;  %v9484_v23 = vmax.f32 %v4108_v5, %v3784_v57  ;;  %v1291_v16 = vmax.f32 %v1162_v40, %v9442_v41  ;;  %v9495_v9 = vld [vmem:[#allocation2 + $0x2e2] sm:$0xff] }
 0x152   : > { %12501 = vst [vmem:[#allocation79_spill] sm:$0xff] %v9474_v50  ;;  %12502 = vst [vmem:[#allocation80_spill] sm:$0xff] %v9476_v7  ;;  %v1292_v37 = vmax.f32 %v1163_v54, %v9442_v41  ;;  %v1416_v49 = vmax.f32 %v1287_v36, %v9442_v41  ;;  %v1417_v4 = vmax.f32 %v1288_v60, %v9442_v41 }
 0x153   : > { %v1419_v19 = vmax.f32 %v1290_v21, %v9442_v41  ;;  %v1541_v55 = vmax.f32 %v1412_v58, %v9442_v41  ;;  %v1542_v59 = vmax.f32 %v1413_v25, %v9442_v41  ;;  %v1544_v26 = vmax.f32 %v1415_v22, %v9442_v41 }
 0x154   : > { %v1666_v5 = vmax.f32 %v1537_v51, %v9442_v41  ;;  %v1667_v2 = vmax.f32 %v1538_v39, %v9442_v41  ;;  %v1669_v24 = vmax.f32 %v1540_v33, %v9442_v41  ;;  %v1791_v40 = vmax.f32 %v9468_v42, %v9442_v41 }
 0x155   : > { %v1792_v60 = vmax.f32 %v9470_v63, %v9442_v41  ;;  %v1794_v21 = vmax.f32 %v9448_v56, %v9442_v41  ;;  %v9508_v25 = vmax.f32 %v1787_v43, %v9442_v41  ;;  %v9511_v22 = vmax.f32 %v1788_v8, %v9442_v41 }
 0x156   : > { %v9514_v54 = vmax.f32 %v1790_v44, %v9442_v41  ;;  %v3928_v33 = vmax.f32 %v9478_v17, %v9489_v12  ;;  %v9519_v36 = vmax.f32 %v3925_v48, %v9489_v12  ;;  %v9522_v58 = vmax.f32 %v3927_v3, %v9495_v9 }
 0x157   : > { %12503 = vst [vmem:[#allocation81_spill] sm:$0xff] %v9508_v25  ;;  %12504 = vst [vmem:[#allocation82_spill] sm:$0xff] %v9511_v22  ;;  %v1420_v56 = vmax.f32 %v1291_v16, %v9442_v41  ;;  %v1421_v57 = vmax.f32 %v1292_v37, %v9442_v41  ;;  %v1545_v51 = vmax.f32 %v1416_v49, %v9442_v41 }
 0x158   : > { %12505 = vst [vmem:[#allocation83_spill] sm:$0xff] %v9514_v54  ;;  %v1546_v39 = vmax.f32 %v1417_v4, %v9442_v41  ;;  %v1548_v44 = vmax.f32 %v1419_v19, %v9442_v41  ;;  %v1670_v42 = vmax.f32 %v1541_v55, %v9442_v41  ;;  %v1671_v63 = vmax.f32 %v1542_v59, %v9442_v41 }
 0x159   : > { %v1549_v43 = vmax.f32 %v1420_v56, %v9442_v41  ;;  %v1550_v8 = vmax.f32 %v1421_v57, %v9442_v41  ;;  %v1673_v3 = vmax.f32 %v1544_v26, %v9442_v41  ;;  %v1674_v17 = vmax.f32 %v1545_v51, %v9442_v41 }
 0x15a   : > { %v4114_v48 = vmax.f32 %v9481_v62, %v9489_v12  ;;  %v4116_v16 = vmax.f32 %v9459_v27, %v9495_v9  ;;  %v1675_v37 = vmax.f32 %v1546_v39, %v9442_v41  ;;  %v1677_v49 = vmax.f32 %v1548_v44, %v9442_v41  ;;  %v3785_v44 = vld [vmem:[#allocation2 + $0x2b2] sm:$0xff] }
 0x15b   : > { %v1678_v4 = vmax.f32 %v1549_v43, %v9442_v41  ;;  %v1679_v19 = vmax.f32 %v1550_v8, %v9442_v41  ;;  %v1795_v55 = vmax.f32 %v1666_v5, %v9442_v41  ;;  %v1796_v59 = vmax.f32 %v1667_v2, %v9442_v41  ;;  %v3976_v43 = vld [vmem:[#allocation2 + $0x2ea] sm:$0xff]  ;;  %v3881_v8 = vld [vmem:[#allocation2 + $0x2d2] sm:$0xff] }
 0x15c   : > { %v1798_v26 = vmax.f32 %v1669_v24, %v9442_v41  ;;  %v1799_v56 = vmax.f32 %v1670_v42, %v9442_v41  ;;  %v1800_v62 = vmax.f32 %v1671_v63, %v9442_v41  ;;  %v1802_v27 = vmax.f32 %v1673_v3, %v9442_v41  ;;  %v4071_v3 = vld [vmem:[#allocation2 + $0x302] sm:$0xff] }
 0x15d   : > { %v9550_v57 = vmax.f32 %v4111_v6, %v9489_v12  ;;  %v9553_v51 = vmax.f32 %v4113_v53, %v9495_v9  ;;  %v1803_v39 = vmax.f32 %v1674_v17, %v9442_v41  ;;  %v1804_v5 = vmax.f32 %v1675_v37, %v9442_v41  ;;  %v4072_v37 = vld [vmem:[#allocation2 + $0x30a] sm:$0xff] }
 0x15e   : > { %v1806_v2 = vmax.f32 %v1677_v49, %v9442_v41  ;;  %v1807_v24 = vmax.f32 %v1678_v4, %v9442_v41  ;;  %v1808_v42 = vmax.f32 %v1679_v19, %v9442_v41  ;;  %v9561_v63 = vmax.f32 %v1791_v40, %v9442_v41 }
 0x15f   : > { %v9564_v6 = vmax.f32 %v1792_v60, %v9442_v41  ;;  %v9567_v53 = vmax.f32 %v1794_v21, %v9442_v41  ;;  %v9570_v12 = vmax.f32 %v1795_v55, %v9442_v41  ;;  %v9573_v9 = vmax.f32 %v1796_v59, %v9442_v41 }
 0x160   : > { %12506 = vst [vmem:[#allocation84_spill] sm:$0xff] %v9561_v63  ;;  %v9576_v17 = vmax.f32 %v1798_v26, %v9442_v41  ;;  %v9579_v40 = vmax.f32 %v1799_v56, %v9442_v41  ;;  %v9582_v60 = vmax.f32 %v1800_v62, %v9442_v41  ;;  %v9585_v21 = vmax.f32 %v1802_v27, %v9442_v41  ;;  %v9597_v56 = vld [vmem:[#allocation2 + $0x2f2] sm:$0xff]  ;;  %v4167_v62 = vld [vmem:[#allocation2 + $0x322] sm:$0xff] }
 0x161   : > { %12507 = vst [vmem:[#allocation85_spill] sm:$0xff] %v9564_v6  ;;  %12508 = vst [vmem:[#allocation86_spill] sm:$0xff] %v9567_v53  ;;  %v9588_v49 = vmax.f32 %v1803_v39, %v9442_v41  ;;  %v12516_v4 = vmax.f32 %v9322_v18, %v9385_v20  ;;  %v3926_v55 = vmax.f32 %v9415_v28, %v3785_v44  ;;  %v5580_v53 = vld [vmem:[#allocation2 + $0xf4] sm:$0xf] }
 0x162   : > { %12509 = vst [vmem:[#allocation87_spill] sm:$0xff] %v9570_v12  ;;  %12510 = vst [vmem:[#allocation88_spill] sm:$0xff] %v9573_v9  ;;  %v12517_v59 = vmax.f32 %v9335_v1, %v9385_v20  ;;  %v9600_v27 = vmax.f32 %v1804_v5, %v9442_v41  ;;  %v4112_v39 = vmax.f32 %v9422_v61, %v3785_v44  ;;  %v5338_v1 = vld [vmem:[#allocation2 + $0x84] sm:$0xff]  ;;  %v5487_v12 = vld [vmem:[#allocation2 + $0xf4] sm:$0xf] }
 0x163   : > { %12511 = vst [vmem:[#allocation89_spill] sm:$0xff] %v9576_v17  ;;  %12512 = vst [vmem:[#allocation90_spill] sm:$0xff] %v9579_v40  ;;  %v3833_v19 = vmax.f32 %v12516_v4, %v3785_v44  ;;  %v9604_v4 = vmax.f32 %v3926_v55, %v3881_v8  ;;  %v4119_v40 = vmax.f32 %v9522_v58, %v4071_v3 }
 0x164   : > { %12513 = vst [vmem:[#allocation91_spill] sm:$0xff] %v9582_v60  ;;  %12514 = vst [vmem:[#allocation92_spill] sm:$0xff] %v9585_v21  ;;  %v4019_v26 = vmax.f32 %v12517_v59, %v3785_v44  ;;  %v4024_v21 = vmax.f32 %v3928_v33, %v3976_v43  ;;  %v4168_v60 = vld [vmem:[#allocation2 + $0x32a] sm:$0xff]  ;;  %v9608_v17 = vmax.f32 %v1806_v2, %v9442_v41 }
 0x165   : > { %12515 = vst [vmem:[#allocation93_spill] sm:$0xff] %v9588_v49  ;;  %12518 = vst [vmem:[#allocation94_spill] sm:$0xff] %v9600_v27  ;;  %v4117_v49 = vmax.f32 %v9519_v36, %v3976_v43  ;;  %v3929_v18 = vmax.f32 %v3833_v19, %v3881_v8  ;;  %v5339_v59 = vld [vmem:[#allocation2 + $0x8c] sm:$0xff]  ;;  %v9611_v5 = vmax.f32 %v1807_v24, %v9442_v41  ;;  %v5386_v36 = vld [vmem:[#allocation2 + $0xa4] sm:$0xff] }
 0x166   : > { %v4115_v28 = vmax.f32 %v4019_v26, %v3881_v8  ;;  %12519 = vst [vmem:[#allocation95_spill] sm:$0xff] %v9608_v17  ;;  %v9614_v33 = vmax.f32 %v1808_v42, %v9442_v41  ;;  %v4120_v61 = vmax.f32 %v4024_v21, %v4072_v37  ;;  %v5387_v27 = vld [vmem:[#allocation2 + $0xac] sm:$0xff]  ;;  %v5340_v19 = vld [vmem:[#allocation2 + $0x94] sm:$0xf]  ;;  %v12522_v55 = vmax.f32 %v9363_v13, %v9385_v20  ;;  %v5482_v24 = vld [vmem:[#allocation2 + $0xc4] sm:$0xff] }
 0x167   : > { %12520 = vst [vmem:[#allocation96_spill] sm:$0xff] %v9611_v5  ;;  %v9621_v58 = vmax.f32 %v4112_v39, %v3881_v8  ;;  %v9623_v9 = vmax.f32 %v4114_v48, %v3976_v43  ;;  %v9625_v2 = vmax.f32 %v4116_v16, %v4071_v3  ;;  %v5483_v5 = vld [vmem:[#allocation2 + $0xcc] sm:$0xff]  ;;  %v5388_v17 = vld [vmem:[#allocation2 + $0xb4] sm:$0xf]  ;;  %v9628_v41 = vmax.f32 %v3929_v18, %v9597_v56  ;;  %v9637_v20 = vld [vmem:[#allocation2 + $0xe4] sm:$0xff] }
 0x168   : > { %12521 = vst [vmem:[#allocation97_spill] sm:$0xff] %v9614_v33  ;;  %v9619_v26 = vmax.f32 %v12522_v55, %v3785_v44  ;;  %v9633_v21 = vmax.f32 %v4115_v28, %v9597_v56  ;;  %v9635_v13 = vmax.f32 %v4117_v49, %v4072_v37  ;;  %v5343_v48 = vld [vmem:[#allocation2 + $0xb4] sm:$0xf]  ;;  %v9639_v16 = vmax.f32 %v4119_v40, %v4167_v62  ;;  %v9643_v18 = vld [vmem:[#allocation2 + $0xec] sm:$0xff]  ;;  %v9646_v62 = vld [vmem:[#allocation2 + $0x104] sm:$0xff] }
 0x169   : > { %v5391_v44 = vld [vmem:[#allocation2 + $0xd4] sm:$0xf]  ;;  %v9641_v43 = vmax.f32 %v4120_v61, %v4168_v60  ;;  %v5434_v3 = vmax.f32 %v5338_v1, %v5386_v36  ;;  %v5435_v39 = vmax.f32 %v5339_v59, %v5387_v27  ;;  %v5436_v28 = vmax.f32 %v5340_v19, %v5388_v17 }
 0x16a   : > { %12523 = vst [vmem:[#allocation98_spill] sm:$0xff] %v9639_v16  ;;  %v5484_v8 = vld [vmem:[#allocation2 + $0xd4] sm:$0xf]  ;;  %v5437_v55 = vmax.f32 %v5386_v36, %v5482_v24  ;;  %v5438_v37 = vmax.f32 %v5387_v27, %v5483_v5  ;;  %v5439_v49 = vmax.f32 %v5343_v48, %v5391_v44  ;;  %v5440_v42 = vmax.f32 %v5482_v24, %v9637_v20 }
 0x16b   : > { %12524 = vst [vmem:[#allocation99_spill] sm:$0xff] %v9641_v43  ;;  %v5530_v33 = vmax.f32 %v5434_v3, %v5482_v24  ;;  %v5531_v40 = vmax.f32 %v5435_v39, %v5483_v5  ;;  %v5532_v60 = vmax.f32 %v5436_v28, %v5484_v8  ;;  %v5441_v17 = vmax.f32 %v5483_v5, %v9643_v18  ;;  %v9654_v24 = vld [vmem:[#allocation2 + $0x10c] sm:$0xff]  ;;  %v9657_v8 = vld [vmem:[#allocation2 + $0x124] sm:$0xff]  ;;  %v5583_v3 = vld [vmem:[#allocation2 + $0x114] sm:$0xf] }
 0x16c   : > { %v5533_v61 = vmax.f32 %v5437_v55, %v9637_v20  ;;  %v5534_v1 = vmax.f32 %v5438_v37, %v9643_v18  ;;  %v5535_v59 = vmax.f32 %v5439_v49, %v5487_v12  ;;  %v5536_v36 = vmax.f32 %v5440_v42, %v9646_v62  ;;  %v5676_v39 = vld [vmem:[#allocation2 + $0x114] sm:$0xf] }
 0x16d   : > { %v5626_v27 = vmax.f32 %v5530_v33, %v9637_v20  ;;  %v5627_v19 = vmax.f32 %v5531_v40, %v9643_v18  ;;  %v5628_v48 = vmax.f32 %v5532_v60, %v5580_v53  ;;  %v9661_v5 = vmax.f32 %v5441_v17, %v9654_v24  ;;  %v9666_v53 = vld [vmem:[#allocation2 + $0x12c] sm:$0xff]  ;;  %v5679_v40 = vld [vmem:[#allocation2 + $0x134] sm:$0xf]  ;;  %v9669_v60 = vld [vmem:[#allocation2 + $0x144] sm:$0xff] }
 0x16e   : > { %v5629_v44 = vmax.f32 %v5533_v61, %v9646_v62  ;;  %v5630_v28 = vmax.f32 %v5534_v1, %v9654_v24  ;;  %v5631_v12 = vmax.f32 %v5535_v59, %v5583_v3  ;;  %v5632_v42 = vmax.f32 %v5536_v36, %v9657_v8 }
 0x16f   : > { %v5722_v33 = vmax.f32 %v5626_v27, %v9646_v62  ;;  %v5723_v55 = vmax.f32 %v5627_v19, %v9654_v24  ;;  %v5724_v37 = vmax.f32 %v5628_v48, %v5676_v39  ;;  %v5633_v59 = vmax.f32 %v9661_v5, %v9666_v53 }
 0x170   : > { %v5725_v49 = vmax.f32 %v5629_v44, %v9657_v8  ;;  %v9672_v61 = vmax.f32 %v5630_v28, %v9666_v53  ;;  %v5727_v1 = vmax.f32 %v5631_v12, %v5679_v40  ;;  %v9677_v17 = vmax.f32 %v5632_v42, %v9669_v60 }
 0x171   : > { %v5818_v36 = vrot.slane %v5722_v33, 1  ;;  %v5819_v27 = vrot.slane %v5723_v55, 1  ;;  %v5962_v19 = vrot.slane %v5722_v33, 2  ;;  %v5963_v48 = vrot.slane %v5723_v55, 2 }
 0x172   : > { %v6106_v3 = vrot.slane %v5722_v33, 3  ;;  %v6107_v39 = vrot.slane %v5723_v55, 3  ;;  %v6250_v44 = vrot.slane %v5722_v33, 4  ;;  %v6251_v6 = vrot.slane %v5723_v55, 4 }
 0x173   : > { %v5820_v63 = vsel %vm1987_vm0, %v5818_v36, %v5819_v27  ;;  %v5964_v28 = vsel %vm2132_vm1, %v5962_v19, %v5963_v48  ;;  %v5821_v54 = vrot.slane %v5724_v37, 1  ;;  %v5965_v12 = vrot.slane %v5724_v37, 2 }
 0x174   : > { %v5930_v40 = vmax.f32 %v5722_v33, %v5820_v63  ;;  %v6108_v5 = vsel %vm2277_vm2, %v6106_v3, %v6107_v39  ;;  %v6252_v42 = vsel %vm2422_vm3, %v6250_v44, %v6251_v6  ;;  %v6109_v22 = vrot.slane %v5724_v37, 3 }
 0x175   : > { %v5822_v25 = vsel %vm1987_vm0, %v5819_v27, %v5821_v54  ;;  %v5966_v15 = vsel %vm2132_vm1, %v5963_v48, %v5965_v12  ;;  %v6253_v7 = vrot.slane %v5724_v37, 4  ;;  %v5823_v50 = vrot.slane %v5725_v49, 1 }
 0x176   : > { %v6074_v30 = vmax.f32 %v5930_v40, %v5964_v28  ;;  %v5931_v46 = vmax.f32 %v5723_v55, %v5822_v25  ;;  %v6110_v36 = vsel %vm2277_vm2, %v6107_v39, %v6109_v22  ;;  %v5824_v19 = vrot.slane %v9672_v61, 1 }
 0x177   : > { %v6254_v34 = vsel %vm2422_vm3, %v6251_v6, %v6253_v7  ;;  %v5967_v63 = vrot.slane %v5725_v49, 2  ;;  %v5968_v33 = vrot.slane %v9672_v61, 2  ;;  %v6111_v3 = vrot.slane %v5725_v49, 3 }
 0x178   : > { %v6218_v44 = vmax.f32 %v6074_v30, %v6108_v5  ;;  %v6075_v38 = vmax.f32 %v5931_v46, %v5966_v15  ;;  %v5825_v54 = vsel %vm1987_vm0, %v5823_v50, %v5824_v19  ;;  %v6112_v37 = vrot.slane %v9672_v61, 3  ;;  %v9695_v50 = vld [vmem:[#allocation2 + $0x14c] sm:$0xff] }
 0x179   : > { %v5932_v27 = vmax.f32 %v5725_v49, %v5825_v54  ;;  %v5969_v25 = vsel %vm2132_vm1, %v5967_v63, %v5968_v33  ;;  %v6255_v55 = vrot.slane %v5725_v49, 4  ;;  %v6256_v22 = vrot.slane %v9672_v61, 4 }
 0x17a   : > { %v6362_v48 = vmax.f32 %v6218_v44, %v6252_v42  ;;  %v6219_v39 = vmax.f32 %v6075_v38, %v6110_v36  ;;  %v6113_v7 = vsel %vm2277_vm2, %v6111_v3, %v6112_v37  ;;  %v5826_v6 = vrot.slane %v5727_v1, 1  ;;  %v5346_v3 = vld [vmem:[#allocation2 + $0xd4] sm:$0xf] }
 0x17b   : > { %v6076_v28 = vmax.f32 %v5932_v27, %v5969_v25  ;;  %v6257_v46 = vsel %vm2422_vm3, %v6255_v55, %v6256_v22  ;;  %v5970_v30 = vrot.slane %v5727_v1, 2  ;;  %v6114_v15 = vrot.slane %v5727_v1, 3  ;;  %v5349_v25 = vld [vmem:[#allocation2 + $0xf4] sm:$0xf] }
 0x17c   : > { %6394 = vst [vmem:[%s8117_s25 + $0x10] sm:$0xff] %v6362_v48  ;;  %v6363_v12 = vmax.f32 %v6219_v39, %v6254_v34  ;;  %v5827_v40 = vsel %vm1987_vm0, %v5824_v19, %v5826_v6  ;;  %v6258_v49 = vrot.slane %v5727_v1, 4  ;;  %v9700_v5 = vmax.f32 %v5633_v59, %v9695_v50  ;;  %v5394_v59 = vld [vmem:[#allocation2 + $0xf4] sm:$0xf] }
 0x17d   : > { %v6220_v38 = vmax.f32 %v6076_v28, %v6113_v7  ;;  %v5933_v42 = vmax.f32 %v9672_v61, %v5827_v40  ;;  %v5971_v36 = vsel %vm2132_vm1, %v5968_v33, %v5970_v30  ;;  %v6115_v63 = vsel %vm2277_vm2, %v6112_v37, %v6114_v15  ;;  %v5397_v39 = vld [vmem:[#allocation2 + $0x114] sm:$0xf] }
 0x17e   : > { %6395 = vst [vmem:[%s8117_s25 + $0x30] sm:$0xff] %v6363_v12  ;;  %v6259_v44 = vsel %vm2422_vm3, %v6256_v22, %v6258_v49  ;;  %v5828_v34 = vrot.slane %v9677_v17, 1  ;;  %v5829_v19 = vrot.slane %v9700_v5, 1  ;;  %v5972_v1 = vrot.slane %v9677_v17, 2  ;;  %v5490_v12 = vld [vmem:[#allocation2 + $0x114] sm:$0xf] }
 0x17f   : > { %v6364_v54 = vmax.f32 %v6220_v38, %v6257_v46  ;;  %v6077_v27 = vmax.f32 %v5933_v42, %v5971_v36  ;;  %v5973_v61 = vrot.slane %v9700_v5, 2  ;;  %v6116_v33 = vrot.slane %v9677_v17, 3  ;;  %v5352_v38 = vld [vmem:[#allocation2 + $0x114] sm:$0xf] }
 0x180   : > { %v5830_v37 = vsel %vm1987_vm0, %v5828_v34, %v5829_v19  ;;  %v6117_v55 = vrot.slane %v9700_v5, 3  ;;  %v6260_v22 = vrot.slane %v9677_v17, 4  ;;  %v6261_v48 = vrot.slane %v9700_v5, 4  ;;  %v5400_v42 = vld [vmem:[#allocation2 + $0x134] sm:$0xf] }
 0x181   : > { %6396 = vst [vmem:[%s8117_s25 + $0x50] sm:$0xff] %v6364_v54  ;;  %v6221_v7 = vmax.f32 %v6077_v27, %v6115_v63  ;;  %v5934_v6 = vmax.f32 %v9677_v17, %v5830_v37  ;;  %v5974_v28 = vsel %vm2132_vm1, %v5972_v1, %v5973_v61  ;;  %v5442_v46 = vmax.f32 %v5346_v3, %v5394_v59  ;;  %v5586_v1 = vld [vmem:[#allocation2 + $0x134] sm:$0xf] }
 0x182   : > { %v6118_v30 = vsel %vm2277_vm2, %v6116_v33, %v6117_v55  ;;  %v6262_v15 = vsel %vm2422_vm3, %v6260_v22, %v6261_v48  ;;  %v5443_v40 = vmax.f32 %v9637_v20, %v9646_v62  ;;  %v5444_v49 = vmax.f32 %v9643_v18, %v9654_v24  ;;  %v5493_v54 = vld [vmem:[#allocation2 + $0x134] sm:$0xf] }
 0x183   : > { %v6365_v17 = vmax.f32 %v6221_v7, %v6259_v44  ;;  %v6078_v36 = vmax.f32 %v5934_v6, %v5974_v28  ;;  %v5538_v63 = vmax.f32 %v5442_v46, %v5490_v12  ;;  %v5445_v34 = vmax.f32 %v5349_v25, %v5397_v39  ;;  %v5682_v22 = vld [vmem:[#allocation2 + $0x154] sm:$0xf] }
 0x184   : > { %v5539_v3 = vmax.f32 %v5443_v40, %v9657_v8  ;;  %v5540_v59 = vmax.f32 %v5444_v49, %v9666_v53  ;;  %v5446_v27 = vmax.f32 %v9646_v62, %v9657_v8  ;;  %v5447_v20 = vmax.f32 %v9654_v24, %v9666_v53  ;;  %v5589_v7 = vld [vmem:[#allocation2 + $0x154] sm:$0xf]  ;;  %v9740_v24 = vld [vmem:[#allocation2 + $0x164] sm:$0xff] }
 0x185   : > { %6397 = vst [vmem:[%s8117_s25 + $0x70] sm:$0xff] %v6365_v17  ;;  %v6222_v18 = vmax.f32 %v6078_v36, %v6118_v30  ;;  %v5634_v33 = vmax.f32 %v5538_v63, %v5586_v1  ;;  %v5541_v37 = vmax.f32 %v5445_v34, %v5493_v54  ;;  %v5448_v44 = vmax.f32 %v5352_v38, %v5400_v42  ;;  %v5496_v62 = vld [vmem:[#allocation2 + $0x154] sm:$0xf]  ;;  %v9742_v30 = vld [vmem:[#allocation2 + $0x16c] sm:$0xff] }
 0x186   : > { %v5635_v25 = vmax.f32 %v5539_v3, %v9669_v60  ;;  %v5636_v39 = vmax.f32 %v5540_v59, %v9695_v50  ;;  %v5542_v6 = vmax.f32 %v5446_v27, %v9669_v60  ;;  %v5543_v28 = vmax.f32 %v5447_v20, %v9695_v50 }
 0x187   : > { %v6366_v46 = vmax.f32 %v6222_v18, %v6262_v15  ;;  %v5730_v12 = vmax.f32 %v5634_v33, %v5682_v22  ;;  %v5637_v40 = vmax.f32 %v5541_v37, %v5589_v7  ;;  %v9744_v49 = vmax.f32 %v5448_v44, %v5496_v62  ;;  %v5685_v7 = vld [vmem:[#allocation2 + $0x174] sm:$0xf] }
 0x188   : > { %v5731_v38 = vmax.f32 %v5635_v25, %v9740_v24  ;;  %v5732_v42 = vmax.f32 %v5636_v39, %v9742_v30  ;;  %v5638_v17 = vmax.f32 %v5542_v6, %v9740_v24  ;;  %v5639_v36 = vmax.f32 %v5543_v28, %v9742_v30 }
 0x189   : > { %6398 = vst [vmem:[%s8117_s25 + $0x90] sm:$0xff] %v6366_v46  ;;  %v5831_v63 = vrot.slane %v5730_v12, 1  ;;  %v5975_v34 = vrot.slane %v5730_v12, 2  ;;  %v6119_v15 = vrot.slane %v5730_v12, 3  ;;  %v6263_v1 = vrot.slane %v5730_v12, 4  ;;  %v9762_v46 = vld [vmem:[#allocation2 + $0x184] sm:$0xff] }
 0x18a   : > { %v5833_v3 = vrot.slane %v5731_v38, 1  ;;  %v5834_v59 = vrot.slane %v5732_v42, 1  ;;  %v5977_v54 = vrot.slane %v5731_v38, 2  ;;  %v5978_v27 = vrot.slane %v5732_v42, 2  ;;  %v9764_v12 = vld [vmem:[#allocation2 + $0x18c] sm:$0xff] }
 0x18b   : > { %v5832_v20 = vsel %vm1987_vm0, %v5829_v19, %v5831_v63  ;;  %v5976_v18 = vsel %vm2132_vm1, %v5973_v61, %v5975_v34  ;;  %v6120_v33 = vsel %vm2277_vm2, %v6117_v55, %v6119_v15  ;;  %v6264_v37 = vsel %vm2422_vm3, %v6261_v48, %v6263_v1  ;;  %v5592_v63 = vld [vmem:[#allocation2 + $0x174] sm:$0xf] }
 0x18c   : > { %v5935_v44 = vmax.f32 %v9700_v5, %v5832_v20  ;;  %v5835_v22 = vsel %vm1987_vm0, %v5833_v3, %v5834_v59  ;;  %v5979_v25 = vsel %vm2132_vm1, %v5977_v54, %v5978_v27  ;;  %v6121_v39 = vrot.slane %v5731_v38, 3 }
 0x18d   : > { %v5936_v6 = vmax.f32 %v5731_v38, %v5835_v22  ;;  %v6122_v28 = vrot.slane %v5732_v42, 3  ;;  %v6265_v62 = vrot.slane %v5731_v38, 4  ;;  %v6266_v19 = vrot.slane %v5732_v42, 4 }
 0x18e   : > { %v6079_v61 = vmax.f32 %v5935_v44, %v5976_v18  ;;  %v5733_v55 = vmax.f32 %v5637_v40, %v5685_v7  ;;  %v5734_v48 = vmax.f32 %v5638_v17, %v9762_v46  ;;  %v9768_v5 = vmax.f32 %v5639_v36, %v9764_v12 }
 0x18f   : > { %v6080_v34 = vmax.f32 %v5936_v6, %v5979_v25  ;;  %v6123_v15 = vsel %vm2277_vm2, %v6121_v39, %v6122_v28  ;;  %v6267_v1 = vsel %vm2422_vm3, %v6265_v62, %v6266_v19  ;;  %v5640_v38 = vmax.f32 %v9744_v49, %v5592_v63 }
 0x190   : > { %v6223_v3 = vmax.f32 %v6079_v61, %v6120_v33  ;;  %v5836_v54 = vrot.slane %v5733_v55, 1  ;;  %v5980_v20 = vrot.slane %v5733_v55, 2  ;;  %v6124_v22 = vrot.slane %v5733_v55, 3 }
 0x191   : > { %v6224_v18 = vmax.f32 %v6080_v34, %v6123_v15  ;;  %v6268_v40 = vrot.slane %v5733_v55, 4  ;;  %v5838_v17 = vrot.slane %v5734_v48, 1  ;;  %v5839_v36 = vrot.slane %v9768_v5, 1 }
 0x192   : > { %v6367_v44 = vmax.f32 %v6223_v3, %v6264_v37  ;;  %v5837_v25 = vsel %vm1987_vm0, %v5834_v59, %v5836_v54  ;;  %v5981_v39 = vsel %vm2132_vm1, %v5978_v27, %v5980_v20  ;;  %v6125_v7 = vsel %vm2277_vm2, %v6122_v28, %v6124_v22  ;;  %v5688_v28 = vld [vmem:[#allocation2 + $0x194] sm:$0xf] }
 0x193   : > { %v6368_v6 = vmax.f32 %v6224_v18, %v6267_v1  ;;  %v5937_v49 = vmax.f32 %v5732_v42, %v5837_v25  ;;  %v6269_v33 = vsel %vm2422_vm3, %v6266_v19, %v6268_v40  ;;  %v5840_v62 = vsel %vm1987_vm0, %v5838_v17, %v5839_v36  ;;  %v5355_v25 = vld [vmem:[#allocation2 + $0x134] sm:$0xf] }
 0x194   : > { %6399 = vst [vmem:[%s8117_s25 + $0xb0] sm:$0xff] %v6367_v44  ;;  %v5938_v61 = vmax.f32 %v5734_v48, %v5840_v62  ;;  %v5982_v55 = vrot.slane %v5734_v48, 2  ;;  %v5983_v63 = vrot.slane %v9768_v5, 2  ;;  %v6126_v34 = vrot.slane %v5734_v48, 3 }
 0x195   : > { %6400 = vst [vmem:[%s8117_s25 + $0xd0] sm:$0xff] %v6368_v6  ;;  %v6081_v37 = vmax.f32 %v5937_v49, %v5981_v39  ;;  %v6127_v59 = vrot.slane %v9768_v5, 3  ;;  %v6270_v15 = vrot.slane %v5734_v48, 4  ;;  %v6271_v27 = vrot.slane %v9768_v5, 4  ;;  %v5403_v49 = vld [vmem:[#allocation2 + $0x154] sm:$0xf] }
 0x196   : > { %v5984_v42 = vsel %vm2132_vm1, %v5982_v55, %v5983_v63  ;;  %v5736_v1 = vmax.f32 %v5640_v38, %v5688_v28  ;;  %v5449_v19 = vmax.f32 %v9657_v8, %v9669_v60  ;;  %v5450_v3 = vmax.f32 %v9666_v53, %v9695_v50  ;;  %v5358_v53 = vld [vmem:[#allocation2 + $0x154] sm:$0xf] }
 0x197   : > { %v6225_v54 = vmax.f32 %v6081_v37, %v6125_v7  ;;  %v6082_v20 = vmax.f32 %v5938_v61, %v5984_v42  ;;  %v6128_v22 = vsel %vm2277_vm2, %v6126_v34, %v6127_v59  ;;  %v6272_v18 = vsel %vm2422_vm3, %v6270_v15, %v6271_v27  ;;  %v5406_v7 = vld [vmem:[#allocation2 + $0x174] sm:$0xf]  ;;  %v9801_v42 = vld [vmem:[#allocation2 + $0x1a4] sm:$0xff] }
 0x198   : > { %v5841_v40 = vrot.slane %v5736_v1, 1  ;;  %v5985_v48 = vrot.slane %v5736_v1, 2  ;;  %v6129_v17 = vrot.slane %v5736_v1, 3  ;;  %v6273_v44 = vrot.slane %v5736_v1, 4  ;;  %v9803_v1 = vld [vmem:[#allocation2 + $0x1ac] sm:$0xff] }
 0x199   : > { %v6369_v39 = vmax.f32 %v6225_v54, %v6269_v33  ;;  %v6226_v38 = vmax.f32 %v6082_v20, %v6128_v22  ;;  %v5545_v6 = vmax.f32 %v5449_v19, %v9740_v24  ;;  %v5546_v8 = vmax.f32 %v5450_v3, %v9742_v30  ;;  %v5499_v54 = vld [vmem:[#allocation2 + $0x174] sm:$0xf] }
 0x19a   : > { %v5842_v62 = vsel %vm1987_vm0, %v5839_v36, %v5841_v40  ;;  %v5986_v61 = vsel %vm2132_vm1, %v5983_v63, %v5985_v48  ;;  %v6130_v55 = vsel %vm2277_vm2, %v6127_v59, %v6129_v17  ;;  %v6274_v34 = vsel %vm2422_vm3, %v6271_v27, %v6273_v44  ;;  %v5502_v20 = vld [vmem:[#allocation2 + $0x194] sm:$0xf] }
 0x19b   : > { %6401 = vst [vmem:[%s8117_s25 + $0xf0] sm:$0xff] %v6369_v39  ;;  %v6370_v37 = vmax.f32 %v6226_v38, %v6272_v18  ;;  %v5939_v33 = vmax.f32 %v9768_v5, %v5842_v62  ;;  %v5641_v15 = vmax.f32 %v5545_v6, %v9762_v46  ;;  %v5642_v28 = vmax.f32 %v5546_v8, %v9764_v12 }
 0x19c   : > { %v5451_v19 = vmax.f32 %v5355_v25, %v5403_v49  ;;  %v5452_v36 = vmax.f32 %v9669_v60, %v9740_v24  ;;  %v5453_v63 = vmax.f32 %v9695_v50, %v9742_v30  ;;  %v5454_v59 = vmax.f32 %v5358_v53, %v5406_v7  ;;  %v5595_v49 = vld [vmem:[#allocation2 + $0x194] sm:$0xf] }
 0x19d   : > { %6402 = vst [vmem:[%s8117_s25 + $0x110] sm:$0xff] %v6370_v37  ;;  %v6083_v27 = vmax.f32 %v5939_v33, %v5986_v61  ;;  %v5737_v5 = vmax.f32 %v5641_v15, %v9801_v42  ;;  %v5738_v3 = vmax.f32 %v5642_v28, %v9803_v1  ;;  %v5455_v22 = vmax.f32 %v9740_v24, %v9762_v46  ;;  %v5598_v28 = vld [vmem:[#allocation2 + $0x1b4] sm:$0xf] }
 0x19e   : > { %v5547_v18 = vmax.f32 %v5451_v19, %v5499_v54  ;;  %v5548_v40 = vmax.f32 %v5452_v36, %v9762_v46  ;;  %v5549_v60 = vmax.f32 %v5453_v63, %v9764_v12  ;;  %v5550_v48 = vmax.f32 %v5454_v59, %v5502_v20 }
 0x19f   : > { %v6227_v17 = vmax.f32 %v6083_v27, %v6130_v55  ;;  %v5843_v50 = vrot.slane %v5737_v5, 1  ;;  %v5844_v44 = vrot.slane %v5738_v3, 1  ;;  %v5987_v25 = vrot.slane %v5737_v5, 2  ;;  %v5691_v55 = vld [vmem:[#allocation2 + $0x1b4] sm:$0xf] }
 0x1a0   : > { %v5988_v39 = vrot.slane %v5738_v3, 2  ;;  %v6131_v38 = vrot.slane %v5737_v5, 3  ;;  %v6132_v6 = vrot.slane %v5738_v3, 3  ;;  %v6275_v8 = vrot.slane %v5737_v5, 4 }
 0x1a1   : > { %v6371_v53 = vmax.f32 %v6227_v17, %v6274_v34  ;;  %v5845_v7 = vsel %vm1987_vm0, %v5843_v50, %v5844_v44  ;;  %v6276_v24 = vrot.slane %v5738_v3, 4  ;;  %v5643_v62 = vmax.f32 %v5547_v18, %v5595_v49  ;;  %v9823_v34 = vld [vmem:[#allocation2 + $0x1c4] sm:$0xff] }
 0x1a2   : > { %v5940_v61 = vmax.f32 %v5737_v5, %v5845_v7  ;;  %v5989_v37 = vsel %vm2132_vm1, %v5987_v25, %v5988_v39  ;;  %v6133_v33 = vsel %vm2277_vm2, %v6131_v38, %v6132_v6  ;;  %v5644_v15 = vmax.f32 %v5548_v40, %v9801_v42  ;;  %v9829_v25 = vld [vmem:[#allocation2 + $0x1cc] sm:$0xff] }
 0x1a3   : > { %6403 = vst [vmem:[%s8117_s25 + $0x130] sm:$0xff] %v6371_v53  ;;  %v6277_v19 = vsel %vm2422_vm3, %v6275_v8, %v6276_v24  ;;  %v5739_v36 = vmax.f32 %v5643_v62, %v5691_v55  ;;  %v5645_v63 = vmax.f32 %v5549_v60, %v9803_v1  ;;  %v5646_v59 = vmax.f32 %v5550_v48, %v5598_v28 }
 0x1a4   : > { %v6084_v27 = vmax.f32 %v5940_v61, %v5989_v37  ;;  %v5740_v5 = vmax.f32 %v5644_v15, %v9823_v34  ;;  %v5456_v54 = vmax.f32 %v9742_v30, %v9764_v12  ;;  %v5551_v20 = vmax.f32 %v5455_v22, %v9801_v42 }
 0x1a5   : > { %v5846_v18 = vrot.slane %v5739_v36, 1  ;;  %v5990_v40 = vrot.slane %v5739_v36, 2  ;;  %v6134_v17 = vrot.slane %v5739_v36, 3  ;;  %v6278_v50 = vrot.slane %v5739_v36, 4  ;;  %v5694_v36 = vld [vmem:[#allocation2 + $0x1d4] sm:$0xf] }
 0x1a6   : > { %v6228_v38 = vmax.f32 %v6084_v27, %v6133_v33  ;;  %v5741_v60 = vmax.f32 %v5645_v63, %v9829_v25  ;;  %v5848_v8 = vrot.slane %v5740_v5, 1  ;;  %v5992_v48 = vrot.slane %v5740_v5, 2 }
 0x1a7   : > { %v5847_v49 = vsel %vm1987_vm0, %v5844_v44, %v5846_v18  ;;  %v5991_v53 = vsel %vm2132_vm1, %v5988_v39, %v5990_v40  ;;  %v6135_v30 = vsel %vm2277_vm2, %v6132_v6, %v6134_v17  ;;  %v6279_v22 = vsel %vm2422_vm3, %v6276_v24, %v6278_v50 }
 0x1a8   : > { %v6372_v7 = vmax.f32 %v6228_v38, %v6277_v19  ;;  %v5941_v62 = vmax.f32 %v5738_v3, %v5847_v49  ;;  %v5849_v61 = vrot.slane %v5741_v60, 1  ;;  %v5993_v37 = vrot.slane %v5741_v60, 2 }
 0x1a9   : > { %v6136_v55 = vrot.slane %v5740_v5, 3  ;;  %v6137_v15 = vrot.slane %v5741_v60, 3  ;;  %v6280_v33 = vrot.slane %v5740_v5, 4  ;;  %v6281_v28 = vrot.slane %v5741_v60, 4 }
 0x1aa   : > { %6404 = vst [vmem:[%s8117_s25 + $0x150] sm:$0xff] %v6372_v7  ;;  %v6085_v63 = vmax.f32 %v5941_v62, %v5991_v53  ;;  %v5850_v27 = vsel %vm1987_vm0, %v5848_v8, %v5849_v61  ;;  %v5994_v44 = vsel %vm2132_vm1, %v5992_v48, %v5993_v37  ;;  %v5742_v39 = vmax.f32 %v5646_v59, %v5694_v36  ;;  %v5361_v48 = vld [vmem:[#allocation2 + $0x174] sm:$0xf] }
 0x1ab   : > { %v5942_v18 = vmax.f32 %v5740_v5, %v5850_v27  ;;  %v6138_v6 = vsel %vm2277_vm2, %v6136_v55, %v6137_v15  ;;  %v6282_v24 = vsel %vm2422_vm3, %v6280_v33, %v6281_v28  ;;  %v5552_v3 = vmax.f32 %v5456_v54, %v9803_v1  ;;  %v5409_v59 = vld [vmem:[#allocation2 + $0x194] sm:$0xf] }
 0x1ac   : > { %v6229_v19 = vmax.f32 %v6085_v63, %v6135_v30  ;;  %v5851_v40 = vrot.slane %v5742_v39, 1  ;;  %v5995_v17 = vrot.slane %v5742_v39, 2  ;;  %v6139_v50 = vrot.slane %v5742_v39, 3  ;;  %v9847_v30 = vld [vmem:[#allocation2 + $0x1e4] sm:$0xff]  ;;  %v9850_v63 = vld [vmem:[#allocation2 + $0x1ec] sm:$0xff] }
 0x1ad   : > { %v6086_v38 = vmax.f32 %v5942_v18, %v5994_v44  ;;  %v6283_v49 = vrot.slane %v5742_v39, 4  ;;  %v5647_v53 = vmax.f32 %v5551_v20, %v9823_v34  ;;  %v5648_v8 = vmax.f32 %v5552_v3, %v9829_v25 }
 0x1ae   : > { %v6373_v5 = vmax.f32 %v6229_v19, %v6279_v22  ;;  %v5852_v7 = vsel %vm1987_vm0, %v5849_v61, %v5851_v40  ;;  %v5996_v62 = vsel %vm2132_vm1, %v5993_v37, %v5995_v17  ;;  %v6140_v54 = vsel %vm2277_vm2, %v6137_v15, %v6139_v50  ;;  %v5505_v19 = vld [vmem:[#allocation2 + $0x1b4] sm:$0xf] }
 0x1af   : > { %v6230_v55 = vmax.f32 %v6086_v38, %v6138_v6  ;;  %v5943_v33 = vmax.f32 %v5741_v60, %v5852_v7  ;;  %v6284_v36 = vsel %vm2422_vm3, %v6281_v28, %v6283_v49  ;;  %v5743_v20 = vmax.f32 %v5647_v53, %v9847_v30  ;;  %v5364_v38 = vld [vmem:[#allocation2 + $0x194] sm:$0xf] }
 0x1b0   : > { %6405 = vst [vmem:[%s8117_s25 + $0x170] sm:$0xff] %v6373_v5  ;;  %v9855_v22 = vmax.f32 %v5648_v8, %v9850_v63  ;;  %v5457_v61 = vmax.f32 %v5361_v48, %v5409_v59  ;;  %v5458_v37 = vmax.f32 %v9762_v46, %v9801_v42  ;;  %v5459_v15 = vmax.f32 %v9764_v12, %v9803_v1  ;;  %v5412_v12 = vld [vmem:[#allocation2 + $0x1b4] sm:$0xf] }
 0x1b1   : > { %v6374_v27 = vmax.f32 %v6230_v55, %v6282_v24  ;;  %v6087_v60 = vmax.f32 %v5943_v33, %v5996_v62  ;;  %v5853_v44 = vrot.slane %v5743_v20, 1  ;;  %v5997_v28 = vrot.slane %v5743_v20, 2  ;;  %v5601_v8 = vld [vmem:[#allocation2 + $0x1d4] sm:$0xf] }
 0x1b2   : > { %v5854_v39 = vrot.slane %v9855_v22, 1  ;;  %v5998_v18 = vrot.slane %v9855_v22, 2  ;;  %v6141_v6 = vrot.slane %v5743_v20, 3  ;;  %v6142_v3 = vrot.slane %v9855_v22, 3  ;;  %v5367_v59 = vld [vmem:[#allocation2 + $0x1b4] sm:$0xf] }
 0x1b3   : > { %6406 = vst [vmem:[%s8117_s25 + $0x190] sm:$0xff] %v6374_v27  ;;  %v6231_v40 = vmax.f32 %v6087_v60, %v6140_v54  ;;  %v6285_v17 = vrot.slane %v5743_v20, 4  ;;  %v6286_v46 = vrot.slane %v9855_v22, 4  ;;  %v5553_v50 = vmax.f32 %v5457_v61, %v5505_v19  ;;  %v5415_v5 = vld [vmem:[#allocation2 + $0x1d4] sm:$0xf] }
 0x1b4   : > { %v5855_v24 = vsel %vm1987_vm0, %v5853_v44, %v5854_v39  ;;  %v5999_v49 = vsel %vm2132_vm1, %v5997_v28, %v5998_v18  ;;  %v6143_v53 = vsel %vm2277_vm2, %v6141_v6, %v6142_v3  ;;  %v5554_v48 = vmax.f32 %v5458_v37, %v9823_v34  ;;  %v5697_v33 = vld [vmem:[#allocation2 + $0x1f4] sm:$0xf]  ;;  %v9876_v37 = vld [vmem:[#allocation2 + $0x204] sm:$0xff] }
 0x1b5   : > { %v6375_v7 = vmax.f32 %v6231_v40, %v6284_v36  ;;  %v5944_v62 = vmax.f32 %v5743_v20, %v5855_v24  ;;  %v6287_v54 = vsel %vm2422_vm3, %v6285_v17, %v6286_v46  ;;  %v5649_v55 = vmax.f32 %v5553_v50, %v5601_v8  ;;  %v5508_v19 = vld [vmem:[#allocation2 + $0x1d4] sm:$0xf] }
 0x1b6   : > { %v5555_v61 = vmax.f32 %v5459_v15, %v9829_v25  ;;  %v5650_v27 = vmax.f32 %v5554_v48, %v9847_v30  ;;  %v5460_v60 = vmax.f32 %v5364_v38, %v5412_v12  ;;  %v5461_v44 = vmax.f32 %v9801_v42, %v9823_v34 }
 0x1b7   : > { %6407 = vst [vmem:[%s8117_s25 + $0x1b0] sm:$0xff] %v6375_v7  ;;  %v6088_v28 = vmax.f32 %v5944_v62, %v5999_v49  ;;  %v5745_v6 = vmax.f32 %v5649_v55, %v5697_v33  ;;  %v5462_v36 = vmax.f32 %v9803_v1, %v9829_v25  ;;  %v5463_v20 = vmax.f32 %v5367_v59, %v5415_v5  ;;  %v9883_v49 = vld [vmem:[#allocation2 + $0x20c] sm:$0xff] }
 0x1b8   : > { %v5651_v40 = vmax.f32 %v5555_v61, %v9850_v63  ;;  %v5746_v15 = vmax.f32 %v5650_v27, %v9876_v37  ;;  %v5556_v17 = vmax.f32 %v5460_v60, %v5508_v19  ;;  %v5557_v50 = vmax.f32 %v5461_v44, %v9847_v30  ;;  %v5604_v19 = vld [vmem:[#allocation2 + $0x1f4] sm:$0xf] }
 0x1b9   : > { %v6232_v38 = vmax.f32 %v6088_v28, %v6143_v53  ;;  %v5856_v12 = vrot.slane %v5745_v6, 1  ;;  %v6000_v42 = vrot.slane %v5745_v6, 2  ;;  %v6144_v24 = vrot.slane %v5745_v6, 3 }
 0x1ba   : > { %v6288_v8 = vrot.slane %v5745_v6, 4  ;;  %v5747_v48 = vmax.f32 %v5651_v40, %v9883_v49  ;;  %v5858_v7 = vrot.slane %v5746_v15, 1  ;;  %v6002_v1 = vrot.slane %v5746_v15, 2 }
 0x1bb   : > { %v6376_v59 = vmax.f32 %v6232_v38, %v6287_v54  ;;  %v5857_v5 = vsel %vm1987_vm0, %v5854_v39, %v5856_v12  ;;  %v6001_v62 = vsel %vm2132_vm1, %v5998_v18, %v6000_v42  ;;  %v6145_v55 = vsel %vm2277_vm2, %v6142_v3, %v6144_v24  ;;  %v5511_v42 = vld [vmem:[#allocation2 + $0x1f4] sm:$0xf] }
 0x1bc   : > { %v5945_v53 = vmax.f32 %v9855_v22, %v5857_v5  ;;  %v6289_v33 = vsel %vm2422_vm3, %v6286_v46, %v6288_v8  ;;  %v5859_v61 = vrot.slane %v5747_v48, 1  ;;  %v6003_v27 = vrot.slane %v5747_v48, 2  ;;  %v5700_v46 = vld [vmem:[#allocation2 + $0x214] sm:$0xf] }
 0x1bd   : > { %6408 = vst [vmem:[%s8117_s25 + $0x1d0] sm:$0xff] %v6376_v59  ;;  %v6146_v60 = vrot.slane %v5746_v15, 3  ;;  %v6147_v44 = vrot.slane %v5747_v48, 3  ;;  %v6290_v28 = vrot.slane %v5746_v15, 4  ;;  %v6291_v6 = vrot.slane %v5747_v48, 4 }
 0x1be   : > { %v6089_v40 = vmax.f32 %v5945_v53, %v6001_v62  ;;  %v5860_v54 = vsel %vm1987_vm0, %v5858_v7, %v5859_v61  ;;  %v6004_v39 = vsel %vm2132_vm1, %v6002_v1, %v6003_v27  ;;  %v5652_v18 = vmax.f32 %v5556_v17, %v5604_v19 }
 0x1bf   : > { %v5946_v38 = vmax.f32 %v5746_v15, %v5860_v54  ;;  %v6148_v3 = vsel %vm2277_vm2, %v6146_v60, %v6147_v44  ;;  %v6292_v22 = vsel %vm2422_vm3, %v6290_v28, %v6291_v6  ;;  %v5558_v12 = vmax.f32 %v5462_v36, %v9850_v63  ;;  %v9903_v28 = vld [vmem:[#allocation2 + $0x224] sm:$0xff]  ;;  %v5607_v54 = vld [vmem:[#allocation2 + $0x214] sm:$0xf] }
 0x1c0   : > { %v6233_v24 = vmax.f32 %v6089_v40, %v6145_v55  ;;  %v5748_v8 = vmax.f32 %v5652_v18, %v5700_v46  ;;  %v5653_v59 = vmax.f32 %v5557_v50, %v9876_v37  ;;  %v5559_v5 = vmax.f32 %v5463_v20, %v5511_v42  ;;  %v9905_v55 = vld [vmem:[#allocation2 + $0x22c] sm:$0xff] }
 0x1c1   : > { %v6090_v62 = vmax.f32 %v5946_v38, %v6004_v39  ;;  %v5654_v7 = vmax.f32 %v5558_v12, %v9883_v49  ;;  %v5464_v15 = vmax.f32 %v9823_v34, %v9847_v30  ;;  %v5465_v17 = vmax.f32 %v9829_v25, %v9850_v63 }
 0x1c2   : > { %v6377_v1 = vmax.f32 %v6233_v24, %v6289_v33  ;;  %v5861_v53 = vrot.slane %v5748_v8, 1  ;;  %v6005_v60 = vrot.slane %v5748_v8, 2  ;;  %v6149_v36 = vrot.slane %v5748_v8, 3 }
 0x1c3   : > { %v6234_v50 = vmax.f32 %v6090_v62, %v6148_v3  ;;  %v6293_v20 = vrot.slane %v5748_v8, 4  ;;  %v5749_v19 = vmax.f32 %v5653_v59, %v9903_v28  ;;  %v5750_v40 = vmax.f32 %v5654_v7, %v9905_v55 }
 0x1c4   : > { %6409 = vst [vmem:[%s8117_s25 + $0x1f0] sm:$0xff] %v6377_v1  ;;  %v5862_v34 = vsel %vm1987_vm0, %v5859_v61, %v5861_v53  ;;  %v6006_v25 = vsel %vm2132_vm1, %v6003_v27, %v6005_v60  ;;  %v6150_v33 = vsel %vm2277_vm2, %v6147_v44, %v6149_v36  ;;  %v5655_v39 = vmax.f32 %v5559_v5, %v5607_v54  ;;  %v5703_v61 = vld [vmem:[#allocation2 + $0x234] sm:$0xf] }
 0x1c5   : > { %v6378_v18 = vmax.f32 %v6234_v50, %v6292_v22  ;;  %v5947_v38 = vmax.f32 %v5747_v48, %v5862_v34  ;;  %v6294_v46 = vsel %vm2422_vm3, %v6291_v6, %v6293_v20  ;;  %v5863_v3 = vrot.slane %v5749_v19, 1  ;;  %v5370_v34 = vld [vmem:[#allocation2 + $0x1d4] sm:$0xf] }
 0x1c6   : > { %v5864_v12 = vrot.slane %v5750_v40, 1  ;;  %v6007_v42 = vrot.slane %v5749_v19, 2  ;;  %v6008_v24 = vrot.slane %v5750_v40, 2  ;;  %v6151_v8 = vrot.slane %v5749_v19, 3 }
 0x1c7   : > { %6410 = vst [vmem:[%s8117_s25 + $0x210] sm:$0xff] %v6378_v18  ;;  %v6091_v59 = vmax.f32 %v5947_v38, %v6006_v25  ;;  %v6152_v62 = vrot.slane %v5750_v40, 3  ;;  %v6295_v7 = vrot.slane %v5749_v19, 4  ;;  %v6296_v1 = vrot.slane %v5750_v40, 4 }
 0x1c8   : > { %v5865_v27 = vsel %vm1987_vm0, %v5863_v3, %v5864_v12  ;;  %v6009_v44 = vsel %vm2132_vm1, %v6007_v42, %v6008_v24  ;;  %v5751_v5 = vmax.f32 %v5655_v39, %v5703_v61  ;;  %v5560_v48 = vmax.f32 %v5464_v15, %v9876_v37  ;;  %v5418_v3 = vld [vmem:[#allocation2 + $0x1f4] sm:$0xf] }
 0x1c9   : > { %v6235_v22 = vmax.f32 %v6091_v59, %v6150_v33  ;;  %v5948_v6 = vmax.f32 %v5749_v19, %v5865_v27  ;;  %v6153_v53 = vsel %vm2277_vm2, %v6151_v8, %v6152_v62  ;;  %v6297_v60 = vsel %vm2422_vm3, %v6295_v7, %v6296_v1  ;;  %v5373_v15 = vld [vmem:[#allocation2 + $0x1f4] sm:$0xf]  ;;  %v9926_v7 = vld [vmem:[#allocation2 + $0x244] sm:$0xff] }
 0x1ca   : > { %v5866_v36 = vrot.slane %v5751_v5, 1  ;;  %v6010_v50 = vrot.slane %v5751_v5, 2  ;;  %v6154_v20 = vrot.slane %v5751_v5, 3  ;;  %v6298_v54 = vrot.slane %v5751_v5, 4  ;;  %v5421_v33 = vld [vmem:[#allocation2 + $0x214] sm:$0xf] }
 0x1cb   : > { %v6379_v25 = vmax.f32 %v6235_v22, %v6294_v46  ;;  %v6092_v18 = vmax.f32 %v5948_v6, %v6009_v44  ;;  %v5561_v38 = vmax.f32 %v5465_v17, %v9883_v49  ;;  %v5656_v39 = vmax.f32 %v5560_v48, %v9903_v28  ;;  %v9931_v44 = vld [vmem:[#allocation2 + $0x24c] sm:$0xff]  ;;  %v5514_v6 = vld [vmem:[#allocation2 + $0x214] sm:$0xf] }
 0x1cc   : > { %v5867_v19 = vsel %vm1987_vm0, %v5864_v12, %v5866_v36  ;;  %v6011_v42 = vsel %vm2132_vm1, %v6008_v24, %v6010_v50  ;;  %v6155_v8 = vsel %vm2277_vm2, %v6152_v62, %v6154_v20  ;;  %v6299_v59 = vsel %vm2422_vm3, %v6296_v1, %v6298_v54 }
 0x1cd   : > { %6411 = vst [vmem:[%s8117_s25 + $0x230] sm:$0xff] %v6379_v25  ;;  %v6236_v46 = vmax.f32 %v6092_v18, %v6153_v53  ;;  %v5949_v61 = vmax.f32 %v5750_v40, %v5867_v19  ;;  %v5657_v17 = vmax.f32 %v5561_v38, %v9905_v55  ;;  %v5752_v27 = vmax.f32 %v5656_v39, %v9926_v7  ;;  %v9940_v53 = vld [vmem:[#allocation2 + $0x312] sm:$0xff] }
 0x1ce   : > { %v5466_v5 = vmax.f32 %v5370_v34, %v5418_v3  ;;  %v5467_v12 = vmax.f32 %v9847_v30, %v9876_v37  ;;  %v5468_v24 = vmax.f32 %v9850_v63, %v9883_v49  ;;  %v5469_v62 = vmax.f32 %v5373_v15, %v5421_v33  ;;  %v5610_v25 = vld [vmem:[#allocation2 + $0x234] sm:$0xf] }
 0x1cf   : > { %v6380_v1 = vmax.f32 %v6236_v46, %v6297_v60  ;;  %v6093_v48 = vmax.f32 %v5949_v61, %v6011_v42  ;;  %v9938_v22 = vmax.f32 %v5657_v17, %v9931_v44  ;;  %v5868_v40 = vrot.slane %v5752_v27, 1  ;;  %v5517_v15 = vld [vmem:[#allocation2 + $0x234] sm:$0xf] }
 0x1d0   : > { %v6012_v36 = vrot.slane %v5752_v27, 2  ;;  %v6156_v50 = vrot.slane %v5752_v27, 3  ;;  %v6300_v20 = vrot.slane %v5752_v27, 4  ;;  %v5562_v54 = vmax.f32 %v5466_v5, %v5514_v6  ;;  %v5706_v46 = vld [vmem:[#allocation2 + $0x254] sm:$0xf] }
 0x1d1   : > { %6412 = vst [vmem:[%s8117_s25 + $0x250] sm:$0xff] %v6380_v1  ;;  %v6237_v34 = vmax.f32 %v6093_v48, %v6155_v8  ;;  %v5869_v30 = vrot.slane %v9938_v22, 1  ;;  %v6013_v63 = vrot.slane %v9938_v22, 2  ;;  %v6157_v60 = vrot.slane %v9938_v22, 3  ;;  %v5613_v6 = vld [vmem:[#allocation2 + $0x254] sm:$0xf] }
 0x1d2   : > { %v6301_v18 = vrot.slane %v9938_v22, 4  ;;  %v5658_v38 = vmax.f32 %v5562_v54, %v5610_v25  ;;  %v5563_v39 = vmax.f32 %v5467_v12, %v9903_v28  ;;  %v5564_v3 = vmax.f32 %v5468_v24, %v9905_v55 }
 0x1d3   : > { %v6381_v19 = vmax.f32 %v6237_v34, %v6299_v59  ;;  %v5870_v42 = vsel %vm1987_vm0, %v5868_v40, %v5869_v30  ;;  %v6014_v8 = vsel %vm2132_vm1, %v6012_v36, %v6013_v63  ;;  %v6158_v17 = vsel %vm2277_vm2, %v6156_v50, %v6157_v60  ;;  %v9962_v50 = vld [vmem:[#allocation2 + $0x26c] sm:$0xff] }
 0x1d4   : > { %v5950_v61 = vmax.f32 %v5752_v27, %v5870_v42  ;;  %v5754_v5 = vmax.f32 %v5658_v38, %v5706_v46  ;;  %v5659_v1 = vmax.f32 %v5563_v39, %v9926_v7  ;;  %v6302_v12 = vsel %vm2422_vm3, %v6300_v20, %v6301_v18  ;;  %v9960_v27 = vld [vmem:[#allocation2 + $0x264] sm:$0xff] }
 0x1d5   : > { %6413 = vst [vmem:[%s8117_s25 + $0x270] sm:$0xff] %v6381_v19  ;;  %v5660_v24 = vmax.f32 %v5564_v3, %v9931_v44  ;;  %v5565_v48 = vmax.f32 %v5469_v62, %v5517_v15  ;;  %v5470_v59 = vmax.f32 %v9876_v37, %v9903_v28  ;;  %v5471_v62 = vmax.f32 %v9883_v49, %v9905_v55 }
 0x1d6   : > { %v6094_v40 = vmax.f32 %v5950_v61, %v6014_v8  ;;  %v5871_v54 = vrot.slane %v5754_v5, 1  ;;  %v6015_v36 = vrot.slane %v5754_v5, 2  ;;  %v6159_v34 = vrot.slane %v5754_v5, 3  ;;  %v5709_v61 = vld [vmem:[#allocation2 + $0x274] sm:$0xf] }
 0x1d7   : > { %v6303_v25 = vrot.slane %v5754_v5, 4  ;;  %v5755_v38 = vmax.f32 %v5659_v1, %v9960_v27  ;;  %v9966_v20 = vmax.f32 %v5660_v24, %v9962_v50  ;;  %v5661_v15 = vmax.f32 %v5565_v48, %v5613_v6 }
 0x1d8   : > { %v6238_v39 = vmax.f32 %v6094_v40, %v6158_v17  ;;  %v5872_v37 = vsel %vm1987_vm0, %v5869_v30, %v5871_v54  ;;  %v6016_v3 = vsel %vm2132_vm1, %v6013_v63, %v6015_v36  ;;  %v6160_v42 = vsel %vm2277_vm2, %v6157_v60, %v6159_v34 }
 0x1d9   : > { %v5951_v19 = vmax.f32 %v9938_v22, %v5872_v37  ;;  %v5873_v8 = vrot.slane %v5755_v38, 1  ;;  %v5874_v46 = vrot.slane %v9966_v20, 1  ;;  %v6017_v1 = vrot.slane %v5755_v38, 2 }
 0x1da   : > { %v6382_v5 = vmax.f32 %v6238_v39, %v6302_v12  ;;  %v6018_v24 = vrot.slane %v9966_v20, 2  ;;  %v6161_v49 = vrot.slane %v5755_v38, 3  ;;  %v6162_v40 = vrot.slane %v9966_v20, 3 }
 0x1db   : > { %v6095_v17 = vmax.f32 %v5951_v19, %v6016_v3  ;;  %v5875_v30 = vsel %vm1987_vm0, %v5873_v8, %v5874_v46  ;;  %v6305_v63 = vrot.slane %v5755_v38, 4  ;;  %v6304_v22 = vsel %vm2422_vm3, %v6301_v18, %v6303_v25 }
 0x1dc   : > { %6414 = vst [vmem:[%s8117_s25 + $0x290] sm:$0xff] %v6382_v5  ;;  %v5952_v48 = vmax.f32 %v5755_v38, %v5875_v30  ;;  %v6306_v60 = vrot.slane %v9966_v20, 4  ;;  %v5757_v6 = vmax.f32 %v5661_v15, %v5709_v61  ;;  %v6019_v12 = vsel %vm2132_vm1, %v6017_v1, %v6018_v24  ;;  %v5376_v15 = vld [vmem:[#allocation2 + $0x214] sm:$0xf]  ;;  %v9989_v1 = vld [vmem:[#allocation2 + $0x284] sm:$0xff] }
 0x1dd   : > { %v6239_v54 = vmax.f32 %v6095_v17, %v6160_v42  ;;  %v5566_v36 = vmax.f32 %v5470_v59, %v9926_v7  ;;  %v5567_v34 = vmax.f32 %v5471_v62, %v9931_v44  ;;  %v6163_v37 = vsel %vm2277_vm2, %v6161_v49, %v6162_v40  ;;  %v5424_v42 = vld [vmem:[#allocation2 + $0x234] sm:$0xf] }
 0x1de   : > { %v6096_v39 = vmax.f32 %v5952_v48, %v6019_v12  ;;  %v5876_v3 = vrot.slane %v5757_v6, 1  ;;  %v6020_v19 = vrot.slane %v5757_v6, 2  ;;  %v6307_v18 = vsel %vm2422_vm3, %v6305_v63, %v6306_v60  ;;  %v9995_v63 = vld [vmem:[#allocation2 + $0x28c] sm:$0xff] }
 0x1df   : > { %v6383_v8 = vmax.f32 %v6239_v54, %v6304_v22  ;;  %v6164_v25 = vrot.slane %v5757_v6, 3  ;;  %v5662_v38 = vmax.f32 %v5566_v36, %v9960_v27  ;;  %v6308_v59 = vrot.slane %v5757_v6, 4  ;;  %v5520_v54 = vld [vmem:[#allocation2 + $0x254] sm:$0xf] }
 0x1e0   : > { %v6240_v61 = vmax.f32 %v6096_v39, %v6163_v37  ;;  %v5877_v5 = vsel %vm1987_vm0, %v5874_v46, %v5876_v3  ;;  %v5663_v62 = vmax.f32 %v5567_v34, %v9962_v50  ;;  %v6021_v17 = vsel %vm2132_vm1, %v6018_v24, %v6020_v19  ;;  %v5616_v19 = vld [vmem:[#allocation2 + $0x274] sm:$0xf] }
 0x1e1   : > { %6415 = vst [vmem:[%s8117_s25 + $0x2b0] sm:$0xff] %v6383_v8  ;;  %v5953_v49 = vmax.f32 %v9966_v20, %v5877_v5  ;;  %v6165_v30 = vsel %vm2277_vm2, %v6162_v40, %v6164_v25  ;;  %v5758_v22 = vmax.f32 %v5662_v38, %v9989_v1  ;;  %v5472_v6 = vmax.f32 %v5376_v15, %v5424_v42  ;;  %v5379_v38 = vld [vmem:[#allocation2 + $0x234] sm:$0xf] }
 0x1e2   : > { %v6384_v48 = vmax.f32 %v6240_v61, %v6307_v18  ;;  %v9999_v46 = vmax.f32 %v5663_v62, %v9995_v63  ;;  %v5473_v12 = vmax.f32 %v9903_v28, %v9926_v7  ;;  %v5474_v28 = vmax.f32 %v9905_v55, %v9931_v44  ;;  %v5427_v15 = vld [vmem:[#allocation2 + $0x254] sm:$0xf] }
 0x1e3   : > { %v6097_v36 = vmax.f32 %v5953_v49, %v6021_v17  ;;  %v5878_v34 = vrot.slane %v5758_v22, 1  ;;  %v6022_v20 = vrot.slane %v5758_v22, 2  ;;  %v6166_v39 = vrot.slane %v5758_v22, 3  ;;  %v5712_v62 = vld [vmem:[#allocation2 + $0x294] sm:$0xf] }
 0x1e4   : > { %6416 = vst [vmem:[%s8117_s25 + $0x2d0] sm:$0xff] %v6384_v48  ;;  %v5879_v24 = vrot.slane %v9999_v46, 1  ;;  %v6023_v40 = vrot.slane %v9999_v46, 2  ;;  %v6167_v37 = vrot.slane %v9999_v46, 3  ;;  %v6310_v3 = vrot.slane %v5758_v22, 4 }
 0x1e5   : > { %v6241_v8 = vmax.f32 %v6097_v36, %v6165_v30  ;;  %v6311_v18 = vrot.slane %v9999_v46, 4  ;;  %v5568_v25 = vmax.f32 %v5472_v6, %v5520_v54  ;;  %v6309_v42 = vsel %vm2422_vm3, %v6306_v60, %v6308_v59  ;;  %v5523_v54 = vld [vmem:[#allocation2 + $0x274] sm:$0xf] }
 0x1e6   : > { %v5880_v61 = vsel %vm1987_vm0, %v5878_v34, %v5879_v24  ;;  %v6024_v5 = vsel %vm2132_vm1, %v6022_v20, %v6023_v40  ;;  %v5569_v49 = vmax.f32 %v5473_v12, %v9960_v27  ;;  %v6168_v48 = vsel %vm2277_vm2, %v6166_v39, %v6167_v37  ;;  %v5382_v36 = vld [vmem:[#allocation2 + $0x254] sm:$0xf] }
 0x1e7   : > { %v6385_v17 = vmax.f32 %v6241_v8, %v6309_v42  ;;  %v5954_v30 = vmax.f32 %v5758_v22, %v5880_v61  ;;  %v5664_v6 = vmax.f32 %v5568_v25, %v5616_v19  ;;  %v5430_v55 = vld [vmem:[#allocation2 + $0x274] sm:$0xf]  ;;  %v5570_v33 = vmax.f32 %v5474_v28, %v9962_v50  ;;  %v10021_v22 = vld [vmem:[#allocation2 + $0x2a4] sm:$0xff] }
 0x1e8   : > { %v5665_v60 = vmax.f32 %v5569_v49, %v9989_v1  ;;  %v5475_v59 = vmax.f32 %v5379_v38, %v5427_v15  ;;  %v5476_v34 = vmax.f32 %v9926_v7, %v9960_v27  ;;  %v6312_v12 = vsel %vm2422_vm3, %v6310_v3, %v6311_v18 }
 0x1e9   : > { %6417 = vst [vmem:[%s8117_s25 + $0x2f0] sm:$0xff] %v6385_v17  ;;  %v6098_v20 = vmax.f32 %v5954_v30, %v6024_v5  ;;  %v5760_v8 = vmax.f32 %v5664_v6, %v5712_v62  ;;  %v5477_v39 = vmax.f32 %v9931_v44, %v9962_v50  ;;  %v5666_v19 = vmax.f32 %v5570_v33, %v9995_v63  ;;  %v10027_v5 = vld [vmem:[#allocation2 + $0x2ac] sm:$0xff] }
 0x1ea   : > { %v5761_v25 = vmax.f32 %v5665_v60, %v10021_v22  ;;  %v5571_v28 = vmax.f32 %v5475_v59, %v5523_v54  ;;  %v5478_v42 = vmax.f32 %v5382_v36, %v5430_v55  ;;  %v5572_v44 = vmax.f32 %v5476_v34, %v9989_v1  ;;  %v5715_v59 = vld [vmem:[#allocation2 + $0x2b4] sm:$0xf] }
 0x1eb   : > { %v6242_v38 = vmax.f32 %v6098_v20, %v6168_v48  ;;  %v5881_v15 = vrot.slane %v5760_v8, 1  ;;  %v6025_v61 = vrot.slane %v5760_v8, 2  ;;  %v6169_v7 = vrot.slane %v5760_v8, 3  ;;  %v5619_v48 = vld [vmem:[#allocation2 + $0x294] sm:$0xf] }
 0x1ec   : > { %v10030_v3 = vmax.f32 %v5666_v19, %v10027_v5  ;;  %v5883_v62 = vrot.slane %v5761_v25, 1  ;;  %v6027_v49 = vrot.slane %v5761_v25, 2  ;;  %v6313_v6 = vrot.slane %v5760_v8, 4  ;;  %v5526_v19 = vld [vmem:[#allocation2 + $0x294] sm:$0xf] }
 0x1ed   : > { %v6386_v17 = vmax.f32 %v6242_v38, %v6312_v12  ;;  %v5882_v33 = vsel %vm1987_vm0, %v5879_v24, %v5881_v15  ;;  %v6026_v30 = vsel %vm2132_vm1, %v6023_v40, %v6025_v61  ;;  %v6170_v36 = vsel %vm2277_vm2, %v6167_v37, %v6169_v7 }
 0x1ee   : > { %v5955_v54 = vmax.f32 %v9999_v46, %v5882_v33  ;;  %v5884_v55 = vrot.slane %v10030_v3, 1  ;;  %v6028_v60 = vrot.slane %v10030_v3, 2  ;;  %v6171_v20 = vrot.slane %v5761_v25, 3 }
 0x1ef   : > { %6418 = vst [vmem:[%s8117_s25 + $0x310] sm:$0xff] %v6386_v17  ;;  %v6172_v34 = vrot.slane %v10030_v3, 3  ;;  %v6315_v12 = vrot.slane %v5761_v25, 4  ;;  %v6316_v24 = vrot.slane %v10030_v3, 4  ;;  %v5667_v38 = vmax.f32 %v5571_v28, %v5619_v48 }
 0x1f0   : > { %v6099_v40 = vmax.f32 %v5955_v54, %v6026_v30  ;;  %v5885_v8 = vsel %vm1987_vm0, %v5883_v62, %v5884_v55  ;;  %v6029_v46 = vsel %vm2132_vm1, %v6027_v49, %v6028_v60  ;;  %v6314_v37 = vsel %vm2422_vm3, %v6311_v18, %v6313_v6  ;;  %v5622_v49 = vld [vmem:[#allocation2 + $0x2b4] sm:$0xf]  ;;  %v5717_v54 = vld [vmem:[#allocation2 + $0x2cc] sm:$0xff] }
 0x1f1   : > { %v5956_v15 = vmax.f32 %v5761_v25, %v5885_v8  ;;  %v6173_v61 = vsel %vm2277_vm2, %v6171_v20, %v6172_v34  ;;  %v5573_v7 = vmax.f32 %v5477_v39, %v9995_v63  ;;  %v5763_v33 = vmax.f32 %v5667_v38, %v5715_v59  ;;  %v5716_v39 = vld [vmem:[#allocation2 + $0x2c4] sm:$0xff] }
 0x1f2   : > { %v6243_v17 = vmax.f32 %v6099_v40, %v6170_v36  ;;  %v5668_v35 = vmax.f32 %v5572_v44, %v10021_v22  ;;  %v5574_v43 = vmax.f32 %v5478_v42, %v5526_v19  ;;  %v6317_v30 = vsel %vm2422_vm3, %v6315_v12, %v6316_v24 }
 0x1f3   : > { %v6100_v16 = vmax.f32 %v5956_v15, %v6029_v46  ;;  %v5669_v62 = vmax.f32 %v5573_v7, %v10027_v5  ;;  %v5479_v18 = vmax.f32 %v9960_v27, %v9989_v1  ;;  %v5886_v28 = vrot.slane %v5763_v33, 1 }
 0x1f4   : > { %v6387_v25 = vmax.f32 %v6243_v17, %v6314_v37  ;;  %v6030_v6 = vrot.slane %v5763_v33, 2  ;;  %v6174_v48 = vrot.slane %v5763_v33, 3  ;;  %v6318_v59 = vrot.slane %v5763_v33, 4 }
 0x1f5   : > { %v6244_v36 = vmax.f32 %v6100_v16, %v6173_v61  ;;  %v5764_v44 = vmax.f32 %v5668_v35, %v5716_v39  ;;  %v5765_v42 = vmax.f32 %v5669_v62, %v5717_v54  ;;  %v5887_v20 = vsel %vm1987_vm0, %v5884_v55, %v5886_v28  ;;  %v5718_v16 = vld [vmem:[#allocation2 + $0x2d4] sm:$0xf] }
 0x1f6   : > { %6419 = vst [vmem:[%s8117_s25 + $0x330] sm:$0xff] %v6387_v25  ;;  %v6031_v12 = vsel %vm2132_vm1, %v6028_v60, %v6030_v6  ;;  %v5670_v19 = vmax.f32 %v5574_v43, %v5622_v49  ;;  %v5480_v27 = vmax.f32 %v9962_v50, %v9995_v63  ;;  %v5957_v40 = vmax.f32 %v10030_v3, %v5887_v20  ;;  %v5719_v6 = vld [vmem:[#allocation2 + $0x2e4] sm:$0xff] }
 0x1f7   : > { %v6388_v1 = vmax.f32 %v6244_v36, %v6317_v30  ;;  %v6175_v8 = vsel %vm2277_vm2, %v6172_v34, %v6174_v48  ;;  %v5888_v46 = vrot.slane %v5764_v44, 1  ;;  %v5889_v38 = vrot.slane %v5765_v42, 1  ;;  %v4169_v34 = vld [vmem:[#allocation2 + $0x332] sm:$0xff] }
 0x1f8   : > { %v6032_v35 = vrot.slane %v5764_v44, 2  ;;  %v6033_v37 = vrot.slane %v5765_v42, 2  ;;  %v6176_v15 = vrot.slane %v5764_v44, 3  ;;  %v6101_v61 = vmax.f32 %v5957_v40, %v6031_v12  ;;  %v5385_v12 = vld [vmem:[#allocation2 + $0x274] sm:$0xf] }
 0x1f9   : > { %6420 = vst [vmem:[%s8117_s25 + $0x350] sm:$0xff] %v6388_v1  ;;  %v6319_v55 = vsel %vm2422_vm3, %v6316_v24, %v6318_v59  ;;  %v6177_v60 = vrot.slane %v5765_v42, 3  ;;  %v6320_v43 = vrot.slane %v5764_v44, 4  ;;  %v5890_v7 = vsel %vm1987_vm0, %v5888_v46, %v5889_v38  ;;  %v5720_v46 = vld [vmem:[#allocation2 + $0x2ec] sm:$0xff] }
 0x1fa   : > { %v6034_v50 = vsel %vm2132_vm1, %v6032_v35, %v6033_v37  ;;  %v5766_v63 = vmax.f32 %v5670_v19, %v5718_v16  ;;  %v5575_v3 = vmax.f32 %v5479_v18, %v10021_v22  ;;  %v6245_v17 = vmax.f32 %v6101_v61, %v6175_v8  ;;  %v5433_v19 = vld [vmem:[#allocation2 + $0x294] sm:$0xf] }
 0x1fb   : > { %v5958_v33 = vmax.f32 %v5764_v44, %v5890_v7  ;;  %v6178_v30 = vsel %vm2277_vm2, %v6176_v15, %v6177_v60  ;;  %v6321_v62 = vrot.slane %v5765_v42, 4  ;;  %v5576_v59 = vmax.f32 %v5480_v27, %v10027_v5  ;;  %v5529_v35 = vld [vmem:[#allocation2 + $0x2b4] sm:$0xf] }
 0x1fc   : > { %v5891_v49 = vrot.slane %v5766_v63, 1  ;;  %v6035_v25 = vrot.slane %v5766_v63, 2  ;;  %v6179_v28 = vrot.slane %v5766_v63, 3  ;;  %v6323_v24 = vrot.slane %v5766_v63, 4 }
 0x1fd   : > { %v6389_v48 = vmax.f32 %v6245_v17, %v6319_v55  ;;  %v6102_v36 = vmax.f32 %v5958_v33, %v6034_v50  ;;  %v5671_v20 = vmax.f32 %v5575_v3, %v5716_v39  ;;  %v12525_v22 = vmax.f32 %v9604_v4, %v9597_v56 }
 0x1fe   : > { %v12526_v44 = vmax.f32 %v9628_v41, %v9940_v53  ;;  %v5892_v40 = vsel %vm1987_vm0, %v5889_v38, %v5891_v49  ;;  %v6036_v8 = vsel %vm2132_vm1, %v6033_v37, %v6035_v25  ;;  %v5672_v27 = vmax.f32 %v5576_v59, %v5717_v54  ;;  %v5625_v37 = vld [vmem:[#allocation2 + $0x2d4] sm:$0xf]  ;;  %v12528_v49 = vld [vmem:[#allocation52_spill] sm:$0xff] }
 0x1ff   : > { %v10070_v18 = vmax.f32 %v12525_v22, %v9940_v53  ;;  %6421 = vst [vmem:[%s8117_s25 + $0x370] sm:$0xff] %v6389_v48  ;;  %v6246_v5 = vmax.f32 %v6102_v36, %v6178_v30  ;;  %v5959_v39 = vmax.f32 %v5765_v42, %v5892_v40  ;;  %v5767_v16 = vmax.f32 %v5671_v20, %v5719_v6  ;;  %v12527_v30 = vld [vmem:[#allocation49_spill] sm:$0xff] }
 0x200   : > { %v10075_v1 = vmax.f32 %v12526_v44, %v4169_v34  ;;  %v6322_v56 = vsel %vm2422_vm3, %v6320_v43, %v6321_v62  ;;  %v6180_v4 = vsel %vm2277_vm2, %v6177_v60, %v6179_v28  ;;  %v6324_v41 = vsel %vm2422_vm3, %v6321_v62, %v6323_v24  ;;  %v5721_v43 = vld [vmem:[#allocation2 + $0x2f4] sm:$0xf] }
 0x201   : > { %v5481_v53 = vmax.f32 %v5385_v12, %v5433_v19  ;;  %v6390_v15 = vmax.f32 %v6246_v5, %v6322_v56  ;;  %v6103_v61 = vmax.f32 %v5959_v39, %v6036_v8  ;;  %v5768_v38 = vmax.f32 %v5672_v27, %v5720_v46 }
 0x202   : > { %v5893_v55 = vrot.slane %v5767_v16, 1  ;;  %v6037_v7 = vrot.slane %v5767_v16, 2  ;;  %v6181_v50 = vrot.slane %v5767_v16, 3  ;;  %v6325_v63 = vrot.slane %v5767_v16, 4 }
 0x203   : > { %v5577_v42 = vmax.f32 %v5481_v53, %v5529_v35  ;;  %6422 = vst [vmem:[%s8117_s25 + $0x390] sm:$0xff] %v6390_v15  ;;  %v6247_v54 = vmax.f32 %v6103_v61, %v6180_v4  ;;  %v5894_v3 = vrot.slane %v5768_v38, 1  ;;  %v6038_v34 = vrot.slane %v5768_v38, 2 }
 0x204   : > { %v6182_v17 = vrot.slane %v5768_v38, 3  ;;  %v6326_v60 = vrot.slane %v5768_v38, 4  ;;  %v4266_v62 = vrot.slane %v12527_v30, 1  ;;  %v4267_v25 = vrot.slane %v12528_v49, 1 }
 0x205   : > { %v5673_v33 = vmax.f32 %v5577_v42, %v5625_v37  ;;  %v6391_v28 = vmax.f32 %v6247_v54, %v6324_v41  ;;  %v5895_v24 = vsel %vm1987_vm0, %v5893_v55, %v5894_v3  ;;  %v6039_v6 = vsel %vm2132_vm1, %v6037_v7, %v6038_v34 }
 0x206   : > { %v6183_v48 = vsel %vm2277_vm2, %v6181_v50, %v6182_v17  ;;  %v5960_v36 = vmax.f32 %v5767_v16, %v5895_v24  ;;  %v6327_v59 = vsel %vm2422_vm3, %v6325_v63, %v6326_v60  ;;  %v4268_v12 = vsel %vm1987_vm0, %v4266_v62, %v4267_v25 }
 0x207   : > { %v5769_v20 = vmax.f32 %v5673_v33, %v5721_v43  ;;  %6423 = vst [vmem:[%s8117_s25 + $0x3b0] sm:$0xff] %v6391_v28  ;;  %v4378_v19 = vmax.f32 %v12527_v30, %v4268_v12  ;;  %v4410_v22 = vrot.slane %v12527_v30, 2  ;;  %v4411_v44 = vrot.slane %v12528_v49, 2 }
 0x208   : > { %v4554_v40 = vrot.slane %v12527_v30, 3  ;;  %v6104_v8 = vmax.f32 %v5960_v36, %v6039_v6  ;;  %v4555_v35 = vrot.slane %v12528_v49, 3  ;;  %v4698_v56 = vrot.slane %v12527_v30, 4 }
 0x209   : > { %v5896_v46 = vrot.slane %v5769_v20, 1  ;;  %v6040_v5 = vrot.slane %v5769_v20, 2  ;;  %v6184_v39 = vrot.slane %v5769_v20, 3  ;;  %v6328_v27 = vrot.slane %v5769_v20, 4 }
 0x20a   : > { %v4412_v16 = vsel %vm2132_vm1, %v4410_v22, %v4411_v44  ;;  %v6248_v4 = vmax.f32 %v6104_v8, %v6183_v48  ;;  %v4556_v7 = vsel %vm2277_vm2, %v4554_v40, %v4555_v35  ;;  %v4699_v63 = vrot.slane %v12528_v49, 4  ;;  %v12529_v48 = vld [vmem:[#allocation53_spill] sm:$0xff] }
 0x20b   : > { %v5897_v41 = vsel %vm1987_vm0, %v5894_v3, %v5896_v46  ;;  %v6041_v53 = vsel %vm2132_vm1, %v6038_v34, %v6040_v5  ;;  %v6185_v15 = vsel %vm2277_vm2, %v6182_v17, %v6184_v39  ;;  %v6329_v55 = vsel %vm2422_vm3, %v6326_v60, %v6328_v27 }
 0x20c   : > { %v5961_v61 = vmax.f32 %v5768_v38, %v5897_v41  ;;  %v4522_v37 = vmax.f32 %v4378_v19, %v4412_v16  ;;  %v6392_v50 = vmax.f32 %v6248_v4, %v6327_v59  ;;  %v4842_v42 = vrot.slane %v12527_v30, 5 }
 0x20d   : > { %v4843_v54 = vrot.slane %v12528_v49, 5  ;;  %v4986_v3 = vrot.slane %v12527_v30, 6  ;;  %v4987_v34 = vrot.slane %v12528_v49, 6  ;;  %v4700_v38 = vsel %vm2422_vm3, %v4698_v56, %v4699_v63 }
 0x20e   : > { %v6105_v43 = vmax.f32 %v5961_v61, %v6041_v53  ;;  %v4666_v33 = vmax.f32 %v4522_v37, %v4556_v7  ;;  %6424 = vst [vmem:[%s8117_s25 + $0x3d0] sm:$0xff] %v6392_v50  ;;  %v5130_v60 = vrot.slane %v12527_v30, 7  ;;  %v5131_v62 = vrot.slane %v12528_v49, 7  ;;  %v12531_v61 = vld [vmem:[#allocation56_spill] sm:$0xff] }
 0x20f   : > { %v4844_v17 = vsel %vm2567_vm4, %v4842_v42, %v4843_v54  ;;  %v4988_v6 = vsel %vm2712_vm5, %v4986_v3, %v4987_v34  ;;  %v4269_v36 = vrot.slane %v12529_v48, 1  ;;  %v4413_v20 = vrot.slane %v12529_v48, 2 }
 0x210   : > { %v6249_v28 = vmax.f32 %v6105_v43, %v6185_v15  ;;  %v4810_v24 = vmax.f32 %v4666_v33, %v4700_v38  ;;  %v5132_v59 = vsel %vm2857_vm6, %v5130_v60, %v5131_v62  ;;  %v4557_v12 = vrot.slane %v12529_v48, 3 }
 0x211   : > { %v4701_v19 = vrot.slane %v12529_v48, 4  ;;  %v4270_v30 = vsel %vm1987_vm0, %v4267_v25, %v4269_v36  ;;  %v4845_v8 = vrot.slane %v12529_v48, 5  ;;  %v4414_v5 = vsel %vm2132_vm1, %v4411_v44, %v4413_v20  ;;  %v12530_v25 = vld [vmem:[#allocation54_spill] sm:$0xff] }
 0x212   : > { %v6393_v22 = vmax.f32 %v6249_v28, %v6329_v55  ;;  %v4954_v40 = vmax.f32 %v4810_v24, %v4844_v17  ;;  %v4379_v46 = vmax.f32 %v12528_v49, %v4270_v30  ;;  %v4558_v39 = vsel %vm2277_vm2, %v4555_v35, %v4557_v12 }
 0x213   : > { %v4702_v27 = vsel %vm2422_vm3, %v4699_v63, %v4701_v19  ;;  %v4846_v56 = vsel %vm2567_vm4, %v4843_v54, %v4845_v8  ;;  %v4989_v4 = vrot.slane %v12529_v48, 6  ;;  %v5133_v41 = vrot.slane %v12529_v48, 7  ;;  %v12532_v8 = vld [vmem:[#allocation57_spill] sm:$0xff] }
 0x214   : > { %6425 = vst [vmem:[%s8117_s25 + $0x3f0] sm:$0xff] %v6393_v22  ;;  %v5098_v16 = vmax.f32 %v4954_v40, %v4988_v6  ;;  %v4523_v53 = vmax.f32 %v4379_v46, %v4414_v5  ;;  %v4271_v15 = vrot.slane %v12530_v25, 1  ;;  %v4272_v55 = vrot.slane %v12531_v61, 1 }
 0x215   : > { %v4415_v37 = vrot.slane %v12530_v25, 2  ;;  %v4990_v35 = vsel %vm2712_vm5, %v4987_v34, %v4989_v4  ;;  %v5134_v7 = vsel %vm2857_vm6, %v5131_v62, %v5133_v41  ;;  %v4416_v50 = vrot.slane %v12531_v61, 2 }
 0x216   : > { %v5242_v44 = vmax.f32 %v5098_v16, %v5132_v59  ;;  %v4667_v63 = vmax.f32 %v4523_v53, %v4558_v39  ;;  %v4273_v42 = vsel %vm1987_vm0, %v4271_v15, %v4272_v55  ;;  %v4559_v54 = vrot.slane %v12530_v25, 3 }
 0x217   : > { %v4560_v43 = vrot.slane %v12531_v61, 3  ;;  %v4380_v3 = vmax.f32 %v12530_v25, %v4273_v42  ;;  %v4417_v38 = vsel %vm2132_vm1, %v4415_v37, %v4416_v50  ;;  %v4703_v17 = vrot.slane %v12530_v25, 4 }
 0x218   : > { %v5274_v33 = vmax.f32 %v5242_v44, %v12528_v49  ;;  %v4811_v34 = vmax.f32 %v4667_v63, %v4702_v27  ;;  %v4704_v62 = vrot.slane %v12531_v61, 4  ;;  %v4847_v28 = vrot.slane %v12530_v25, 5 }
 0x219   : > { %v4561_v60 = vsel %vm2277_vm2, %v4559_v54, %v4560_v43  ;;  %v4524_v24 = vmax.f32 %v4380_v3, %v4417_v38  ;;  %v4848_v6 = vrot.slane %v12531_v61, 5  ;;  %v4991_v36 = vrot.slane %v12530_v25, 6 }
 0x21a   : > { %5306 = vst [vmem:[%s8117_s25 + $0x8] sm:$0xff] %v5274_v33  ;;  %v4992_v49 = vrot.slane %v12531_v61, 6  ;;  %v4955_v59 = vmax.f32 %v4811_v34, %v4846_v56  ;;  %v4705_v20 = vsel %vm2422_vm3, %v4703_v17, %v4704_v62  ;;  %v5135_v12 = vrot.slane %v12530_v25, 7 }
 0x21b   : > { %v5136_v19 = vrot.slane %v12531_v61, 7  ;;  %v4668_v22 = vmax.f32 %v4524_v24, %v4561_v60  ;;  %v4849_v40 = vsel %vm2567_vm4, %v4847_v28, %v4848_v6  ;;  %v4274_v46 = vrot.slane %v12532_v8, 1 }
 0x21c   : > { %v4993_v30 = vsel %vm2712_vm5, %v4991_v36, %v4992_v49  ;;  %v5099_v5 = vmax.f32 %v4955_v59, %v4990_v35  ;;  %v4418_v27 = vrot.slane %v12532_v8, 2  ;;  %v4562_v16 = vrot.slane %v12532_v8, 3 }
 0x21d   : > { %v5137_v39 = vsel %vm2857_vm6, %v5135_v12, %v5136_v19  ;;  %v4812_v56 = vmax.f32 %v4668_v22, %v4705_v20  ;;  %v4275_v4 = vsel %vm1987_vm0, %v4272_v55, %v4274_v46  ;;  %v4706_v41 = vrot.slane %v12532_v8, 4 }
 0x21e   : > { %v4850_v53 = vrot.slane %v12532_v8, 5  ;;  %v5243_v25 = vmax.f32 %v5099_v5, %v5134_v7  ;;  %v4381_v15 = vmax.f32 %v12531_v61, %v4275_v4  ;;  %v4419_v37 = vsel %vm2132_vm1, %v4416_v50, %v4418_v27  ;;  %v12533_v7 = vld [vmem:[#allocation60_spill] sm:$0xff]  ;;  %v12534_v50 = vld [vmem:[#allocation63_spill] sm:$0xff] }
 0x21f   : > { %v4563_v44 = vsel %vm2277_vm2, %v4560_v43, %v4562_v16  ;;  %v4956_v35 = vmax.f32 %v4812_v56, %v4849_v40  ;;  %v4707_v63 = vsel %vm2422_vm3, %v4704_v62, %v4706_v41  ;;  %v4994_v54 = vrot.slane %v12532_v8, 6 }
 0x220   : > { %v4851_v42 = vsel %vm2567_vm4, %v4848_v6, %v4850_v53  ;;  %v5275_v55 = vmax.f32 %v5243_v25, %v12529_v48  ;;  %v4525_v33 = vmax.f32 %v4381_v15, %v4419_v37  ;;  %v5138_v3 = vrot.slane %v12532_v8, 7  ;;  %v12535_v37 = vld [vmem:[#allocation64_spill] sm:$0xff] }
 0x221   : > { %v4276_v38 = vrot.slane %v12533_v7, 1  ;;  %v5100_v17 = vmax.f32 %v4956_v35, %v4993_v30  ;;  %v4995_v34 = vsel %vm2712_vm5, %v4992_v49, %v4994_v54  ;;  %v4277_v60 = vrot.slane %v12534_v50, 1 }
 0x222   : > { %v4420_v43 = vrot.slane %v12533_v7, 2  ;;  %5307 = vst [vmem:[%s8117_s25 + $0x28] sm:$0xff] %v5275_v55  ;;  %v4669_v62 = vmax.f32 %v4525_v33, %v4563_v44  ;;  %v5139_v28 = vsel %vm2857_vm6, %v5136_v19, %v5138_v3  ;;  %v4421_v24 = vrot.slane %v12534_v50, 2 }
 0x223   : > { %v4564_v48 = vrot.slane %v12533_v7, 3  ;;  %v5244_v6 = vmax.f32 %v5100_v17, %v5137_v39  ;;  %v4278_v36 = vsel %vm1987_vm0, %v4276_v38, %v4277_v60  ;;  %v4565_v59 = vrot.slane %v12534_v50, 3 }
 0x224   : > { %v4708_v49 = vrot.slane %v12533_v7, 4  ;;  %v4813_v20 = vmax.f32 %v4669_v62, %v4707_v63  ;;  %v4382_v12 = vmax.f32 %v12533_v7, %v4278_v36  ;;  %v4422_v22 = vsel %vm2132_vm1, %v4420_v43, %v4421_v24 }
 0x225   : > { %v4709_v40 = vrot.slane %v12534_v50, 4  ;;  %v5276_v19 = vmax.f32 %v5244_v6, %v12531_v61  ;;  %v4566_v30 = vsel %vm2277_vm2, %v4564_v48, %v4565_v59  ;;  %v4852_v46 = vrot.slane %v12533_v7, 5 }
 0x226   : > { %v4853_v5 = vrot.slane %v12534_v50, 5  ;;  %v4957_v39 = vmax.f32 %v4813_v20, %v4851_v42  ;;  %v4526_v27 = vmax.f32 %v4382_v12, %v4422_v22  ;;  %v4996_v56 = vrot.slane %v12533_v7, 6  ;;  %v12536_v20 = vld [vmem:[#allocation67_spill] sm:$0xff]  ;;  %v12537_v12 = vld [vmem:[#allocation70_spill] sm:$0xff] }
 0x227   : > { %v4710_v16 = vsel %vm2422_vm3, %v4708_v49, %v4709_v40  ;;  %5308 = vst [vmem:[%s8117_s25 + $0x48] sm:$0xff] %v5276_v19  ;;  %v4997_v41 = vrot.slane %v12534_v50, 6  ;;  %v5140_v53 = vrot.slane %v12533_v7, 7  ;;  %v5141_v61 = vrot.slane %v12534_v50, 7 }
 0x228   : > { %v4854_v4 = vsel %vm2567_vm4, %v4852_v46, %v4853_v5  ;;  %v5101_v25 = vmax.f32 %v4957_v39, %v4995_v34  ;;  %v4670_v15 = vmax.f32 %v4526_v27, %v4566_v30  ;;  %v4279_v44 = vrot.slane %v12535_v37, 1 }
 0x229   : > { %v4423_v35 = vrot.slane %v12535_v37, 2  ;;  %v4998_v63 = vsel %vm2712_vm5, %v4996_v56, %v4997_v41  ;;  %v5142_v42 = vsel %vm2857_vm6, %v5140_v53, %v5141_v61  ;;  %v4567_v54 = vrot.slane %v12535_v37, 3 }
 0x22a   : > { %v4711_v55 = vrot.slane %v12535_v37, 4  ;;  %v5245_v33 = vmax.f32 %v5101_v25, %v5139_v28  ;;  %v4814_v3 = vmax.f32 %v4670_v15, %v4710_v16  ;;  %v4280_v7 = vsel %vm1987_vm0, %v4277_v60, %v4279_v44 }
 0x22b   : > { %v4424_v38 = vsel %vm2132_vm1, %v4421_v24, %v4423_v35  ;;  %v4383_v17 = vmax.f32 %v12534_v50, %v4280_v7  ;;  %v4568_v34 = vsel %vm2277_vm2, %v4565_v59, %v4567_v54  ;;  %v4855_v62 = vrot.slane %v12535_v37, 5 }
 0x22c   : > { %v4712_v43 = vsel %vm2422_vm3, %v4709_v40, %v4711_v55  ;;  %v5277_v48 = vmax.f32 %v5245_v33, %v12532_v8  ;;  %v4958_v6 = vmax.f32 %v4814_v3, %v4854_v4  ;;  %v4999_v36 = vrot.slane %v12535_v37, 6 }
 0x22d   : > { %v5143_v28 = vrot.slane %v12535_v37, 7  ;;  %v4527_v49 = vmax.f32 %v4383_v17, %v4424_v38  ;;  %v4856_v60 = vsel %vm2567_vm4, %v4853_v5, %v4855_v62  ;;  %v4281_v24 = vrot.slane %v12536_v20, 1 }
 0x22e   : > { %v4282_v22 = vrot.slane %v12537_v12, 1  ;;  %5309 = vst [vmem:[%s8117_s25 + $0x68] sm:$0xff] %v5277_v48  ;;  %v5102_v59 = vmax.f32 %v4958_v6, %v4998_v63  ;;  %v5000_v40 = vsel %vm2712_vm5, %v4997_v41, %v4999_v36  ;;  %v4425_v8 = vrot.slane %v12536_v20, 2 }
 0x22f   : > { %v5144_v19 = vsel %vm2857_vm6, %v5141_v61, %v5143_v28  ;;  %v4671_v30 = vmax.f32 %v4527_v49, %v4568_v34  ;;  %v4426_v39 = vrot.slane %v12537_v12, 2  ;;  %v4569_v27 = vrot.slane %v12536_v20, 3 }
 0x230   : > { %v4283_v46 = vsel %vm1987_vm0, %v4281_v24, %v4282_v22  ;;  %v5246_v5 = vmax.f32 %v5102_v59, %v5142_v42  ;;  %v4570_v56 = vrot.slane %v12537_v12, 3  ;;  %v4713_v4 = vrot.slane %v12536_v20, 4 }
 0x231   : > { %v4384_v16 = vmax.f32 %v12536_v20, %v4283_v46  ;;  %v4815_v41 = vmax.f32 %v4671_v30, %v4712_v43  ;;  %v4427_v53 = vsel %vm2132_vm1, %v4425_v8, %v4426_v39  ;;  %v4714_v61 = vrot.slane %v12537_v12, 4  ;;  %v12538_v43 = vld [vmem:[#allocation71_spill] sm:$0xff] }
 0x232   : > { %v4857_v25 = vrot.slane %v12536_v20, 5  ;;  %v5278_v15 = vmax.f32 %v5246_v5, %v12534_v50  ;;  %v4571_v35 = vsel %vm2277_vm2, %v4569_v27, %v4570_v56  ;;  %v4858_v63 = vrot.slane %v12537_v12, 5 }
 0x233   : > { %v4528_v44 = vmax.f32 %v4384_v16, %v4427_v53  ;;  %v4959_v42 = vmax.f32 %v4815_v41, %v4856_v60  ;;  %v4715_v54 = vsel %vm2422_vm3, %v4713_v4, %v4714_v61  ;;  %v5001_v55 = vrot.slane %v12536_v20, 6  ;;  %v12540_v53 = vld [vmem:[#allocation34_spill] sm:$0xff] }
 0x234   : > { %v5002_v33 = vrot.slane %v12537_v12, 6  ;;  %5310 = vst [vmem:[%s8117_s25 + $0x88] sm:$0xff] %v5278_v15  ;;  %v4859_v7 = vsel %vm2567_vm4, %v4857_v25, %v4858_v63  ;;  %v5145_v38 = vrot.slane %v12536_v20, 7  ;;  %v5146_v50 = vrot.slane %v12537_v12, 7 }
 0x235   : > { %v4672_v3 = vmax.f32 %v4528_v44, %v4571_v35  ;;  %v5103_v17 = vmax.f32 %v4959_v42, %v5000_v40  ;;  %v4284_v62 = vrot.slane %v12538_v43, 1  ;;  %v4428_v48 = vrot.slane %v12538_v43, 2 }
 0x236   : > { %v5003_v34 = vsel %vm2712_vm5, %v5001_v55, %v5002_v33  ;;  %v5147_v36 = vsel %vm2857_vm6, %v5145_v38, %v5146_v50  ;;  %v4572_v28 = vrot.slane %v12538_v43, 3  ;;  %v4716_v49 = vrot.slane %v12538_v43, 4 }
 0x237   : > { %v4816_v6 = vmax.f32 %v4672_v3, %v4715_v54  ;;  %v5247_v60 = vmax.f32 %v5103_v17, %v5144_v19  ;;  %v4285_v20 = vsel %vm1987_vm0, %v4282_v22, %v4284_v62  ;;  %v4429_v24 = vsel %vm2132_vm1, %v4426_v39, %v4428_v48  ;;  %v12539_v39 = vld [vmem:[#allocation25_spill] sm:$0xff] }
 0x238   : > { %v4860_v59 = vrot.slane %v12538_v43, 5  ;;  %v4385_v8 = vmax.f32 %v12537_v12, %v4285_v20  ;;  %v4573_v30 = vsel %vm2277_vm2, %v4570_v56, %v4572_v28  ;;  %v4717_v46 = vsel %vm2422_vm3, %v4714_v61, %v4716_v49 }
 0x239   : > { %v4960_v40 = vmax.f32 %v4816_v6, %v4859_v7  ;;  %v5279_v27 = vmax.f32 %v5247_v60, %v12535_v37  ;;  %v5004_v19 = vrot.slane %v12538_v43, 6  ;;  %v5148_v16 = vrot.slane %v12538_v43, 7 }
 0x23a   : > { %v4861_v5 = vsel %vm2567_vm4, %v4858_v63, %v4860_v59  ;;  %v4529_v4 = vmax.f32 %v4385_v8, %v4429_v24  ;;  %v4286_v41 = vrot.slane %v12539_v39, 1  ;;  %v4287_v25 = vrot.slane %v12540_v53, 1  ;;  %v12541_v59 = vld [vmem:[#allocation35_spill] sm:$0xff] }
 0x23b   : > { %v5104_v22 = vmax.f32 %v4960_v40, %v5003_v34  ;;  %5311 = vst [vmem:[%s8117_s25 + $0xa8] sm:$0xff] %v5279_v27  ;;  %v5005_v15 = vsel %vm2712_vm5, %v5002_v33, %v5004_v19  ;;  %v5149_v56 = vsel %vm2857_vm6, %v5146_v50, %v5148_v16  ;;  %v4430_v61 = vrot.slane %v12539_v39, 2 }
 0x23c   : > { %v4431_v37 = vrot.slane %v12540_v53, 2  ;;  %v4673_v35 = vmax.f32 %v4529_v4, %v4573_v30  ;;  %v4288_v63 = vsel %vm1987_vm0, %v4286_v41, %v4287_v25  ;;  %v4574_v42 = vrot.slane %v12539_v39, 3 }
 0x23d   : > { %v5248_v44 = vmax.f32 %v5104_v22, %v5147_v36  ;;  %v4386_v54 = vmax.f32 %v12539_v39, %v4288_v63  ;;  %v4575_v3 = vrot.slane %v12540_v53, 3  ;;  %v4718_v33 = vrot.slane %v12539_v39, 4 }
 0x23e   : > { %v4432_v55 = vsel %vm2132_vm1, %v4430_v61, %v4431_v37  ;;  %v4817_v38 = vmax.f32 %v4673_v35, %v4717_v46  ;;  %v4719_v50 = vrot.slane %v12540_v53, 4  ;;  %v4862_v17 = vrot.slane %v12539_v39, 5 }
 0x23f   : > { %v5280_v7 = vmax.f32 %v5248_v44, %v12537_v12  ;;  %v4530_v34 = vmax.f32 %v4386_v54, %v4432_v55  ;;  %v4576_v62 = vsel %vm2277_vm2, %v4574_v42, %v4575_v3  ;;  %v4863_v48 = vrot.slane %v12540_v53, 5 }
 0x240   : > { %v5006_v6 = vrot.slane %v12539_v39, 6  ;;  %v4961_v36 = vmax.f32 %v4817_v38, %v4861_v5  ;;  %v4720_v28 = vsel %vm2422_vm3, %v4718_v33, %v4719_v50  ;;  %v5007_v49 = vrot.slane %v12540_v53, 6 }
 0x241   : > { %5312 = vst [vmem:[%s8117_s25 + $0xc8] sm:$0xff] %v5280_v7  ;;  %v5150_v12 = vrot.slane %v12539_v39, 7  ;;  %v4674_v60 = vmax.f32 %v4530_v34, %v4576_v62  ;;  %v4864_v20 = vsel %vm2567_vm4, %v4862_v17, %v4863_v48  ;;  %v5151_v24 = vrot.slane %v12540_v53, 7 }
 0x242   : > { %v4289_v40 = vrot.slane %v12541_v59, 1  ;;  %v5105_v8 = vmax.f32 %v4961_v36, %v5005_v15  ;;  %v5008_v30 = vsel %vm2712_vm5, %v5006_v6, %v5007_v49  ;;  %v4433_v46 = vrot.slane %v12541_v59, 2 }
 0x243   : > { %v4577_v27 = vrot.slane %v12541_v59, 3  ;;  %v4818_v5 = vmax.f32 %v4674_v60, %v4720_v28  ;;  %v5152_v19 = vsel %vm2857_vm6, %v5150_v12, %v5151_v24  ;;  %v4721_v22 = vrot.slane %v12541_v59, 4 }
 0x244   : > { %v4290_v16 = vsel %vm1987_vm0, %v4287_v25, %v4289_v40  ;;  %v5249_v4 = vmax.f32 %v5105_v8, %v5149_v56  ;;  %v4434_v41 = vsel %vm2132_vm1, %v4431_v37, %v4433_v46  ;;  %v4865_v35 = vrot.slane %v12541_v59, 5  ;;  %v12542_v56 = vld [vmem:[#allocation37_spill] sm:$0xff] }
 0x245   : > { %v4387_v39 = vmax.f32 %v12540_v53, %v4290_v16  ;;  %v4578_v15 = vsel %vm2277_vm2, %v4575_v3, %v4577_v27  ;;  %v4962_v61 = vmax.f32 %v4818_v5, %v4864_v20  ;;  %v4722_v44 = vsel %vm2422_vm3, %v4719_v50, %v4721_v22  ;;  %v12543_v3 = vld [vmem:[#allocation47_spill] sm:$0xff] }
 0x246   : > { %v5009_v63 = vrot.slane %v12541_v59, 6  ;;  %v5281_v42 = vmax.f32 %v5249_v4, %v12538_v43  ;;  %v5153_v54 = vrot.slane %v12541_v59, 7  ;;  %v4291_v55 = vrot.slane %v12542_v56, 1 }
 0x247   : > { %v4531_v25 = vmax.f32 %v4387_v39, %v4434_v41  ;;  %v5106_v33 = vmax.f32 %v4962_v61, %v5008_v30  ;;  %v4866_v7 = vsel %vm2567_vm4, %v4863_v48, %v4865_v35  ;;  %v4292_v38 = vrot.slane %v12543_v3, 1 }
 0x248   : > { %v5010_v37 = vsel %vm2712_vm5, %v5007_v49, %v5009_v63  ;;  %5313 = vst [vmem:[%s8117_s25 + $0xe8] sm:$0xff] %v5281_v42  ;;  %v5154_v17 = vsel %vm2857_vm6, %v5151_v24, %v5153_v54  ;;  %v4435_v34 = vrot.slane %v12542_v56, 2  ;;  %v4436_v43 = vrot.slane %v12543_v3, 2 }
 0x249   : > { %v4675_v50 = vmax.f32 %v4531_v25, %v4578_v15  ;;  %v5250_v62 = vmax.f32 %v5106_v33, %v5152_v19  ;;  %v4293_v6 = vsel %vm1987_vm0, %v4291_v55, %v4292_v38  ;;  %v4579_v36 = vrot.slane %v12542_v56, 3  ;;  %v12544_v15 = vld [vmem:[#allocation48_spill] sm:$0xff] }
 0x24a   : > { %v4580_v48 = vrot.slane %v12543_v3, 3  ;;  %v4388_v49 = vmax.f32 %v12542_v56, %v4293_v6  ;;  %v4437_v12 = vsel %vm2132_vm1, %v4435_v34, %v4436_v43  ;;  %v4723_v60 = vrot.slane %v12542_v56, 4 }
 0x24b   : > { %v4819_v28 = vmax.f32 %v4675_v50, %v4722_v44  ;;  %v5282_v20 = vmax.f32 %v5250_v62, %v12540_v53  ;;  %v4724_v40 = vrot.slane %v12543_v3, 4  ;;  %v4867_v8 = vrot.slane %v12542_v56, 5 }
 0x24c   : > { %v4581_v24 = vsel %vm2277_vm2, %v4579_v36, %v4580_v48  ;;  %v4532_v46 = vmax.f32 %v4388_v49, %v4437_v12  ;;  %v4868_v27 = vrot.slane %v12543_v3, 5  ;;  %v5011_v5 = vrot.slane %v12542_v56, 6  ;;  %v12545_v49 = vld [vmem:[#allocation61_spill] sm:$0xff] }
 0x24d   : > { %v4963_v30 = vmax.f32 %v4819_v28, %v4866_v7  ;;  %5314 = vst [vmem:[%s8117_s25 + $0x108] sm:$0xff] %v5282_v20  ;;  %v4725_v19 = vsel %vm2422_vm3, %v4723_v60, %v4724_v40  ;;  %v5012_v16 = vrot.slane %v12543_v3, 6  ;;  %v5155_v22 = vrot.slane %v12542_v56, 7  ;;  %v12546_v60 = vld [vmem:[#allocation30_spill] sm:$0xff] }
 0x24e   : > { %v5156_v53 = vrot.slane %v12543_v3, 7  ;;  %v4676_v39 = vmax.f32 %v4532_v46, %v4581_v24  ;;  %v4869_v41 = vsel %vm2567_vm4, %v4867_v8, %v4868_v27  ;;  %v4294_v61 = vrot.slane %v12544_v15, 1 }
 0x24f   : > { %v5107_v4 = vmax.f32 %v4963_v30, %v5010_v37  ;;  %v5013_v44 = vsel %vm2712_vm5, %v5011_v5, %v5012_v16  ;;  %v4438_v63 = vrot.slane %v12544_v15, 2  ;;  %v4582_v42 = vrot.slane %v12544_v15, 3 }
 0x250   : > { %v5157_v35 = vsel %vm2857_vm6, %v5155_v22, %v5156_v53  ;;  %v4820_v54 = vmax.f32 %v4676_v39, %v4725_v19  ;;  %v4295_v56 = vsel %vm1987_vm0, %v4292_v38, %v4294_v61  ;;  %v4726_v55 = vrot.slane %v12544_v15, 4 }
 0x251   : > { %v5251_v25 = vmax.f32 %v5107_v4, %v5154_v17  ;;  %v4389_v33 = vmax.f32 %v12543_v3, %v4295_v56  ;;  %v4439_v7 = vsel %vm2132_vm1, %v4436_v43, %v4438_v63  ;;  %v4583_v37 = vsel %vm2277_vm2, %v4580_v48, %v4582_v42 }
 0x252   : > { %v4870_v50 = vrot.slane %v12544_v15, 5  ;;  %v4964_v62 = vmax.f32 %v4820_v54, %v4869_v41  ;;  %v4727_v6 = vsel %vm2422_vm3, %v4724_v40, %v4726_v55  ;;  %v5014_v17 = vrot.slane %v12544_v15, 6 }
 0x253   : > { %v5283_v34 = vmax.f32 %v5251_v25, %v12541_v59  ;;  %v4533_v36 = vmax.f32 %v4389_v33, %v4439_v7  ;;  %v5158_v28 = vrot.slane %v12544_v15, 7  ;;  %v4296_v12 = vrot.slane %v12545_v49, 1 }
 0x254   : > { %v4871_v38 = vsel %vm2567_vm4, %v4868_v27, %v4870_v50  ;;  %v5108_v43 = vmax.f32 %v4964_v62, %v5013_v44  ;;  %v5015_v48 = vsel %vm2712_vm5, %v5012_v16, %v5014_v17  ;;  %v4297_v20 = vrot.slane %v12546_v60, 1 }
 0x255   : > { %5315 = vst [vmem:[%s8117_s25 + $0x128] sm:$0xff] %v5283_v34  ;;  %v4440_v59 = vrot.slane %v12545_v49, 2  ;;  %v4677_v24 = vmax.f32 %v4533_v36, %v4583_v37  ;;  %v5159_v40 = vsel %vm2857_vm6, %v5156_v53, %v5158_v28  ;;  %v4441_v8 = vrot.slane %v12546_v60, 2  ;;  %v12547_v37 = vld [vmem:[#allocation33_spill] sm:$0xff] }
 0x256   : > { %v4584_v30 = vrot.slane %v12545_v49, 3  ;;  %v5252_v46 = vmax.f32 %v5108_v43, %v5157_v35  ;;  %v4298_v27 = vsel %vm1987_vm0, %v4296_v12, %v4297_v20  ;;  %v4585_v5 = vrot.slane %v12546_v60, 3 }
 0x257   : > { %v4728_v19 = vrot.slane %v12545_v49, 4  ;;  %v4821_v16 = vmax.f32 %v4677_v24, %v4727_v6  ;;  %v4390_v22 = vmax.f32 %v12545_v49, %v4298_v27  ;;  %v4442_v4 = vsel %vm2132_vm1, %v4440_v59, %v4441_v8 }
 0x258   : > { %v4729_v39 = vrot.slane %v12546_v60, 4  ;;  %v5284_v53 = vmax.f32 %v5252_v46, %v12543_v3  ;;  %v4586_v41 = vsel %vm2277_vm2, %v4584_v30, %v4585_v5  ;;  %v4872_v61 = vrot.slane %v12545_v49, 5 }
 0x259   : > { %v4873_v44 = vrot.slane %v12546_v60, 5  ;;  %v4965_v35 = vmax.f32 %v4821_v16, %v4871_v38  ;;  %v4534_v63 = vmax.f32 %v4390_v22, %v4442_v4  ;;  %v5016_v25 = vrot.slane %v12545_v49, 6  ;;  %v12548_v16 = vld [vmem:[#allocation46_spill] sm:$0xff]  ;;  %v12549_v22 = vld [vmem:[#allocation45_spill] sm:$0xff] }
 0x25a   : > { %v4730_v42 = vsel %vm2422_vm3, %v4728_v19, %v4729_v39  ;;  %5316 = vst [vmem:[%s8117_s25 + $0x148] sm:$0xff] %v5284_v53  ;;  %v5017_v56 = vrot.slane %v12546_v60, 6  ;;  %v5160_v55 = vrot.slane %v12545_v49, 7  ;;  %v5161_v3 = vrot.slane %v12546_v60, 7 }
 0x25b   : > { %v4874_v54 = vsel %vm2567_vm4, %v4872_v61, %v4873_v44  ;;  %v5109_v33 = vmax.f32 %v4965_v35, %v5015_v48  ;;  %v4678_v7 = vmax.f32 %v4534_v63, %v4586_v41  ;;  %v4299_v50 = vrot.slane %v12547_v37, 1 }
 0x25c   : > { %v4443_v34 = vrot.slane %v12547_v37, 2  ;;  %v5018_v62 = vsel %vm2712_vm5, %v5016_v25, %v5017_v56  ;;  %v5162_v6 = vsel %vm2857_vm6, %v5160_v55, %v5161_v3  ;;  %v4587_v17 = vrot.slane %v12547_v37, 3 }
 0x25d   : > { %v4731_v36 = vrot.slane %v12547_v37, 4  ;;  %v5253_v38 = vmax.f32 %v5109_v33, %v5159_v40  ;;  %v4822_v28 = vmax.f32 %v4678_v7, %v4730_v42  ;;  %v4300_v49 = vsel %vm1987_vm0, %v4297_v20, %v4299_v50 }
 0x25e   : > { %v4444_v12 = vsel %vm2132_vm1, %v4441_v8, %v4443_v34  ;;  %v4391_v43 = vmax.f32 %v12546_v60, %v4300_v49  ;;  %v4588_v48 = vsel %vm2277_vm2, %v4585_v5, %v4587_v17  ;;  %v4875_v24 = vrot.slane %v12547_v37, 5 }
 0x25f   : > { %v4732_v59 = vsel %vm2422_vm3, %v4729_v39, %v4731_v36  ;;  %v5285_v30 = vmax.f32 %v5253_v38, %v12544_v15  ;;  %v4966_v46 = vmax.f32 %v4822_v28, %v4874_v54  ;;  %v5019_v27 = vrot.slane %v12547_v37, 6 }
 0x260   : > { %v5163_v40 = vrot.slane %v12547_v37, 7  ;;  %v4535_v19 = vmax.f32 %v4391_v43, %v4444_v12  ;;  %v4876_v20 = vsel %vm2567_vm4, %v4873_v44, %v4875_v24  ;;  %v4301_v8 = vrot.slane %v12548_v16, 1 }
 0x261   : > { %v4302_v4 = vrot.slane %v12549_v22, 1  ;;  %5317 = vst [vmem:[%s8117_s25 + $0x168] sm:$0xff] %v5285_v30  ;;  %v5110_v5 = vmax.f32 %v4966_v46, %v5018_v62  ;;  %v5020_v39 = vsel %vm2712_vm5, %v5017_v56, %v5019_v27  ;;  %v4445_v15 = vrot.slane %v12548_v16, 2 }
 0x262   : > { %v5164_v53 = vsel %vm2857_vm6, %v5161_v3, %v5163_v40  ;;  %v4679_v41 = vmax.f32 %v4535_v19, %v4588_v48  ;;  %v4446_v35 = vrot.slane %v12549_v22, 2  ;;  %v4589_v63 = vrot.slane %v12548_v16, 3 }
 0x263   : > { %v4303_v61 = vsel %vm1987_vm0, %v4301_v8, %v4302_v4  ;;  %v5254_v44 = vmax.f32 %v5110_v5, %v5162_v6  ;;  %v4590_v25 = vrot.slane %v12549_v22, 3  ;;  %v4733_v54 = vrot.slane %v12548_v16, 4 }
 0x264   : > { %v4392_v42 = vmax.f32 %v12548_v16, %v4303_v61  ;;  %v4823_v56 = vmax.f32 %v4679_v41, %v4732_v59  ;;  %v4447_v55 = vsel %vm2132_vm1, %v4445_v15, %v4446_v35  ;;  %v4734_v3 = vrot.slane %v12549_v22, 4  ;;  %v12550_v59 = vld [vmem:[#allocation43_spill] sm:$0xff] }
 0x265   : > { %v4877_v33 = vrot.slane %v12548_v16, 5  ;;  %v5286_v7 = vmax.f32 %v5254_v44, %v12546_v60  ;;  %v4591_v34 = vsel %vm2277_vm2, %v4589_v63, %v4590_v25  ;;  %v4878_v62 = vrot.slane %v12549_v22, 5 }
 0x266   : > { %v4536_v50 = vmax.f32 %v4392_v42, %v4447_v55  ;;  %v4967_v6 = vmax.f32 %v4823_v56, %v4876_v20  ;;  %v4735_v17 = vsel %vm2422_vm3, %v4733_v54, %v4734_v3  ;;  %v5021_v36 = vrot.slane %v12548_v16, 6 }
 0x267   : > { %v5022_v38 = vrot.slane %v12549_v22, 6  ;;  %5318 = vst [vmem:[%s8117_s25 + $0x188] sm:$0xff] %v5286_v7  ;;  %v4879_v49 = vsel %vm2567_vm4, %v4877_v33, %v4878_v62  ;;  %v5165_v12 = vrot.slane %v12548_v16, 7  ;;  %v5166_v60 = vrot.slane %v12549_v22, 7 }
 0x268   : > { %v4680_v28 = vmax.f32 %v4536_v50, %v4591_v34  ;;  %v5111_v43 = vmax.f32 %v4967_v6, %v5020_v39  ;;  %v4304_v24 = vrot.slane %v12550_v59, 1  ;;  %v4448_v30 = vrot.slane %v12550_v59, 2 }
 0x269   : > { %v5023_v48 = vsel %vm2712_vm5, %v5021_v36, %v5022_v38  ;;  %v5167_v27 = vsel %vm2857_vm6, %v5165_v12, %v5166_v60  ;;  %v4592_v40 = vrot.slane %v12550_v59, 3  ;;  %v4736_v19 = vrot.slane %v12550_v59, 4 }
 0x26a   : > { %v4824_v46 = vmax.f32 %v4680_v28, %v4735_v17  ;;  %v5255_v20 = vmax.f32 %v5111_v43, %v5164_v53  ;;  %v4305_v16 = vsel %vm1987_vm0, %v4302_v4, %v4304_v24  ;;  %v4449_v8 = vsel %vm2132_vm1, %v4446_v35, %v4448_v30  ;;  %v12551_v35 = vld [vmem:[#allocation74_spill] sm:$0xff] }
 0x26b   : > { %v4880_v5 = vrot.slane %v12550_v59, 5  ;;  %v4393_v15 = vmax.f32 %v12549_v22, %v4305_v16  ;;  %v4593_v41 = vsel %vm2277_vm2, %v4590_v25, %v4592_v40  ;;  %v4737_v61 = vsel %vm2422_vm3, %v4734_v3, %v4736_v19 }
 0x26c   : > { %v4968_v39 = vmax.f32 %v4824_v46, %v4879_v49  ;;  %v5287_v63 = vmax.f32 %v5255_v20, %v12547_v37  ;;  %v5024_v53 = vrot.slane %v12550_v59, 6  ;;  %v5168_v42 = vrot.slane %v12550_v59, 7 }
 0x26d   : > { %v4881_v44 = vsel %vm2567_vm4, %v4878_v62, %v4880_v5  ;;  %v4537_v54 = vmax.f32 %v4393_v15, %v4449_v8  ;;  %v4306_v56 = vrot.slane %v12551_v35, 1  ;;  %v4307_v55 = vrot.slane %v9176_v11, 1 }
 0x26e   : > { %v5112_v4 = vmax.f32 %v4968_v39, %v5023_v48  ;;  %5319 = vst [vmem:[%s8117_s25 + $0x1a8] sm:$0xff] %v5287_v63  ;;  %v5025_v33 = vsel %vm2712_vm5, %v5022_v38, %v5024_v53  ;;  %v5169_v25 = vsel %vm2857_vm6, %v5166_v60, %v5168_v42  ;;  %v4450_v3 = vrot.slane %v12551_v35, 2 }
 0x26f   : > { %v4451_v37 = vrot.slane %v9176_v11, 2  ;;  %v4681_v50 = vmax.f32 %v4537_v54, %v4593_v41  ;;  %v4308_v34 = vsel %vm1987_vm0, %v4306_v56, %v4307_v55  ;;  %v4594_v62 = vrot.slane %v12551_v35, 3 }
 0x270   : > { %v5256_v7 = vmax.f32 %v5112_v4, %v5167_v27  ;;  %v4394_v6 = vmax.f32 %v12551_v35, %v4308_v34  ;;  %v4595_v36 = vrot.slane %v9176_v11, 3  ;;  %v4738_v38 = vrot.slane %v12551_v35, 4 }
 0x271   : > { %v4452_v17 = vsel %vm2132_vm1, %v4450_v3, %v4451_v37  ;;  %v4825_v49 = vmax.f32 %v4681_v50, %v4737_v61  ;;  %v4739_v12 = vrot.slane %v9176_v11, 4  ;;  %v4882_v60 = vrot.slane %v12551_v35, 5 }
 0x272   : > { %v5288_v28 = vmax.f32 %v5256_v7, %v12549_v22  ;;  %v4538_v43 = vmax.f32 %v4394_v6, %v4452_v17  ;;  %v4596_v48 = vsel %vm2277_vm2, %v4594_v62, %v4595_v36  ;;  %v4883_v24 = vrot.slane %v9176_v11, 5 }
 0x273   : > { %v5026_v30 = vrot.slane %v12551_v35, 6  ;;  %v4969_v46 = vmax.f32 %v4825_v49, %v4881_v44  ;;  %v4740_v27 = vsel %vm2422_vm3, %v4738_v38, %v4739_v12  ;;  %v5027_v40 = vrot.slane %v9176_v11, 6 }
 0x274   : > { %5320 = vst [vmem:[%s8117_s25 + $0x1c8] sm:$0xff] %v5288_v28  ;;  %v5170_v22 = vrot.slane %v12551_v35, 7  ;;  %v4682_v19 = vmax.f32 %v4538_v43, %v4596_v48  ;;  %v4884_v20 = vsel %vm2567_vm4, %v4882_v60, %v4883_v24  ;;  %v5171_v16 = vrot.slane %v9176_v11, 7 }
 0x275   : > { %v4309_v8 = vrot.slane %v9182_v14, 1  ;;  %v5113_v5 = vmax.f32 %v4969_v46, %v5025_v33  ;;  %v5028_v39 = vsel %vm2712_vm5, %v5026_v30, %v5027_v40  ;;  %v4453_v15 = vrot.slane %v9182_v14, 2 }
 0x276   : > { %v4597_v41 = vrot.slane %v9182_v14, 3  ;;  %v4826_v61 = vmax.f32 %v4682_v19, %v4740_v27  ;;  %v5172_v63 = vsel %vm2857_vm6, %v5170_v22, %v5171_v16  ;;  %v4741_v53 = vrot.slane %v9182_v14, 4 }
 0x277   : > { %v4310_v44 = vsel %vm1987_vm0, %v4307_v55, %v4309_v8  ;;  %v5257_v42 = vmax.f32 %v5113_v5, %v5169_v25  ;;  %v4454_v54 = vsel %vm2132_vm1, %v4451_v37, %v4453_v15  ;;  %v4885_v3 = vrot.slane %v9182_v14, 5 }
 0x278   : > { %v4395_v4 = vmax.f32 %v9176_v11, %v4310_v44  ;;  %v4598_v35 = vsel %vm2277_vm2, %v4595_v36, %v4597_v41  ;;  %v4970_v56 = vmax.f32 %v4826_v61, %v4884_v20  ;;  %v4742_v33 = vsel %vm2422_vm3, %v4739_v12, %v4741_v53 }
 0x279   : > { %v5029_v7 = vrot.slane %v9182_v14, 6  ;;  %v5289_v50 = vmax.f32 %v5257_v42, %v12550_v59  ;;  %v5173_v34 = vrot.slane %v9182_v14, 7  ;;  %v4311_v25 = vrot.slane %v9238_v0, 1 }
 0x27a   : > { %v4539_v55 = vmax.f32 %v4395_v4, %v4454_v54  ;;  %v5114_v62 = vmax.f32 %v4970_v56, %v5028_v39  ;;  %v4886_v6 = vsel %vm2567_vm4, %v4883_v24, %v4885_v3  ;;  %v4312_v17 = vrot.slane %v9292_v45, 1 }
 0x27b   : > { %v5030_v37 = vsel %vm2712_vm5, %v5027_v40, %v5029_v7  ;;  %5321 = vst [vmem:[%s8117_s25 + $0x1e8] sm:$0xff] %v5289_v50  ;;  %v5174_v38 = vsel %vm2857_vm6, %v5171_v16, %v5173_v34  ;;  %v4455_v28 = vrot.slane %v9238_v0, 2  ;;  %v4456_v59 = vrot.slane %v9292_v45, 2 }
 0x27c   : > { %v4683_v36 = vmax.f32 %v4539_v55, %v4598_v35  ;;  %v5258_v49 = vmax.f32 %v5114_v62, %v5172_v63  ;;  %v4313_v12 = vsel %vm1987_vm0, %v4311_v25, %v4312_v17  ;;  %v4599_v60 = vrot.slane %v9238_v0, 3 }
 0x27d   : > { %v4600_v43 = vrot.slane %v9292_v45, 3  ;;  %v4396_v24 = vmax.f32 %v9238_v0, %v4313_v12  ;;  %v4457_v30 = vsel %vm2132_vm1, %v4455_v28, %v4456_v59  ;;  %v4743_v46 = vrot.slane %v9238_v0, 4 }
 0x27e   : > { %v4827_v48 = vmax.f32 %v4683_v36, %v4742_v33  ;;  %v5290_v27 = vmax.f32 %v5258_v49, %v9176_v11  ;;  %v4744_v22 = vrot.slane %v9292_v45, 4  ;;  %v4887_v19 = vrot.slane %v9238_v0, 5 }
 0x27f   : > { %v4601_v40 = vsel %vm2277_vm2, %v4599_v60, %v4600_v43  ;;  %v4540_v16 = vmax.f32 %v4396_v24, %v4457_v30  ;;  %v4888_v8 = vrot.slane %v9292_v45, 5  ;;  %v5031_v5 = vrot.slane %v9238_v0, 6 }
 0x280   : > { %v4971_v20 = vmax.f32 %v4827_v48, %v4886_v6  ;;  %5322 = vst [vmem:[%s8117_s25 + $0x208] sm:$0xff] %v5290_v27  ;;  %v4745_v39 = vsel %vm2422_vm3, %v4743_v46, %v4744_v22  ;;  %v5032_v15 = vrot.slane %v9292_v45, 6  ;;  %v5175_v41 = vrot.slane %v9238_v0, 7 }
 0x281   : > { %v5176_v11 = vrot.slane %v9292_v45, 7  ;;  %v4684_v63 = vmax.f32 %v4540_v16, %v4601_v40  ;;  %v4889_v44 = vsel %vm2567_vm4, %v4887_v19, %v4888_v8  ;;  %v4314_v53 = vrot.slane %v9371_v52, 1 }
 0x282   : > { %v5115_v61 = vmax.f32 %v4971_v20, %v5030_v37  ;;  %v5033_v42 = vsel %vm2712_vm5, %v5031_v5, %v5032_v15  ;;  %v4458_v54 = vrot.slane %v9371_v52, 2  ;;  %v4602_v35 = vrot.slane %v9371_v52, 3 }
 0x283   : > { %v5177_v4 = vsel %vm2857_vm6, %v5175_v41, %v5176_v11  ;;  %v4828_v33 = vmax.f32 %v4684_v63, %v4745_v39  ;;  %v4315_v0 = vsel %vm1987_vm0, %v4312_v17, %v4314_v53  ;;  %v4746_v3 = vrot.slane %v9371_v52, 4 }
 0x284   : > { %v5259_v56 = vmax.f32 %v5115_v61, %v5174_v38  ;;  %v4397_v7 = vmax.f32 %v9292_v45, %v4315_v0  ;;  %v4459_v50 = vsel %vm2132_vm1, %v4456_v59, %v4458_v54  ;;  %v4603_v55 = vsel %vm2277_vm2, %v4600_v43, %v4602_v35 }
 0x285   : > { %v4890_v34 = vrot.slane %v9371_v52, 5  ;;  %v4972_v62 = vmax.f32 %v4828_v33, %v4889_v44  ;;  %v4747_v6 = vsel %vm2422_vm3, %v4744_v22, %v4746_v3  ;;  %v5034_v37 = vrot.slane %v9371_v52, 6 }
 0x286   : > { %v5291_v25 = vmax.f32 %v5259_v56, %v9182_v14  ;;  %v4541_v36 = vmax.f32 %v4397_v7, %v4459_v50  ;;  %v5178_v38 = vrot.slane %v9371_v52, 7  ;;  %v4316_v28 = vrot.slane %v9327_v31, 1 }
 0x287   : > { %v4891_v17 = vsel %vm2567_vm4, %v4888_v8, %v4890_v34  ;;  %v5116_v59 = vmax.f32 %v4972_v62, %v5033_v42  ;;  %v5035_v49 = vsel %vm2712_vm5, %v5032_v15, %v5034_v37  ;;  %v4317_v12 = vrot.slane %v9410_v10, 1 }
 0x288   : > { %5323 = vst [vmem:[%s8117_s25 + $0x228] sm:$0xff] %v5291_v25  ;;  %v4460_v14 = vrot.slane %v9327_v31, 2  ;;  %v4685_v60 = vmax.f32 %v4541_v36, %v4603_v55  ;;  %v5179_v43 = vsel %vm2857_vm6, %v5176_v11, %v5178_v38  ;;  %v4461_v48 = vrot.slane %v9410_v10, 2 }
 0x289   : > { %v4604_v24 = vrot.slane %v9327_v31, 3  ;;  %v5260_v30 = vmax.f32 %v5116_v59, %v5177_v4  ;;  %v4318_v46 = vsel %vm1987_vm0, %v4316_v28, %v4317_v12  ;;  %v4605_v27 = vrot.slane %v9410_v10, 3 }
 0x28a   : > { %v4748_v40 = vrot.slane %v9327_v31, 4  ;;  %v4829_v22 = vmax.f32 %v4685_v60, %v4747_v6  ;;  %v4398_v19 = vmax.f32 %v9327_v31, %v4318_v46  ;;  %v4462_v20 = vsel %vm2132_vm1, %v4460_v14, %v4461_v48 }
 0x28b   : > { %v4749_v16 = vrot.slane %v9410_v10, 4  ;;  %v5292_v8 = vmax.f32 %v5260_v30, %v9292_v45  ;;  %v4606_v5 = vsel %vm2277_vm2, %v4604_v24, %v4605_v27  ;;  %v4892_v39 = vrot.slane %v9327_v31, 5 }
 0x28c   : > { %v4893_v15 = vrot.slane %v9410_v10, 5  ;;  %v4973_v41 = vmax.f32 %v4829_v22, %v4891_v17  ;;  %v4542_v11 = vmax.f32 %v4398_v19, %v4462_v20  ;;  %v5036_v63 = vrot.slane %v9327_v31, 6 }
 0x28d   : > { %v4750_v61 = vsel %vm2422_vm3, %v4748_v40, %v4749_v16  ;;  %5324 = vst [vmem:[%s8117_s25 + $0x248] sm:$0xff] %v5292_v8  ;;  %v5037_v53 = vrot.slane %v9410_v10, 6  ;;  %v5180_v42 = vrot.slane %v9327_v31, 7  ;;  %v5181_v45 = vrot.slane %v9410_v10, 7 }
 0x28e   : > { %v4894_v44 = vsel %vm2567_vm4, %v4892_v39, %v4893_v15  ;;  %v5117_v4 = vmax.f32 %v4973_v41, %v5035_v49  ;;  %v4686_v54 = vmax.f32 %v4542_v11, %v4606_v5  ;;  %v4319_v35 = vrot.slane %v9430_v47, 1 }
 0x28f   : > { %v4463_v56 = vrot.slane %v9430_v47, 2  ;;  %v5038_v33 = vsel %vm2712_vm5, %v5036_v63, %v5037_v53  ;;  %v5182_v0 = vsel %vm2857_vm6, %v5180_v42, %v5181_v45  ;;  %v4607_v3 = vrot.slane %v9430_v47, 3 }
 0x290   : > { %v4751_v7 = vrot.slane %v9430_v47, 4  ;;  %v5261_v50 = vmax.f32 %v5117_v4, %v5179_v43  ;;  %v4830_v55 = vmax.f32 %v4686_v54, %v4750_v61  ;;  %v4320_v31 = vsel %vm1987_vm0, %v4317_v12, %v4319_v35 }
 0x291   : > { %v4464_v34 = vsel %vm2132_vm1, %v4461_v48, %v4463_v56  ;;  %v4399_v25 = vmax.f32 %v9410_v10, %v4320_v31  ;;  %v4608_v62 = vsel %vm2277_vm2, %v4605_v27, %v4607_v3  ;;  %v4895_v37 = vrot.slane %v9430_v47, 5 }
 0x292   : > { %v4752_v6 = vsel %vm2422_vm3, %v4749_v16, %v4751_v7  ;;  %v5293_v36 = vmax.f32 %v5261_v50, %v9371_v52  ;;  %v4974_v17 = vmax.f32 %v4830_v55, %v4894_v44  ;;  %v5039_v38 = vrot.slane %v9430_v47, 6 }
 0x293   : > { %v5183_v28 = vrot.slane %v9430_v47, 7  ;;  %v4543_v59 = vmax.f32 %v4399_v25, %v4464_v34  ;;  %v4896_v49 = vsel %vm2567_vm4, %v4893_v15, %v4895_v37  ;;  %v4321_v12 = vrot.slane %v9438_v32, 1 }
 0x294   : > { %v4322_v14 = vrot.slane %v9484_v23, 1  ;;  %5325 = vst [vmem:[%s8117_s25 + $0x268] sm:$0xff] %v5293_v36  ;;  %v5118_v60 = vmax.f32 %v4974_v17, %v5038_v33  ;;  %v5040_v43 = vsel %vm2712_vm5, %v5037_v53, %v5039_v38  ;;  %v4465_v52 = vrot.slane %v9438_v32, 2 }
 0x295   : > { %v5184_v48 = vsel %vm2857_vm6, %v5181_v45, %v5183_v28  ;;  %v4687_v24 = vmax.f32 %v4543_v59, %v4608_v62  ;;  %v4466_v46 = vrot.slane %v9484_v23, 2  ;;  %v4609_v27 = vrot.slane %v9438_v32, 3 }
 0x296   : > { %v4323_v30 = vsel %vm1987_vm0, %v4321_v12, %v4322_v14  ;;  %v5262_v40 = vmax.f32 %v5118_v60, %v5182_v0  ;;  %v4610_v19 = vrot.slane %v9484_v23, 3  ;;  %v4753_v20 = vrot.slane %v9438_v32, 4 }
 0x297   : > { %v4400_v22 = vmax.f32 %v9438_v32, %v4323_v30  ;;  %v4831_v16 = vmax.f32 %v4687_v24, %v4752_v6  ;;  %v4467_v8 = vsel %vm2132_vm1, %v4465_v52, %v4466_v46  ;;  %v4754_v5 = vrot.slane %v9484_v23, 4 }
 0x298   : > { %v4897_v39 = vrot.slane %v9438_v32, 5  ;;  %v5294_v15 = vmax.f32 %v5262_v40, %v9410_v10  ;;  %v4611_v11 = vsel %vm2277_vm2, %v4609_v27, %v4610_v19  ;;  %v4898_v61 = vrot.slane %v9484_v23, 5 }
 0x299   : > { %v4544_v41 = vmax.f32 %v4400_v22, %v4467_v8  ;;  %v4975_v63 = vmax.f32 %v4831_v16, %v4896_v49  ;;  %v4755_v44 = vsel %vm2422_vm3, %v4753_v20, %v4754_v5  ;;  %v5041_v53 = vrot.slane %v9438_v32, 6 }
 0x29a   : > { %v5042_v42 = vrot.slane %v9484_v23, 6  ;;  %5326 = vst [vmem:[%s8117_s25 + $0x288] sm:$0xff] %v5294_v15  ;;  %v4899_v4 = vsel %vm2567_vm4, %v4897_v39, %v4898_v61  ;;  %v5185_v54 = vrot.slane %v9438_v32, 7  ;;  %v5186_v10 = vrot.slane %v9484_v23, 7 }
 0x29b   : > { %v4688_v45 = vmax.f32 %v4544_v41, %v4611_v11  ;;  %v5119_v35 = vmax.f32 %v4975_v63, %v5040_v43  ;;  %v4324_v33 = vrot.slane %v9619_v26, 1  ;;  %v4468_v0 = vrot.slane %v9619_v26, 2 }
 0x29c   : > { %v5043_v56 = vsel %vm2712_vm5, %v5041_v53, %v5042_v42  ;;  %v5187_v7 = vsel %vm2857_vm6, %v5185_v54, %v5186_v10  ;;  %v4612_v50 = vrot.slane %v9619_v26, 3  ;;  %v4756_v55 = vrot.slane %v9619_v26, 4 }
 0x29d   : > { %v4832_v3 = vmax.f32 %v4688_v45, %v4755_v44  ;;  %v5263_v31 = vmax.f32 %v5119_v35, %v5184_v48  ;;  %v4325_v32 = vsel %vm1987_vm0, %v4322_v14, %v4324_v33  ;;  %v4469_v34 = vsel %vm2132_vm1, %v4466_v46, %v4468_v0 }
 0x29e   : > { %v4900_v25 = vrot.slane %v9619_v26, 5  ;;  %v4401_v6 = vmax.f32 %v9484_v23, %v4325_v32  ;;  %v4613_v37 = vsel %vm2277_vm2, %v4610_v19, %v4612_v50  ;;  %v4757_v36 = vsel %vm2422_vm3, %v4754_v5, %v4756_v55 }
 0x29f   : > { %v4976_v62 = vmax.f32 %v4832_v3, %v4899_v4  ;;  %v5295_v17 = vmax.f32 %v5263_v31, %v9430_v47  ;;  %v5044_v28 = vrot.slane %v9619_v26, 6  ;;  %v5188_v59 = vrot.slane %v9619_v26, 7 }
 0x2a0   : > { %v4901_v38 = vsel %vm2567_vm4, %v4898_v61, %v4900_v25  ;;  %v4545_v12 = vmax.f32 %v4401_v6, %v4469_v34  ;;  %v4326_v14 = vrot.slane %v9464_v29, 1  ;;  %v4327_v60 = vrot.slane %v9550_v57, 1 }
 0x2a1   : > { %v5120_v49 = vmax.f32 %v4976_v62, %v5043_v56  ;;  %5327 = vst [vmem:[%s8117_s25 + $0x2a8] sm:$0xff] %v5295_v17  ;;  %v5045_v43 = vsel %vm2712_vm5, %v5042_v42, %v5044_v28  ;;  %v5189_v48 = vsel %vm2857_vm6, %v5186_v10, %v5188_v59  ;;  %v4470_v52 = vrot.slane %v9464_v29, 2 }
 0x2a2   : > { %v4471_v47 = vrot.slane %v9550_v57, 2  ;;  %v4689_v30 = vmax.f32 %v4545_v12, %v4613_v37  ;;  %v4328_v46 = vsel %vm1987_vm0, %v4326_v14, %v4327_v60  ;;  %v4614_v27 = vrot.slane %v9464_v29, 3 }
 0x2a3   : > { %v5264_v24 = vmax.f32 %v5120_v49, %v5187_v7  ;;  %v4402_v40 = vmax.f32 %v9464_v29, %v4328_v46  ;;  %v4615_v19 = vrot.slane %v9550_v57, 3  ;;  %v4758_v20 = vrot.slane %v9464_v29, 4 }
 0x2a4   : > { %v4472_v22 = vsel %vm2132_vm1, %v4470_v52, %v4471_v47  ;;  %v4833_v8 = vmax.f32 %v4689_v30, %v4757_v36  ;;  %v4759_v5 = vrot.slane %v9550_v57, 4  ;;  %v4902_v39 = vrot.slane %v9464_v29, 5 }
 0x2a5   : > { %v5296_v16 = vmax.f32 %v5264_v24, %v9484_v23  ;;  %v4546_v15 = vmax.f32 %v4402_v40, %v4472_v22  ;;  %v4616_v41 = vsel %vm2277_vm2, %v4614_v27, %v4615_v19  ;;  %v4903_v11 = vrot.slane %v9550_v57, 5 }
 0x2a6   : > { %v5046_v61 = vrot.slane %v9464_v29, 6  ;;  %v4977_v63 = vmax.f32 %v4833_v8, %v4901_v38  ;;  %v4760_v44 = vsel %vm2422_vm3, %v4758_v20, %v4759_v5  ;;  %v5047_v53 = vrot.slane %v9550_v57, 6 }
 0x2a7   : > { %5328 = vst [vmem:[%s8117_s25 + $0x2c8] sm:$0xff] %v5296_v16  ;;  %v5190_v23 = vrot.slane %v9464_v29, 7  ;;  %v4690_v42 = vmax.f32 %v4546_v15, %v4616_v41  ;;  %v4904_v45 = vsel %vm2567_vm4, %v4902_v39, %v4903_v11  ;;  %v5191_v4 = vrot.slane %v9550_v57, 7 }
 0x2a8   : > { %v4329_v54 = vrot.slane %v9621_v58, 1  ;;  %v5121_v10 = vmax.f32 %v4977_v63, %v5045_v43  ;;  %v5048_v35 = vsel %vm2712_vm5, %v5046_v61, %v5047_v53  ;;  %v4473_v56 = vrot.slane %v9621_v58, 2 }
 0x2a9   : > { %v4617_v33 = vrot.slane %v9621_v58, 3  ;;  %v4834_v0 = vmax.f32 %v4690_v42, %v4760_v44  ;;  %v5192_v3 = vsel %vm2857_vm6, %v5190_v23, %v5191_v4  ;;  %v4761_v29 = vrot.slane %v9621_v58, 4 }
 0x2aa   : > { %v4330_v7 = vsel %vm1987_vm0, %v4327_v60, %v4329_v54  ;;  %v5265_v50 = vmax.f32 %v5121_v10, %v5189_v48  ;;  %v4474_v31 = vsel %vm2132_vm1, %v4471_v47, %v4473_v56  ;;  %v4905_v62 = vrot.slane %v9621_v58, 5 }
 0x2ab   : > { %v4403_v55 = vmax.f32 %v9550_v57, %v4330_v7  ;;  %v4618_v32 = vsel %vm2277_vm2, %v4615_v19, %v4617_v33  ;;  %v4978_v34 = vmax.f32 %v4834_v0, %v4904_v45  ;;  %v4762_v25 = vsel %vm2422_vm3, %v4759_v5, %v4761_v29 }
 0x2ac   : > { %v5049_v6 = vrot.slane %v9621_v58, 6  ;;  %v5297_v37 = vmax.f32 %v5265_v50, %v9619_v26  ;;  %v5193_v17 = vrot.slane %v9621_v58, 7  ;;  %v4331_v38 = vrot.slane %v9553_v51, 1 }
 0x2ad   : > { %v4547_v36 = vmax.f32 %v4403_v55, %v4474_v31  ;;  %v5122_v28 = vmax.f32 %v4978_v34, %v5048_v35  ;;  %v4906_v59 = vsel %vm2567_vm4, %v4903_v11, %v4905_v62  ;;  %v4332_v12 = vrot.slane %v9623_v9, 1 }
 0x2ae   : > { %v5050_v49 = vsel %vm2712_vm5, %v5047_v53, %v5049_v6  ;;  %5329 = vst [vmem:[%s8117_s25 + $0x2e8] sm:$0xff] %v5297_v37  ;;  %v5194_v60 = vsel %vm2857_vm6, %v5191_v4, %v5193_v17  ;;  %v4475_v43 = vrot.slane %v9553_v51, 2  ;;  %v4476_v26 = vrot.slane %v9623_v9, 2 }
 0x2af   : > { %v4691_v14 = vmax.f32 %v4547_v36, %v4618_v32  ;;  %v5266_v48 = vmax.f32 %v5122_v28, %v5192_v3  ;;  %v4333_v52 = vsel %vm1987_vm0, %v4331_v38, %v4332_v12  ;;  %v4619_v47 = vrot.slane %v9553_v51, 3 }
 0x2b0   : > { %v4620_v24 = vrot.slane %v9623_v9, 3  ;;  %v4404_v46 = vmax.f32 %v9553_v51, %v4333_v52  ;;  %v4477_v27 = vsel %vm2132_vm1, %v4475_v43, %v4476_v26  ;;  %v4763_v40 = vrot.slane %v9553_v51, 4 }
 0x2b1   : > { %v4835_v30 = vmax.f32 %v4691_v14, %v4762_v25  ;;  %v5298_v22 = vmax.f32 %v5266_v48, %v9550_v57  ;;  %v4764_v20 = vrot.slane %v9623_v9, 4  ;;  %v4907_v16 = vrot.slane %v9553_v51, 5 }
 0x2b2   : > { %v4621_v19 = vsel %vm2277_vm2, %v4619_v47, %v4620_v24  ;;  %v4548_v5 = vmax.f32 %v4404_v46, %v4477_v27  ;;  %v4908_v39 = vrot.slane %v9623_v9, 5  ;;  %v5051_v15 = vrot.slane %v9553_v51, 6 }
 0x2b3   : > { %v4979_v8 = vmax.f32 %v4835_v30, %v4906_v59  ;;  %5330 = vst [vmem:[%s8117_s25 + $0x308] sm:$0xff] %v5298_v22  ;;  %v4765_v41 = vsel %vm2422_vm3, %v4763_v40, %v4764_v20  ;;  %v5052_v11 = vrot.slane %v9623_v9, 6  ;;  %v5195_v61 = vrot.slane %v9553_v51, 7 }
 0x2b4   : > { %v5196_v57 = vrot.slane %v9623_v9, 7  ;;  %v4692_v44 = vmax.f32 %v4548_v5, %v4621_v19  ;;  %v4909_v53 = vsel %vm2567_vm4, %v4907_v16, %v4908_v39  ;;  %v4334_v23 = vrot.slane %v9633_v21, 1 }
 0x2b5   : > { %v5123_v63 = vmax.f32 %v4979_v8, %v5050_v49  ;;  %v5053_v42 = vsel %vm2712_vm5, %v5051_v15, %v5052_v11  ;;  %v4478_v4 = vrot.slane %v9633_v21, 2  ;;  %v4622_v54 = vrot.slane %v9633_v21, 3 }
 0x2b6   : > { %v5197_v45 = vsel %vm2857_vm6, %v5195_v61, %v5196_v57  ;;  %v4836_v35 = vmax.f32 %v4692_v44, %v4765_v41  ;;  %v4335_v51 = vsel %vm1987_vm0, %v4332_v12, %v4334_v23  ;;  %v4766_v56 = vrot.slane %v9633_v21, 4 }
 0x2b7   : > { %v5267_v10 = vmax.f32 %v5123_v63, %v5194_v60  ;;  %v4405_v33 = vmax.f32 %v9623_v9, %v4335_v51  ;;  %v4479_v0 = vsel %vm2132_vm1, %v4476_v26, %v4478_v4  ;;  %v4623_v3 = vsel %vm2277_vm2, %v4620_v24, %v4622_v54 }
 0x2b8   : > { %v4910_v7 = vrot.slane %v9633_v21, 5  ;;  %v4980_v50 = vmax.f32 %v4836_v35, %v4909_v53  ;;  %v4767_v55 = vsel %vm2422_vm3, %v4764_v20, %v4766_v56  ;;  %v5054_v31 = vrot.slane %v9633_v21, 6 }
 0x2b9   : > { %v5299_v29 = vmax.f32 %v5267_v10, %v9621_v58  ;;  %v4549_v32 = vmax.f32 %v4405_v33, %v4479_v0  ;;  %v5198_v25 = vrot.slane %v9633_v21, 7  ;;  %v4336_v62 = vrot.slane %v9625_v2, 1 }
 0x2ba   : > { %v4911_v34 = vsel %vm2567_vm4, %v4908_v39, %v4910_v7  ;;  %v5124_v6 = vmax.f32 %v4980_v50, %v5053_v42  ;;  %v5055_v37 = vsel %vm2712_vm5, %v5052_v11, %v5054_v31  ;;  %v4337_v36 = vrot.slane %v9635_v13, 1 }
 0x2bb   : > { %5331 = vst [vmem:[%s8117_s25 + $0x328] sm:$0xff] %v5299_v29  ;;  %v4480_v58 = vrot.slane %v9625_v2, 2  ;;  %v4693_v17 = vmax.f32 %v4549_v32, %v4623_v3  ;;  %v5199_v38 = vsel %vm2857_vm6, %v5196_v57, %v5198_v25  ;;  %v4481_v28 = vrot.slane %v9635_v13, 2  ;;  %v12552_v3 = vld [vmem:[#allocation98_spill] sm:$0xff]  ;;  %v12553_v29 = vld [vmem:[#allocation99_spill] sm:$0xff] }
 0x2bc   : > { %v4624_v59 = vrot.slane %v9625_v2, 3  ;;  %v5268_v49 = vmax.f32 %v5124_v6, %v5197_v45  ;;  %v4338_v12 = vsel %vm1987_vm0, %v4336_v62, %v4337_v36  ;;  %v4625_v14 = vrot.slane %v9635_v13, 3 }
 0x2bd   : > { %v4768_v60 = vrot.slane %v9625_v2, 4  ;;  %v4837_v43 = vmax.f32 %v4693_v17, %v4767_v55  ;;  %v4406_v26 = vmax.f32 %v9625_v2, %v4338_v12  ;;  %v4482_v48 = vsel %vm2132_vm1, %v4480_v58, %v4481_v28 }
 0x2be   : > { %v4769_v52 = vrot.slane %v9635_v13, 4  ;;  %v5300_v47 = vmax.f32 %v5268_v49, %v9623_v9  ;;  %v4626_v24 = vsel %vm2277_vm2, %v4624_v59, %v4625_v14  ;;  %v4912_v30 = vrot.slane %v9625_v2, 5 }
 0x2bf   : > { %v4913_v46 = vrot.slane %v9635_v13, 5  ;;  %v4981_v27 = vmax.f32 %v4837_v43, %v4911_v34  ;;  %v4550_v40 = vmax.f32 %v4406_v26, %v4482_v48  ;;  %v5056_v19 = vrot.slane %v9625_v2, 6 }
 0x2c0   : > { %v4770_v22 = vsel %vm2422_vm3, %v4768_v60, %v4769_v52  ;;  %5332 = vst [vmem:[%s8117_s25 + $0x348] sm:$0xff] %v5300_v47  ;;  %v5057_v16 = vrot.slane %v9635_v13, 6  ;;  %v5200_v8 = vrot.slane %v9625_v2, 7  ;;  %v5201_v9 = vrot.slane %v9635_v13, 7 }
 0x2c1   : > { %v4914_v20 = vsel %vm2567_vm4, %v4912_v30, %v4913_v46  ;;  %v5125_v5 = vmax.f32 %v4981_v27, %v5055_v37  ;;  %v4694_v39 = vmax.f32 %v4550_v40, %v4626_v24  ;;  %v4339_v15 = vrot.slane %v10070_v18, 1 }
 0x2c2   : > { %v4483_v41 = vrot.slane %v10070_v18, 2  ;;  %v5058_v11 = vsel %vm2712_vm5, %v5056_v19, %v5057_v16  ;;  %v5202_v61 = vsel %vm2857_vm6, %v5200_v8, %v5201_v9  ;;  %v4627_v57 = vrot.slane %v10070_v18, 3 }
 0x2c3   : > { %v4771_v63 = vrot.slane %v10070_v18, 4  ;;  %v5269_v44 = vmax.f32 %v5125_v5, %v5199_v38  ;;  %v4838_v53 = vmax.f32 %v4694_v39, %v4770_v22  ;;  %v4340_v2 = vsel %vm1987_vm0, %v4337_v36, %v4339_v15 }
 0x2c4   : > { %v4484_v23 = vsel %vm2132_vm1, %v4481_v28, %v4483_v41  ;;  %v4407_v42 = vmax.f32 %v9635_v13, %v4340_v2  ;;  %v4628_v45 = vsel %vm2277_vm2, %v4625_v14, %v4627_v57  ;;  %v4915_v54 = vrot.slane %v10070_v18, 5 }
 0x2c5   : > { %v4772_v4 = vsel %vm2422_vm3, %v4769_v52, %v4771_v63  ;;  %v5301_v10 = vmax.f32 %v5269_v44, %v9633_v21  ;;  %v4982_v35 = vmax.f32 %v4838_v53, %v4914_v20  ;;  %v5059_v51 = vrot.slane %v10070_v18, 6 }
 0x2c6   : > { %v5203_v56 = vrot.slane %v10070_v18, 7  ;;  %v4551_v33 = vmax.f32 %v4407_v42, %v4484_v23  ;;  %v4916_v0 = vsel %vm2567_vm4, %v4913_v46, %v4915_v54  ;;  %v4341_v7 = vrot.slane %v12552_v3, 1 }
 0x2c7   : > { %v4342_v50 = vrot.slane %v12553_v29, 1  ;;  %5333 = vst [vmem:[%s8117_s25 + $0x368] sm:$0xff] %v5301_v10  ;;  %v5126_v55 = vmax.f32 %v4982_v35, %v5058_v11  ;;  %v5060_v31 = vsel %vm2712_vm5, %v5057_v16, %v5059_v51  ;;  %v4485_v21 = vrot.slane %v12552_v3, 2  ;;  %v12555_v10 = vld [vmem:[#allocation58_spill] sm:$0xff] }
 0x2c8   : > { %v5204_v32 = vsel %vm2857_vm6, %v5201_v9, %v5203_v56  ;;  %v4695_v34 = vmax.f32 %v4551_v33, %v4628_v45  ;;  %v4486_v62 = vrot.slane %v12553_v29, 2  ;;  %v4629_v6 = vrot.slane %v12552_v3, 3  ;;  %v12556_v33 = vld [vmem:[#allocation59_spill] sm:$0xff] }
 0x2c9   : > { %v4343_v25 = vsel %vm1987_vm0, %v4341_v7, %v4342_v50  ;;  %v5270_v37 = vmax.f32 %v5126_v55, %v5202_v61  ;;  %v4630_v58 = vrot.slane %v12553_v29, 3  ;;  %v4773_v17 = vrot.slane %v12552_v3, 4 }
 0x2ca   : > { %v4408_v36 = vmax.f32 %v12552_v3, %v4343_v25  ;;  %v4839_v38 = vmax.f32 %v4695_v34, %v4772_v4  ;;  %v4487_v28 = vsel %vm2132_vm1, %v4485_v21, %v4486_v62  ;;  %v4774_v59 = vrot.slane %v12553_v29, 4  ;;  %v12554_v4 = vld [vmem:[#allocation55_spill] sm:$0xff] }
 0x2cb   : > { %v4917_v49 = vrot.slane %v12552_v3, 5  ;;  %v5302_v12 = vmax.f32 %v5270_v37, %v9635_v13  ;;  %v4631_v60 = vsel %vm2277_vm2, %v4629_v6, %v4630_v58  ;;  %v4918_v43 = vrot.slane %v12553_v29, 5 }
 0x2cc   : > { %v4552_v14 = vmax.f32 %v4408_v36, %v4487_v28  ;;  %v4983_v26 = vmax.f32 %v4839_v38, %v4916_v0  ;;  %v4775_v48 = vsel %vm2422_vm3, %v4773_v17, %v4774_v59  ;;  %v5061_v52 = vrot.slane %v12552_v3, 6 }
 0x2cd   : > { %v5062_v47 = vrot.slane %v12553_v29, 6  ;;  %5334 = vst [vmem:[%s8117_s25 + $0x388] sm:$0xff] %v5302_v12  ;;  %v4919_v30 = vsel %vm2567_vm4, %v4917_v49, %v4918_v43  ;;  %v5205_v46 = vrot.slane %v12552_v3, 7  ;;  %v5206_v13 = vrot.slane %v12553_v29, 7 }
 0x2ce   : > { %v4696_v24 = vmax.f32 %v4552_v14, %v4631_v60  ;;  %v5127_v27 = vmax.f32 %v4983_v26, %v5060_v31  ;;  %v4344_v22 = vrot.slane %v10075_v1, 1  ;;  %v4488_v19 = vrot.slane %v10075_v1, 2 }
 0x2cf   : > { %v5063_v40 = vsel %vm2712_vm5, %v5061_v52, %v5062_v47  ;;  %v5207_v16 = vsel %vm2857_vm6, %v5205_v46, %v5206_v13  ;;  %v4632_v8 = vrot.slane %v10075_v1, 3  ;;  %v4776_v9 = vrot.slane %v10075_v1, 4 }
 0x2d0   : > { %v4840_v20 = vmax.f32 %v4696_v24, %v4775_v48  ;;  %v5271_v5 = vmax.f32 %v5127_v27, %v5204_v32  ;;  %v4345_v39 = vsel %vm1987_vm0, %v4342_v50, %v4344_v22  ;;  %v4489_v15 = vsel %vm2132_vm1, %v4486_v62, %v4488_v19  ;;  %v912_v27 = vld [vmem:[#allocation2 + $0xb8] sm:$0xf] }
 0x2d1   : > { %v4920_v41 = vrot.slane %v10075_v1, 5  ;;  %v4409_v61 = vmax.f32 %v12553_v29, %v4345_v39  ;;  %v4633_v57 = vsel %vm2277_vm2, %v4630_v58, %v4632_v8  ;;  %v4777_v63 = vsel %vm2422_vm3, %v4774_v59, %v4776_v9 }
 0x2d2   : > { %v4984_v11 = vmax.f32 %v4840_v20, %v4919_v30  ;;  %v5303_v44 = vmax.f32 %v5271_v5, %v10070_v18  ;;  %v5064_v2 = vrot.slane %v10075_v1, 6  ;;  %v5208_v23 = vrot.slane %v10075_v1, 7 }
 0x2d3   : > { %v4921_v53 = vsel %vm2567_vm4, %v4918_v43, %v4920_v41  ;;  %v4553_v45 = vmax.f32 %v4409_v61, %v4489_v15  ;;  %v1988_v54 = vrot.slane %v12554_v4, 1  ;;  %v1989_v35 = vrot.slane %v12555_v10, 1  ;;  %v1040_v61 = vld [vmem:[#allocation2 + $0xd8] sm:$0xf] }
 0x2d4   : > { %v5128_v42 = vmax.f32 %v4984_v11, %v5063_v40  ;;  %5335 = vst [vmem:[%s8117_s25 + $0x3a8] sm:$0xff] %v5303_v44  ;;  %v5065_v51 = vsel %vm2712_vm5, %v5062_v47, %v5064_v2  ;;  %v5209_v56 = vsel %vm2857_vm6, %v5206_v13, %v5208_v23  ;;  %v1991_v0 = vrot.slane %v12556_v33, 1 }
 0x2d5   : > { %v2133_v18 = vrot.slane %v12554_v4, 2  ;;  %v4697_v7 = vmax.f32 %v4553_v45, %v4633_v57  ;;  %v1990_v50 = vsel %vm1987_vm0, %v1988_v54, %v1989_v35  ;;  %v2134_v55 = vrot.slane %v12555_v10, 2  ;;  %v1169_v45 = vld [vmem:[#allocation2 + $0xf8] sm:$0xf] }
 0x2d6   : > { %v5272_v3 = vmax.f32 %v5128_v42, %v5207_v16  ;;  %v10756_v31 = vsel %vm1987_vm0, %v1989_v35, %v1991_v0  ;;  %v2100_v32 = vmax.f32 %v12554_v4, %v1990_v50  ;;  %v2136_v21 = vrot.slane %v12556_v33, 2 }
 0x2d7   : > { %v2278_v34 = vrot.slane %v12554_v4, 3  ;;  %v4841_v62 = vmax.f32 %v4697_v7, %v4777_v63  ;;  %v2101_v6 = vmax.f32 %v12555_v10, %v10756_v31  ;;  %v2135_v37 = vsel %vm2132_vm1, %v2133_v18, %v2134_v55 }
 0x2d8   : > { %v5304_v25 = vmax.f32 %v5272_v3, %v12553_v29  ;;  %v10768_v36 = vsel %vm2132_vm1, %v2134_v55, %v2136_v21  ;;  %v2245_v58 = vmax.f32 %v2100_v32, %v2135_v37  ;;  %v2279_v17 = vrot.slane %v12555_v10, 3  ;;  %v12560_v3 = vld [vmem:[#allocation66_spill] sm:$0xff]  ;;  %v1298_v32 = vld [vmem:[#allocation2 + $0x118] sm:$0xf] }
 0x2d9   : > { %v2281_v38 = vrot.slane %v12556_v33, 3  ;;  %v4985_v28 = vmax.f32 %v4841_v62, %v4921_v53  ;;  %v2246_v29 = vmax.f32 %v2101_v6, %v10768_v36  ;;  %v2423_v59 = vrot.slane %v12554_v4, 4  ;;  %v12557_v53 = vld [vmem:[#allocation9_spill] sm:$0xff] }
 0x2da   : > { %5336 = vst [vmem:[%s8117_s25 + $0x3c8] sm:$0xff] %v5304_v25  ;;  %v2424_v49 = vrot.slane %v12555_v10, 4  ;;  %v2280_v12 = vsel %vm2277_vm2, %v2278_v34, %v2279_v17  ;;  %v2426_v60 = vrot.slane %v12556_v33, 4  ;;  %v2568_v43 = vrot.slane %v12554_v4, 5 }
 0x2db   : > { %v10780_v14 = vsel %vm2277_vm2, %v2279_v17, %v2281_v38  ;;  %v5129_v26 = vmax.f32 %v4985_v28, %v5065_v51  ;;  %v2390_v48 = vmax.f32 %v2245_v58, %v2280_v12  ;;  %v2569_v30 = vrot.slane %v12555_v10, 5  ;;  %v1427_v28 = vld [vmem:[#allocation2 + $0x138] sm:$0xf] }
 0x2dc   : > { %v2391_v52 = vmax.f32 %v2246_v29, %v10780_v14  ;;  %v2425_v47 = vsel %vm2422_vm3, %v2423_v59, %v2424_v49  ;;  %v10789_v24 = vsel %vm2422_vm3, %v2424_v49, %v2426_v60  ;;  %v2571_v46 = vrot.slane %v12556_v33, 5 }
 0x2dd   : > { %v2713_v13 = vrot.slane %v12554_v4, 6  ;;  %v5273_v40 = vmax.f32 %v5129_v26, %v5209_v56  ;;  %v2535_v22 = vmax.f32 %v2390_v48, %v2425_v47  ;;  %v2714_v20 = vrot.slane %v12555_v10, 6  ;;  %v1556_v47 = vld [vmem:[#allocation2 + $0x158] sm:$0xf] }
 0x2de   : > { %v2536_v19 = vmax.f32 %v2391_v52, %v10789_v24  ;;  %v2570_v16 = vsel %vm2567_vm4, %v2568_v43, %v2569_v30  ;;  %v2572_v8 = vsel %vm2567_vm4, %v2569_v30, %v2571_v46  ;;  %v2716_v9 = vrot.slane %v12556_v33, 6 }
 0x2df   : > { %v2858_v5 = vrot.slane %v12554_v4, 7  ;;  %v5305_v39 = vmax.f32 %v5273_v40, %v10075_v1  ;;  %v2680_v15 = vmax.f32 %v2535_v22, %v2570_v16  ;;  %v2715_v11 = vsel %vm2712_vm5, %v2713_v13, %v2714_v20  ;;  %v12558_v4 = vld [vmem:[#allocation62_spill] sm:$0xff]  ;;  %v12559_v1 = vld [vmem:[#allocation65_spill] sm:$0xff] }
 0x2e0   : > { %v2681_v41 = vmax.f32 %v2536_v19, %v2572_v8  ;;  %v2717_v57 = vsel %vm2712_vm5, %v2714_v20, %v2716_v9  ;;  %v2859_v63 = vrot.slane %v12555_v10, 7  ;;  %v2861_v44 = vrot.slane %v12556_v33, 7  ;;  %v1685_v20 = vld [vmem:[#allocation2 + $0x178] sm:$0xf] }
 0x2e1   : > { %v976_v2 = vmax.f32 %v12557_v53, %v912_v27  ;;  %5337 = vst [vmem:[%s8117_s25 + $0x3e8] sm:$0xff] %v5305_v39  ;;  %v2825_v23 = vmax.f32 %v2680_v15, %v2715_v11  ;;  %v1993_v54 = vrot.slane %v12558_v4, 1  ;;  %v1994_v35 = vrot.slane %v12559_v1, 1  ;;  %v1814_v11 = vld [vmem:[#allocation2 + $0x198] sm:$0xf] }
 0x2e2   : > { %v2826_v42 = vmax.f32 %v2681_v41, %v2717_v57  ;;  %v2860_v51 = vsel %vm2857_vm6, %v2858_v5, %v2859_v63  ;;  %v2862_v56 = vsel %vm2857_vm6, %v2859_v63, %v2861_v44  ;;  %v1996_v7 = vrot.slane %v12560_v3, 1 }
 0x2e3   : > { %v1104_v18 = vmax.f32 %v976_v2, %v1040_v61  ;;  %v2970_v50 = vmax.f32 %v2825_v23, %v2860_v51  ;;  %v1995_v34 = vsel %vm1987_vm0, %v1993_v54, %v1994_v35  ;;  %v2138_v25 = vrot.slane %v12558_v4, 2 }
 0x2e4   : > { %v2971_v55 = vmax.f32 %v2826_v42, %v2862_v56  ;;  %v10817_v6 = vsel %vm1987_vm0, %v1994_v35, %v1996_v7  ;;  %v2102_v37 = vmax.f32 %v12558_v4, %v1995_v34  ;;  %v2139_v58 = vrot.slane %v12559_v1, 2 }
 0x2e5   : > { %v1233_v62 = vmax.f32 %v1104_v18, %v1169_v45  ;;  %v3002_v17 = vmax.f32 %v2970_v50, %v12555_v10  ;;  %v2103_v59 = vmax.f32 %v12559_v1, %v10817_v6  ;;  %v2141_v49 = vrot.slane %v12560_v3, 2 }
 0x2e6   : > { %v10823_v29 = vmax.f32 %v2971_v55, %v12556_v33  ;;  %v2140_v43 = vsel %vm2132_vm1, %v2138_v25, %v2139_v58  ;;  %v2283_v26 = vrot.slane %v12558_v4, 3  ;;  %v2284_v48 = vrot.slane %v12559_v1, 3 }
 0x2e7   : > { %v1362_v12 = vmax.f32 %v1233_v62, %v1298_v32  ;;  %v3098_v52 = vmax.f32 %v3002_v17, %v10756_v31  ;;  %v10835_v10 = vsel %vm2132_vm1, %v2139_v58, %v2141_v49  ;;  %v2247_v30 = vmax.f32 %v2102_v37, %v2140_v43  ;;  %v916_v32 = vld [vmem:[#allocation2 + $0xd8] sm:$0xf] }
 0x2e8   : > { %v2286_v46 = vrot.slane %v12560_v3, 3  ;;  %v2248_v27 = vmax.f32 %v2103_v59, %v10835_v10  ;;  %v2285_v40 = vsel %vm2277_vm2, %v2283_v26, %v2284_v48  ;;  %v2428_v22 = vrot.slane %v12558_v4, 4 }
 0x2e9   : > { %v1491_v13 = vmax.f32 %v1362_v12, %v1427_v28  ;;  %v3178_v19 = vmax.f32 %v3098_v52, %v10768_v36  ;;  %v2392_v16 = vmax.f32 %v2247_v30, %v2285_v40  ;;  %v2429_v8 = vrot.slane %v12559_v1, 4  ;;  %v12562_v40 = vld [vmem:[#allocation72_spill] sm:$0xff] }
 0x2ea   : > { %v10845_v31 = vsel %vm2277_vm2, %v2284_v48, %v2286_v46  ;;  %v2431_v39 = vrot.slane %v12560_v3, 4  ;;  %v2573_v15 = vrot.slane %v12558_v4, 5  ;;  %v2574_v61 = vrot.slane %v12559_v1, 5  ;;  %v1044_v48 = vld [vmem:[#allocation2 + $0xf8] sm:$0xf] }
 0x2eb   : > { %v1620_v9 = vmax.f32 %v1491_v13, %v1556_v47  ;;  %v2393_v5 = vmax.f32 %v2248_v27, %v10845_v31  ;;  %v3258_v41 = vmax.f32 %v3178_v19, %v10780_v14  ;;  %v2430_v36 = vsel %vm2422_vm3, %v2428_v22, %v2429_v8  ;;  %v12561_v13 = vld [vmem:[#allocation10_spill] sm:$0xff] }
 0x2ec   : > { %v2576_v57 = vrot.slane %v12560_v3, 5  ;;  %v10858_v44 = vsel %vm2422_vm3, %v2429_v8, %v2431_v39  ;;  %v2537_v53 = vmax.f32 %v2392_v16, %v2430_v36  ;;  %v2718_v2 = vrot.slane %v12558_v4, 6  ;;  %v12563_v19 = vld [vmem:[#allocation26_spill] sm:$0xff] }
 0x2ed   : > { %v1749_v63 = vmax.f32 %v1620_v9, %v1685_v20  ;;  %v3338_v23 = vmax.f32 %v3258_v41, %v10789_v24  ;;  %v2538_v14 = vmax.f32 %v2393_v5, %v10858_v44  ;;  %v2575_v42 = vsel %vm2567_vm4, %v2573_v15, %v2574_v61  ;;  %v12564_v20 = vld [vmem:[#allocation27_spill] sm:$0xff]  ;;  %v1302_v5 = vld [vmem:[#allocation2 + $0x138] sm:$0xf] }
 0x2ee   : > { %v2577_v45 = vsel %vm2567_vm4, %v2574_v61, %v2576_v57  ;;  %v2682_v35 = vmax.f32 %v2537_v53, %v2575_v42  ;;  %v2719_v51 = vrot.slane %v12559_v1, 6  ;;  %v2721_v56 = vrot.slane %v12560_v3, 6  ;;  %v1431_v53 = vld [vmem:[#allocation2 + $0x158] sm:$0xf] }
 0x2ef   : > { %v1878_v54 = vmax.f32 %v1749_v63, %v1814_v11  ;;  %3370 = vst [vmem:[%s8117_s25] sm:$0xff] %v3338_v23  ;;  %v2683_v18 = vmax.f32 %v2538_v14, %v2577_v45  ;;  %v2863_v50 = vrot.slane %v12558_v4, 7  ;;  %v2864_v55 = vrot.slane %v12559_v1, 7 }
 0x2f0   : > { %v2866_v24 = vrot.slane %v12560_v3, 7  ;;  %v2720_v58 = vsel %vm2712_vm5, %v2718_v2, %v2719_v51  ;;  %v2722_v17 = vsel %vm2712_vm5, %v2719_v51, %v2721_v56  ;;  %v980_v27 = vmax.f32 %v12561_v13, %v916_v32  ;;  %v1560_v51 = vld [vmem:[#allocation2 + $0x178] sm:$0xf] }
 0x2f1   : > { %v3050_v34 = vrot.slane %v1878_v54, 1  ;;  %v3130_v25 = vrot.slane %v1878_v54, 2  ;;  %v3210_v62 = vrot.slane %v1878_v54, 3  ;;  %v3290_v37 = vrot.slane %v1878_v54, 4 }
 0x2f2   : > { %v2865_v28 = vsel %vm2857_vm6, %v2863_v50, %v2864_v55  ;;  %v2867_v59 = vsel %vm2857_vm6, %v2864_v55, %v2866_v24  ;;  %v2827_v47 = vmax.f32 %v2682_v35, %v2720_v58  ;;  %v2828_v30 = vmax.f32 %v2683_v18, %v2722_v17 }
 0x2f3   : > { %v3051_v4 = vsel %vm1987_vm0, %v1991_v0, %v3050_v34  ;;  %v3131_v12 = vsel %vm2132_vm1, %v2136_v21, %v3130_v25  ;;  %v3211_v43 = vsel %vm2277_vm2, %v2281_v38, %v3210_v62  ;;  %v3291_v26 = vsel %vm2422_vm3, %v2426_v60, %v3290_v37  ;;  %v1173_v0 = vld [vmem:[#allocation2 + $0x118] sm:$0xf] }
 0x2f4   : > { %v3099_v52 = vmax.f32 %v10823_v29, %v3051_v4  ;;  %v1998_v22 = vrot.slane %v12562_v40, 1  ;;  %v1999_v21 = vrot.slane %v12563_v19, 1  ;;  %v2001_v16 = vrot.slane %v12564_v20, 1 }
 0x2f5   : > { %v2143_v38 = vrot.slane %v12562_v40, 2  ;;  %v2972_v33 = vmax.f32 %v2827_v47, %v2865_v28  ;;  %v2973_v9 = vmax.f32 %v2828_v30, %v2867_v59  ;;  %v1108_v60 = vmax.f32 %v980_v27, %v1044_v48 }
 0x2f6   : > { %v3179_v8 = vmax.f32 %v3099_v52, %v3131_v12  ;;  %v2000_v29 = vsel %vm1987_vm0, %v1998_v22, %v1999_v21  ;;  %v10897_v15 = vsel %vm1987_vm0, %v1999_v21, %v2001_v16  ;;  %v2144_v41 = vrot.slane %v12563_v19, 2  ;;  %v1818_v12 = vld [vmem:[#allocation2 + $0x1b8] sm:$0xf] }
 0x2f7   : > { %v2146_v11 = vrot.slane %v12564_v20, 2  ;;  %v3004_v61 = vmax.f32 %v2972_v33, %v12559_v1  ;;  %v1237_v57 = vmax.f32 %v1108_v60, %v1173_v0  ;;  %v10903_v63 = vmax.f32 %v2973_v9, %v12560_v3 }
 0x2f8   : > { %v3259_v36 = vmax.f32 %v3179_v8, %v3211_v43  ;;  %v2104_v2 = vmax.f32 %v12562_v40, %v2000_v29  ;;  %v2105_v23 = vmax.f32 %v12563_v19, %v10897_v15  ;;  %v2145_v14 = vsel %vm2132_vm1, %v2143_v38, %v2144_v41 }
 0x2f9   : > { %v10912_v42 = vsel %vm2132_vm1, %v2144_v41, %v2146_v11  ;;  %v3100_v1 = vmax.f32 %v3004_v61, %v10817_v6  ;;  %v1366_v54 = vmax.f32 %v1237_v57, %v1302_v5  ;;  %v2288_v35 = vrot.slane %v12562_v40, 3  ;;  %v1689_v6 = vld [vmem:[#allocation2 + $0x198] sm:$0xf] }
 0x2fa   : > { %v3339_v45 = vmax.f32 %v3259_v36, %v3291_v26  ;;  %v2249_v56 = vmax.f32 %v2104_v2, %v2145_v14  ;;  %v2250_v18 = vmax.f32 %v2105_v23, %v10912_v42  ;;  %v2289_v50 = vrot.slane %v12563_v19, 3  ;;  %v920_v41 = vld [vmem:[#allocation2 + $0xf8] sm:$0xf] }
 0x2fb   : > { %v2291_v55 = vrot.slane %v12564_v20, 3  ;;  %v3180_v24 = vmax.f32 %v3100_v1, %v10835_v10  ;;  %v1495_v32 = vmax.f32 %v1366_v54, %v1431_v53  ;;  %v2433_v34 = vrot.slane %v12562_v40, 4 }
 0x2fc   : > { %3371 = vst [vmem:[%s8117_s25 + $0x20] sm:$0xff] %v3339_v45  ;;  %v2434_v25 = vrot.slane %v12563_v19, 4  ;;  %v2290_v62 = vsel %vm2277_vm2, %v2288_v35, %v2289_v50  ;;  %v2436_v58 = vrot.slane %v12564_v20, 4  ;;  %v2578_v17 = vrot.slane %v12562_v40, 5 }
 0x2fd   : > { %v10927_v37 = vsel %vm2277_vm2, %v2289_v50, %v2291_v55  ;;  %v3260_v28 = vmax.f32 %v3180_v24, %v10845_v31  ;;  %v1624_v10 = vmax.f32 %v1495_v32, %v1560_v51  ;;  %v2394_v59 = vmax.f32 %v2249_v56, %v2290_v62  ;;  %v1048_v51 = vld [vmem:[#allocation2 + $0x118] sm:$0xf]  ;;  %v12565_v24 = vld [vmem:[#allocation11_spill] sm:$0xff] }
 0x2fe   : > { %v2395_v4 = vmax.f32 %v2250_v18, %v10927_v37  ;;  %v2435_v43 = vsel %vm2422_vm3, %v2433_v34, %v2434_v25  ;;  %v10937_v26 = vsel %vm2422_vm3, %v2434_v25, %v2436_v58  ;;  %v2579_v48 = vrot.slane %v12563_v19, 5  ;;  %v12566_v34 = vld [vmem:[#allocation36_spill] sm:$0xff]  ;;  %v12568_v62 = vld [vmem:[#allocation39_spill] sm:$0xff] }
 0x2ff   : > { %v2581_v52 = vrot.slane %v12564_v20, 5  ;;  %v3340_v47 = vmax.f32 %v3260_v28, %v10858_v44  ;;  %v1753_v31 = vmax.f32 %v1624_v10, %v1689_v6  ;;  %v2539_v30 = vmax.f32 %v2394_v59, %v2435_v43  ;;  %v12567_v6 = vld [vmem:[#allocation38_spill] sm:$0xff]  ;;  %v1306_v59 = vld [vmem:[#allocation2 + $0x158] sm:$0xf] }
 0x300   : > { %v2540_v13 = vmax.f32 %v2395_v4, %v10937_v26  ;;  %v2580_v27 = vsel %vm2567_vm4, %v2578_v17, %v2579_v48  ;;  %v2723_v22 = vrot.slane %v12562_v40, 6  ;;  %v2724_v21 = vrot.slane %v12563_v19, 6 }
 0x301   : > { %v2582_v0 = vsel %vm2567_vm4, %v2579_v48, %v2581_v52  ;;  %3372 = vst [vmem:[%s8117_s25 + $0x40] sm:$0xff] %v3340_v47  ;;  %v1882_v38 = vmax.f32 %v1753_v31, %v1818_v12  ;;  %v2684_v8 = vmax.f32 %v2539_v30, %v2580_v27  ;;  %v2726_v9 = vrot.slane %v12564_v20, 6  ;;  %v1435_v31 = vld [vmem:[#allocation2 + $0x178] sm:$0xf] }
 0x302   : > { %v2685_v33 = vmax.f32 %v2540_v13, %v2582_v0  ;;  %v2725_v44 = vsel %vm2712_vm5, %v2723_v22, %v2724_v21  ;;  %v2868_v60 = vrot.slane %v12562_v40, 7  ;;  %v2869_v5 = vrot.slane %v12563_v19, 7 }
 0x303   : > { %v2871_v29 = vrot.slane %v12564_v20, 7  ;;  %v3052_v36 = vrot.slane %v1882_v38, 1  ;;  %v3132_v61 = vrot.slane %v1882_v38, 2  ;;  %v3212_v57 = vrot.slane %v1882_v38, 3 }
 0x304   : > { %v3292_v53 = vrot.slane %v1882_v38, 4  ;;  %v2727_v2 = vsel %vm2712_vm5, %v2724_v21, %v2726_v9  ;;  %v2829_v23 = vmax.f32 %v2684_v8, %v2725_v44  ;;  %v2870_v14 = vsel %vm2857_vm6, %v2868_v60, %v2869_v5  ;;  %v1564_v8 = vld [vmem:[#allocation2 + $0x198] sm:$0xf] }
 0x305   : > { %v2872_v45 = vsel %vm2857_vm6, %v2869_v5, %v2871_v29  ;;  %v3053_v40 = vsel %vm1987_vm0, %v1996_v7, %v3052_v36  ;;  %v3133_v1 = vsel %vm2132_vm1, %v2141_v49, %v3132_v61  ;;  %v3213_v54 = vsel %vm2277_vm2, %v2286_v46, %v3212_v57  ;;  %v1177_v7 = vld [vmem:[#allocation2 + $0x138] sm:$0xf] }
 0x306   : > { %v3293_v35 = vsel %vm2422_vm3, %v2431_v39, %v3292_v53  ;;  %v3101_v56 = vmax.f32 %v10903_v63, %v3053_v40  ;;  %v2830_v18 = vmax.f32 %v2685_v33, %v2727_v2  ;;  %v2974_v50 = vmax.f32 %v2829_v23, %v2870_v14  ;;  %v1693_v36 = vld [vmem:[#allocation2 + $0x1b8] sm:$0xf] }
 0x307   : > { %v984_v32 = vmax.f32 %v12565_v24, %v920_v41  ;;  %v2003_v25 = vrot.slane %v12566_v34, 1  ;;  %v2004_v49 = vrot.slane %v12567_v6, 1  ;;  %v2006_v17 = vrot.slane %v12568_v62, 1  ;;  %v1822_v40 = vld [vmem:[#allocation2 + $0x1d8] sm:$0xf] }
 0x308   : > { %v2148_v46 = vrot.slane %v12566_v34, 2  ;;  %v3181_v28 = vmax.f32 %v3101_v56, %v3133_v1  ;;  %v2975_v3 = vmax.f32 %v2830_v18, %v2872_v45  ;;  %v3006_v39 = vmax.f32 %v2974_v50, %v12563_v19 }
 0x309   : > { %v1112_v10 = vmax.f32 %v984_v32, %v1048_v51  ;;  %v2005_v63 = vsel %vm1987_vm0, %v2003_v25, %v2004_v49  ;;  %v10979_v4 = vsel %vm1987_vm0, %v2004_v49, %v2006_v17  ;;  %v2149_v12 = vrot.slane %v12567_v6, 2 }
 0x30a   : > { %v2151_v43 = vrot.slane %v12568_v62, 2  ;;  %v3261_v48 = vmax.f32 %v3181_v28, %v3213_v54  ;;  %v3102_v52 = vmax.f32 %v3006_v39, %v10897_v15  ;;  %v10985_v19 = vmax.f32 %v2975_v3, %v12564_v20 }
 0x30b   : > { %v1241_v47 = vmax.f32 %v1112_v10, %v1177_v7  ;;  %v2106_v30 = vmax.f32 %v12566_v34, %v2005_v63  ;;  %v2107_v13 = vmax.f32 %v12567_v6, %v10979_v4  ;;  %v2150_v27 = vsel %vm2132_vm1, %v2148_v46, %v2149_v12 }
 0x30c   : > { %v10994_v0 = vsel %vm2132_vm1, %v2149_v12, %v2151_v43  ;;  %v3341_v22 = vmax.f32 %v3261_v48, %v3293_v35  ;;  %v3182_v15 = vmax.f32 %v3102_v52, %v10912_v42  ;;  %v2293_v38 = vrot.slane %v12566_v34, 3  ;;  %v924_v12 = vld [vmem:[#allocation2 + $0x118] sm:$0xf] }
 0x30d   : > { %v1370_v21 = vmax.f32 %v1241_v47, %v1306_v59  ;;  %v2251_v33 = vmax.f32 %v2106_v30, %v2150_v27  ;;  %v2252_v9 = vmax.f32 %v2107_v13, %v10994_v0  ;;  %v2294_v44 = vrot.slane %v12567_v6, 3 }
 0x30e   : > { %v2296_v60 = vrot.slane %v12568_v62, 3  ;;  %3373 = vst [vmem:[%s8117_s25 + $0x60] sm:$0xff] %v3341_v22  ;;  %v3262_v5 = vmax.f32 %v3182_v15, %v10927_v37  ;;  %v2438_v41 = vrot.slane %v12566_v34, 4  ;;  %v2439_v42 = vrot.slane %v12567_v6, 4 }
 0x30f   : > { %v1499_v29 = vmax.f32 %v1370_v21, %v1435_v31  ;;  %v2295_v61 = vsel %vm2277_vm2, %v2293_v38, %v2294_v44  ;;  %v2441_v53 = vrot.slane %v12568_v62, 4  ;;  %v2583_v2 = vrot.slane %v12566_v34, 5 }
 0x310   : > { %v11009_v57 = vsel %vm2277_vm2, %v2294_v44, %v2296_v60  ;;  %v3342_v37 = vmax.f32 %v3262_v5, %v10937_v26  ;;  %v2396_v14 = vmax.f32 %v2251_v33, %v2295_v61  ;;  %v2440_v1 = vsel %vm2422_vm3, %v2438_v41, %v2439_v42  ;;  %v12569_v5 = vld [vmem:[#allocation12_spill] sm:$0xff]  ;;  %v12570_v41 = vld [vmem:[#allocation50_spill] sm:$0xff] }
 0x311   : > { %v1628_v23 = vmax.f32 %v1499_v29, %v1564_v8  ;;  %v2397_v45 = vmax.f32 %v2252_v9, %v11009_v57  ;;  %v11019_v54 = vsel %vm2422_vm3, %v2439_v42, %v2441_v53  ;;  %v2584_v35 = vrot.slane %v12567_v6, 5  ;;  %v1052_v8 = vld [vmem:[#allocation2 + $0x138] sm:$0xf] }
 0x312   : > { %v2586_v51 = vrot.slane %v12568_v62, 5  ;;  %3374 = vst [vmem:[%s8117_s25 + $0x80] sm:$0xff] %v3342_v37  ;;  %v2541_v18 = vmax.f32 %v2396_v14, %v2440_v1  ;;  %v2728_v50 = vrot.slane %v12566_v34, 6  ;;  %v2729_v7 = vrot.slane %v12567_v6, 6  ;;  %v12572_v61 = vld [vmem:[#allocation28_spill] sm:$0xff] }
 0x313   : > { %v1757_v56 = vmax.f32 %v1628_v23, %v1693_v36  ;;  %v2542_v26 = vmax.f32 %v2397_v45, %v11019_v54  ;;  %v2585_v24 = vsel %vm2567_vm4, %v2583_v2, %v2584_v35  ;;  %v2731_v25 = vrot.slane %v12568_v62, 6  ;;  %v12571_v36 = vld [vmem:[#allocation69_spill] sm:$0xff] }
 0x314   : > { %v2587_v32 = vsel %vm2567_vm4, %v2584_v35, %v2586_v51  ;;  %v2686_v46 = vmax.f32 %v2541_v18, %v2585_v24  ;;  %v2873_v3 = vrot.slane %v12566_v34, 7  ;;  %v2730_v39 = vsel %vm2712_vm5, %v2728_v50, %v2729_v7  ;;  %v1439_v18 = vld [vmem:[#allocation2 + $0x198] sm:$0xf] }
 0x315   : > { %v1886_v49 = vmax.f32 %v1757_v56, %v1822_v40  ;;  %v2687_v28 = vmax.f32 %v2542_v26, %v2587_v32  ;;  %v2732_v10 = vsel %vm2712_vm5, %v2729_v7, %v2731_v25  ;;  %v2874_v59 = vrot.slane %v12567_v6, 7 }
 0x316   : > { %v2876_v63 = vrot.slane %v12568_v62, 7  ;;  %v2831_v30 = vmax.f32 %v2686_v46, %v2730_v39  ;;  %v988_v29 = vmax.f32 %v12569_v5, %v924_v12  ;;  %v2008_v42 = vrot.slane %v12570_v41, 1  ;;  %v1568_v46 = vld [vmem:[#allocation2 + $0x1b8] sm:$0xf] }
 0x317   : > { %v3054_v48 = vrot.slane %v1886_v49, 1  ;;  %v3134_v52 = vrot.slane %v1886_v49, 2  ;;  %v3214_v47 = vrot.slane %v1886_v49, 3  ;;  %v3294_v31 = vrot.slane %v1886_v49, 4 }
 0x318   : > { %v2832_v13 = vmax.f32 %v2687_v28, %v2732_v10  ;;  %v2875_v27 = vsel %vm2857_vm6, %v2873_v3, %v2874_v59  ;;  %v2877_v22 = vsel %vm2857_vm6, %v2874_v59, %v2876_v63  ;;  %v2011_v2 = vrot.slane %v12572_v61, 1 }
 0x319   : > { %v3055_v34 = vsel %vm1987_vm0, %v2001_v16, %v3054_v48  ;;  %v3135_v15 = vsel %vm2132_vm1, %v2146_v11, %v3134_v52  ;;  %v3215_v21 = vsel %vm2277_vm2, %v2291_v55, %v3214_v47  ;;  %v3295_v38 = vsel %vm2422_vm3, %v2436_v58, %v3294_v31  ;;  %v1181_v16 = vld [vmem:[#allocation2 + $0x158] sm:$0xf] }
 0x31a   : > { %v3103_v33 = vmax.f32 %v10985_v19, %v3055_v34  ;;  %v2976_v9 = vmax.f32 %v2831_v30, %v2875_v27  ;;  %v2977_v44 = vmax.f32 %v2832_v13, %v2877_v22  ;;  %v2009_v11 = vrot.slane %v12571_v36, 1  ;;  %v1310_v19 = vld [vmem:[#allocation2 + $0x178] sm:$0xf] }
 0x31b   : > { %v2153_v55 = vrot.slane %v12570_v41, 2  ;;  %v1116_v58 = vmax.f32 %v988_v29, %v1052_v8  ;;  %v2154_v40 = vrot.slane %v12571_v36, 2  ;;  %v2156_v1 = vrot.slane %v12572_v61, 2  ;;  %v1826_v34 = vld [vmem:[#allocation2 + $0x1f8] sm:$0xf] }
 0x31c   : > { %v3183_v37 = vmax.f32 %v3103_v33, %v3135_v15  ;;  %v3008_v20 = vmax.f32 %v2976_v9, %v12567_v6  ;;  %v11057_v23 = vmax.f32 %v2977_v44, %v12568_v62  ;;  %v2010_v14 = vsel %vm1987_vm0, %v2008_v42, %v2009_v11  ;;  %v928_v33 = vld [vmem:[#allocation2 + $0x138] sm:$0xf] }
 0x31d   : > { %v11063_v45 = vsel %vm1987_vm0, %v2009_v11, %v2011_v2  ;;  %v1245_v6 = vmax.f32 %v1116_v58, %v1181_v16  ;;  %v2108_v56 = vmax.f32 %v12570_v41, %v2010_v14  ;;  %v2155_v50 = vsel %vm2132_vm1, %v2153_v55, %v2154_v40 }
 0x31e   : > { %v3263_v35 = vmax.f32 %v3183_v37, %v3215_v21  ;;  %v3104_v51 = vmax.f32 %v3008_v20, %v10979_v4  ;;  %v2109_v26 = vmax.f32 %v12571_v36, %v11063_v45  ;;  %v11075_v24 = vsel %vm2132_vm1, %v2154_v40, %v2156_v1 }
 0x31f   : > { %v2298_v32 = vrot.slane %v12570_v41, 3  ;;  %v1374_v25 = vmax.f32 %v1245_v6, %v1310_v19  ;;  %v2253_v49 = vmax.f32 %v2108_v56, %v2155_v50  ;;  %v2299_v3 = vrot.slane %v12571_v36, 3  ;;  %v1056_v50 = vld [vmem:[#allocation2 + $0x158] sm:$0xf] }
 0x320   : > { %v3343_v7 = vmax.f32 %v3263_v35, %v3295_v38  ;;  %v3184_v4 = vmax.f32 %v3104_v51, %v10994_v0  ;;  %v2254_v28 = vmax.f32 %v2109_v26, %v11075_v24  ;;  %v2301_v39 = vrot.slane %v12572_v61, 3  ;;  %v1697_v0 = vld [vmem:[#allocation2 + $0x1d8] sm:$0xf]  ;;  %v12573_v35 = vld [vmem:[#allocation13_spill] sm:$0xff] }
 0x321   : > { %v2443_v10 = vrot.slane %v12570_v41, 4  ;;  %v1503_v63 = vmax.f32 %v1374_v25, %v1439_v18  ;;  %v2444_v12 = vrot.slane %v12571_v36, 4  ;;  %v2446_v48 = vrot.slane %v12572_v61, 4 }
 0x322   : > { %3375 = vst [vmem:[%s8117_s25 + $0xa0] sm:$0xff] %v3343_v7  ;;  %v3264_v59 = vmax.f32 %v3184_v4, %v11009_v57  ;;  %v2300_v52 = vsel %vm2277_vm2, %v2298_v32, %v2299_v3  ;;  %v11091_v47 = vsel %vm2277_vm2, %v2299_v3, %v2301_v39  ;;  %v2588_v31 = vrot.slane %v12570_v41, 5  ;;  %v1185_v3 = vld [vmem:[#allocation2 + $0x178] sm:$0xf] }
 0x323   : > { %v2589_v30 = vrot.slane %v12571_v36, 5  ;;  %v1632_v13 = vmax.f32 %v1503_v63, %v1568_v46  ;;  %v2398_v27 = vmax.f32 %v2253_v49, %v2300_v52  ;;  %v2399_v22 = vmax.f32 %v2254_v28, %v11091_v47 }
 0x324   : > { %v3344_v57 = vmax.f32 %v3264_v59, %v11019_v54  ;;  %v2445_v15 = vsel %vm2422_vm3, %v2443_v10, %v2444_v12  ;;  %v11101_v21 = vsel %vm2422_vm3, %v2444_v12, %v2446_v48  ;;  %v2591_v8 = vrot.slane %v12572_v61, 5 }
 0x325   : > { %v2590_v38 = vsel %vm2567_vm4, %v2588_v31, %v2589_v30  ;;  %v1761_v9 = vmax.f32 %v1632_v13, %v1697_v0  ;;  %v2543_v54 = vmax.f32 %v2398_v27, %v2445_v15  ;;  %v2544_v44 = vmax.f32 %v2399_v22, %v11101_v21  ;;  %v1314_v0 = vld [vmem:[#allocation2 + $0x198] sm:$0xf]  ;;  %v12575_v31 = vld [vmem:[#allocation51_spill] sm:$0xff] }
 0x326   : > { %3376 = vst [vmem:[%s8117_s25 + $0xc0] sm:$0xff] %v3344_v57  ;;  %v2733_v5 = vrot.slane %v12570_v41, 6  ;;  %v2592_v29 = vsel %vm2567_vm4, %v2589_v30, %v2591_v8  ;;  %v2734_v16 = vrot.slane %v12571_v36, 6  ;;  %v2736_v42 = vrot.slane %v12572_v61, 6 }
 0x327   : > { %v2878_v11 = vrot.slane %v12570_v41, 7  ;;  %v1890_v55 = vmax.f32 %v1761_v9, %v1826_v34  ;;  %v2688_v37 = vmax.f32 %v2543_v54, %v2590_v38  ;;  %v2689_v20 = vmax.f32 %v2544_v44, %v2592_v29  ;;  %v1572_v54 = vld [vmem:[#allocation2 + $0x1d8] sm:$0xf] }
 0x328   : > { %v2879_v58 = vrot.slane %v12571_v36, 7  ;;  %v2735_v19 = vsel %vm2712_vm5, %v2733_v5, %v2734_v16  ;;  %v2737_v14 = vsel %vm2712_vm5, %v2734_v16, %v2736_v42  ;;  %v2881_v40 = vrot.slane %v12572_v61, 7 }
 0x329   : > { %v992_v51 = vmax.f32 %v12573_v35, %v928_v33  ;;  %v3056_v6 = vrot.slane %v1890_v55, 1  ;;  %v3136_v56 = vrot.slane %v1890_v55, 2  ;;  %v3216_v18 = vrot.slane %v1890_v55, 3 }
 0x32a   : > { %v3296_v26 = vrot.slane %v1890_v55, 4  ;;  %v2833_v32 = vmax.f32 %v2688_v37, %v2735_v19  ;;  %v2834_v41 = vmax.f32 %v2689_v20, %v2737_v14  ;;  %v2880_v7 = vsel %vm2857_vm6, %v2878_v11, %v2879_v58  ;;  %v1701_v37 = vld [vmem:[#allocation2 + $0x1f8] sm:$0xf] }
 0x32b   : > { %v2882_v4 = vsel %vm2857_vm6, %v2879_v58, %v2881_v40  ;;  %v3057_v25 = vsel %vm1987_vm0, %v2006_v17, %v3056_v6  ;;  %v3137_v49 = vsel %vm2132_vm1, %v2151_v43, %v3136_v56  ;;  %v3217_v46 = vsel %vm2277_vm2, %v2296_v60, %v3216_v18  ;;  %v12574_v17 = vld [vmem:[#allocation42_spill] sm:$0xff]  ;;  %v12576_v43 = vld [vmem:[#allocation73_spill] sm:$0xff]  ;;  %v1830_v6 = vld [vmem:[#allocation2 + $0x218] sm:$0xf] }
 0x32c   : > { %v3297_v28 = vsel %vm2422_vm3, %v2441_v53, %v3296_v26  ;;  %v3105_v10 = vmax.f32 %v11057_v23, %v3057_v25  ;;  %v2978_v59 = vmax.f32 %v2833_v32, %v2880_v7  ;;  %v2979_v63 = vmax.f32 %v2834_v41, %v2882_v4  ;;  %v1443_v23 = vld [vmem:[#allocation2 + $0x1b8] sm:$0xf] }
 0x32d   : > { %v1120_v12 = vmax.f32 %v992_v51, %v1056_v50  ;;  %v2013_v52 = vrot.slane %v12574_v17, 1  ;;  %v2014_v30 = vrot.slane %v12575_v31, 1  ;;  %v2016_v57 = vrot.slane %v12576_v43, 1 }
 0x32e   : > { %v2158_v13 = vrot.slane %v12574_v17, 2  ;;  %v3185_v60 = vmax.f32 %v3105_v10, %v3137_v49  ;;  %v3010_v62 = vmax.f32 %v2978_v59, %v12571_v36  ;;  %v11138_v53 = vmax.f32 %v2979_v63, %v12572_v61 }
 0x32f   : > { %v1249_v27 = vmax.f32 %v1120_v12, %v1185_v3  ;;  %v2015_v22 = vsel %vm1987_vm0, %v2013_v52, %v2014_v30  ;;  %v11144_v34 = vsel %vm1987_vm0, %v2014_v30, %v2016_v57  ;;  %v2159_v15 = vrot.slane %v12575_v31, 2 }
 0x330   : > { %v2161_v38 = vrot.slane %v12576_v43, 2  ;;  %v3265_v8 = vmax.f32 %v3185_v60, %v3217_v46  ;;  %v3106_v33 = vmax.f32 %v3010_v62, %v11063_v45  ;;  %v2110_v9 = vmax.f32 %v12574_v17, %v2015_v22  ;;  %v932_v62 = vld [vmem:[#allocation2 + $0x158] sm:$0xf] }
 0x331   : > { %v1378_v36 = vmax.f32 %v1249_v27, %v1314_v0  ;;  %v2111_v44 = vmax.f32 %v12575_v31, %v11144_v34  ;;  %v2160_v5 = vsel %vm2132_vm1, %v2158_v13, %v2159_v15  ;;  %v2303_v16 = vrot.slane %v12574_v17, 3 }
 0x332   : > { %v11156_v29 = vsel %vm2132_vm1, %v2159_v15, %v2161_v38  ;;  %v3345_v42 = vmax.f32 %v3265_v8, %v3297_v28  ;;  %v3186_v45 = vmax.f32 %v3106_v33, %v11075_v24  ;;  %v2255_v55 = vmax.f32 %v2110_v9, %v2160_v5 }
 0x333   : > { %v1507_v11 = vmax.f32 %v1378_v36, %v1443_v23  ;;  %v2256_v20 = vmax.f32 %v2111_v44, %v11156_v29  ;;  %v2304_v58 = vrot.slane %v12575_v31, 3  ;;  %v2306_v19 = vrot.slane %v12576_v43, 3 }
 0x334   : > { %v2448_v14 = vrot.slane %v12574_v17, 4  ;;  %3377 = vst [vmem:[%s8117_s25 + $0xe0] sm:$0xff] %v3345_v42  ;;  %v3266_v40 = vmax.f32 %v3186_v45, %v11091_v47  ;;  %v2449_v51 = vrot.slane %v12575_v31, 4  ;;  %v2451_v24 = vrot.slane %v12576_v43, 4  ;;  %v12577_v42 = vld [vmem:[#allocation14_spill] sm:$0xff] }
 0x335   : > { %v1636_v35 = vmax.f32 %v1507_v11, %v1572_v54  ;;  %v2305_v56 = vsel %vm2277_vm2, %v2303_v16, %v2304_v58  ;;  %v11172_v18 = vsel %vm2277_vm2, %v2304_v58, %v2306_v19  ;;  %v2593_v26 = vrot.slane %v12574_v17, 5  ;;  %v1060_v16 = vld [vmem:[#allocation2 + $0x178] sm:$0xf] }
 0x336   : > { %v2594_v50 = vrot.slane %v12575_v31, 5  ;;  %v3346_v47 = vmax.f32 %v3266_v40, %v11101_v21  ;;  %v2400_v41 = vmax.f32 %v2255_v55, %v2305_v56  ;;  %v2401_v7 = vmax.f32 %v2256_v20, %v11172_v18  ;;  %v12579_v55 = vld [vmem:[#allocation75_spill] sm:$0xff]  ;;  %v1189_v20 = vld [vmem:[#allocation2 + $0x198] sm:$0xf] }
 0x337   : > { %v1765_v32 = vmax.f32 %v1636_v35, %v1701_v37  ;;  %v2450_v4 = vsel %vm2422_vm3, %v2448_v14, %v2449_v51  ;;  %v11182_v25 = vsel %vm2422_vm3, %v2449_v51, %v2451_v24  ;;  %v2596_v46 = vrot.slane %v12576_v43, 5 }
 0x338   : > { %v2595_v49 = vsel %vm2567_vm4, %v2593_v26, %v2594_v50  ;;  %3378 = vst [vmem:[%s8117_s25 + $0x100] sm:$0xff] %v3346_v47  ;;  %v2545_v3 = vmax.f32 %v2400_v41, %v2450_v4  ;;  %v2546_v21 = vmax.f32 %v2401_v7, %v11182_v25  ;;  %v2738_v10 = vrot.slane %v12574_v17, 6  ;;  %v1318_v26 = vld [vmem:[#allocation2 + $0x1b8] sm:$0xf] }
 0x339   : > { %v1894_v28 = vmax.f32 %v1765_v32, %v1830_v6  ;;  %v2597_v59 = vsel %vm2567_vm4, %v2594_v50, %v2596_v46  ;;  %v2739_v63 = vrot.slane %v12575_v31, 6  ;;  %v2741_v12 = vrot.slane %v12576_v43, 6  ;;  %v1447_v46 = vld [vmem:[#allocation2 + $0x1d8] sm:$0xf] }
 0x33a   : > { %v2883_v0 = vrot.slane %v12574_v17, 7  ;;  %v2690_v27 = vmax.f32 %v2545_v3, %v2595_v49  ;;  %v2691_v23 = vmax.f32 %v2546_v21, %v2597_v59  ;;  %v2884_v5 = vrot.slane %v12575_v31, 7 }
 0x33b   : > { %v3058_v52 = vrot.slane %v1894_v28, 1  ;;  %v3138_v30 = vrot.slane %v1894_v28, 2  ;;  %v3218_v13 = vrot.slane %v1894_v28, 3  ;;  %v3298_v60 = vrot.slane %v1894_v28, 4 }
 0x33c   : > { %v2740_v22 = vsel %vm2712_vm5, %v2738_v10, %v2739_v63  ;;  %v2742_v15 = vsel %vm2712_vm5, %v2739_v63, %v2741_v12  ;;  %v996_v45 = vmax.f32 %v12577_v42, %v932_v62  ;;  %v2019_v37 = vrot.slane %v12579_v55, 1  ;;  %v1576_v12 = vld [vmem:[#allocation2 + $0x1f8] sm:$0xf] }
 0x33d   : > { %v3059_v8 = vsel %vm1987_vm0, %v2011_v2, %v3058_v52  ;;  %v3139_v33 = vsel %vm2132_vm1, %v2156_v1, %v3138_v30  ;;  %v3219_v17 = vsel %vm2277_vm2, %v2301_v39, %v3218_v13  ;;  %v3299_v36 = vsel %vm2422_vm3, %v2446_v48, %v3298_v60  ;;  %v12578_v1 = vld [vmem:[#allocation68_spill] sm:$0xff] }
 0x33e   : > { %v3107_v9 = vmax.f32 %v11138_v53, %v3059_v8  ;;  %v2835_v54 = vmax.f32 %v2690_v27, %v2740_v22  ;;  %v2836_v44 = vmax.f32 %v2691_v23, %v2742_v15  ;;  %v2886_v2 = vrot.slane %v12576_v43, 7  ;;  %v12580_v48 = vld [vmem:[#allocation76_spill] sm:$0xff] }
 0x33f   : > { %v2018_v11 = vrot.slane %v12578_v1, 1  ;;  %v2885_v61 = vsel %vm2857_vm6, %v2883_v0, %v2884_v5  ;;  %v2021_v58 = vrot.slane %v12580_v48, 1  ;;  %v2163_v53 = vrot.slane %v12578_v1, 2  ;;  %v1705_v23 = vld [vmem:[#allocation2 + $0x218] sm:$0xf] }
 0x340   : > { %v3187_v39 = vmax.f32 %v3107_v9, %v3139_v33  ;;  %v2887_v14 = vsel %vm2857_vm6, %v2884_v5, %v2886_v2  ;;  %v2980_v40 = vmax.f32 %v2835_v54, %v2885_v61  ;;  %v1124_v35 = vmax.f32 %v996_v45, %v1060_v16  ;;  %v1834_v54 = vld [vmem:[#allocation2 + $0x238] sm:$0xf] }
 0x341   : > { %v2020_v51 = vsel %vm1987_vm0, %v2018_v11, %v2019_v37  ;;  %v2981_v56 = vmax.f32 %v2836_v44, %v2887_v14  ;;  %v11221_v50 = vsel %vm1987_vm0, %v2019_v37, %v2021_v58  ;;  %v2164_v4 = vrot.slane %v12579_v55, 2 }
 0x342   : > { %v3267_v6 = vmax.f32 %v3187_v39, %v3219_v17  ;;  %v2112_v47 = vmax.f32 %v12578_v1, %v2020_v51  ;;  %v3012_v32 = vmax.f32 %v2980_v40, %v12575_v31  ;;  %v1253_v41 = vmax.f32 %v1124_v35, %v1189_v20 }
 0x343   : > { %v2113_v7 = vmax.f32 %v12579_v55, %v11221_v50  ;;  %v11229_v28 = vmax.f32 %v2981_v56, %v12576_v43  ;;  %v2166_v3 = vrot.slane %v12580_v48, 2  ;;  %v2308_v21 = vrot.slane %v12578_v1, 3 }
 0x344   : > { %v3347_v49 = vmax.f32 %v3267_v6, %v3299_v36  ;;  %v3108_v10 = vmax.f32 %v3012_v32, %v11144_v34  ;;  %v1382_v59 = vmax.f32 %v1253_v41, %v1318_v26  ;;  %v2165_v31 = vsel %vm2132_vm1, %v2163_v53, %v2164_v4  ;;  %v936_v26 = vld [vmem:[#allocation2 + $0x178] sm:$0xf] }
 0x345   : > { %v2309_v63 = vrot.slane %v12579_v55, 3  ;;  %v11240_v0 = vsel %vm2132_vm1, %v2164_v4, %v2166_v3  ;;  %v2257_v52 = vmax.f32 %v2112_v47, %v2165_v31  ;;  %v2311_v30 = vrot.slane %v12580_v48, 3 }
 0x346   : > { %3379 = vst [vmem:[%s8117_s25 + $0x120] sm:$0xff] %v3347_v49  ;;  %v2453_v13 = vrot.slane %v12578_v1, 4  ;;  %v3188_v60 = vmax.f32 %v3108_v10, %v11156_v29  ;;  %v1511_v34 = vmax.f32 %v1382_v59, %v1447_v46  ;;  %v2258_v62 = vmax.f32 %v2113_v7, %v11240_v0 }
 0x347   : > { %v2310_v27 = vsel %vm2277_vm2, %v2308_v21, %v2309_v63  ;;  %v11250_v22 = vsel %vm2277_vm2, %v2309_v63, %v2311_v30  ;;  %v2454_v8 = vrot.slane %v12579_v55, 4  ;;  %v2456_v33 = vrot.slane %v12580_v48, 4  ;;  %v1064_v63 = vld [vmem:[#allocation2 + $0x198] sm:$0xf] }
 0x348   : > { %v2402_v15 = vmax.f32 %v2257_v52, %v2310_v27  ;;  %v3268_v17 = vmax.f32 %v3188_v60, %v11172_v18  ;;  %v1640_v36 = vmax.f32 %v1511_v34, %v1576_v12  ;;  %v2403_v29 = vmax.f32 %v2258_v62, %v11250_v22  ;;  %v12581_v60 = vld [vmem:[#allocation15_spill] sm:$0xff]  ;;  %v12582_v62 = vld [vmem:[#allocation32_spill] sm:$0xff] }
 0x349   : > { %v2598_v9 = vrot.slane %v12578_v1, 5  ;;  %v2455_v44 = vsel %vm2422_vm3, %v2453_v13, %v2454_v8  ;;  %v11261_v5 = vsel %vm2422_vm3, %v2454_v8, %v2456_v33  ;;  %v2599_v16 = vrot.slane %v12579_v55, 5 }
 0x34a   : > { %v2601_v2 = vrot.slane %v12580_v48, 5  ;;  %v3348_v18 = vmax.f32 %v3268_v17, %v11182_v25  ;;  %v1769_v42 = vmax.f32 %v1640_v36, %v1705_v23  ;;  %v2547_v45 = vmax.f32 %v2402_v15, %v2455_v44  ;;  %v12583_v23 = vld [vmem:[#allocation40_spill] sm:$0xff]  ;;  %v12584_v15 = vld [vmem:[#allocation41_spill] sm:$0xff] }
 0x34b   : > { %v2548_v11 = vmax.f32 %v2403_v29, %v11261_v5  ;;  %v2600_v37 = vsel %vm2567_vm4, %v2598_v9, %v2599_v16  ;;  %v2743_v61 = vrot.slane %v12578_v1, 6  ;;  %v2744_v20 = vrot.slane %v12579_v55, 6  ;;  %v1322_v29 = vld [vmem:[#allocation2 + $0x1d8] sm:$0xf] }
 0x34c   : > { %v2602_v39 = vsel %vm2567_vm4, %v2599_v16, %v2601_v2  ;;  %3380 = vst [vmem:[%s8117_s25 + $0x140] sm:$0xff] %v3348_v18  ;;  %v1898_v53 = vmax.f32 %v1769_v42, %v1834_v54  ;;  %v2692_v14 = vmax.f32 %v2547_v45, %v2600_v37  ;;  %v2746_v35 = vrot.slane %v12580_v48, 6  ;;  %v1451_v42 = vld [vmem:[#allocation2 + $0x1f8] sm:$0xf] }
 0x34d   : > { %v2693_v40 = vmax.f32 %v2548_v11, %v2602_v39  ;;  %v2745_v25 = vsel %vm2712_vm5, %v2743_v61, %v2744_v20  ;;  %v2888_v51 = vrot.slane %v12578_v1, 7  ;;  %v2889_v6 = vrot.slane %v12579_v55, 7 }
 0x34e   : > { %v2891_v56 = vrot.slane %v12580_v48, 7  ;;  %v3060_v47 = vrot.slane %v1898_v53, 1  ;;  %v3140_v32 = vrot.slane %v1898_v53, 2  ;;  %v3220_v41 = vrot.slane %v1898_v53, 3 }
 0x34f   : > { %v3300_v7 = vrot.slane %v1898_v53, 4  ;;  %v2747_v4 = vsel %vm2712_vm5, %v2744_v20, %v2746_v35  ;;  %v2837_v49 = vmax.f32 %v2692_v14, %v2745_v25  ;;  %v2890_v46 = vsel %vm2857_vm6, %v2888_v51, %v2889_v6  ;;  %v1580_v14 = vld [vmem:[#allocation2 + $0x218] sm:$0xf] }
 0x350   : > { %v2892_v21 = vsel %vm2857_vm6, %v2889_v6, %v2891_v56  ;;  %v3061_v1 = vsel %vm1987_vm0, %v2016_v57, %v3060_v47  ;;  %v3141_v10 = vsel %vm2132_vm1, %v2161_v38, %v3140_v32  ;;  %v3221_v59 = vsel %vm2277_vm2, %v2306_v19, %v3220_v41  ;;  %v1193_v57 = vld [vmem:[#allocation2 + $0x1b8] sm:$0xf] }
 0x351   : > { %v3301_v31 = vsel %vm2422_vm3, %v2451_v24, %v3300_v7  ;;  %v3109_v12 = vmax.f32 %v11229_v28, %v3061_v1  ;;  %v2838_v52 = vmax.f32 %v2693_v40, %v2747_v4  ;;  %v2982_v13 = vmax.f32 %v2837_v49, %v2890_v46  ;;  %v1709_v47 = vld [vmem:[#allocation2 + $0x238] sm:$0xf] }
 0x352   : > { %v1000_v34 = vmax.f32 %v12581_v60, %v936_v26  ;;  %v2023_v27 = vrot.slane %v12582_v62, 1  ;;  %v2024_v38 = vrot.slane %v12583_v23, 1  ;;  %v2026_v8 = vrot.slane %v12584_v15, 1  ;;  %v1838_v1 = vld [vmem:[#allocation2 + $0x258] sm:$0xf] }
 0x353   : > { %v2168_v19 = vrot.slane %v12582_v62, 2  ;;  %v3189_v17 = vmax.f32 %v3109_v12, %v3141_v10  ;;  %v2983_v43 = vmax.f32 %v2838_v52, %v2892_v21  ;;  %v3014_v24 = vmax.f32 %v2982_v13, %v12579_v55 }
 0x354   : > { %v1128_v36 = vmax.f32 %v1000_v34, %v1064_v63  ;;  %v2025_v28 = vsel %vm1987_vm0, %v2023_v27, %v2024_v38  ;;  %v11303_v9 = vsel %vm1987_vm0, %v2024_v38, %v2026_v8  ;;  %v2169_v54 = vrot.slane %v12583_v23, 2 }
 0x355   : > { %v2171_v44 = vrot.slane %v12584_v15, 2  ;;  %v3269_v16 = vmax.f32 %v3189_v17, %v3221_v59  ;;  %v3110_v2 = vmax.f32 %v3014_v24, %v11221_v50  ;;  %v11309_v55 = vmax.f32 %v2983_v43, %v12580_v48 }
 0x356   : > { %v1257_v18 = vmax.f32 %v1128_v36, %v1193_v57  ;;  %v2114_v45 = vmax.f32 %v12582_v62, %v2025_v28  ;;  %v2115_v11 = vmax.f32 %v12583_v23, %v11303_v9  ;;  %v2170_v37 = vsel %vm2132_vm1, %v2168_v19, %v2169_v54 }
 0x357   : > { %v11318_v39 = vsel %vm2132_vm1, %v2169_v54, %v2171_v44  ;;  %v3349_v61 = vmax.f32 %v3269_v16, %v3301_v31  ;;  %v3190_v50 = vmax.f32 %v3110_v2, %v11240_v0  ;;  %v2313_v53 = vrot.slane %v12582_v62, 3  ;;  %v940_v54 = vld [vmem:[#allocation2 + $0x198] sm:$0xf] }
 0x358   : > { %v1386_v20 = vmax.f32 %v1257_v18, %v1322_v29  ;;  %v2259_v40 = vmax.f32 %v2114_v45, %v2170_v37  ;;  %v2260_v35 = vmax.f32 %v2115_v11, %v11318_v39  ;;  %v2314_v25 = vrot.slane %v12583_v23, 3 }
 0x359   : > { %v2316_v51 = vrot.slane %v12584_v15, 3  ;;  %3381 = vst [vmem:[%s8117_s25 + $0x160] sm:$0xff] %v3349_v61  ;;  %v3270_v6 = vmax.f32 %v3190_v50, %v11250_v22  ;;  %v2458_v26 = vrot.slane %v12582_v62, 4  ;;  %v2459_v0 = vrot.slane %v12583_v23, 4 }
 0x35a   : > { %v1515_v56 = vmax.f32 %v1386_v20, %v1451_v42  ;;  %v2315_v32 = vsel %vm2277_vm2, %v2313_v53, %v2314_v25  ;;  %v2461_v7 = vrot.slane %v12584_v15, 4  ;;  %v2603_v4 = vrot.slane %v12582_v62, 5 }
 0x35b   : > { %v11333_v41 = vsel %vm2277_vm2, %v2314_v25, %v2316_v51  ;;  %v3350_v22 = vmax.f32 %v3270_v6, %v11261_v5  ;;  %v2404_v46 = vmax.f32 %v2259_v40, %v2315_v32  ;;  %v2460_v10 = vsel %vm2422_vm3, %v2458_v26, %v2459_v0  ;;  %v12585_v6 = vld [vmem:[#allocation16_spill] sm:$0xff]  ;;  %v12586_v26 = vld [vmem:[#allocation29_spill] sm:$0xff] }
 0x35c   : > { %v1644_v49 = vmax.f32 %v1515_v56, %v1580_v14  ;;  %v2405_v21 = vmax.f32 %v2260_v35, %v11333_v41  ;;  %v11343_v59 = vsel %vm2422_vm3, %v2459_v0, %v2461_v7  ;;  %v2604_v31 = vrot.slane %v12583_v23, 5  ;;  %v1068_v14 = vld [vmem:[#allocation2 + $0x1b8] sm:$0xf] }
 0x35d   : > { %v2606_v63 = vrot.slane %v12584_v15, 5  ;;  %3382 = vst [vmem:[%s8117_s25 + $0x180] sm:$0xff] %v3350_v22  ;;  %v2549_v52 = vmax.f32 %v2404_v46, %v2460_v10  ;;  %v2748_v13 = vrot.slane %v12582_v62, 6  ;;  %v2749_v57 = vrot.slane %v12583_v23, 6  ;;  %v12588_v32 = vld [vmem:[#allocation44_spill] sm:$0xff] }
 0x35e   : > { %v1773_v12 = vmax.f32 %v1644_v49, %v1709_v47  ;;  %v2550_v5 = vmax.f32 %v2405_v21, %v11343_v59  ;;  %v2605_v60 = vsel %vm2567_vm4, %v2603_v4, %v2604_v31  ;;  %v2751_v27 = vrot.slane %v12584_v15, 6  ;;  %v12587_v47 = vld [vmem:[#allocation31_spill] sm:$0xff] }
 0x35f   : > { %v2607_v34 = vsel %vm2567_vm4, %v2604_v31, %v2606_v63  ;;  %v2694_v19 = vmax.f32 %v2549_v52, %v2605_v60  ;;  %v2893_v43 = vrot.slane %v12582_v62, 7  ;;  %v2750_v24 = vsel %vm2712_vm5, %v2748_v13, %v2749_v57  ;;  %v1455_v52 = vld [vmem:[#allocation2 + $0x218] sm:$0xf] }
 0x360   : > { %v1902_v38 = vmax.f32 %v1773_v12, %v1838_v1  ;;  %v2695_v17 = vmax.f32 %v2550_v5, %v2607_v34  ;;  %v2752_v36 = vsel %vm2712_vm5, %v2749_v57, %v2751_v27  ;;  %v2894_v29 = vrot.slane %v12583_v23, 7 }
 0x361   : > { %v2896_v28 = vrot.slane %v12584_v15, 7  ;;  %v2839_v45 = vmax.f32 %v2694_v19, %v2750_v24  ;;  %v1004_v56 = vmax.f32 %v12585_v6, %v940_v54  ;;  %v2028_v0 = vrot.slane %v12586_v26, 1  ;;  %v1584_v19 = vld [vmem:[#allocation2 + $0x238] sm:$0xf] }
 0x362   : > { %v3062_v16 = vrot.slane %v1902_v38, 1  ;;  %v3142_v2 = vrot.slane %v1902_v38, 2  ;;  %v3222_v18 = vrot.slane %v1902_v38, 3  ;;  %v3302_v42 = vrot.slane %v1902_v38, 4 }
 0x363   : > { %v2840_v11 = vmax.f32 %v2695_v17, %v2752_v36  ;;  %v2895_v37 = vsel %vm2857_vm6, %v2893_v43, %v2894_v29  ;;  %v2897_v61 = vsel %vm2857_vm6, %v2894_v29, %v2896_v28  ;;  %v2031_v4 = vrot.slane %v12588_v32, 1 }
 0x364   : > { %v3063_v62 = vsel %vm1987_vm0, %v2021_v58, %v3062_v16  ;;  %v3143_v50 = vsel %vm2132_vm1, %v2166_v3, %v3142_v2  ;;  %v3223_v20 = vsel %vm2277_vm2, %v2311_v30, %v3222_v18  ;;  %v3303_v53 = vsel %vm2422_vm3, %v2456_v33, %v3302_v42  ;;  %v1197_v58 = vld [vmem:[#allocation2 + $0x1d8] sm:$0xf] }
 0x365   : > { %v3111_v40 = vmax.f32 %v11309_v55, %v3063_v62  ;;  %v2984_v35 = vmax.f32 %v2839_v45, %v2895_v37  ;;  %v2985_v25 = vmax.f32 %v2840_v11, %v2897_v61  ;;  %v2029_v3 = vrot.slane %v12587_v47, 1  ;;  %v1326_v55 = vld [vmem:[#allocation2 + $0x1f8] sm:$0xf] }
 0x366   : > { %v2173_v30 = vrot.slane %v12586_v26, 2  ;;  %v1132_v33 = vmax.f32 %v1004_v56, %v1068_v14  ;;  %v2174_v1 = vrot.slane %v12587_v47, 2  ;;  %v2176_v10 = vrot.slane %v12588_v32, 2  ;;  %v1842_v62 = vld [vmem:[#allocation2 + $0x278] sm:$0xf] }
 0x367   : > { %v3191_v22 = vmax.f32 %v3111_v40, %v3143_v50  ;;  %v3016_v48 = vmax.f32 %v2984_v35, %v12583_v23  ;;  %v11381_v49 = vmax.f32 %v2985_v25, %v12584_v15  ;;  %v2030_v46 = vsel %vm1987_vm0, %v2028_v0, %v2029_v3  ;;  %v944_v40 = vld [vmem:[#allocation2 + $0x1b8] sm:$0xf] }
 0x368   : > { %v11387_v21 = vsel %vm1987_vm0, %v2029_v3, %v2031_v4  ;;  %v1261_v23 = vmax.f32 %v1132_v33, %v1197_v58  ;;  %v2116_v12 = vmax.f32 %v12586_v26, %v2030_v46  ;;  %v2175_v13 = vsel %vm2132_vm1, %v2173_v30, %v2174_v1 }
 0x369   : > { %v3271_v31 = vmax.f32 %v3191_v22, %v3223_v20  ;;  %v3112_v63 = vmax.f32 %v3016_v48, %v11303_v9  ;;  %v2117_v5 = vmax.f32 %v12587_v47, %v11387_v21  ;;  %v11399_v60 = vsel %vm2132_vm1, %v2174_v1, %v2176_v10 }
 0x36a   : > { %v2318_v34 = vrot.slane %v12586_v26, 3  ;;  %v1390_v27 = vmax.f32 %v1261_v23, %v1326_v55  ;;  %v2261_v38 = vmax.f32 %v2116_v12, %v2175_v13  ;;  %v2319_v43 = vrot.slane %v12587_v47, 3  ;;  %v1072_v13 = vld [vmem:[#allocation2 + $0x1d8] sm:$0xf] }
 0x36b   : > { %v3351_v57 = vmax.f32 %v3271_v31, %v3303_v53  ;;  %v3192_v9 = vmax.f32 %v3112_v63, %v11318_v39  ;;  %v2262_v17 = vmax.f32 %v2117_v5, %v11399_v60  ;;  %v2321_v24 = vrot.slane %v12588_v32, 3  ;;  %v1713_v39 = vld [vmem:[#allocation2 + $0x258] sm:$0xf]  ;;  %v12589_v31 = vld [vmem:[#allocation17_spill] sm:$0xff] }
 0x36c   : > { %v2463_v36 = vrot.slane %v12586_v26, 4  ;;  %v1519_v28 = vmax.f32 %v1390_v27, %v1455_v52  ;;  %v2464_v54 = vrot.slane %v12587_v47, 4  ;;  %v2466_v16 = vrot.slane %v12588_v32, 4 }
 0x36d   : > { %3383 = vst [vmem:[%s8117_s25 + $0x1a0] sm:$0xff] %v3351_v57  ;;  %v3272_v29 = vmax.f32 %v3192_v9, %v11333_v41  ;;  %v2320_v2 = vsel %vm2277_vm2, %v2318_v34, %v2319_v43  ;;  %v11415_v18 = vsel %vm2277_vm2, %v2319_v43, %v2321_v24  ;;  %v2608_v42 = vrot.slane %v12586_v26, 5  ;;  %v1201_v43 = vld [vmem:[#allocation2 + $0x1f8] sm:$0xf] }
 0x36e   : > { %v2609_v45 = vrot.slane %v12587_v47, 5  ;;  %v1648_v11 = vmax.f32 %v1519_v28, %v1584_v19  ;;  %v2406_v37 = vmax.f32 %v2261_v38, %v2320_v2  ;;  %v2407_v61 = vmax.f32 %v2262_v17, %v11415_v18 }
 0x36f   : > { %v3352_v41 = vmax.f32 %v3272_v29, %v11343_v59  ;;  %v2465_v50 = vsel %vm2422_vm3, %v2463_v36, %v2464_v54  ;;  %v11425_v20 = vsel %vm2422_vm3, %v2464_v54, %v2466_v16  ;;  %v2611_v14 = vrot.slane %v12588_v32, 5 }
 0x370   : > { %v2610_v53 = vsel %vm2567_vm4, %v2608_v42, %v2609_v45  ;;  %v1777_v35 = vmax.f32 %v1648_v11, %v1713_v39  ;;  %v2551_v59 = vmax.f32 %v2406_v37, %v2465_v50  ;;  %v2552_v25 = vmax.f32 %v2407_v61, %v11425_v20  ;;  %v1330_v39 = vld [vmem:[#allocation2 + $0x218] sm:$0xf]  ;;  %v12591_v42 = vld [vmem:[#allocation79_spill] sm:$0xff] }
 0x371   : > { %3384 = vst [vmem:[%s8117_s25 + $0x1c0] sm:$0xff] %v3352_v41  ;;  %v2753_v6 = vrot.slane %v12586_v26, 6  ;;  %v2612_v56 = vsel %vm2567_vm4, %v2609_v45, %v2611_v14  ;;  %v2754_v58 = vrot.slane %v12587_v47, 6  ;;  %v2756_v0 = vrot.slane %v12588_v32, 6 }
 0x372   : > { %v2898_v3 = vrot.slane %v12586_v26, 7  ;;  %v1906_v30 = vmax.f32 %v1777_v35, %v1842_v62  ;;  %v2696_v22 = vmax.f32 %v2551_v59, %v2610_v53  ;;  %v2697_v48 = vmax.f32 %v2552_v25, %v2612_v56  ;;  %v1588_v59 = vld [vmem:[#allocation2 + $0x258] sm:$0xf] }
 0x373   : > { %v2899_v33 = vrot.slane %v12587_v47, 7  ;;  %v2755_v55 = vsel %vm2712_vm5, %v2753_v6, %v2754_v58  ;;  %v2757_v46 = vsel %vm2712_vm5, %v2754_v58, %v2756_v0  ;;  %v2901_v1 = vrot.slane %v12588_v32, 7 }
 0x374   : > { %v1008_v63 = vmax.f32 %v12589_v31, %v944_v40  ;;  %v3064_v23 = vrot.slane %v1906_v30, 1  ;;  %v3144_v12 = vrot.slane %v1906_v30, 2  ;;  %v3224_v52 = vrot.slane %v1906_v30, 3 }
 0x375   : > { %v3304_v5 = vrot.slane %v1906_v30, 4  ;;  %v2841_v34 = vmax.f32 %v2696_v22, %v2755_v55  ;;  %v2842_v26 = vmax.f32 %v2697_v48, %v2757_v46  ;;  %v2900_v57 = vsel %vm2857_vm6, %v2898_v3, %v2899_v33  ;;  %v1717_v22 = vld [vmem:[#allocation2 + $0x278] sm:$0xf] }
 0x376   : > { %v2902_v9 = vsel %vm2857_vm6, %v2899_v33, %v2901_v1  ;;  %v3065_v27 = vsel %vm1987_vm0, %v2026_v8, %v3064_v23  ;;  %v3145_v38 = vsel %vm2132_vm1, %v2171_v44, %v3144_v12  ;;  %v3225_v19 = vsel %vm2277_vm2, %v2316_v51, %v3224_v52  ;;  %v12590_v8 = vld [vmem:[#allocation77_spill] sm:$0xff]  ;;  %v12592_v44 = vld [vmem:[#allocation80_spill] sm:$0xff] }
 0x377   : > { %v3305_v17 = vsel %vm2422_vm3, %v2461_v7, %v3304_v5  ;;  %v3113_v36 = vmax.f32 %v11381_v49, %v3065_v27  ;;  %v2986_v29 = vmax.f32 %v2841_v34, %v2900_v57  ;;  %v2987_v28 = vmax.f32 %v2842_v26, %v2902_v9  ;;  %v1459_v49 = vld [vmem:[#allocation2 + $0x238] sm:$0xf] }
 0x378   : > { %v1136_v54 = vmax.f32 %v1008_v63, %v1072_v13  ;;  %v2033_v2 = vrot.slane %v12590_v8, 1  ;;  %v2034_v45 = vrot.slane %v12591_v42, 1  ;;  %v2036_v41 = vrot.slane %v12592_v44, 1  ;;  %v1846_v23 = vld [vmem:[#allocation2 + $0x298] sm:$0xf] }
 0x379   : > { %v2178_v11 = vrot.slane %v12590_v8, 2  ;;  %v3193_v51 = vmax.f32 %v3113_v36, %v3145_v38  ;;  %v3018_v15 = vmax.f32 %v2986_v29, %v12587_v47  ;;  %v11462_v7 = vmax.f32 %v2987_v28, %v12588_v32 }
 0x37a   : > { %v1265_v37 = vmax.f32 %v1136_v54, %v1201_v43  ;;  %v2035_v61 = vsel %vm1987_vm0, %v2033_v2, %v2034_v45  ;;  %v11468_v62 = vsel %vm1987_vm0, %v2034_v45, %v2036_v41  ;;  %v2179_v50 = vrot.slane %v12591_v42, 2 }
 0x37b   : > { %v2181_v53 = vrot.slane %v12592_v44, 2  ;;  %v3273_v14 = vmax.f32 %v3193_v51, %v3225_v19  ;;  %v3114_v40 = vmax.f32 %v3018_v15, %v11387_v21  ;;  %v2118_v35 = vmax.f32 %v12590_v8, %v2035_v61  ;;  %v948_v15 = vld [vmem:[#allocation2 + $0x1d8] sm:$0xf] }
 0x37c   : > { %v1394_v47 = vmax.f32 %v1265_v37, %v1330_v39  ;;  %v2119_v25 = vmax.f32 %v12591_v42, %v11468_v62  ;;  %v2180_v6 = vsel %vm2132_vm1, %v2178_v11, %v2179_v50  ;;  %v2323_v58 = vrot.slane %v12590_v8, 3 }
 0x37d   : > { %v11480_v56 = vsel %vm2132_vm1, %v2179_v50, %v2181_v53  ;;  %v3353_v0 = vmax.f32 %v3273_v14, %v3305_v17  ;;  %v3194_v21 = vmax.f32 %v3114_v40, %v11399_v60  ;;  %v2263_v30 = vmax.f32 %v2118_v35, %v2180_v6 }
 0x37e   : > { %v1523_v3 = vmax.f32 %v1394_v47, %v1459_v49  ;;  %v2264_v48 = vmax.f32 %v2119_v25, %v11480_v56  ;;  %v2324_v33 = vrot.slane %v12591_v42, 3  ;;  %v2326_v55 = vrot.slane %v12592_v44, 3 }
 0x37f   : > { %v2468_v46 = vrot.slane %v12590_v8, 4  ;;  %3385 = vst [vmem:[%s8117_s25 + $0x1e0] sm:$0xff] %v3353_v0  ;;  %v3274_v1 = vmax.f32 %v3194_v21, %v11415_v18  ;;  %v2469_v63 = vrot.slane %v12591_v42, 4  ;;  %v2471_v60 = vrot.slane %v12592_v44, 4  ;;  %v12593_v0 = vld [vmem:[#allocation18_spill] sm:$0xff] }
 0x380   : > { %v1652_v31 = vmax.f32 %v1523_v3, %v1588_v59  ;;  %v2325_v12 = vsel %vm2277_vm2, %v2323_v58, %v2324_v33  ;;  %v11496_v52 = vsel %vm2277_vm2, %v2324_v33, %v2326_v55  ;;  %v2613_v5 = vrot.slane %v12590_v8, 5  ;;  %v1076_v58 = vld [vmem:[#allocation2 + $0x1f8] sm:$0xf] }
 0x381   : > { %v2614_v13 = vrot.slane %v12591_v42, 5  ;;  %v3354_v18 = vmax.f32 %v3274_v1, %v11425_v20  ;;  %v2408_v26 = vmax.f32 %v2263_v30, %v2325_v12  ;;  %v2409_v57 = vmax.f32 %v2264_v48, %v11496_v52  ;;  %v12595_v30 = vld [vmem:[#allocation81_spill] sm:$0xff]  ;;  %v1205_v48 = vld [vmem:[#allocation2 + $0x218] sm:$0xf] }
 0x382   : > { %v1781_v34 = vmax.f32 %v1652_v31, %v1717_v22  ;;  %v2470_v9 = vsel %vm2422_vm3, %v2468_v46, %v2469_v63  ;;  %v11506_v27 = vsel %vm2422_vm3, %v2469_v63, %v2471_v60  ;;  %v2616_v19 = vrot.slane %v12592_v44, 5 }
 0x383   : > { %v2615_v38 = vsel %vm2567_vm4, %v2613_v5, %v2614_v13  ;;  %3386 = vst [vmem:[%s8117_s25 + $0x200] sm:$0xff] %v3354_v18  ;;  %v2553_v43 = vmax.f32 %v2408_v26, %v2470_v9  ;;  %v2554_v20 = vmax.f32 %v2409_v57, %v11506_v27  ;;  %v2758_v36 = vrot.slane %v12590_v8, 6  ;;  %v1334_v5 = vld [vmem:[#allocation2 + $0x238] sm:$0xf] }
 0x384   : > { %v1910_v17 = vmax.f32 %v1781_v34, %v1846_v23  ;;  %v2617_v29 = vsel %vm2567_vm4, %v2614_v13, %v2616_v19  ;;  %v2759_v28 = vrot.slane %v12591_v42, 6  ;;  %v2761_v54 = vrot.slane %v12592_v44, 6  ;;  %v1463_v19 = vld [vmem:[#allocation2 + $0x258] sm:$0xf] }
 0x385   : > { %v2903_v39 = vrot.slane %v12590_v8, 7  ;;  %v2698_v37 = vmax.f32 %v2553_v43, %v2615_v38  ;;  %v2699_v49 = vmax.f32 %v2554_v20, %v2617_v29  ;;  %v2904_v6 = vrot.slane %v12591_v42, 7 }
 0x386   : > { %v3066_v2 = vrot.slane %v1910_v17, 1  ;;  %v3146_v45 = vrot.slane %v1910_v17, 2  ;;  %v3226_v11 = vrot.slane %v1910_v17, 3  ;;  %v3306_v51 = vrot.slane %v1910_v17, 4 }
 0x387   : > { %v2760_v61 = vsel %vm2712_vm5, %v2758_v36, %v2759_v28  ;;  %v2762_v50 = vsel %vm2712_vm5, %v2759_v28, %v2761_v54  ;;  %v1012_v21 = vmax.f32 %v12593_v0, %v948_v15  ;;  %v2039_v22 = vrot.slane %v12595_v30, 1  ;;  %v1592_v54 = vld [vmem:[#allocation2 + $0x278] sm:$0xf] }
 0x388   : > { %v3067_v14 = vsel %vm1987_vm0, %v2031_v4, %v3066_v2  ;;  %v3147_v40 = vsel %vm2132_vm1, %v2176_v10, %v3146_v45  ;;  %v3227_v8 = vsel %vm2277_vm2, %v2321_v24, %v3226_v11  ;;  %v3307_v47 = vsel %vm2422_vm3, %v2466_v16, %v3306_v51  ;;  %v12594_v10 = vld [vmem:[#allocation78_spill] sm:$0xff] }
 0x389   : > { %v3115_v35 = vmax.f32 %v11462_v7, %v3067_v14  ;;  %v2843_v59 = vmax.f32 %v2698_v37, %v2760_v61  ;;  %v2844_v25 = vmax.f32 %v2699_v49, %v2762_v50  ;;  %v2906_v4 = vrot.slane %v12592_v44, 7  ;;  %v12596_v16 = vld [vmem:[#allocation82_spill] sm:$0xff]  ;;  %v1721_v49 = vld [vmem:[#allocation2 + $0x298] sm:$0xf] }
 0x38a   : > { %v2038_v3 = vrot.slane %v12594_v10, 1  ;;  %v2905_v32 = vsel %vm2857_vm6, %v2903_v39, %v2904_v6  ;;  %v2041_v33 = vrot.slane %v12596_v16, 1  ;;  %v2183_v7 = vrot.slane %v12594_v10, 2 }
 0x38b   : > { %v3195_v24 = vmax.f32 %v3115_v35, %v3147_v40  ;;  %v2907_v46 = vsel %vm2857_vm6, %v2904_v6, %v2906_v4  ;;  %v2988_v1 = vmax.f32 %v2843_v59, %v2905_v32  ;;  %v1140_v31 = vmax.f32 %v1012_v21, %v1076_v58  ;;  %v1850_v59 = vld [vmem:[#allocation2 + $0x2b8] sm:$0xf] }
 0x38c   : > { %v2040_v63 = vsel %vm1987_vm0, %v2038_v3, %v2039_v22  ;;  %v2989_v12 = vmax.f32 %v2844_v25, %v2907_v46  ;;  %v11545_v13 = vsel %vm1987_vm0, %v2039_v22, %v2041_v33  ;;  %v2184_v9 = vrot.slane %v12595_v30, 2 }
 0x38d   : > { %v3275_v23 = vmax.f32 %v3195_v24, %v3227_v8  ;;  %v2120_v18 = vmax.f32 %v12594_v10, %v2040_v63  ;;  %v3020_v34 = vmax.f32 %v2988_v1, %v12591_v42  ;;  %v1269_v26 = vmax.f32 %v1140_v31, %v1205_v48 }
 0x38e   : > { %v2121_v57 = vmax.f32 %v12595_v30, %v11545_v13  ;;  %v11553_v17 = vmax.f32 %v2989_v12, %v12592_v44  ;;  %v2186_v43 = vrot.slane %v12596_v16, 2  ;;  %v2328_v20 = vrot.slane %v12594_v10, 3 }
 0x38f   : > { %v3355_v38 = vmax.f32 %v3275_v23, %v3307_v47  ;;  %v3116_v36 = vmax.f32 %v3020_v34, %v11468_v62  ;;  %v1398_v29 = vmax.f32 %v1269_v26, %v1334_v5  ;;  %v2185_v42 = vsel %vm2132_vm1, %v2183_v7, %v2184_v9  ;;  %v952_v5 = vld [vmem:[#allocation2 + $0x1f8] sm:$0xf] }
 0x390   : > { %v2329_v28 = vrot.slane %v12595_v30, 3  ;;  %v11564_v39 = vsel %vm2132_vm1, %v2184_v9, %v2186_v43  ;;  %v2265_v2 = vmax.f32 %v2120_v18, %v2185_v42  ;;  %v2331_v45 = vrot.slane %v12596_v16, 3 }
 0x391   : > { %3387 = vst [vmem:[%s8117_s25 + $0x220] sm:$0xff] %v3355_v38  ;;  %v2473_v11 = vrot.slane %v12594_v10, 4  ;;  %v3196_v51 = vmax.f32 %v3116_v36, %v11480_v56  ;;  %v1527_v62 = vmax.f32 %v1398_v29, %v1463_v19  ;;  %v2266_v15 = vmax.f32 %v2121_v57, %v11564_v39 }
 0x392   : > { %v2330_v37 = vsel %vm2277_vm2, %v2328_v20, %v2329_v28  ;;  %v11574_v61 = vsel %vm2277_vm2, %v2329_v28, %v2331_v45  ;;  %v2474_v14 = vrot.slane %v12595_v30, 4  ;;  %v2476_v40 = vrot.slane %v12596_v16, 4  ;;  %v1080_v28 = vld [vmem:[#allocation2 + $0x218] sm:$0xf] }
 0x393   : > { %v2410_v50 = vmax.f32 %v2265_v2, %v2330_v37  ;;  %v3276_v8 = vmax.f32 %v3196_v51, %v11496_v52  ;;  %v1656_v47 = vmax.f32 %v1527_v62, %v1592_v54  ;;  %v2411_v56 = vmax.f32 %v2266_v15, %v11574_v61  ;;  %v12597_v51 = vld [vmem:[#allocation19_spill] sm:$0xff] }
 0x394   : > { %v2618_v35 = vrot.slane %v12594_v10, 5  ;;  %v2475_v25 = vsel %vm2422_vm3, %v2473_v11, %v2474_v14  ;;  %v11585_v6 = vsel %vm2422_vm3, %v2474_v14, %v2476_v40  ;;  %v2619_v58 = vrot.slane %v12595_v30, 5  ;;  %v12598_v15 = vld [vmem:[#allocation83_spill] sm:$0xff] }
 0x395   : > { %v2621_v4 = vrot.slane %v12596_v16, 5  ;;  %v3356_v52 = vmax.f32 %v3276_v8, %v11506_v27  ;;  %v1785_v0 = vmax.f32 %v1656_v47, %v1721_v49  ;;  %v2555_v21 = vmax.f32 %v2410_v50, %v2475_v25  ;;  %v12599_v49 = vld [vmem:[#allocation84_spill] sm:$0xff]  ;;  %v12600_v50 = vld [vmem:[#allocation85_spill] sm:$0xff] }
 0x396   : > { %v2556_v3 = vmax.f32 %v2411_v56, %v11585_v6  ;;  %v2620_v22 = vsel %vm2567_vm4, %v2618_v35, %v2619_v58  ;;  %v2763_v32 = vrot.slane %v12594_v10, 6  ;;  %v2764_v48 = vrot.slane %v12595_v30, 6  ;;  %v1338_v56 = vld [vmem:[#allocation2 + $0x258] sm:$0xf] }
 0x397   : > { %v2622_v24 = vsel %vm2567_vm4, %v2619_v58, %v2621_v4  ;;  %3388 = vst [vmem:[%s8117_s25 + $0x240] sm:$0xff] %v3356_v52  ;;  %v1914_v7 = vmax.f32 %v1785_v0, %v1850_v59  ;;  %v2700_v46 = vmax.f32 %v2555_v21, %v2620_v22  ;;  %v2766_v31 = vrot.slane %v12596_v16, 6  ;;  %v1467_v0 = vld [vmem:[#allocation2 + $0x278] sm:$0xf] }
 0x398   : > { %v2701_v1 = vmax.f32 %v2556_v3, %v2622_v24  ;;  %v2765_v27 = vsel %vm2712_vm5, %v2763_v32, %v2764_v48  ;;  %v2908_v63 = vrot.slane %v12594_v10, 7  ;;  %v2909_v23 = vrot.slane %v12595_v30, 7 }
 0x399   : > { %v2911_v12 = vrot.slane %v12596_v16, 7  ;;  %v3068_v18 = vrot.slane %v1914_v7, 1  ;;  %v3148_v34 = vrot.slane %v1914_v7, 2  ;;  %v3228_v26 = vrot.slane %v1914_v7, 3 }
 0x39a   : > { %v3308_v57 = vrot.slane %v1914_v7, 4  ;;  %v2767_v9 = vsel %vm2712_vm5, %v2764_v48, %v2766_v31  ;;  %v2845_v38 = vmax.f32 %v2700_v46, %v2765_v27  ;;  %v2910_v19 = vsel %vm2857_vm6, %v2908_v63, %v2909_v23  ;;  %v1596_v46 = vld [vmem:[#allocation2 + $0x298] sm:$0xf] }
 0x39b   : > { %v2912_v20 = vsel %vm2857_vm6, %v2909_v23, %v2911_v12  ;;  %v3069_v10 = vsel %vm1987_vm0, %v2036_v41, %v3068_v18  ;;  %v3149_v36 = vsel %vm2132_vm1, %v2181_v53, %v3148_v34  ;;  %v3229_v29 = vsel %vm2277_vm2, %v2326_v55, %v3228_v26  ;;  %v1209_v41 = vld [vmem:[#allocation2 + $0x238] sm:$0xf] }
 0x39c   : > { %v3309_v42 = vsel %vm2422_vm3, %v2471_v60, %v3308_v57  ;;  %v3117_v54 = vmax.f32 %v11553_v17, %v3069_v10  ;;  %v2846_v2 = vmax.f32 %v2701_v1, %v2767_v9  ;;  %v2990_v11 = vmax.f32 %v2845_v38, %v2910_v19  ;;  %v1725_v18 = vld [vmem:[#allocation2 + $0x2b8] sm:$0xf] }
 0x39d   : > { %v1016_v62 = vmax.f32 %v12597_v51, %v952_v5  ;;  %v2043_v37 = vrot.slane %v12598_v15, 1  ;;  %v2044_v53 = vrot.slane %v12599_v49, 1  ;;  %v2046_v14 = vrot.slane %v12600_v50, 1  ;;  %v1854_v10 = vld [vmem:[#allocation2 + $0x2d8] sm:$0xf] }
 0x39e   : > { %v2188_v55 = vrot.slane %v12598_v15, 2  ;;  %v3197_v8 = vmax.f32 %v3117_v54, %v3149_v36  ;;  %v2991_v44 = vmax.f32 %v2846_v2, %v2912_v20  ;;  %v3022_v60 = vmax.f32 %v2990_v11, %v12595_v30 }
 0x39f   : > { %v1144_v47 = vmax.f32 %v1016_v62, %v1080_v28  ;;  %v2045_v17 = vsel %vm1987_vm0, %v2043_v37, %v2044_v53  ;;  %v11627_v35 = vsel %vm1987_vm0, %v2044_v53, %v2046_v14  ;;  %v2189_v59 = vrot.slane %v12599_v49, 2 }
 0x3a0   : > { %v2191_v25 = vrot.slane %v12600_v50, 2  ;;  %v3277_v58 = vmax.f32 %v3197_v8, %v3229_v29  ;;  %v3118_v4 = vmax.f32 %v3022_v60, %v11545_v13  ;;  %v11633_v30 = vmax.f32 %v2991_v44, %v12596_v16 }
 0x3a1   : > { %v1273_v52 = vmax.f32 %v1144_v47, %v1209_v41  ;;  %v2122_v21 = vmax.f32 %v12598_v15, %v2045_v17  ;;  %v2123_v3 = vmax.f32 %v12599_v49, %v11627_v35  ;;  %v2190_v22 = vsel %vm2132_vm1, %v2188_v55, %v2189_v59 }
 0x3a2   : > { %v11642_v24 = vsel %vm2132_vm1, %v2189_v59, %v2191_v25  ;;  %v3357_v32 = vmax.f32 %v3277_v58, %v3309_v42  ;;  %v3198_v13 = vmax.f32 %v3118_v4, %v11564_v39  ;;  %v2333_v7 = vrot.slane %v12598_v15, 3  ;;  %v956_v59 = vld [vmem:[#allocation2 + $0x218] sm:$0xf] }
 0x3a3   : > { %v1402_v48 = vmax.f32 %v1273_v52, %v1338_v56  ;;  %v2267_v1 = vmax.f32 %v2122_v21, %v2190_v22  ;;  %v2268_v31 = vmax.f32 %v2123_v3, %v11642_v24  ;;  %v2334_v27 = vrot.slane %v12599_v49, 3 }
 0x3a4   : > { %v2336_v63 = vrot.slane %v12600_v50, 3  ;;  %3389 = vst [vmem:[%s8117_s25 + $0x260] sm:$0xff] %v3357_v32  ;;  %v3278_v23 = vmax.f32 %v3198_v13, %v11574_v61  ;;  %v2478_v5 = vrot.slane %v12598_v15, 4  ;;  %v2479_v39 = vrot.slane %v12599_v49, 4 }
 0x3a5   : > { %v1531_v12 = vmax.f32 %v1402_v48, %v1467_v0  ;;  %v2335_v34 = vsel %vm2277_vm2, %v2333_v7, %v2334_v27  ;;  %v2481_v57 = vrot.slane %v12600_v50, 4  ;;  %v2623_v9 = vrot.slane %v12598_v15, 5 }
 0x3a6   : > { %v11657_v26 = vsel %vm2277_vm2, %v2334_v27, %v2336_v63  ;;  %v3358_v61 = vmax.f32 %v3278_v23, %v11585_v6  ;;  %v2412_v19 = vmax.f32 %v2267_v1, %v2335_v34  ;;  %v2480_v36 = vsel %vm2422_vm3, %v2478_v5, %v2479_v39  ;;  %v12601_v23 = vld [vmem:[#allocation20_spill] sm:$0xff]  ;;  %v12602_v5 = vld [vmem:[#allocation86_spill] sm:$0xff] }
 0x3a7   : > { %v1660_v38 = vmax.f32 %v1531_v12, %v1596_v46  ;;  %v2413_v20 = vmax.f32 %v2268_v31, %v11657_v26  ;;  %v11667_v29 = vsel %vm2422_vm3, %v2479_v39, %v2481_v57  ;;  %v2624_v42 = vrot.slane %v12599_v49, 5  ;;  %v1084_v46 = vld [vmem:[#allocation2 + $0x238] sm:$0xf] }
 0x3a8   : > { %v2626_v28 = vrot.slane %v12600_v50, 5  ;;  %3390 = vst [vmem:[%s8117_s25 + $0x280] sm:$0xff] %v3358_v61  ;;  %v2557_v2 = vmax.f32 %v2412_v19, %v2480_v36  ;;  %v2768_v11 = vrot.slane %v12598_v15, 6  ;;  %v2769_v41 = vrot.slane %v12599_v49, 6  ;;  %v12604_v34 = vld [vmem:[#allocation88_spill] sm:$0xff] }
 0x3a9   : > { %v1789_v54 = vmax.f32 %v1660_v38, %v1725_v18  ;;  %v2558_v6 = vmax.f32 %v2413_v20, %v11667_v29  ;;  %v2625_v51 = vsel %vm2567_vm4, %v2623_v9, %v2624_v42  ;;  %v2771_v37 = vrot.slane %v12600_v50, 6  ;;  %v12603_v18 = vld [vmem:[#allocation87_spill] sm:$0xff] }
 0x3aa   : > { %v2627_v62 = vsel %vm2567_vm4, %v2624_v42, %v2626_v28  ;;  %v2702_v55 = vmax.f32 %v2557_v2, %v2625_v51  ;;  %v2913_v44 = vrot.slane %v12598_v15, 7  ;;  %v2770_v60 = vsel %vm2712_vm5, %v2768_v11, %v2769_v41  ;;  %v1471_v2 = vld [vmem:[#allocation2 + $0x298] sm:$0xf] }
 0x3ab   : > { %v1918_v53 = vmax.f32 %v1789_v54, %v1854_v10  ;;  %v2703_v8 = vmax.f32 %v2558_v6, %v2627_v62  ;;  %v2772_v47 = vsel %vm2712_vm5, %v2769_v41, %v2771_v37  ;;  %v2914_v56 = vrot.slane %v12599_v49, 7 }
 0x3ac   : > { %v2916_v17 = vrot.slane %v12600_v50, 7  ;;  %v2847_v21 = vmax.f32 %v2702_v55, %v2770_v60  ;;  %v1020_v12 = vmax.f32 %v12601_v23, %v956_v59  ;;  %v2048_v39 = vrot.slane %v12602_v5, 1  ;;  %v1600_v55 = vld [vmem:[#allocation2 + $0x2b8] sm:$0xf] }
 0x3ad   : > { %v3070_v58 = vrot.slane %v1918_v53, 1  ;;  %v3150_v4 = vrot.slane %v1918_v53, 2  ;;  %v3230_v52 = vrot.slane %v1918_v53, 3  ;;  %v3310_v0 = vrot.slane %v1918_v53, 4 }
 0x3ae   : > { %v2848_v3 = vmax.f32 %v2703_v8, %v2772_v47  ;;  %v2915_v22 = vsel %vm2857_vm6, %v2913_v44, %v2914_v56  ;;  %v2917_v32 = vsel %vm2857_vm6, %v2914_v56, %v2916_v17  ;;  %v2051_v9 = vrot.slane %v12604_v34, 1 }
 0x3af   : > { %v3071_v15 = vsel %vm1987_vm0, %v2041_v33, %v3070_v58  ;;  %v3151_v13 = vsel %vm2132_vm1, %v2186_v43, %v3150_v4  ;;  %v3231_v48 = vsel %vm2277_vm2, %v2331_v45, %v3230_v52  ;;  %v3311_v7 = vsel %vm2422_vm3, %v2476_v40, %v3310_v0  ;;  %v1213_v33 = vld [vmem:[#allocation2 + $0x258] sm:$0xf] }
 0x3b0   : > { %v3119_v1 = vmax.f32 %v11633_v30, %v3071_v15  ;;  %v2992_v31 = vmax.f32 %v2847_v21, %v2915_v22  ;;  %v2993_v27 = vmax.f32 %v2848_v3, %v2917_v32  ;;  %v2049_v43 = vrot.slane %v12603_v18, 1  ;;  %v1342_v30 = vld [vmem:[#allocation2 + $0x278] sm:$0xf] }
 0x3b1   : > { %v2193_v45 = vrot.slane %v12602_v5, 2  ;;  %v1148_v40 = vmax.f32 %v1020_v12, %v1084_v46  ;;  %v2194_v10 = vrot.slane %v12603_v18, 2  ;;  %v2196_v36 = vrot.slane %v12604_v34, 2  ;;  %v1858_v15 = vld [vmem:[#allocation2 + $0x2f8] sm:$0xf] }
 0x3b2   : > { %v3199_v61 = vmax.f32 %v3119_v1, %v3151_v13  ;;  %v3024_v16 = vmax.f32 %v2992_v31, %v12599_v49  ;;  %v11705_v38 = vmax.f32 %v2993_v27, %v12600_v50  ;;  %v2050_v19 = vsel %vm1987_vm0, %v2048_v39, %v2049_v43  ;;  %v960_v1 = vld [vmem:[#allocation2 + $0x238] sm:$0xf] }
 0x3b3   : > { %v11711_v20 = vsel %vm1987_vm0, %v2049_v43, %v2051_v9  ;;  %v1277_v49 = vmax.f32 %v1148_v40, %v1213_v33  ;;  %v2124_v54 = vmax.f32 %v12602_v5, %v2050_v19  ;;  %v2195_v11 = vsel %vm2132_vm1, %v2193_v45, %v2194_v10 }
 0x3b4   : > { %v3279_v42 = vmax.f32 %v3199_v61, %v3231_v48  ;;  %v3120_v28 = vmax.f32 %v3024_v16, %v11627_v35  ;;  %v2125_v6 = vmax.f32 %v12603_v18, %v11711_v20  ;;  %v11723_v51 = vsel %vm2132_vm1, %v2194_v10, %v2196_v36 }
 0x3b5   : > { %v2338_v62 = vrot.slane %v12602_v5, 3  ;;  %v1406_v37 = vmax.f32 %v1277_v49, %v1342_v30  ;;  %v2269_v53 = vmax.f32 %v2124_v54, %v2195_v11  ;;  %v2339_v44 = vrot.slane %v12603_v18, 3  ;;  %v1088_v11 = vld [vmem:[#allocation2 + $0x258] sm:$0xf] }
 0x3b6   : > { %v3359_v41 = vmax.f32 %v3279_v42, %v3311_v7  ;;  %v3200_v35 = vmax.f32 %v3120_v28, %v11642_v24  ;;  %v2270_v8 = vmax.f32 %v2125_v6, %v11723_v51  ;;  %v2341_v60 = vrot.slane %v12604_v34, 3  ;;  %v1729_v24 = vld [vmem:[#allocation2 + $0x2d8] sm:$0xf]  ;;  %v12605_v42 = vld [vmem:[#allocation21_spill] sm:$0xff] }
 0x3b7   : > { %v2483_v47 = vrot.slane %v12602_v5, 4  ;;  %v1535_v17 = vmax.f32 %v1406_v37, %v1471_v2  ;;  %v2484_v59 = vrot.slane %v12603_v18, 4  ;;  %v2486_v58 = vrot.slane %v12604_v34, 4 }
 0x3b8   : > { %3391 = vst [vmem:[%s8117_s25 + $0x2a0] sm:$0xff] %v3359_v41  ;;  %v3280_v56 = vmax.f32 %v3200_v35, %v11657_v26  ;;  %v2340_v4 = vsel %vm2277_vm2, %v2338_v62, %v2339_v44  ;;  %v11739_v52 = vsel %vm2277_vm2, %v2339_v44, %v2341_v60  ;;  %v2628_v0 = vrot.slane %v12602_v5, 5  ;;  %v1217_v44 = vld [vmem:[#allocation2 + $0x278] sm:$0xf] }
 0x3b9   : > { %v2629_v21 = vrot.slane %v12603_v18, 5  ;;  %v1664_v3 = vmax.f32 %v1535_v17, %v1600_v55  ;;  %v2414_v22 = vmax.f32 %v2269_v53, %v2340_v4  ;;  %v2415_v32 = vmax.f32 %v2270_v8, %v11739_v52 }
 0x3ba   : > { %v3360_v26 = vmax.f32 %v3280_v56, %v11667_v29  ;;  %v2485_v13 = vsel %vm2422_vm3, %v2483_v47, %v2484_v59  ;;  %v11749_v48 = vsel %vm2422_vm3, %v2484_v59, %v2486_v58  ;;  %v2631_v46 = vrot.slane %v12604_v34, 5 }
 0x3bb   : > { %v2630_v7 = vsel %vm2567_vm4, %v2628_v0, %v2629_v21  ;;  %v1793_v31 = vmax.f32 %v1664_v3, %v1729_v24  ;;  %v2559_v29 = vmax.f32 %v2414_v22, %v2485_v13  ;;  %v2560_v27 = vmax.f32 %v2415_v32, %v11749_v48  ;;  %v1346_v24 = vld [vmem:[#allocation2 + $0x298] sm:$0xf]  ;;  %v12607_v0 = vld [vmem:[#allocation90_spill] sm:$0xff] }
 0x3bc   : > { %3392 = vst [vmem:[%s8117_s25 + $0x2c0] sm:$0xff] %v3360_v26  ;;  %v2773_v23 = vrot.slane %v12602_v5, 6  ;;  %v2632_v12 = vsel %vm2567_vm4, %v2629_v21, %v2631_v46  ;;  %v2774_v33 = vrot.slane %v12603_v18, 6  ;;  %v2776_v39 = vrot.slane %v12604_v34, 6 }
 0x3bd   : > { %v2918_v43 = vrot.slane %v12602_v5, 7  ;;  %v1922_v45 = vmax.f32 %v1793_v31, %v1858_v15  ;;  %v2704_v61 = vmax.f32 %v2559_v29, %v2630_v7  ;;  %v2705_v16 = vmax.f32 %v2560_v27, %v2632_v12  ;;  %v1604_v29 = vld [vmem:[#allocation2 + $0x2d8] sm:$0xf] }
 0x3be   : > { %v2919_v40 = vrot.slane %v12603_v18, 7  ;;  %v2775_v30 = vsel %vm2712_vm5, %v2773_v23, %v2774_v33  ;;  %v2777_v19 = vsel %vm2712_vm5, %v2774_v33, %v2776_v39  ;;  %v2921_v10 = vrot.slane %v12604_v34, 7 }
 0x3bf   : > { %v1024_v28 = vmax.f32 %v12605_v42, %v960_v1  ;;  %v3072_v49 = vrot.slane %v1922_v45, 1  ;;  %v3152_v54 = vrot.slane %v1922_v45, 2  ;;  %v3232_v2 = vrot.slane %v1922_v45, 3 }
 0x3c0   : > { %v3312_v6 = vrot.slane %v1922_v45, 4  ;;  %v2849_v62 = vmax.f32 %v2704_v61, %v2775_v30  ;;  %v2850_v5 = vmax.f32 %v2705_v16, %v2777_v19  ;;  %v2920_v41 = vsel %vm2857_vm6, %v2918_v43, %v2919_v40  ;;  %v1733_v61 = vld [vmem:[#allocation2 + $0x2f8] sm:$0xf] }
 0x3c1   : > { %v2922_v35 = vsel %vm2857_vm6, %v2919_v40, %v2921_v10  ;;  %v3073_v37 = vsel %vm1987_vm0, %v2046_v14, %v3072_v49  ;;  %v3153_v53 = vsel %vm2132_vm1, %v2191_v25, %v3152_v54  ;;  %v3233_v55 = vsel %vm2277_vm2, %v2336_v63, %v3232_v2  ;;  %v12606_v14 = vld [vmem:[#allocation89_spill] sm:$0xff]  ;;  %v12608_v25 = vld [vmem:[#allocation91_spill] sm:$0xff]  ;;  %v1862_v49 = vld [vmem:[#allocation2 + $0x318] sm:$0xf] }
 0x3c2   : > { %v3313_v8 = vsel %vm2422_vm3, %v2481_v57, %v3312_v6  ;;  %v3121_v47 = vmax.f32 %v11705_v38, %v3073_v37  ;;  %v2994_v56 = vmax.f32 %v2849_v62, %v2920_v41  ;;  %v2995_v17 = vmax.f32 %v2850_v5, %v2922_v35  ;;  %v1475_v38 = vld [vmem:[#allocation2 + $0x2b8] sm:$0xf] }
 0x3c3   : > { %v1152_v59 = vmax.f32 %v1024_v28, %v1088_v11  ;;  %v2053_v4 = vrot.slane %v12606_v14, 1  ;;  %v2054_v21 = vrot.slane %v12607_v0, 1  ;;  %v2056_v26 = vrot.slane %v12608_v25, 1 }
 0x3c4   : > { %v2198_v3 = vrot.slane %v12606_v14, 2  ;;  %v3201_v63 = vmax.f32 %v3121_v47, %v3153_v53  ;;  %v3026_v50 = vmax.f32 %v2994_v56, %v12603_v18  ;;  %v11786_v57 = vmax.f32 %v2995_v17, %v12604_v34 }
 0x3c5   : > { %v1281_v22 = vmax.f32 %v1152_v59, %v1217_v44  ;;  %v2055_v32 = vsel %vm1987_vm0, %v2053_v4, %v2054_v21  ;;  %v11792_v15 = vsel %vm1987_vm0, %v2054_v21, %v2056_v26  ;;  %v2199_v13 = vrot.slane %v12607_v0, 2 }
 0x3c6   : > { %v2201_v7 = vrot.slane %v12608_v25, 2  ;;  %v3281_v46 = vmax.f32 %v3201_v63, %v3233_v55  ;;  %v3122_v1 = vmax.f32 %v3026_v50, %v11711_v20  ;;  %v2126_v31 = vmax.f32 %v12606_v14, %v2055_v32  ;;  %v964_v50 = vld [vmem:[#allocation2 + $0x258] sm:$0xf] }
 0x3c7   : > { %v1410_v18 = vmax.f32 %v1281_v22, %v1346_v24  ;;  %v2127_v27 = vmax.f32 %v12607_v0, %v11792_v15  ;;  %v2200_v23 = vsel %vm2132_vm1, %v2198_v3, %v2199_v13  ;;  %v2343_v33 = vrot.slane %v12606_v14, 3 }
 0x3c8   : > { %v11804_v12 = vsel %vm2132_vm1, %v2199_v13, %v2201_v7  ;;  %v3361_v39 = vmax.f32 %v3281_v46, %v3313_v8  ;;  %v3202_v20 = vmax.f32 %v3122_v1, %v11723_v51  ;;  %v2271_v45 = vmax.f32 %v2126_v31, %v2200_v23 }
 0x3c9   : > { %v1539_v43 = vmax.f32 %v1410_v18, %v1475_v38  ;;  %v2272_v16 = vmax.f32 %v2127_v27, %v11804_v12  ;;  %v2344_v40 = vrot.slane %v12607_v0, 3  ;;  %v2346_v30 = vrot.slane %v12608_v25, 3 }
 0x3ca   : > { %v2488_v19 = vrot.slane %v12606_v14, 4  ;;  %3393 = vst [vmem:[%s8117_s25 + $0x2e0] sm:$0xff] %v3361_v39  ;;  %v3282_v10 = vmax.f32 %v3202_v20, %v11739_v52  ;;  %v2489_v28 = vrot.slane %v12607_v0, 4  ;;  %v2491_v51 = vrot.slane %v12608_v25, 4  ;;  %v12609_v39 = vld [vmem:[#allocation22_spill] sm:$0xff] }
 0x3cb   : > { %v1668_v42 = vmax.f32 %v1539_v43, %v1604_v29  ;;  %v2345_v54 = vsel %vm2277_vm2, %v2343_v33, %v2344_v40  ;;  %v11820_v2 = vsel %vm2277_vm2, %v2344_v40, %v2346_v30  ;;  %v2633_v6 = vrot.slane %v12606_v14, 5  ;;  %v1092_v33 = vld [vmem:[#allocation2 + $0x278] sm:$0xf] }
 0x3cc   : > { %v2634_v11 = vrot.slane %v12607_v0, 5  ;;  %v3362_v52 = vmax.f32 %v3282_v10, %v11749_v48  ;;  %v2416_v5 = vmax.f32 %v2271_v45, %v2345_v54  ;;  %v2417_v41 = vmax.f32 %v2272_v16, %v11820_v2  ;;  %v12611_v45 = vld [vmem:[#allocation93_spill] sm:$0xff]  ;;  %v1221_v16 = vld [vmem:[#allocation2 + $0x298] sm:$0xf] }
 0x3cd   : > { %v1797_v62 = vmax.f32 %v1668_v42, %v1733_v61  ;;  %v2490_v35 = vsel %vm2422_vm3, %v2488_v19, %v2489_v28  ;;  %v11830_v37 = vsel %vm2422_vm3, %v2489_v28, %v2491_v51  ;;  %v2636_v55 = vrot.slane %v12608_v25, 5 }
 0x3ce   : > { %v2635_v53 = vsel %vm2567_vm4, %v2633_v6, %v2634_v11  ;;  %3394 = vst [vmem:[%s8117_s25 + $0x300] sm:$0xff] %v3362_v52  ;;  %v2561_v44 = vmax.f32 %v2416_v5, %v2490_v35  ;;  %v2562_v48 = vmax.f32 %v2417_v41, %v11830_v37  ;;  %v2778_v47 = vrot.slane %v12606_v14, 6  ;;  %v1350_v6 = vld [vmem:[#allocation2 + $0x2b8] sm:$0xf] }
 0x3cf   : > { %v1926_v8 = vmax.f32 %v1797_v62, %v1862_v49  ;;  %v2637_v56 = vsel %vm2567_vm4, %v2634_v11, %v2636_v55  ;;  %v2779_v17 = vrot.slane %v12607_v0, 6  ;;  %v2781_v59 = vrot.slane %v12608_v25, 6  ;;  %v1479_v55 = vld [vmem:[#allocation2 + $0x2d8] sm:$0xf] }
 0x3d0   : > { %v2923_v24 = vrot.slane %v12606_v14, 7  ;;  %v2706_v22 = vmax.f32 %v2561_v44, %v2635_v53  ;;  %v2707_v38 = vmax.f32 %v2562_v48, %v2637_v56  ;;  %v2924_v23 = vrot.slane %v12607_v0, 7 }
 0x3d1   : > { %v3074_v4 = vrot.slane %v1926_v8, 1  ;;  %v3154_v21 = vrot.slane %v1926_v8, 2  ;;  %v3234_v3 = vrot.slane %v1926_v8, 3  ;;  %v3314_v63 = vrot.slane %v1926_v8, 4 }
 0x3d2   : > { %v2780_v32 = vsel %vm2712_vm5, %v2778_v47, %v2779_v17  ;;  %v2782_v13 = vsel %vm2712_vm5, %v2779_v17, %v2781_v59  ;;  %v1028_v20 = vmax.f32 %v12609_v39, %v964_v50  ;;  %v2059_v61 = vrot.slane %v12611_v45, 1  ;;  %v1608_v59 = vld [vmem:[#allocation2 + $0x2f8] sm:$0xf] }
 0x3d3   : > { %v3075_v46 = vsel %vm1987_vm0, %v2051_v9, %v3074_v4  ;;  %v3155_v1 = vsel %vm2132_vm1, %v2196_v36, %v3154_v21  ;;  %v3235_v14 = vsel %vm2277_vm2, %v2341_v60, %v3234_v3  ;;  %v3315_v18 = vsel %vm2422_vm3, %v2486_v58, %v3314_v63  ;;  %v12610_v36 = vld [vmem:[#allocation92_spill] sm:$0xff]  ;;  %v12612_v58 = vld [vmem:[#allocation94_spill] sm:$0xff] }
 0x3d4   : > { %v3123_v31 = vmax.f32 %v11786_v57, %v3075_v46  ;;  %v2851_v29 = vmax.f32 %v2706_v22, %v2780_v32  ;;  %v2852_v27 = vmax.f32 %v2707_v38, %v2782_v13  ;;  %v2926_v9 = vrot.slane %v12608_v25, 7  ;;  %v1737_v38 = vld [vmem:[#allocation2 + $0x318] sm:$0xf] }
 0x3d5   : > { %v2058_v43 = vrot.slane %v12610_v36, 1  ;;  %v2925_v34 = vsel %vm2857_vm6, %v2923_v24, %v2924_v23  ;;  %v2061_v40 = vrot.slane %v12612_v58, 1  ;;  %v2203_v57 = vrot.slane %v12610_v36, 2 }
 0x3d6   : > { %v3203_v60 = vmax.f32 %v3123_v31, %v3155_v1  ;;  %v2927_v19 = vsel %vm2857_vm6, %v2924_v23, %v2926_v9  ;;  %v2996_v10 = vmax.f32 %v2851_v29, %v2925_v34  ;;  %v1156_v42 = vmax.f32 %v1028_v20, %v1092_v33  ;;  %v1866_v29 = vld [vmem:[#allocation2 + $0x338] sm:$0xf] }
 0x3d7   : > { %v2060_v28 = vsel %vm1987_vm0, %v2058_v43, %v2059_v61  ;;  %v2997_v54 = vmax.f32 %v2852_v27, %v2927_v19  ;;  %v11869_v11 = vsel %vm1987_vm0, %v2059_v61, %v2061_v40  ;;  %v2204_v35 = vrot.slane %v12611_v45, 2 }
 0x3d8   : > { %v3283_v49 = vmax.f32 %v3203_v60, %v3235_v14  ;;  %v2128_v52 = vmax.f32 %v12610_v36, %v2060_v28  ;;  %v3028_v62 = vmax.f32 %v2996_v10, %v12607_v0  ;;  %v1285_v5 = vmax.f32 %v1156_v42, %v1221_v16 }
 0x3d9   : > { %v2129_v41 = vmax.f32 %v12611_v45, %v11869_v11  ;;  %v11877_v8 = vmax.f32 %v2997_v54, %v12608_v25  ;;  %v2206_v44 = vrot.slane %v12612_v58, 2  ;;  %v2348_v48 = vrot.slane %v12610_v36, 3 }
 0x3da   : > { %v3363_v53 = vmax.f32 %v3283_v49, %v3315_v18  ;;  %v3124_v47 = vmax.f32 %v3028_v62, %v11792_v15  ;;  %v1414_v56 = vmax.f32 %v1285_v5, %v1350_v6  ;;  %v2205_v0 = vsel %vm2132_vm1, %v2203_v57, %v2204_v35  ;;  %v968_v6 = vld [vmem:[#allocation2 + $0x278] sm:$0xf] }
 0x3db   : > { %v2349_v17 = vrot.slane %v12611_v45, 3  ;;  %v11888_v24 = vsel %vm2132_vm1, %v2204_v35, %v2206_v44  ;;  %v2273_v4 = vmax.f32 %v2128_v52, %v2205_v0  ;;  %v2351_v21 = vrot.slane %v12612_v58, 3 }
 0x3dc   : > { %3395 = vst [vmem:[%s8117_s25 + $0x320] sm:$0xff] %v3363_v53  ;;  %v2493_v3 = vrot.slane %v12610_v36, 4  ;;  %v3204_v63 = vmax.f32 %v3124_v47, %v11804_v12  ;;  %v1543_v15 = vmax.f32 %v1414_v56, %v1479_v55  ;;  %v2274_v50 = vmax.f32 %v2129_v41, %v11888_v24 }
 0x3dd   : > { %v2350_v22 = vsel %vm2277_vm2, %v2348_v48, %v2349_v17  ;;  %v11898_v32 = vsel %vm2277_vm2, %v2349_v17, %v2351_v21  ;;  %v2494_v46 = vrot.slane %v12611_v45, 4  ;;  %v2496_v1 = vrot.slane %v12612_v58, 4  ;;  %v1096_v17 = vld [vmem:[#allocation2 + $0x298] sm:$0xf] }
 0x3de   : > { %v2418_v13 = vmax.f32 %v2273_v4, %v2350_v22  ;;  %v3284_v14 = vmax.f32 %v3204_v63, %v11820_v2  ;;  %v1672_v18 = vmax.f32 %v1543_v15, %v1608_v59  ;;  %v2419_v12 = vmax.f32 %v2274_v50, %v11898_v32  ;;  %v12613_v63 = vld [vmem:[#allocation23_spill] sm:$0xff] }
 0x3df   : > { %v2638_v31 = vrot.slane %v12610_v36, 5  ;;  %v2495_v27 = vsel %vm2422_vm3, %v2493_v3, %v2494_v46  ;;  %v11909_v23 = vsel %vm2422_vm3, %v2494_v46, %v2496_v1  ;;  %v2639_v33 = vrot.slane %v12611_v45, 5  ;;  %v12614_v50 = vld [vmem:[#allocation95_spill] sm:$0xff] }
 0x3e0   : > { %v2641_v9 = vrot.slane %v12612_v58, 5  ;;  %v3364_v2 = vmax.f32 %v3284_v14, %v11830_v37  ;;  %v1801_v39 = vmax.f32 %v1672_v18, %v1737_v38  ;;  %v2563_v20 = vmax.f32 %v2418_v13, %v2495_v27  ;;  %v12615_v38 = vld [vmem:[#allocation96_spill] sm:$0xff]  ;;  %v12616_v13 = vld [vmem:[#allocation97_spill] sm:$0xff] }
 0x3e1   : > { %v2564_v43 = vmax.f32 %v2419_v12, %v11909_v23  ;;  %v2640_v61 = vsel %vm2567_vm4, %v2638_v31, %v2639_v33  ;;  %v2783_v34 = vrot.slane %v12610_v36, 6  ;;  %v2784_v16 = vrot.slane %v12611_v45, 6  ;;  %v1354_v12 = vld [vmem:[#allocation2 + $0x2d8] sm:$0xf] }
 0x3e2   : > { %v2642_v60 = vsel %vm2567_vm4, %v2639_v33, %v2641_v9  ;;  %3396 = vst [vmem:[%s8117_s25 + $0x340] sm:$0xff] %v3364_v2  ;;  %v1930_v57 = vmax.f32 %v1801_v39, %v1866_v29  ;;  %v2708_v19 = vmax.f32 %v2563_v20, %v2640_v61  ;;  %v2786_v42 = vrot.slane %v12612_v58, 6  ;;  %v1483_v39 = vld [vmem:[#allocation2 + $0x2f8] sm:$0xf] }
 0x3e3   : > { %v2709_v10 = vmax.f32 %v2564_v43, %v2642_v60  ;;  %v2785_v37 = vsel %vm2712_vm5, %v2783_v34, %v2784_v16  ;;  %v2928_v28 = vrot.slane %v12610_v36, 7  ;;  %v2929_v49 = vrot.slane %v12611_v45, 7 }
 0x3e4   : > { %v2931_v54 = vrot.slane %v12612_v58, 7  ;;  %v3076_v52 = vrot.slane %v1930_v57, 1  ;;  %v3156_v62 = vrot.slane %v1930_v57, 2  ;;  %v3236_v5 = vrot.slane %v1930_v57, 3 }
 0x3e5   : > { %v3316_v41 = vrot.slane %v1930_v57, 4  ;;  %v2787_v35 = vsel %vm2712_vm5, %v2784_v16, %v2786_v42  ;;  %v2853_v53 = vmax.f32 %v2708_v19, %v2785_v37  ;;  %v2930_v55 = vsel %vm2857_vm6, %v2928_v28, %v2929_v49  ;;  %v1612_v19 = vld [vmem:[#allocation2 + $0x318] sm:$0xf] }
 0x3e6   : > { %v2932_v48 = vsel %vm2857_vm6, %v2929_v49, %v2931_v54  ;;  %v3077_v36 = vsel %vm1987_vm0, %v2056_v26, %v3076_v52  ;;  %v3157_v47 = vsel %vm2132_vm1, %v2201_v7, %v3156_v62  ;;  %v3237_v56 = vsel %vm2277_vm2, %v2346_v30, %v3236_v5  ;;  %v1225_v26 = vld [vmem:[#allocation2 + $0x2b8] sm:$0xf] }
 0x3e7   : > { %v3317_v0 = vsel %vm2422_vm3, %v2491_v51, %v3316_v41  ;;  %v3125_v59 = vmax.f32 %v11877_v8, %v3077_v36  ;;  %v2854_v4 = vmax.f32 %v2709_v10, %v2787_v35  ;;  %v2998_v3 = vmax.f32 %v2853_v53, %v2930_v55  ;;  %v1741_v52 = vld [vmem:[#allocation2 + $0x338] sm:$0xf] }
 0x3e8   : > { %v1032_v15 = vmax.f32 %v12613_v63, %v968_v6  ;;  %v2063_v22 = vrot.slane %v12614_v50, 1  ;;  %v2064_v7 = vrot.slane %v12615_v38, 1  ;;  %v2066_v46 = vrot.slane %v12616_v13, 1  ;;  %v1870_v36 = vld [vmem:[#allocation2 + $0x358] sm:$0xf] }
 0x3e9   : > { %v2208_v30 = vrot.slane %v12614_v50, 2  ;;  %v3205_v14 = vmax.f32 %v3125_v59, %v3157_v47  ;;  %v2999_v25 = vmax.f32 %v2854_v4, %v2932_v48  ;;  %v3030_v51 = vmax.f32 %v2998_v3, %v12611_v45 }
 0x3ea   : > { %v1160_v18 = vmax.f32 %v1032_v15, %v1096_v17  ;;  %v2065_v8 = vsel %vm1987_vm0, %v2063_v22, %v2064_v7  ;;  %v11951_v31 = vsel %vm1987_vm0, %v2064_v7, %v2066_v46  ;;  %v2209_v29 = vrot.slane %v12615_v38, 2 }
 0x3eb   : > { %v2211_v27 = vrot.slane %v12616_v13, 2  ;;  %v3285_v33 = vmax.f32 %v3205_v14, %v3237_v56  ;;  %v3126_v9 = vmax.f32 %v3030_v51, %v11869_v11  ;;  %v11957_v45 = vmax.f32 %v2999_v25, %v12612_v58 }
 0x3ec   : > { %v1289_v2 = vmax.f32 %v1160_v18, %v1225_v26  ;;  %v2130_v20 = vmax.f32 %v12614_v50, %v2065_v8  ;;  %v2131_v43 = vmax.f32 %v12615_v38, %v11951_v31  ;;  %v2210_v61 = vsel %vm2132_vm1, %v2208_v30, %v2209_v29 }
 0x3ed   : > { %v11966_v60 = vsel %vm2132_vm1, %v2209_v29, %v2211_v27  ;;  %v3365_v34 = vmax.f32 %v3285_v33, %v3317_v0  ;;  %v3206_v11 = vmax.f32 %v3126_v9, %v11888_v24  ;;  %v2353_v57 = vrot.slane %v12614_v50, 3  ;;  %v972_v29 = vld [vmem:[#allocation2 + $0x298] sm:$0xf] }
 0x3ee   : > { %v1418_v16 = vmax.f32 %v1289_v2, %v1354_v12  ;;  %v2275_v10 = vmax.f32 %v2130_v20, %v2210_v61  ;;  %v2276_v42 = vmax.f32 %v2131_v43, %v11966_v60  ;;  %v2354_v37 = vrot.slane %v12615_v38, 3 }
 0x3ef   : > { %v2356_v28 = vrot.slane %v12616_v13, 3  ;;  %3397 = vst [vmem:[%s8117_s25 + $0x360] sm:$0xff] %v3365_v34  ;;  %v3286_v49 = vmax.f32 %v3206_v11, %v11898_v32  ;;  %v2498_v6 = vrot.slane %v12614_v50, 4  ;;  %v2499_v24 = vrot.slane %v12615_v38, 4  ;;  %v1100_v34 = vld [vmem:[#allocation2 + $0x2b8] sm:$0xf] }
 0x3f0   : > { %v1547_v54 = vmax.f32 %v1418_v16, %v1483_v39  ;;  %v2355_v62 = vsel %vm2277_vm2, %v2353_v57, %v2354_v37  ;;  %v2501_v41 = vrot.slane %v12616_v13, 4  ;;  %v2643_v35 = vrot.slane %v12614_v50, 5 }
 0x3f1   : > { %v11981_v5 = vsel %vm2277_vm2, %v2354_v37, %v2356_v28  ;;  %v3366_v32 = vmax.f32 %v3286_v49, %v11909_v23  ;;  %v2420_v55 = vmax.f32 %v2275_v10, %v2355_v62  ;;  %v2500_v47 = vsel %vm2422_vm3, %v2498_v6, %v2499_v24  ;;  %v1229_v49 = vld [vmem:[#allocation2 + $0x2d8] sm:$0xf] }
 0x3f2   : > { %v1676_v53 = vmax.f32 %v1547_v54, %v1612_v19  ;;  %v2421_v48 = vmax.f32 %v2276_v42, %v11981_v5  ;;  %v2502_v56 = vsel %vm2422_vm3, %v2499_v24, %v2501_v41  ;;  %v2644_v0 = vrot.slane %v12615_v38, 5  ;;  %v12617_v19 = vld [vmem:[#allocation24_spill] sm:$0xff] }
 0x3f3   : > { %v2646_v17 = vrot.slane %v12616_v13, 5  ;;  %3398 = vst [vmem:[%s8117_s25 + $0x380] sm:$0xff] %v3366_v32  ;;  %v2565_v4 = vmax.f32 %v2420_v55, %v2500_v47  ;;  %v2788_v23 = vrot.slane %v12614_v50, 6  ;;  %v2789_v26 = vrot.slane %v12615_v38, 6 }
 0x3f4   : > { %v1805_v59 = vmax.f32 %v1676_v53, %v1741_v52  ;;  %v2566_v3 = vmax.f32 %v2421_v48, %v2502_v56  ;;  %v2645_v63 = vsel %vm2567_vm4, %v2643_v35, %v2644_v0  ;;  %v2791_v22 = vrot.slane %v12616_v13, 6  ;;  %v1358_v52 = vld [vmem:[#allocation2 + $0x2f8] sm:$0xf] }
 0x3f5   : > { %v2647_v15 = vsel %vm2567_vm4, %v2644_v0, %v2646_v17  ;;  %v2710_v30 = vmax.f32 %v2565_v4, %v2645_v63  ;;  %v2933_v25 = vrot.slane %v12614_v50, 7  ;;  %v2790_v51 = vsel %vm2712_vm5, %v2788_v23, %v2789_v26  ;;  %v1487_v53 = vld [vmem:[#allocation2 + $0x318] sm:$0xf] }
 0x3f6   : > { %v1934_v7 = vmax.f32 %v1805_v59, %v1870_v36  ;;  %v2711_v14 = vmax.f32 %v2566_v3, %v2647_v15  ;;  %v2792_v18 = vsel %vm2712_vm5, %v2789_v26, %v2791_v22  ;;  %v2934_v12 = vrot.slane %v12615_v38, 7  ;;  %v1616_v36 = vld [vmem:[#allocation2 + $0x338] sm:$0xf] }
 0x3f7   : > { %v2936_v8 = vrot.slane %v12616_v13, 7  ;;  %v2855_v2 = vmax.f32 %v2710_v30, %v2790_v51  ;;  %v1036_v10 = vmax.f32 %v12617_v19, %v972_v29  ;;  %v1745_v0 = vld [vmem:[#allocation2 + $0x358] sm:$0xf] }
 0x3f8   : > { %v3078_v33 = vrot.slane %v1934_v7, 1  ;;  %v3158_v9 = vrot.slane %v1934_v7, 2  ;;  %v2856_v39 = vmax.f32 %v2711_v14, %v2792_v18  ;;  %v2935_v20 = vsel %vm2857_vm6, %v2933_v25, %v2934_v12  ;;  %v1874_v59 = vld [vmem:[#allocation2 + $0x378] sm:$0xf] }
 0x3f9   : > { %v2937_v43 = vsel %vm2857_vm6, %v2934_v12, %v2936_v8  ;;  %v3238_v61 = vrot.slane %v1934_v7, 3  ;;  %v3000_v16 = vmax.f32 %v2855_v2, %v2935_v20  ;;  %v3318_v37 = vrot.slane %v1934_v7, 4 }
 0x3fa   : > { %v3079_v50 = vsel %vm1987_vm0, %v2061_v40, %v3078_v33  ;;  %v3001_v57 = vmax.f32 %v2856_v39, %v2937_v43  ;;  %v3159_v42 = vsel %vm2132_vm1, %v2206_v44, %v3158_v9  ;;  %v1164_v24 = vmax.f32 %v1036_v10, %v1100_v34 }
 0x3fb   : > { %v3127_v11 = vmax.f32 %v11957_v45, %v3079_v50  ;;  %v3032_v6 = vmax.f32 %v3000_v16, %v12615_v38  ;;  %v3239_v45 = vsel %vm2277_vm2, %v2351_v21, %v3238_v61  ;;  %v3319_v44 = vsel %vm2422_vm3, %v2496_v1, %v3318_v37 }
 0x3fc   : > { %v3033_v40 = vmax.f32 %v3001_v57, %v12616_v13  ;;  %v1293_v32 = vmax.f32 %v1164_v24, %v1229_v49 }
 0x3fd   : > { %v3207_v54 = vmax.f32 %v3127_v11, %v3159_v42  ;;  %v3128_v35 = vmax.f32 %v3032_v6, %v11951_v31 }
 0x3fe   : > { %v1422_v48 = vmax.f32 %v1293_v32, %v1358_v52 }
 0x3ff   : > { %v3287_v62 = vmax.f32 %v3207_v54, %v3239_v45  ;;  %v3208_v38 = vmax.f32 %v3128_v35, %v11966_v60 }
 0x400   : > { %v1551_v21 = vmax.f32 %v1422_v48, %v1487_v53 }
 0x401   : > { %v3367_v55 = vmax.f32 %v3287_v62, %v3319_v44  ;;  %v3288_v47 = vmax.f32 %v3208_v38, %v11981_v5 }
 0x402   : > { %v1680_v31 = vmax.f32 %v1551_v21, %v1616_v36 }
 0x403   : > { %3399 = vst [vmem:[%s8117_s25 + $0x3a0] sm:$0xff] %v3367_v55  ;;  %v3368_v17 = vmax.f32 %v3288_v47, %v2502_v56 }
 0x404   : > { %v1809_v58 = vmax.f32 %v1680_v31, %v1745_v0 }
 0x405   : > { %3400 = vst [vmem:[%s8117_s25 + $0x3c0] sm:$0xff] %v3368_v17 }
 0x406   : > { %v1938_v4 = vmax.f32 %v1809_v58, %v1874_v59 }
 0x408   : > { %v3080_v1 = vrot.slane %v1938_v4, 1  ;;  %v3160_v3 = vrot.slane %v1938_v4, 2  ;;  %v3240_v23 = vrot.slane %v1938_v4, 3  ;;  %v3320_v63 = vrot.slane %v1938_v4, 4 }
 0x40a   : > { %v3081_v60 = vsel %vm1987_vm0, %v2066_v46, %v3080_v1  ;;  %v3161_v56 = vsel %vm2132_vm1, %v2211_v27, %v3160_v3  ;;  %v3241_v26 = vsel %vm2277_vm2, %v2356_v28, %v3240_v23  ;;  %v3321_v46 = vsel %vm2422_vm3, %v2501_v41, %v3320_v63 }
 0x40b   : > { %v3129_v5 = vmax.f32 %v3033_v40, %v3081_v60 }
 0x40d   : > { %v3209_v15 = vmax.f32 %v3129_v5, %v3161_v56 }
 0x40f   : > { %v3289_v22 = vmax.f32 %v3209_v15, %v3241_v26 }
 0x411   : > { %v3369_v27 = vmax.f32 %v3289_v22, %v3321_v46 }
 0x413   : > { %3401 = vst [vmem:[%s8117_s25 + $0x3e0] sm:$0xff] %v3369_v27 }
 0x414   : > { %6659 = shalt.err (!%p6656_p2)
}
 0x415   : > { %s6660_s14 = scalar_lea.hbm %s12044_s3, 16384  ;;  %s6664_s21 = scalar_lea.hbm %s12092_s1, 32768 }
 0x416   : > { %p6661_p4 = scmp.ne.s32.totalorder %s12044_s3, %s6660_s14  ;;  %p6665_p9 = scmp.lt.u32.totalorder %s12044_s3, %s12092_s1 }
 0x417   : > { %p6666_p1 = scmp.lt.u32.totalorder %s6664_s21, %s6660_s14  ;;  %p6668_p6 = scmp.lt.u32.totalorder %s6660_s14, %s12044_s3 }
 0x418   : > { %p6662_p5 = pnand %p6661_p4, %p12618_p11 }
 0x419   : > { %p6667_p3 = por %p6666_p1, %p6665_p9 }
 0x41a   : > { %p6663_p7 = pneg %p6662_p5 }
 0x41b   : > { %p6669_p12 = por %p6668_p6, %p6667_p3 }
 0x41d   : > { %p6670_p13 = pnand %p6669_p12, %p6663_p7 }
 0x41f   : > { %6673 = shalt.err (!%p6670_p13)
}
 0x420   : > { %s6719_s26 = smov 512   ;;  %s6720_s30 = smov 32  }
 0x421   : > { %6563 = dma.vmem_to_hbm [thread:$0]  (%p12618_p11), %s12046_s28, 16384, %s12044_s3, %s6459_s10, %s6719_s26, %s6719_s26, %s6720_s30  }
 0x422 PF: > { %s6487_s17 = sand.u32 1, %s6700_s6   ;;  %p12619_p8 = scmp.ne.s32.totalorder %s12231_s19, 0 }
 0x423   : > { %p12620_p10 = scmp.ge.s32.totalorder %s6712_s9, 2  ;;  %s6488_s25 = scalar_lea.sflag [#allocation5], %s6487_s17 }
 0x425   : > { %p6570_p0 = pnand %p12620_p10, %p12619_p8 }
 0x427   : > { %6695 = dma.done.wait (!%p6570_p0), %s6488_s25, 16384  }
 0x428   : > { %6697 = vsyncadd (!%p6570_p0), %s6488_s25, 4294950912  ;;  %p14_p2 = scmp.ge.s32.totalorder %s6756_s12, 4   ;;  %s12621_s6 = smov %s6704_s7 }
 0x429   : > { %s12622_s7 = smov %s6708_s8  ;;  %s12623_s8 = smov %s6768_s15 }
 0x42a   : > { %s12624_s9 = smov %s6756_s12  ;;  %16 = sbr.rel (!%p14_p2) target bundleno = 5 (0x5), region = 81 }
 0x431   :  { %6493 = vsyncpa [#allocation4], 1 }
 0x432   :  { %6495 = vsyncpa [#allocation4 + $0x1], 1 }
 0x433   :  { %6496 = vsyncpa [#allocation5], 1 }
 0x434   :  { %6498 = vsyncpa [#allocation5 + $0x1], 1 }

</bundles_post_ra>
